<compile_context>
chip_gen: v6e
topology: v6e:2x2x1
jax: 0.10.0
libtpu: 0.0.40
codegen_flags: <defaults>
</compile_context>

<pallas_src>
import functools

import jax
import jax.numpy as jnp
from jax.experimental import pallas as pl
from jax.experimental.pallas import tpu as pltpu


_LN_EPS = 1e-5
_VMEM = pl.BlockSpec(memory_space=pltpu.MemorySpace.VMEM)


def _gelu(x):
    return jax.nn.gelu(x, approximate=True)


def _layernorm(x, gamma, beta, eps):
    mean = jnp.mean(x, axis=-1, keepdims=True)
    var = jnp.mean(jnp.square(x - mean), axis=-1, keepdims=True)
    return (x - mean) * jax.lax.rsqrt(var + eps) * gamma + beta


# ----------------------------------------------------------------------------
# Feature encoder convs (conv-as-matmul, batch-gridded, bf16 MXU / f32 accumulate)
# ----------------------------------------------------------------------------
def _conv_gn_gelu_kernel(p_ref, w_ref, g_ref, b_ref, o_ref, *, eps):
    # conv0: matmul -> GroupNorm(num_groups=C) over time -> GELU   (one batch element)
    y = jnp.dot(p_ref[0], w_ref[...], preferred_element_type=jnp.float32)   # (T, C)
    mean = jnp.mean(y, axis=0, keepdims=True)
    var = jnp.mean(jnp.square(y - mean), axis=0, keepdims=True)
    y = (y - mean) * jax.lax.rsqrt(var + eps) * g_ref[...] + b_ref[...]
    o_ref[0] = _gelu(y).astype(o_ref.dtype)


def _conv_gelu_kernel(p_ref, w_ref, o_ref):
    # conv1/conv2: matmul -> GELU (Conv1d has no bias in the wav2vec2 feature encoder)
    y = jnp.dot(p_ref[0], w_ref[...], preferred_element_type=jnp.float32)
    o_ref[0] = _gelu(y).astype(o_ref.dtype)


def conv_gelu(patches, w, gn=None, eps=_LN_EPS):
    B, T, KC = patches.shape
    C = w.shape[1]
    if gn is None:
        kernel = _conv_gelu_kernel
        extra_in, extra_specs = (), ()
    else:
        kernel = functools.partial(_conv_gn_gelu_kernel, eps=eps)
        extra_in = gn
        extra_specs = (pl.BlockSpec((1, C), lambda b: (0, 0)),) * 2
    return pl.pallas_call(
        kernel,
        out_shape=jax.ShapeDtypeStruct((B, T, C), jnp.bfloat16),
        grid=(B,),
        in_specs=[
            pl.BlockSpec((1, T, KC), lambda b: (b, 0, 0)),
            pl.BlockSpec((KC, C), lambda b: (0, 0)),
            *extra_specs,
        ],
        out_specs=pl.BlockSpec((1, T, C), lambda b: (b, 0, 0)),
        compiler_params=pltpu.CompilerParams(dimension_semantics=("parallel",)),
    )(patches, w, *extra_in)


# ----------------------------------------------------------------------------
# Feature projection + grouped pos-conv + GELU + residual + encoder LayerNorm (fused)
# ----------------------------------------------------------------------------
def _fp_posconv_ln_kernel(x_ref, fpg_ref, fpb_ref, fpw_ref, fpbias_ref,
                          posw_ref, posb_ref, encg_ref, encb_ref, o_ref,
                          *, eps, t_valid, groups, pos_k):
    x = x_ref[0].astype(jnp.float32)                                   # (T_pad, C)
    T = x.shape[0]

    # feature projection: LayerNorm -> Linear
    y = _layernorm(x, fpg_ref[...], fpb_ref[...], eps)
    proj = jnp.dot(y.astype(jnp.bfloat16), fpw_ref[...],
                   preferred_element_type=jnp.float32) + fpbias_ref[...]   # (T_pad, H)
    H = proj.shape[1]
    cg = H // groups

    # zero the padded rows so the pos-conv sees the same zeros HF's SamePad would
    row = jax.lax.broadcasted_iota(jnp.int32, (T, 1), 0)
    proj = jnp.where(row < t_valid, proj, 0.0)

    # grouped positional conv as per-group matmuls (no block-diagonal zeros)
    pad_l = pos_k // 2
    pad_r = pos_k - 1 - pad_l                 # even K: HF SamePadLayer drops the last column
    proj_bf = proj.astype(jnp.bfloat16)
    proj_pad = jnp.concatenate(
        [jnp.zeros((pad_l, H), jnp.bfloat16), proj_bf, jnp.zeros((pad_r, H), jnp.bfloat16)],
        axis=0)                                                            # (T_pad+K-1, H)
    outs = []
    for g in range(groups):
        pg = proj_pad[:, g * cg:(g + 1) * cg]                              # (T_pad+K-1, cg)
        patch = jnp.concatenate([pg[k:k + T] for k in range(pos_k)], axis=-1)   # (T_pad, K*cg)
        outs.append(jnp.dot(patch, posw_ref[g], preferred_element_type=jnp.float32))
    conv = jnp.concatenate(outs, axis=-1) + posb_ref[...]                  # (T_pad, H)

    y = proj + _gelu(conv)
    o_ref[0] = _layernorm(y, encg_ref[...], encb_ref[...], eps).astype(o_ref.dtype)


def fp_posconv_ln(x, pp, *, t_valid, groups, pos_k, eps=_LN_EPS):
    B, T, C = x.shape
    H = pp["fp_w"].shape[1]
    cg = H // groups
    kernel = functools.partial(_fp_posconv_ln_kernel, eps=eps, t_valid=t_valid,
                               groups=groups, pos_k=pos_k)

    def fixed(shape):
        return pl.BlockSpec(shape, lambda b, _s=shape: (0,) * len(_s))

    return pl.pallas_call(
        kernel,
        out_shape=jax.ShapeDtypeStruct((B, T, H), jnp.bfloat16),
        grid=(B,),
        in_specs=[
            pl.BlockSpec((1, T, C), lambda b: (b, 0, 0)),
            fixed((1, C)), fixed((1, C)), fixed((C, H)), fixed((1, H)),
            fixed((groups, pos_k * cg, cg)), fixed((1, H)),
            fixed((1, H)), fixed((1, H)),
        ],
        out_specs=pl.BlockSpec((1, T, H), lambda b: (b, 0, 0)),
        compiler_params=pltpu.CompilerParams(dimension_semantics=("parallel",)),
    )(x, pp["fp_ln_g"], pp["fp_ln_b"], pp["fp_w"], pp["fp_b"],
      pp["pos_w"], pp["pos_b"], pp["enc_ln_g"], pp["enc_ln_b"])


# ----------------------------------------------------------------------------
# Whole transformer stack in ONE pallas_call: grid=(B, num_layers),
# activations carried across layers in a VMEM f32 scratch.
# ----------------------------------------------------------------------------
def _encoder_stack_kernel(x_ref, wqkv_ref, bqkv_ref, wo_ref, bo_ref,
                          ln1g_ref, ln1b_ref, wff1_ref, bff1_ref,
                          wff2_ref, bff2_ref, ln2g_ref, ln2b_ref,
                          o_ref, carry_ref, *, num_heads, eps, t_valid):
    l = pl.program_id(1)

    @pl.when(l == 0)
    def _():
        carry_ref[...] = x_ref[0].astype(jnp.float32)

    x = carry_ref[...]                                  # (T, H) f32
    T, H = x.shape
    dh = H // num_heads

    # fused QKV projection; 1/sqrt(dh) is pre-folded into the Q weights/bias.
    qkv = (jnp.dot(x.astype(jnp.bfloat16), wqkv_ref[0],
                   preferred_element_type=jnp.float32) + bqkv_ref[0]).astype(jnp.bfloat16)

    # mask padded key positions (T padded up to a multiple of 8)
    key_valid = jax.lax.broadcasted_iota(jnp.int32, (1, T), 1) < t_valid

    # Per-head attention with the output projection folded into the head loop
    # (concat(o_h) @ Wo == sum_h o_h @ Wo[h*dh:(h+1)*dh, :]).  At num_heads=4 a batched
    # dot_general would lower to the same per-head MXU passes plus an extra transpose,
    # so the unrolled loop over bf16 lane slices is kept.
    attn = jnp.zeros((T, H), jnp.float32)
    for h in range(num_heads):
        lo = h * dh
        qh = qkv[:, lo:lo + dh]
        kh = qkv[:, H + lo:H + lo + dh]
        vh = qkv[:, 2 * H + lo:2 * H + lo + dh]
        s = jax.lax.dot_general(qh, kh, (((1,), (1,)), ((), ())),
                                preferred_element_type=jnp.float32)        # (T, T)
        s = jnp.where(key_valid, s, -1e30)
        m = jnp.max(s, axis=-1, keepdims=True)
        p = jnp.exp(s - m)
        p = p * pl.reciprocal(jnp.sum(p, axis=-1, keepdims=True), approx=True)
        oh = jnp.dot(p.astype(jnp.bfloat16), vh, preferred_element_type=jnp.float32)
        attn = attn + jnp.dot(oh.astype(jnp.bfloat16), wo_ref[0, lo:lo + dh, :],
                              preferred_element_type=jnp.float32)
    attn = attn + bo_ref[0]

    # residual + LN1 (post-LN, wav2vec2-base)
    x = _layernorm(x + attn, ln1g_ref[0], ln1b_ref[0], eps)

    # feed-forward (fused GELU), residual + LN2
    h1 = _gelu(jnp.dot(x.astype(jnp.bfloat16), wff1_ref[0],
                       preferred_element_type=jnp.float32) + bff1_ref[0])
    h2 = jnp.dot(h1.astype(jnp.bfloat16), wff2_ref[0],
                 preferred_element_type=jnp.float32) + bff2_ref[0]
    x = _layernorm(x + h2, ln2g_ref[0], ln2b_ref[0], eps)

    carry_ref[...] = x

    @pl.when(l == pl.num_programs(1) - 1)
    def _():
        o_ref[0] = x.astype(o_ref.dtype)


def encoder_stack(x, sp, *, num_heads, t_valid, eps=_LN_EPS):
    B, T, H = x.shape
    L = sp["wqkv"].shape[0]
    kernel = functools.partial(_encoder_stack_kernel, num_heads=num_heads,
                               eps=eps, t_valid=t_valid)

    def wspec(arr):
        nrest = arr.ndim - 1
        return pl.BlockSpec((1,) + arr.shape[1:],
                            lambda b, l, _n=nrest: (l,) + (0,) * _n)

    return pl.pallas_call(
        kernel,
        out_shape=jax.ShapeDtypeStruct((B, T, H), jnp.bfloat16),
        grid=(B, L),
        in_specs=[
            pl.BlockSpec((1, T, H), lambda b, l: (b, 0, 0)),
            wspec(sp["wqkv"]), wspec(sp["bqkv"]),
            wspec(sp["wo"]), wspec(sp["bo"]),
            wspec(sp["ln1_g"]), wspec(sp["ln1_b"]),
            wspec(sp["wff1"]), wspec(sp["bff1"]),
            wspec(sp["wff2"]), wspec(sp["bff2"]),
            wspec(sp["ln2_g"]), wspec(sp["ln2_b"]),
        ],
        out_specs=pl.BlockSpec((1, T, H), lambda b, l: (b, 0, 0)),
        scratch_shapes=[pltpu.VMEM((T, H), jnp.float32)],
        compiler_params=pltpu.CompilerParams(
            dimension_semantics=("parallel", "arbitrary")),
    )(x, sp["wqkv"], sp["bqkv"], sp["wo"], sp["bo"],
      sp["ln1_g"], sp["ln1_b"], sp["wff1"], sp["bff1"],
      sp["wff2"], sp["bff2"], sp["ln2_g"], sp["ln2_b"])


# ----------------------------------------------------------------------------
# Head: masked mean over valid time steps -> Linear(hidden, num_classes)
# ----------------------------------------------------------------------------
def _mean_fc_kernel(x_ref, w_ref, b_ref, o_ref, *, t_valid):
    x = x_ref[...].astype(jnp.float32)                            # (B, T_pad, H)
    pooled = jnp.sum(x[:, :t_valid, :], axis=1) * (1.0 / t_valid)
    out = jnp.dot(pooled.astype(jnp.bfloat16), w_ref[...],
                  preferred_element_type=jnp.float32) + b_ref[...]
    o_ref[...] = out


def mean_fc(x, w, b, *, t_valid):
    B = x.shape[0]
    N = w.shape[1]
    kernel = functools.partial(_mean_fc_kernel, t_valid=t_valid)
    return pl.pallas_call(
        kernel,
        out_shape=jax.ShapeDtypeStruct((B, N), jnp.float32),
        in_specs=[_VMEM, _VMEM, _VMEM],
        out_specs=_VMEM,
    )(x, w, b)


# ----------------------------------------------------------------------------
# Glue: im2col via strided slices (no gather) + one-time weight packing
# ----------------------------------------------------------------------------
def _conv_patches(x_btc, K, stride):
    """(B,T,Cin) -> (B,T_out,K*Cin), k-major / channel-minor, via XLA strided slices."""
    B, T, Cin = x_btc.shape
    T_out = (T - K) // stride + 1
    cols = [jax.lax.slice(x_btc, (0, k, 0),
                          (B, k + (T_out - 1) * stride + 1, Cin),
                          (1, stride, 1)) for k in range(K)]
    return jnp.concatenate(cols, axis=-1)


def prepare_params(params, cfg):
    """One-time weight packing, hoisted out of the jitted forward."""
    H = cfg["hidden"]
    nh = cfg["num_heads"]
    G = cfg["pos_groups"]
    K = cfg["pos_kernel"]
    cg = H // G
    F = cfg["ffn"]

    def conv_w(w):  # torch (Cout, Cin, K) -> (K*Cin, Cout) bf16 matching _conv_patches layout
        Cout, Cin, Kc = w.shape
        return jnp.transpose(w, (2, 1, 0)).reshape(Kc * Cin, Cout).astype(jnp.bfloat16)

    pp = dict(
        conv_w=[conv_w(w) for w in params["conv_w"]],
        gn_g=params["gn_g"].reshape(1, -1).astype(jnp.float32),
        gn_b=params["gn_b"].reshape(1, -1).astype(jnp.float32),
        fp_ln_g=params["fp_ln_g"].reshape(1, -1).astype(jnp.float32),
        fp_ln_b=params["fp_ln_b"].reshape(1, -1).astype(jnp.float32),
        fp_w=params["fp_w"].astype(jnp.bfloat16),
        fp_b=params["fp_b"].reshape(1, H).astype(jnp.float32),
        pos_b=params["pos_b"].reshape(1, H).astype(jnp.float32),
        enc_ln_g=params["enc_ln_g"].reshape(1, H).astype(jnp.float32),
        enc_ln_b=params["enc_ln_b"].reshape(1, H).astype(jnp.float32),
        fc_w=params["fc_w"].astype(jnp.bfloat16),
        fc_b=params["fc_b"].reshape(1, -1).astype(jnp.float32),
    )

    # grouped pos-conv: per-group (K*cg, cg) weights stacked (no block-diagonal zeros)
    pw = []
    for g in range(G):
        wg = jnp.transpose(params["pos_w"][g * cg:(g + 1) * cg], (2, 1, 0))  # (K, cg_in, cg_out)
        pw.append(wg.reshape(K * cg, cg))
    pp["pos_w"] = jnp.stack(pw, axis=0).astype(jnp.bfloat16)

    # transformer layers: fused QKV (1/sqrt(dh) folded into Q), stacked along a layer axis
    scale = (H // nh) ** -0.5

    def stack(f):
        return jnp.stack([f(lp) for lp in params["layers"]], axis=0)

    pp["stack"] = dict(
        wqkv=stack(lambda lp: jnp.concatenate(
            [lp["wq"] * scale, lp["wk"], lp["wv"]], axis=1)).astype(jnp.bfloat16),
        bqkv=stack(lambda lp: jnp.concatenate(
            [lp["bq"] * scale, lp["bk"], lp["bv"]]).reshape(1, 3 * H)).astype(jnp.float32),
        wo=stack(lambda lp: lp["wo"]).astype(jnp.bfloat16),
        bo=stack(lambda lp: lp["bo"].reshape(1, H)).astype(jnp.float32),
        ln1_g=stack(lambda lp: lp["ln1_g"].reshape(1, H)).astype(jnp.float32),
        ln1_b=stack(lambda lp: lp["ln1_b"].reshape(1, H)).astype(jnp.float32),
        wff1=stack(lambda lp: lp["w_ff1"]).astype(jnp.bfloat16),
        bff1=stack(lambda lp: lp["b_ff1"].reshape(1, F)).astype(jnp.float32),
        wff2=stack(lambda lp: lp["w_ff2"]).astype(jnp.bfloat16),
        bff2=stack(lambda lp: lp["b_ff2"].reshape(1, H)).astype(jnp.float32),
        ln2_g=stack(lambda lp: lp["ln2_g"].reshape(1, H)).astype(jnp.float32),
        ln2_b=stack(lambda lp: lp["ln2_b"].reshape(1, H)).astype(jnp.float32),
    )
    return pp


def wav2vec2_speech_model(input_values, pp, cfg):
    eps = cfg["ln_eps"]
    x = input_values[:, :, None].astype(jnp.bfloat16)              # (B, L, 1) channels-last

    # feature encoder: [Conv1d(no bias) -> (GroupNorm on layer 0) -> GELU] x 3
    for i, (w, k, s) in enumerate(zip(pp["conv_w"], cfg["conv_kernel"], cfg["conv_stride"])):
        patches = _conv_patches(x, k, s)
        gn = (pp["gn_g"], pp["gn_b"]) if i == 0 else None
        x = conv_gelu(patches, w, gn=gn, eps=eps)
    B, T, C = x.shape

    # pad T to a multiple of 8; padded rows are masked downstream so valid rows are exact
    t_valid = T
    t_pad = ((T + 7) // 8) * 8
    if t_pad != T:
        x = jnp.pad(x, ((0, 0), (0, t_pad - T), (0, 0)))

    # feature projection + grouped pos-conv + GELU + residual + encoder LayerNorm (fused)
    x = fp_posconv_ln(x, pp, t_valid=t_valid, groups=cfg["pos_groups"],
                      pos_k=cfg["pos_kernel"], eps=eps)

    # whole transformer stack in one gridded pallas_call
    x = encoder_stack(x, pp["stack"], num_heads=cfg["num_heads"],
                      t_valid=t_valid, eps=eps)
    # x == last_hidden_state (padded to t_pad), bf16

    # head: mean over valid time steps -> Linear(hidden, num_classes)
    return mean_fc(x, pp["fc_w"], pp["fc_b"], t_valid=t_valid)


# ----------------------------------------------------------------------------
# Deterministic synthetic parameters (scaled-down, lane-dense wav2vec2-base-like config)
# ----------------------------------------------------------------------------
CFG = dict(
    conv_dim=(128, 128, 128),
    conv_kernel=(10, 3, 3),
    conv_stride=(5, 2, 2),
    hidden=128,
    num_heads=4,
    ffn=256,
    num_layers=2,
    pos_kernel=8,
    pos_groups=4,
    num_classes=5,
    ln_eps=1e-5,
)


def init_params(key, cfg):
    keys = iter(jax.random.split(key, 256))

    def nrm(shape, scale=0.05):
        return (scale * jax.random.normal(next(keys), shape)).astype(jnp.float32)

    H = cfg["hidden"]
    params = {}
    conv_w, cin = [], 1
    for cout, k in zip(cfg["conv_dim"], cfg["conv_kernel"]):
        conv_w.append(nrm((cout, cin, k)))                    # torch Conv1d layout (Cout, Cin, K)
        cin = cout
    params["conv_w"] = conv_w
    c0, clast = cfg["conv_dim"][0], cfg["conv_dim"][-1]
    params["gn_g"] = jnp.ones((c0,), jnp.float32)
    params["gn_b"] = jnp.zeros((c0,), jnp.float32)
    params["fp_ln_g"] = jnp.ones((clast,), jnp.float32)
    params["fp_ln_b"] = jnp.zeros((clast,), jnp.float32)
    params["fp_w"] = nrm((clast, H))
    params["fp_b"] = nrm((H,))
    params["pos_w"] = nrm((H, H // cfg["pos_groups"], cfg["pos_kernel"]))   # weight_norm absorbed
    params["pos_b"] = nrm((H,))
    params["enc_ln_g"] = jnp.ones((H,), jnp.float32)
    params["enc_ln_b"] = jnp.zeros((H,), jnp.float32)
    layers = []
    for _ in range(cfg["num_layers"]):
        layers.append(dict(
            wq=nrm((H, H)), bq=nrm((H,)),
            wk=nrm((H, H)), bk=nrm((H,)),
            wv=nrm((H, H)), bv=nrm((H,)),
            wo=nrm((H, H)), bo=nrm((H,)),
            ln1_g=jnp.ones((H,), jnp.float32), ln1_b=jnp.zeros((H,), jnp.float32),
            w_ff1=nrm((H, cfg["ffn"])), b_ff1=nrm((cfg["ffn"],)),
            w_ff2=nrm((cfg["ffn"], H)), b_ff2=nrm((H,)),
            ln2_g=jnp.ones((H,), jnp.float32), ln2_b=jnp.zeros((H,), jnp.float32),
        ))
    params["layers"] = layers
    params["fc_w"] = nrm((H, cfg["num_classes"]))
    params["fc_b"] = nrm((cfg["num_classes"],))
    return params


if __name__ == "__main__":
    key = jax.random.PRNGKey(0)
    pkey, xkey = jax.random.split(key)
    params = init_params(pkey, CFG)
    packed = prepare_params(params, CFG)          # one-time weight packing (outside the forward)
    input_values = jax.random.normal(xkey, (2, 800), dtype=jnp.float32)   # (batch, raw audio)

    fwd = jax.jit(functools.partial(wav2vec2_speech_model, cfg=CFG))
    out = fwd(input_values, packed)
    out = jax.block_until_ready(out)
    assert out.shape == (2, CFG["num_classes"]) and out.dtype == jnp.float32
    print("KERNEL_OK")
</pallas_src>

<mosaic_0001>
module attributes {stable_mosaic.version = 11 : i64} {
  func.func @_conv_gn_gelu_kernel(%arg0: i32, %arg1: memref<1x159x10xbf16, #tpu.memory_space<vmem>>, %arg2: memref<10x128xbf16, #tpu.memory_space<vmem>>, %arg3: memref<1x128xf32, #tpu.memory_space<vmem>>, %arg4: memref<1x128xf32, #tpu.memory_space<vmem>>, %arg5: memref<1x159x128xbf16, #tpu.memory_space<vmem>>) attributes {dimension_semantics = [#tpu.dimension_semantics<parallel>], iteration_bounds = array<i64: 2>, scalar_prefetch = 0 : i64, scratch_operands = 0 : i64, tpu.core_type = #tpu.core_type<tc>, window_params = [{transform_indices = @transform_0, window_bounds = array<i64: 1, 159, 10>}, {pipeline_mode = #tpu.pipeline_mode<synchronous>, transform_indices = @transform_1, window_bounds = array<i64: 10, 128>}, {pipeline_mode = #tpu.pipeline_mode<synchronous>, transform_indices = @transform_2, window_bounds = array<i64: 1, 128>}, {pipeline_mode = #tpu.pipeline_mode<synchronous>, transform_indices = @transform_3, window_bounds = array<i64: 1, 128>}, {transform_indices = @transform_4, window_bounds = array<i64: 1, 159, 128>}]} {
    %c0 = arith.constant 0 : index
    %c0_0 = arith.constant 0 : index
    %c0_1 = arith.constant 0 : index
    %0 = vector.load %arg1[%c0, %c0_0, %c0_1] : memref<1x159x10xbf16, #tpu.memory_space<vmem>>, vector<1x159x10xbf16>
    %1 = vector.shape_cast %0 : vector<1x159x10xbf16> to vector<159x10xbf16>
    %c0_2 = arith.constant 0 : index
    %c0_3 = arith.constant 0 : index
    %2 = vector.load %arg2[%c0_2, %c0_3] : memref<10x128xbf16, #tpu.memory_space<vmem>>, vector<10x128xbf16>
    %cst = arith.constant dense<0.000000e+00> : vector<159x128xf32>
    %3 = tpu.matmul %1, %2, %cst {dimension_numbers = #tpu.dot_dimension_numbers<[1], [0], [0], [1], [0, 0, 1, 1], [], []>} : vector<159x10xbf16>, vector<10x128xbf16>, vector<159x128xf32> -> vector<159x128xf32>
    %cst_4 = arith.constant dense<0.000000e+00> : vector<128xf32>
    %4 = vector.multi_reduction <add>, %3, %cst_4 [0] : vector<159x128xf32> to vector<128xf32>
    %5 = vector.shape_cast %4 : vector<128xf32> to vector<1x128xf32>
    %cst_5 = arith.constant 1.590000e+02 : f32
    %6 = vector.broadcast %cst_5 : f32 to vector<1x128xf32>
    %7 = arith.divf %5, %6 : vector<1x128xf32>
    %8 = vector.broadcast %7 : vector<1x128xf32> to vector<159x128xf32>
    %9 = arith.subf %3, %8 : vector<159x128xf32>
    %10 = arith.mulf %9, %9 : vector<159x128xf32>
    %cst_6 = arith.constant dense<0.000000e+00> : vector<128xf32>
    %11 = vector.multi_reduction <add>, %10, %cst_6 [0] : vector<159x128xf32> to vector<128xf32>
    %12 = vector.shape_cast %11 : vector<128xf32> to vector<1x128xf32>
    %cst_7 = arith.constant 1.590000e+02 : f32
    %13 = vector.broadcast %cst_7 : f32 to vector<1x128xf32>
    %14 = arith.divf %12, %13 : vector<1x128xf32>
    %15 = vector.broadcast %7 : vector<1x128xf32> to vector<159x128xf32>
    %16 = arith.subf %3, %15 : vector<159x128xf32>
    %cst_8 = arith.constant 9.99999974E-6 : f32
    %17 = vector.broadcast %cst_8 : f32 to vector<1x128xf32>
    %18 = arith.addf %14, %17 : vector<1x128xf32>
    %19 = math.rsqrt %18 : vector<1x128xf32>
    %20 = vector.broadcast %19 : vector<1x128xf32> to vector<159x128xf32>
    %21 = arith.mulf %16, %20 : vector<159x128xf32>
    %c0_9 = arith.constant 0 : index
    %c0_10 = arith.constant 0 : index
    %22 = vector.load %arg3[%c0_9, %c0_10] : memref<1x128xf32, #tpu.memory_space<vmem>>, vector<1x128xf32>
    %23 = vector.broadcast %22 : vector<1x128xf32> to vector<159x128xf32>
    %24 = arith.mulf %21, %23 : vector<159x128xf32>
    %c0_11 = arith.constant 0 : index
    %c0_12 = arith.constant 0 : index
    %25 = vector.load %arg4[%c0_11, %c0_12] : memref<1x128xf32, #tpu.memory_space<vmem>>, vector<1x128xf32>
    %26 = vector.broadcast %25 : vector<1x128xf32> to vector<159x128xf32>
    %27 = arith.addf %24, %26 : vector<159x128xf32>
    %28 = arith.mulf %27, %27 : vector<159x128xf32>
    %29 = arith.mulf %27, %28 : vector<159x128xf32>
    %cst_13 = arith.constant 4.471500e-02 : f32
    %30 = vector.broadcast %cst_13 : f32 to vector<159x128xf32>
    %31 = arith.mulf %30, %29 : vector<159x128xf32>
    %32 = arith.addf %27, %31 : vector<159x128xf32>
    %cst_14 = arith.constant 0.797884583 : f32
    %33 = vector.broadcast %cst_14 : f32 to vector<159x128xf32>
    %34 = arith.mulf %33, %32 : vector<159x128xf32>
    %35 = math.tanh %34 : vector<159x128xf32>
    %cst_15 = arith.constant 1.000000e+00 : f32
    %36 = vector.broadcast %cst_15 : f32 to vector<159x128xf32>
    %37 = arith.addf %36, %35 : vector<159x128xf32>
    %cst_16 = arith.constant 5.000000e-01 : f32
    %38 = vector.broadcast %cst_16 : f32 to vector<159x128xf32>
    %39 = arith.mulf %38, %37 : vector<159x128xf32>
    %40 = arith.mulf %27, %39 : vector<159x128xf32>
    %41 = arith.truncf %40 : vector<159x128xf32> to vector<159x128xbf16>
    %c0_17 = arith.constant 0 : index
    %c0_18 = arith.constant 0 : index
    %c0_19 = arith.constant 0 : index
    %42 = vector.load %arg5[%c0_17, %c0_18, %c0_19] : memref<1x159x128xbf16, #tpu.memory_space<vmem>>, vector<1x159x128xbf16>
    %43 = vector.shape_cast %42 : vector<1x159x128xbf16> to vector<159x128xbf16>
    %44 = vector.shape_cast %41 : vector<159x128xbf16> to vector<1x159x128xbf16>
    tpu.vector_store %arg5[%c0_17, %c0_18, %c0_19], %44 {strides = array<i32>} : memref<1x159x128xbf16, #tpu.memory_space<vmem>>, vector<1x159x128xbf16>,
    return
  }
  func.func @transform_0(%arg0: i32) -> (i32, i32, i32) {
    %c0_i32 = arith.constant 0 : i32
    %c0_i32_0 = arith.constant 0 : i32
    %c0_i32_1 = arith.constant 0 : i32
    return %arg0, %c0_i32, %c0_i32_0 : i32, i32, i32
  }
  func.func @transform_1(%arg0: i32) -> (i32, i32) {
    %c0_i32 = arith.constant 0 : i32
    %c0_i32_0 = arith.constant 0 : i32
    %c0_i32_1 = arith.constant 0 : i32
    return %c0_i32, %c0_i32_0 : i32, i32
  }
  func.func @transform_2(%arg0: i32) -> (i32, i32) {
    %c0_i32 = arith.constant 0 : i32
    %c0_i32_0 = arith.constant 0 : i32
    %c0_i32_1 = arith.constant 0 : i32
    return %c0_i32, %c0_i32_0 : i32, i32
  }
  func.func @transform_3(%arg0: i32) -> (i32, i32) {
    %c0_i32 = arith.constant 0 : i32
    %c0_i32_0 = arith.constant 0 : i32
    %c0_i32_1 = arith.constant 0 : i32
    return %c0_i32, %c0_i32_0 : i32, i32
  }
  func.func @transform_4(%arg0: i32) -> (i32, i32, i32) {
    %c0_i32 = arith.constant 0 : i32
    %c0_i32_0 = arith.constant 0 : i32
    %c0_i32_1 = arith.constant 0 : i32
    return %arg0, %c0_i32, %c0_i32_0 : i32, i32, i32
  }
}

module attributes {stable_mosaic.version = 11 : i64} {
  func.func @_conv_gelu_kernel(%arg0: i32, %arg1: memref<1x79x384xbf16, #tpu.memory_space<vmem>>, %arg2: memref<384x128xbf16, #tpu.memory_space<vmem>>, %arg3: memref<1x79x128xbf16, #tpu.memory_space<vmem>>) attributes {dimension_semantics = [#tpu.dimension_semantics<parallel>], iteration_bounds = array<i64: 2>, scalar_prefetch = 0 : i64, scratch_operands = 0 : i64, tpu.core_type = #tpu.core_type<tc>, window_params = [{transform_indices = @transform_0, window_bounds = array<i64: 1, 79, 384>}, {pipeline_mode = #tpu.pipeline_mode<synchronous>, transform_indices = @transform_1, window_bounds = array<i64: 384, 128>}, {transform_indices = @transform_2, window_bounds = array<i64: 1, 79, 128>}]} {
    %c0 = arith.constant 0 : index
    %c0_0 = arith.constant 0 : index
    %c0_1 = arith.constant 0 : index
    %0 = vector.load %arg1[%c0, %c0_0, %c0_1] : memref<1x79x384xbf16, #tpu.memory_space<vmem>>, vector<1x79x384xbf16>
    %1 = vector.shape_cast %0 : vector<1x79x384xbf16> to vector<79x384xbf16>
    %c0_2 = arith.constant 0 : index
    %c0_3 = arith.constant 0 : index
    %2 = vector.load %arg2[%c0_2, %c0_3] : memref<384x128xbf16, #tpu.memory_space<vmem>>, vector<384x128xbf16>
    %cst = arith.constant dense<0.000000e+00> : vector<79x128xf32>
    %3 = tpu.matmul %1, %2, %cst {dimension_numbers = #tpu.dot_dimension_numbers<[1], [0], [0], [1], [0, 0, 1, 1], [], []>} : vector<79x384xbf16>, vector<384x128xbf16>, vector<79x128xf32> -> vector<79x128xf32>
    %4 = arith.mulf %3, %3 : vector<79x128xf32>
    %5 = arith.mulf %3, %4 : vector<79x128xf32>
    %cst_4 = arith.constant 4.471500e-02 : f32
    %6 = vector.broadcast %cst_4 : f32 to vector<79x128xf32>
    %7 = arith.mulf %6, %5 : vector<79x128xf32>
    %8 = arith.addf %3, %7 : vector<79x128xf32>
    %cst_5 = arith.constant 0.797884583 : f32
    %9 = vector.broadcast %cst_5 : f32 to vector<79x128xf32>
    %10 = arith.mulf %9, %8 : vector<79x128xf32>
    %11 = math.tanh %10 : vector<79x128xf32>
    %cst_6 = arith.constant 1.000000e+00 : f32
    %12 = vector.broadcast %cst_6 : f32 to vector<79x128xf32>
    %13 = arith.addf %12, %11 : vector<79x128xf32>
    %cst_7 = arith.constant 5.000000e-01 : f32
    %14 = vector.broadcast %cst_7 : f32 to vector<79x128xf32>
    %15 = arith.mulf %14, %13 : vector<79x128xf32>
    %16 = arith.mulf %3, %15 : vector<79x128xf32>
    %17 = arith.truncf %16 : vector<79x128xf32> to vector<79x128xbf16>
    %c0_8 = arith.constant 0 : index
    %c0_9 = arith.constant 0 : index
    %c0_10 = arith.constant 0 : index
    %18 = vector.load %arg3[%c0_8, %c0_9, %c0_10] : memref<1x79x128xbf16, #tpu.memory_space<vmem>>, vector<1x79x128xbf16>
    %19 = vector.shape_cast %18 : vector<1x79x128xbf16> to vector<79x128xbf16>
    %20 = vector.shape_cast %17 : vector<79x128xbf16> to vector<1x79x128xbf16>
    tpu.vector_store %arg3[%c0_8, %c0_9, %c0_10], %20 {strides = array<i32>} : memref<1x79x128xbf16, #tpu.memory_space<vmem>>, vector<1x79x128xbf16>,
    return
  }
  func.func @transform_0(%arg0: i32) -> (i32, i32, i32) {
    %c0_i32 = arith.constant 0 : i32
    %c0_i32_0 = arith.constant 0 : i32
    %c0_i32_1 = arith.constant 0 : i32
    return %arg0, %c0_i32, %c0_i32_0 : i32, i32, i32
  }
  func.func @transform_1(%arg0: i32) -> (i32, i32) {
    %c0_i32 = arith.constant 0 : i32
    %c0_i32_0 = arith.constant 0 : i32
    %c0_i32_1 = arith.constant 0 : i32
    return %c0_i32, %c0_i32_0 : i32, i32
  }
  func.func @transform_2(%arg0: i32) -> (i32, i32, i32) {
    %c0_i32 = arith.constant 0 : i32
    %c0_i32_0 = arith.constant 0 : i32
    %c0_i32_1 = arith.constant 0 : i32
    return %arg0, %c0_i32, %c0_i32_0 : i32, i32, i32
  }
}

module attributes {stable_mosaic.version = 11 : i64} {
  func.func @_conv_gelu_kernel(%arg0: i32, %arg1: memref<1x39x384xbf16, #tpu.memory_space<vmem>>, %arg2: memref<384x128xbf16, #tpu.memory_space<vmem>>, %arg3: memref<1x39x128xbf16, #tpu.memory_space<vmem>>) attributes {dimension_semantics = [#tpu.dimension_semantics<parallel>], iteration_bounds = array<i64: 2>, scalar_prefetch = 0 : i64, scratch_operands = 0 : i64, tpu.core_type = #tpu.core_type<tc>, window_params = [{transform_indices = @transform_0, window_bounds = array<i64: 1, 39, 384>}, {pipeline_mode = #tpu.pipeline_mode<synchronous>, transform_indices = @transform_1, window_bounds = array<i64: 384, 128>}, {transform_indices = @transform_2, window_bounds = array<i64: 1, 39, 128>}]} {
    %c0 = arith.constant 0 : index
    %c0_0 = arith.constant 0 : index
    %c0_1 = arith.constant 0 : index
    %0 = vector.load %arg1[%c0, %c0_0, %c0_1] : memref<1x39x384xbf16, #tpu.memory_space<vmem>>, vector<1x39x384xbf16>
    %1 = vector.shape_cast %0 : vector<1x39x384xbf16> to vector<39x384xbf16>
    %c0_2 = arith.constant 0 : index
    %c0_3 = arith.constant 0 : index
    %2 = vector.load %arg2[%c0_2, %c0_3] : memref<384x128xbf16, #tpu.memory_space<vmem>>, vector<384x128xbf16>
    %cst = arith.constant dense<0.000000e+00> : vector<39x128xf32>
    %3 = tpu.matmul %1, %2, %cst {dimension_numbers = #tpu.dot_dimension_numbers<[1], [0], [0], [1], [0, 0, 1, 1], [], []>} : vector<39x384xbf16>, vector<384x128xbf16>, vector<39x128xf32> -> vector<39x128xf32>
    %4 = arith.mulf %3, %3 : vector<39x128xf32>
    %5 = arith.mulf %3, %4 : vector<39x128xf32>
    %cst_4 = arith.constant 4.471500e-02 : f32
    %6 = vector.broadcast %cst_4 : f32 to vector<39x128xf32>
    %7 = arith.mulf %6, %5 : vector<39x128xf32>
    %8 = arith.addf %3, %7 : vector<39x128xf32>
    %cst_5 = arith.constant 0.797884583 : f32
    %9 = vector.broadcast %cst_5 : f32 to vector<39x128xf32>
    %10 = arith.mulf %9, %8 : vector<39x128xf32>
    %11 = math.tanh %10 : vector<39x128xf32>
    %cst_6 = arith.constant 1.000000e+00 : f32
    %12 = vector.broadcast %cst_6 : f32 to vector<39x128xf32>
    %13 = arith.addf %12, %11 : vector<39x128xf32>
    %cst_7 = arith.constant 5.000000e-01 : f32
    %14 = vector.broadcast %cst_7 : f32 to vector<39x128xf32>
    %15 = arith.mulf %14, %13 : vector<39x128xf32>
    %16 = arith.mulf %3, %15 : vector<39x128xf32>
    %17 = arith.truncf %16 : vector<39x128xf32> to vector<39x128xbf16>
    %c0_8 = arith.constant 0 : index
    %c0_9 = arith.constant 0 : index
    %c0_10 = arith.constant 0 : index
    %18 = vector.load %arg3[%c0_8, %c0_9, %c0_10] : memref<1x39x128xbf16, #tpu.memory_space<vmem>>, vector<1x39x128xbf16>
    %19 = vector.shape_cast %18 : vector<1x39x128xbf16> to vector<39x128xbf16>
    %20 = vector.shape_cast %17 : vector<39x128xbf16> to vector<1x39x128xbf16>
    tpu.vector_store %arg3[%c0_8, %c0_9, %c0_10], %20 {strides = array<i32>} : memref<1x39x128xbf16, #tpu.memory_space<vmem>>, vector<1x39x128xbf16>,
    return
  }
  func.func @transform_0(%arg0: i32) -> (i32, i32, i32) {
    %c0_i32 = arith.constant 0 : i32
    %c0_i32_0 = arith.constant 0 : i32
    %c0_i32_1 = arith.constant 0 : i32
    return %arg0, %c0_i32, %c0_i32_0 : i32, i32, i32
  }
  func.func @transform_1(%arg0: i32) -> (i32, i32) {
    %c0_i32 = arith.constant 0 : i32
    %c0_i32_0 = arith.constant 0 : i32
    %c0_i32_1 = arith.constant 0 : i32
    return %c0_i32, %c0_i32_0 : i32, i32
  }
  func.func @transform_2(%arg0: i32) -> (i32, i32, i32) {
    %c0_i32 = arith.constant 0 : i32
    %c0_i32_0 = arith.constant 0 : i32
    %c0_i32_1 = arith.constant 0 : i32
    return %arg0, %c0_i32, %c0_i32_0 : i32, i32, i32
  }
}

module attributes {stable_mosaic.version = 11 : i64} {
  func.func @_fp_posconv_ln_kernel(%arg0: i32, %arg1: memref<1x40x128xbf16, #tpu.memory_space<vmem>>, %arg2: memref<1x128xf32, #tpu.memory_space<vmem>>, %arg3: memref<1x128xf32, #tpu.memory_space<vmem>>, %arg4: memref<128x128xbf16, #tpu.memory_space<vmem>>, %arg5: memref<1x128xf32, #tpu.memory_space<vmem>>, %arg6: memref<4x256x32xbf16, #tpu.memory_space<vmem>>, %arg7: memref<1x128xf32, #tpu.memory_space<vmem>>, %arg8: memref<1x128xf32, #tpu.memory_space<vmem>>, %arg9: memref<1x128xf32, #tpu.memory_space<vmem>>, %arg10: memref<1x40x128xbf16, #tpu.memory_space<vmem>>) attributes {dimension_semantics = [#tpu.dimension_semantics<parallel>], iteration_bounds = array<i64: 2>, scalar_prefetch = 0 : i64, scratch_operands = 0 : i64, tpu.core_type = #tpu.core_type<tc>, window_params = [{transform_indices = @transform_0, window_bounds = array<i64: 1, 40, 128>}, {pipeline_mode = #tpu.pipeline_mode<synchronous>, transform_indices = @transform_1, window_bounds = array<i64: 1, 128>}, {pipeline_mode = #tpu.pipeline_mode<synchronous>, transform_indices = @transform_2, window_bounds = array<i64: 1, 128>}, {pipeline_mode = #tpu.pipeline_mode<synchronous>, transform_indices = @transform_3, window_bounds = array<i64: 128, 128>}, {pipeline_mode = #tpu.pipeline_mode<synchronous>, transform_indices = @transform_4, window_bounds = array<i64: 1, 128>}, {pipeline_mode = #tpu.pipeline_mode<synchronous>, transform_indices = @transform_5, window_bounds = array<i64: 4, 256, 32>}, {pipeline_mode = #tpu.pipeline_mode<synchronous>, transform_indices = @transform_6, window_bounds = array<i64: 1, 128>}, {pipeline_mode = #tpu.pipeline_mode<synchronous>, transform_indices = @transform_7, window_bounds = array<i64: 1, 128>}, {pipeline_mode = #tpu.pipeline_mode<synchronous>, transform_indices = @transform_8, window_bounds = array<i64: 1, 128>}, {transform_indices = @transform_9, window_bounds = array<i64: 1, 40, 128>}]} {
    %c0 = arith.constant 0 : index
    %c0_0 = arith.constant 0 : index
    %c0_1 = arith.constant 0 : index
    %0 = vector.load %arg1[%c0, %c0_0, %c0_1] : memref<1x40x128xbf16, #tpu.memory_space<vmem>>, vector<1x40x128xbf16>
    %1 = vector.shape_cast %0 : vector<1x40x128xbf16> to vector<40x128xbf16>
    %2 = arith.extf %1 : vector<40x128xbf16> to vector<40x128xf32>
    %c0_2 = arith.constant 0 : index
    %c0_3 = arith.constant 0 : index
    %3 = vector.load %arg2[%c0_2, %c0_3] : memref<1x128xf32, #tpu.memory_space<vmem>>, vector<1x128xf32>
    %c0_4 = arith.constant 0 : index
    %c0_5 = arith.constant 0 : index
    %4 = vector.load %arg3[%c0_4, %c0_5] : memref<1x128xf32, #tpu.memory_space<vmem>>, vector<1x128xf32>
    %cst = arith.constant dense<0.000000e+00> : vector<40xf32>
    %5 = vector.multi_reduction <add>, %2, %cst [1] : vector<40x128xf32> to vector<40xf32>
    %6 = vector.shape_cast %5 : vector<40xf32> to vector<40x1xf32>
    %cst_6 = arith.constant 1.280000e+02 : f32
    %7 = vector.broadcast %cst_6 : f32 to vector<40x1xf32>
    %8 = arith.divf %6, %7 : vector<40x1xf32>
    %9 = vector.broadcast %8 : vector<40x1xf32> to vector<40x128xf32>
    %10 = arith.subf %2, %9 : vector<40x128xf32>
    %11 = arith.mulf %10, %10 : vector<40x128xf32>
    %cst_7 = arith.constant dense<0.000000e+00> : vector<40xf32>
    %12 = vector.multi_reduction <add>, %11, %cst_7 [1] : vector<40x128xf32> to vector<40xf32>
    %13 = vector.shape_cast %12 : vector<40xf32> to vector<40x1xf32>
    %cst_8 = arith.constant 1.280000e+02 : f32
    %14 = vector.broadcast %cst_8 : f32 to vector<40x1xf32>
    %15 = arith.divf %13, %14 : vector<40x1xf32>
    %16 = vector.broadcast %8 : vector<40x1xf32> to vector<40x128xf32>
    %17 = arith.subf %2, %16 : vector<40x128xf32>
    %cst_9 = arith.constant 9.99999974E-6 : f32
    %18 = vector.broadcast %cst_9 : f32 to vector<40x1xf32>
    %19 = arith.addf %15, %18 : vector<40x1xf32>
    %20 = math.rsqrt %19 : vector<40x1xf32>
    %21 = vector.broadcast %20 : vector<40x1xf32> to vector<40x128xf32>
    %22 = arith.mulf %17, %21 : vector<40x128xf32>
    %23 = vector.broadcast %3 : vector<1x128xf32> to vector<40x128xf32>
    %24 = arith.mulf %22, %23 : vector<40x128xf32>
    %25 = vector.broadcast %4 : vector<1x128xf32> to vector<40x128xf32>
    %26 = arith.addf %24, %25 : vector<40x128xf32>
    %27 = arith.truncf %26 : vector<40x128xf32> to vector<40x128xbf16>
    %c0_10 = arith.constant 0 : index
    %c0_11 = arith.constant 0 : index
    %28 = vector.load %arg4[%c0_10, %c0_11] : memref<128x128xbf16, #tpu.memory_space<vmem>>, vector<128x128xbf16>
    %cst_12 = arith.constant dense<0.000000e+00> : vector<40x128xf32>
    %29 = tpu.matmul %27, %28, %cst_12 {dimension_numbers = #tpu.dot_dimension_numbers<[1], [0], [0], [1], [0, 0, 1, 1], [], []>} : vector<40x128xbf16>, vector<128x128xbf16>, vector<40x128xf32> -> vector<40x128xf32>
    %c0_13 = arith.constant 0 : index
    %c0_14 = arith.constant 0 : index
    %30 = vector.load %arg5[%c0_13, %c0_14] : memref<1x128xf32, #tpu.memory_space<vmem>>, vector<1x128xf32>
    %31 = vector.broadcast %30 : vector<1x128xf32> to vector<40x128xf32>
    %32 = arith.addf %29, %31 : vector<40x128xf32>
    %33 = tpu.iota {dimensions = array<i32: 0>} : vector<40x1xi32>
    %c39_i32 = arith.constant 39 : i32
    %34 = vector.broadcast %c39_i32 : i32 to vector<40x1xi32>
    %35 = arith.cmpi slt, %33, %34 : vector<40x1xi32>
    %cst_15 = arith.constant 0.000000e+00 : f32
    %36 = vector.shape_cast %35 : vector<40x1xi1> to vector<40x1xi1>
    %37 = vector.broadcast %36 : vector<40x1xi1> to vector<40x128xi1>
    %38 = vector.broadcast %cst_15 : f32 to vector<40x128xf32>
    %39 = arith.select %37, %32, %38 : vector<40x128xi1>, vector<40x128xf32>
    %40 = arith.truncf %39 : vector<40x128xf32> to vector<40x128xbf16>
    %cst_16 = arith.constant 0.000000e+00 : bf16
    %41 = vector.broadcast %cst_16 : bf16 to vector<4x128xbf16>
    %cst_17 = arith.constant 0.000000e+00 : bf16
    %42 = vector.broadcast %cst_17 : bf16 to vector<3x128xbf16>
    %43 = tpu.concatenate %41, %40, %42 in 0 : vector<4x128xbf16>, vector<40x128xbf16>, vector<3x128xbf16> -> vector<47x128xbf16>
    %44 = vector.extract_strided_slice %43 {offsets = [0, 0], sizes = [47, 32], strides = [1, 1]} : vector<47x128xbf16> to vector<47x32xbf16>
    %45 = vector.extract_strided_slice %44 {offsets = [0, 0], sizes = [40, 32], strides = [1, 1]} : vector<47x32xbf16> to vector<40x32xbf16>
    %46 = vector.extract_strided_slice %44 {offsets = [1, 0], sizes = [40, 32], strides = [1, 1]} : vector<47x32xbf16> to vector<40x32xbf16>
    %47 = vector.extract_strided_slice %44 {offsets = [2, 0], sizes = [40, 32], strides = [1, 1]} : vector<47x32xbf16> to vector<40x32xbf16>
    %48 = vector.extract_strided_slice %44 {offsets = [3, 0], sizes = [40, 32], strides = [1, 1]} : vector<47x32xbf16> to vector<40x32xbf16>
    %49 = vector.extract_strided_slice %44 {offsets = [4, 0], sizes = [40, 32], strides = [1, 1]} : vector<47x32xbf16> to vector<40x32xbf16>
    %50 = vector.extract_strided_slice %44 {offsets = [5, 0], sizes = [40, 32], strides = [1, 1]} : vector<47x32xbf16> to vector<40x32xbf16>
    %51 = vector.extract_strided_slice %44 {offsets = [6, 0], sizes = [40, 32], strides = [1, 1]} : vector<47x32xbf16> to vector<40x32xbf16>
    %52 = vector.extract_strided_slice %44 {offsets = [7, 0], sizes = [40, 32], strides = [1, 1]} : vector<47x32xbf16> to vector<40x32xbf16>
    %53 = tpu.concatenate %45, %46, %47, %48, %49, %50, %51, %52 in 1 : vector<40x32xbf16>, vector<40x32xbf16>, vector<40x32xbf16>, vector<40x32xbf16>, vector<40x32xbf16>, vector<40x32xbf16>, vector<40x32xbf16>, vector<40x32xbf16> -> vector<40x256xbf16>
    %c0_18 = arith.constant 0 : index
    %c0_19 = arith.constant 0 : index
    %c0_20 = arith.constant 0 : index
    %54 = vector.load %arg6[%c0_18, %c0_19, %c0_20] : memref<4x256x32xbf16, #tpu.memory_space<vmem>>, vector<1x256x32xbf16>
    %55 = vector.shape_cast %54 : vector<1x256x32xbf16> to vector<256x32xbf16>
    %cst_21 = arith.constant dense<0.000000e+00> : vector<40x32xf32>
    %56 = tpu.matmul %53, %55, %cst_21 {dimension_numbers = #tpu.dot_dimension_numbers<[1], [0], [0], [1], [0, 0, 1, 1], [], []>} : vector<40x256xbf16>, vector<256x32xbf16>, vector<40x32xf32> -> vector<40x32xf32>
    %57 = vector.extract_strided_slice %43 {offsets = [0, 32], sizes = [47, 32], strides = [1, 1]} : vector<47x128xbf16> to vector<47x32xbf16>
    %58 = vector.extract_strided_slice %57 {offsets = [0, 0], sizes = [40, 32], strides = [1, 1]} : vector<47x32xbf16> to vector<40x32xbf16>
    %59 = vector.extract_strided_slice %57 {offsets = [1, 0], sizes = [40, 32], strides = [1, 1]} : vector<47x32xbf16> to vector<40x32xbf16>
    %60 = vector.extract_strided_slice %57 {offsets = [2, 0], sizes = [40, 32], strides = [1, 1]} : vector<47x32xbf16> to vector<40x32xbf16>
    %61 = vector.extract_strided_slice %57 {offsets = [3, 0], sizes = [40, 32], strides = [1, 1]} : vector<47x32xbf16> to vector<40x32xbf16>
    %62 = vector.extract_strided_slice %57 {offsets = [4, 0], sizes = [40, 32], strides = [1, 1]} : vector<47x32xbf16> to vector<40x32xbf16>
    %63 = vector.extract_strided_slice %57 {offsets = [5, 0], sizes = [40, 32], strides = [1, 1]} : vector<47x32xbf16> to vector<40x32xbf16>
    %64 = vector.extract_strided_slice %57 {offsets = [6, 0], sizes = [40, 32], strides = [1, 1]} : vector<47x32xbf16> to vector<40x32xbf16>
    %65 = vector.extract_strided_slice %57 {offsets = [7, 0], sizes = [40, 32], strides = [1, 1]} : vector<47x32xbf16> to vector<40x32xbf16>
    %66 = tpu.concatenate %58, %59, %60, %61, %62, %63, %64, %65 in 1 : vector<40x32xbf16>, vector<40x32xbf16>, vector<40x32xbf16>, vector<40x32xbf16>, vector<40x32xbf16>, vector<40x32xbf16>, vector<40x32xbf16>, vector<40x32xbf16> -> vector<40x256xbf16>
    %c1 = arith.constant 1 : index
    %c0_22 = arith.constant 0 : index
    %c0_23 = arith.constant 0 : index
    %67 = vector.load %arg6[%c1, %c0_22, %c0_23] : memref<4x256x32xbf16, #tpu.memory_space<vmem>>, vector<1x256x32xbf16>
    %68 = vector.shape_cast %67 : vector<1x256x32xbf16> to vector<256x32xbf16>
    %cst_24 = arith.constant dense<0.000000e+00> : vector<40x32xf32>
    %69 = tpu.matmul %66, %68, %cst_24 {dimension_numbers = #tpu.dot_dimension_numbers<[1], [0], [0], [1], [0, 0, 1, 1], [], []>} : vector<40x256xbf16>, vector<256x32xbf16>, vector<40x32xf32> -> vector<40x32xf32>
    %70 = vector.extract_strided_slice %43 {offsets = [0, 64], sizes = [47, 32], strides = [1, 1]} : vector<47x128xbf16> to vector<47x32xbf16>
    %71 = vector.extract_strided_slice %70 {offsets = [0, 0], sizes = [40, 32], strides = [1, 1]} : vector<47x32xbf16> to vector<40x32xbf16>
    %72 = vector.extract_strided_slice %70 {offsets = [1, 0], sizes = [40, 32], strides = [1, 1]} : vector<47x32xbf16> to vector<40x32xbf16>
    %73 = vector.extract_strided_slice %70 {offsets = [2, 0], sizes = [40, 32], strides = [1, 1]} : vector<47x32xbf16> to vector<40x32xbf16>
    %74 = vector.extract_strided_slice %70 {offsets = [3, 0], sizes = [40, 32], strides = [1, 1]} : vector<47x32xbf16> to vector<40x32xbf16>
    %75 = vector.extract_strided_slice %70 {offsets = [4, 0], sizes = [40, 32], strides = [1, 1]} : vector<47x32xbf16> to vector<40x32xbf16>
    %76 = vector.extract_strided_slice %70 {offsets = [5, 0], sizes = [40, 32], strides = [1, 1]} : vector<47x32xbf16> to vector<40x32xbf16>
    %77 = vector.extract_strided_slice %70 {offsets = [6, 0], sizes = [40, 32], strides = [1, 1]} : vector<47x32xbf16> to vector<40x32xbf16>
    %78 = vector.extract_strided_slice %70 {offsets = [7, 0], sizes = [40, 32], strides = [1, 1]} : vector<47x32xbf16> to vector<40x32xbf16>
    %79 = tpu.concatenate %71, %72, %73, %74, %75, %76, %77, %78 in 1 : vector<40x32xbf16>, vector<40x32xbf16>, vector<40x32xbf16>, vector<40x32xbf16>, vector<40x32xbf16>, vector<40x32xbf16>, vector<40x32xbf16>, vector<40x32xbf16> -> vector<40x256xbf16>
    %c2 = arith.constant 2 : index
    %c0_25 = arith.constant 0 : index
    %c0_26 = arith.constant 0 : index
    %80 = vector.load %arg6[%c2, %c0_25, %c0_26] : memref<4x256x32xbf16, #tpu.memory_space<vmem>>, vector<1x256x32xbf16>
    %81 = vector.shape_cast %80 : vector<1x256x32xbf16> to vector<256x32xbf16>
    %cst_27 = arith.constant dense<0.000000e+00> : vector<40x32xf32>
    %82 = tpu.matmul %79, %81, %cst_27 {dimension_numbers = #tpu.dot_dimension_numbers<[1], [0], [0], [1], [0, 0, 1, 1], [], []>} : vector<40x256xbf16>, vector<256x32xbf16>, vector<40x32xf32> -> vector<40x32xf32>
    %83 = vector.extract_strided_slice %43 {offsets = [0, 96], sizes = [47, 32], strides = [1, 1]} : vector<47x128xbf16> to vector<47x32xbf16>
    %84 = vector.extract_strided_slice %83 {offsets = [0, 0], sizes = [40, 32], strides = [1, 1]} : vector<47x32xbf16> to vector<40x32xbf16>
    %85 = vector.extract_strided_slice %83 {offsets = [1, 0], sizes = [40, 32], strides = [1, 1]} : vector<47x32xbf16> to vector<40x32xbf16>
    %86 = vector.extract_strided_slice %83 {offsets = [2, 0], sizes = [40, 32], strides = [1, 1]} : vector<47x32xbf16> to vector<40x32xbf16>
    %87 = vector.extract_strided_slice %83 {offsets = [3, 0], sizes = [40, 32], strides = [1, 1]} : vector<47x32xbf16> to vector<40x32xbf16>
    %88 = vector.extract_strided_slice %83 {offsets = [4, 0], sizes = [40, 32], strides = [1, 1]} : vector<47x32xbf16> to vector<40x32xbf16>
    %89 = vector.extract_strided_slice %83 {offsets = [5, 0], sizes = [40, 32], strides = [1, 1]} : vector<47x32xbf16> to vector<40x32xbf16>
    %90 = vector.extract_strided_slice %83 {offsets = [6, 0], sizes = [40, 32], strides = [1, 1]} : vector<47x32xbf16> to vector<40x32xbf16>
    %91 = vector.extract_strided_slice %83 {offsets = [7, 0], sizes = [40, 32], strides = [1, 1]} : vector<47x32xbf16> to vector<40x32xbf16>
    %92 = tpu.concatenate %84, %85, %86, %87, %88, %89, %90, %91 in 1 : vector<40x32xbf16>, vector<40x32xbf16>, vector<40x32xbf16>, vector<40x32xbf16>, vector<40x32xbf16>, vector<40x32xbf16>, vector<40x32xbf16>, vector<40x32xbf16> -> vector<40x256xbf16>
    %c3 = arith.constant 3 : index
    %c0_28 = arith.constant 0 : index
    %c0_29 = arith.constant 0 : index
    %93 = vector.load %arg6[%c3, %c0_28, %c0_29] : memref<4x256x32xbf16, #tpu.memory_space<vmem>>, vector<1x256x32xbf16>
    %94 = vector.shape_cast %93 : vector<1x256x32xbf16> to vector<256x32xbf16>
    %cst_30 = arith.constant dense<0.000000e+00> : vector<40x32xf32>
    %95 = tpu.matmul %92, %94, %cst_30 {dimension_numbers = #tpu.dot_dimension_numbers<[1], [0], [0], [1], [0, 0, 1, 1], [], []>} : vector<40x256xbf16>, vector<256x32xbf16>, vector<40x32xf32> -> vector<40x32xf32>
    %96 = tpu.concatenate %56, %69, %82, %95 in 1 : vector<40x32xf32>, vector<40x32xf32>, vector<40x32xf32>, vector<40x32xf32> -> vector<40x128xf32>
    %c0_31 = arith.constant 0 : index
    %c0_32 = arith.constant 0 : index
    %97 = vector.load %arg7[%c0_31, %c0_32] : memref<1x128xf32, #tpu.memory_space<vmem>>, vector<1x128xf32>
    %98 = vector.broadcast %97 : vector<1x128xf32> to vector<40x128xf32>
    %99 = arith.addf %96, %98 : vector<40x128xf32>
    %100 = arith.mulf %99, %99 : vector<40x128xf32>
    %101 = arith.mulf %99, %100 : vector<40x128xf32>
    %cst_33 = arith.constant 4.471500e-02 : f32
    %102 = vector.broadcast %cst_33 : f32 to vector<40x128xf32>
    %103 = arith.mulf %102, %101 : vector<40x128xf32>
    %104 = arith.addf %99, %103 : vector<40x128xf32>
    %cst_34 = arith.constant 0.797884583 : f32
    %105 = vector.broadcast %cst_34 : f32 to vector<40x128xf32>
    %106 = arith.mulf %105, %104 : vector<40x128xf32>
    %107 = math.tanh %106 : vector<40x128xf32>
    %cst_35 = arith.constant 1.000000e+00 : f32
    %108 = vector.broadcast %cst_35 : f32 to vector<40x128xf32>
    %109 = arith.addf %108, %107 : vector<40x128xf32>
    %cst_36 = arith.constant 5.000000e-01 : f32
    %110 = vector.broadcast %cst_36 : f32 to vector<40x128xf32>
    %111 = arith.mulf %110, %109 : vector<40x128xf32>
    %112 = arith.mulf %99, %111 : vector<40x128xf32>
    %113 = arith.addf %39, %112 : vector<40x128xf32>
    %c0_37 = arith.constant 0 : index
    %c0_38 = arith.constant 0 : index
    %114 = vector.load %arg8[%c0_37, %c0_38] : memref<1x128xf32, #tpu.memory_space<vmem>>, vector<1x128xf32>
    %c0_39 = arith.constant 0 : index
    %c0_40 = arith.constant 0 : index
    %115 = vector.load %arg9[%c0_39, %c0_40] : memref<1x128xf32, #tpu.memory_space<vmem>>, vector<1x128xf32>
    %cst_41 = arith.constant dense<0.000000e+00> : vector<40xf32>
    %116 = vector.multi_reduction <add>, %113, %cst_41 [1] : vector<40x128xf32> to vector<40xf32>
    %117 = vector.shape_cast %116 : vector<40xf32> to vector<40x1xf32>
    %cst_42 = arith.constant 1.280000e+02 : f32
    %118 = vector.broadcast %cst_42 : f32 to vector<40x1xf32>
    %119 = arith.divf %117, %118 : vector<40x1xf32>
    %120 = vector.broadcast %119 : vector<40x1xf32> to vector<40x128xf32>
    %121 = arith.subf %113, %120 : vector<40x128xf32>
    %122 = arith.mulf %121, %121 : vector<40x128xf32>
    %cst_43 = arith.constant dense<0.000000e+00> : vector<40xf32>
    %123 = vector.multi_reduction <add>, %122, %cst_43 [1] : vector<40x128xf32> to vector<40xf32>
    %124 = vector.shape_cast %123 : vector<40xf32> to vector<40x1xf32>
    %cst_44 = arith.constant 1.280000e+02 : f32
    %125 = vector.broadcast %cst_44 : f32 to vector<40x1xf32>
    %126 = arith.divf %124, %125 : vector<40x1xf32>
    %127 = vector.broadcast %119 : vector<40x1xf32> to vector<40x128xf32>
    %128 = arith.subf %113, %127 : vector<40x128xf32>
    %cst_45 = arith.constant 9.99999974E-6 : f32
    %129 = vector.broadcast %cst_45 : f32 to vector<40x1xf32>
    %130 = arith.addf %126, %129 : vector<40x1xf32>
    %131 = math.rsqrt %130 : vector<40x1xf32>
    %132 = vector.broadcast %131 : vector<40x1xf32> to vector<40x128xf32>
    %133 = arith.mulf %128, %132 : vector<40x128xf32>
    %134 = vector.broadcast %114 : vector<1x128xf32> to vector<40x128xf32>
    %135 = arith.mulf %133, %134 : vector<40x128xf32>
    %136 = vector.broadcast %115 : vector<1x128xf32> to vector<40x128xf32>
    %137 = arith.addf %135, %136 : vector<40x128xf32>
    %138 = arith.truncf %137 : vector<40x128xf32> to vector<40x128xbf16>
    %c0_46 = arith.constant 0 : index
    %c0_47 = arith.constant 0 : index
    %c0_48 = arith.constant 0 : index
    %139 = vector.load %arg10[%c0_46, %c0_47, %c0_48] : memref<1x40x128xbf16, #tpu.memory_space<vmem>>, vector<1x40x128xbf16>
    %140 = vector.shape_cast %139 : vector<1x40x128xbf16> to vector<40x128xbf16>
    %141 = vector.shape_cast %138 : vector<40x128xbf16> to vector<1x40x128xbf16>
    tpu.vector_store %arg10[%c0_46, %c0_47, %c0_48], %141 {strides = array<i32>} : memref<1x40x128xbf16, #tpu.memory_space<vmem>>, vector<1x40x128xbf16>,
    return
  }
  func.func @transform_0(%arg0: i32) -> (i32, i32, i32) {
    %c0_i32 = arith.constant 0 : i32
    %c0_i32_0 = arith.constant 0 : i32
    %c0_i32_1 = arith.constant 0 : i32
    return %arg0, %c0_i32, %c0_i32_0 : i32, i32, i32
  }
  func.func @transform_1(%arg0: i32) -> (i32, i32) {
    %c0_i32 = arith.constant 0 : i32
    %c0_i32_0 = arith.constant 0 : i32
    %c0_i32_1 = arith.constant 0 : i32
    return %c0_i32, %c0_i32_0 : i32, i32
  }
  func.func @transform_2(%arg0: i32) -> (i32, i32) {
    %c0_i32 = arith.constant 0 : i32
    %c0_i32_0 = arith.constant 0 : i32
    %c0_i32_1 = arith.constant 0 : i32
    return %c0_i32, %c0_i32_0 : i32, i32
  }
  func.func @transform_3(%arg0: i32) -> (i32, i32) {
    %c0_i32 = arith.constant 0 : i32
    %c0_i32_0 = arith.constant 0 : i32
    %c0_i32_1 = arith.constant 0 : i32
    return %c0_i32, %c0_i32_0 : i32, i32
  }
  func.func @transform_4(%arg0: i32) -> (i32, i32) {
    %c0_i32 = arith.constant 0 : i32
    %c0_i32_0 = arith.constant 0 : i32
    %c0_i32_1 = arith.constant 0 : i32
    return %c0_i32, %c0_i32_0 : i32, i32
  }
  func.func @transform_5(%arg0: i32) -> (i32, i32, i32) {
    %c0_i32 = arith.constant 0 : i32
    %c0_i32_0 = arith.constant 0 : i32
    %c0_i32_1 = arith.constant 0 : i32
    %c0_i32_2 = arith.constant 0 : i32
    return %c0_i32, %c0_i32_0, %c0_i32_1 : i32, i32, i32
  }
  func.func @transform_6(%arg0: i32) -> (i32, i32) {
    %c0_i32 = arith.constant 0 : i32
    %c0_i32_0 = arith.constant 0 : i32
    %c0_i32_1 = arith.constant 0 : i32
    return %c0_i32, %c0_i32_0 : i32, i32
  }
  func.func @transform_7(%arg0: i32) -> (i32, i32) {
    %c0_i32 = arith.constant 0 : i32
    %c0_i32_0 = arith.constant 0 : i32
    %c0_i32_1 = arith.constant 0 : i32
    return %c0_i32, %c0_i32_0 : i32, i32
  }
  func.func @transform_8(%arg0: i32) -> (i32, i32) {
    %c0_i32 = arith.constant 0 : i32
    %c0_i32_0 = arith.constant 0 : i32
    %c0_i32_1 = arith.constant 0 : i32
    return %c0_i32, %c0_i32_0 : i32, i32
  }
  func.func @transform_9(%arg0: i32) -> (i32, i32, i32) {
    %c0_i32 = arith.constant 0 : i32
    %c0_i32_0 = arith.constant 0 : i32
    %c0_i32_1 = arith.constant 0 : i32
    return %arg0, %c0_i32, %c0_i32_0 : i32, i32, i32
  }
}

module attributes {stable_mosaic.version = 11 : i64} {
  func.func @_mean_fc_kernel(%arg0: memref<2x40x128xbf16, #tpu.memory_space<vmem>>, %arg1: memref<128x5xbf16, #tpu.memory_space<vmem>>, %arg2: memref<1x5xf32, #tpu.memory_space<vmem>>, %arg3: memref<2x5xf32, #tpu.memory_space<vmem>>) attributes {dimension_semantics = [], scalar_prefetch = 0 : i64, scratch_operands = 0 : i64, tpu.core_type = #tpu.core_type<tc>} {
    %c0 = arith.constant 0 : index
    %c0_0 = arith.constant 0 : index
    %c0_1 = arith.constant 0 : index
    %0 = vector.load %arg0[%c0, %c0_0, %c0_1] : memref<2x40x128xbf16, #tpu.memory_space<vmem>>, vector<2x40x128xbf16>
    %1 = arith.extf %0 : vector<2x40x128xbf16> to vector<2x40x128xf32>
    %2 = vector.extract_strided_slice %1 {offsets = [0, 0, 0], sizes = [2, 39, 128], strides = [1, 1, 1]} : vector<2x40x128xf32> to vector<2x39x128xf32>
    %cst = arith.constant dense<0.000000e+00> : vector<2x128xf32>
    %3 = vector.multi_reduction <add>, %2, %cst [1] : vector<2x39x128xf32> to vector<2x128xf32>
    %cst_2 = arith.constant 0.025641026 : f32
    %4 = vector.broadcast %cst_2 : f32 to vector<2x128xf32>
    %5 = arith.mulf %3, %4 : vector<2x128xf32>
    %6 = arith.truncf %5 : vector<2x128xf32> to vector<2x128xbf16>
    %c0_3 = arith.constant 0 : index
    %c0_4 = arith.constant 0 : index
    %7 = vector.load %arg1[%c0_3, %c0_4] : memref<128x5xbf16, #tpu.memory_space<vmem>>, vector<128x5xbf16>
    %cst_5 = arith.constant dense<0.000000e+00> : vector<2x5xf32>
    %8 = tpu.matmul %6, %7, %cst_5 {dimension_numbers = #tpu.dot_dimension_numbers<[1], [0], [0], [1], [0, 0, 1, 1], [], []>} : vector<2x128xbf16>, vector<128x5xbf16>, vector<2x5xf32> -> vector<2x5xf32>
    %c0_6 = arith.constant 0 : index
    %c0_7 = arith.constant 0 : index
    %9 = vector.load %arg2[%c0_6, %c0_7] : memref<1x5xf32, #tpu.memory_space<vmem>>, vector<1x5xf32>
    %10 = vector.broadcast %9 : vector<1x5xf32> to vector<2x5xf32>
    %11 = arith.addf %8, %10 : vector<2x5xf32>
    %c0_8 = arith.constant 0 : index
    %c0_9 = arith.constant 0 : index
    %12 = vector.load %arg3[%c0_8, %c0_9] : memref<2x5xf32, #tpu.memory_space<vmem>>, vector<2x5xf32>
    tpu.vector_store %arg3[%c0_8, %c0_9], %11 {strides = array<i32>} : memref<2x5xf32, #tpu.memory_space<vmem>>, vector<2x5xf32>,
    return
  }
}

module attributes {stable_mosaic.version = 11 : i64} {
  func.func @_encoder_stack_kernel(%arg0: i32, %arg1: i32, %arg2: memref<1x40x128xbf16, #tpu.memory_space<vmem>>, %arg3: memref<1x128x384xbf16, #tpu.memory_space<vmem>>, %arg4: memref<1x1x384xf32, #tpu.memory_space<vmem>>, %arg5: memref<1x128x128xbf16, #tpu.memory_space<vmem>>, %arg6: memref<1x1x128xf32, #tpu.memory_space<vmem>>, %arg7: memref<1x1x128xf32, #tpu.memory_space<vmem>>, %arg8: memref<1x1x128xf32, #tpu.memory_space<vmem>>, %arg9: memref<1x128x256xbf16, #tpu.memory_space<vmem>>, %arg10: memref<1x1x256xf32, #tpu.memory_space<vmem>>, %arg11: memref<1x256x128xbf16, #tpu.memory_space<vmem>>, %arg12: memref<1x1x128xf32, #tpu.memory_space<vmem>>, %arg13: memref<1x1x128xf32, #tpu.memory_space<vmem>>, %arg14: memref<1x1x128xf32, #tpu.memory_space<vmem>>, %arg15: memref<1x40x128xbf16, #tpu.memory_space<vmem>>, %arg16: memref<40x128xf32, #tpu.memory_space<vmem>>) attributes {dimension_semantics = [#tpu.dimension_semantics<parallel>, #tpu.dimension_semantics<arbitrary>], iteration_bounds = array<i64: 2, 2>, scalar_prefetch = 0 : i64, scratch_operands = 1 : i64, tpu.core_type = #tpu.core_type<tc>, window_params = [{transform_indices = @transform_0, window_bounds = array<i64: 1, 40, 128>}, {transform_indices = @transform_1, window_bounds = array<i64: 1, 128, 384>}, {transform_indices = @transform_2, window_bounds = array<i64: 1, 1, 384>}, {transform_indices = @transform_3, window_bounds = array<i64: 1, 128, 128>}, {transform_indices = @transform_4, window_bounds = array<i64: 1, 1, 128>}, {transform_indices = @transform_5, window_bounds = array<i64: 1, 1, 128>}, {transform_indices = @transform_6, window_bounds = array<i64: 1, 1, 128>}, {transform_indices = @transform_7, window_bounds = array<i64: 1, 128, 256>}, {transform_indices = @transform_8, window_bounds = array<i64: 1, 1, 256>}, {transform_indices = @transform_9, window_bounds = array<i64: 1, 256, 128>}, {transform_indices = @transform_10, window_bounds = array<i64: 1, 1, 128>}, {transform_indices = @transform_11, window_bounds = array<i64: 1, 1, 128>}, {transform_indices = @transform_12, window_bounds = array<i64: 1, 1, 128>}, {transform_indices = @transform_13, window_bounds = array<i64: 1, 40, 128>}]} {
    %c0_i32 = arith.constant 0 : i32
    %0 = arith.cmpi eq, %arg1, %c0_i32 : i32
    %1 = arith.extui %0 : i1 to i32
    %c0_i32_0 = arith.constant 0 : i32
    %2 = arith.cmpi ne, %1, %c0_i32_0 : i32
    scf.if %2 {
      %c0_88 = arith.constant 0 : index
      %c0_89 = arith.constant 0 : index
      %c0_90 = arith.constant 0 : index
      %208 = vector.load %arg2[%c0_88, %c0_89, %c0_90] : memref<1x40x128xbf16, #tpu.memory_space<vmem>>, vector<1x40x128xbf16>
      %209 = vector.shape_cast %208 : vector<1x40x128xbf16> to vector<40x128xbf16>
      %210 = arith.extf %209 : vector<40x128xbf16> to vector<40x128xf32>
      %c0_91 = arith.constant 0 : index
      %c0_92 = arith.constant 0 : index
      %211 = vector.load %arg16[%c0_91, %c0_92] : memref<40x128xf32, #tpu.memory_space<vmem>>, vector<40x128xf32>
      tpu.vector_store %arg16[%c0_91, %c0_92], %210 {strides = array<i32>} : memref<40x128xf32, #tpu.memory_space<vmem>>, vector<40x128xf32>,
    } else {
    }
    %c0 = arith.constant 0 : index
    %c0_1 = arith.constant 0 : index
    %3 = vector.load %arg16[%c0, %c0_1] : memref<40x128xf32, #tpu.memory_space<vmem>>, vector<40x128xf32>
    %4 = arith.truncf %3 : vector<40x128xf32> to vector<40x128xbf16>
    %c0_2 = arith.constant 0 : index
    %c0_3 = arith.constant 0 : index
    %c0_4 = arith.constant 0 : index
    %5 = vector.load %arg3[%c0_2, %c0_3, %c0_4] : memref<1x128x384xbf16, #tpu.memory_space<vmem>>, vector<1x128x384xbf16>
    %6 = vector.shape_cast %5 : vector<1x128x384xbf16> to vector<128x384xbf16>
    %cst = arith.constant dense<0.000000e+00> : vector<40x384xf32>
    %7 = tpu.matmul %4, %6, %cst {dimension_numbers = #tpu.dot_dimension_numbers<[1], [0], [0], [1], [0, 0, 1, 1], [], []>} : vector<40x128xbf16>, vector<128x384xbf16>, vector<40x384xf32> -> vector<40x384xf32>
    %c0_5 = arith.constant 0 : index
    %c0_6 = arith.constant 0 : index
    %c0_7 = arith.constant 0 : index
    %8 = vector.load %arg4[%c0_5, %c0_6, %c0_7] : memref<1x1x384xf32, #tpu.memory_space<vmem>>, vector<1x1x384xf32>
    %9 = vector.shape_cast %8 : vector<1x1x384xf32> to vector<1x384xf32>
    %10 = vector.broadcast %9 : vector<1x384xf32> to vector<40x384xf32>
    %11 = arith.addf %7, %10 : vector<40x384xf32>
    %12 = arith.truncf %11 : vector<40x384xf32> to vector<40x384xbf16>
    %13 = tpu.iota {dimensions = array<i32: 1>} : vector<1x40xi32>
    %c39_i32 = arith.constant 39 : i32
    %14 = vector.broadcast %c39_i32 : i32 to vector<1x40xi32>
    %15 = arith.cmpi slt, %13, %14 : vector<1x40xi32>
    %cst_8 = arith.constant 0.000000e+00 : f32
    %16 = vector.broadcast %cst_8 : f32 to vector<40x128xf32>
    %17 = vector.extract_strided_slice %12 {offsets = [0, 0], sizes = [40, 32], strides = [1, 1]} : vector<40x384xbf16> to vector<40x32xbf16>
    %18 = vector.extract_strided_slice %12 {offsets = [0, 128], sizes = [40, 32], strides = [1, 1]} : vector<40x384xbf16> to vector<40x32xbf16>
    %19 = vector.extract_strided_slice %12 {offsets = [0, 256], sizes = [40, 32], strides = [1, 1]} : vector<40x384xbf16> to vector<40x32xbf16>
    %cst_9 = arith.constant dense<0.000000e+00> : vector<40x40xf32>
    %20 = tpu.matmul %17, %18, %cst_9 {dimension_numbers = #tpu.dot_dimension_numbers<[1], [1], [0], [0], [0, 0, 1, 0], [], []>} : vector<40x32xbf16>, vector<40x32xbf16>, vector<40x40xf32> -> vector<40x40xf32>
    %cst_10 = arith.constant -1.000000e+30 : f32
    %21 = vector.shape_cast %15 : vector<1x40xi1> to vector<1x40xi1>
    %22 = vector.broadcast %21 : vector<1x40xi1> to vector<40x40xi1>
    %23 = vector.broadcast %cst_10 : f32 to vector<40x40xf32>
    %24 = arith.select %22, %20, %23 : vector<40x40xi1>, vector<40x40xf32>
    %cst_11 = arith.constant dense<0xFF800000> : vector<40xf32>
    %25 = vector.multi_reduction <maximumf>, %24, %cst_11 [1] : vector<40x40xf32> to vector<40xf32>
    %26 = vector.shape_cast %25 : vector<40xf32> to vector<40x1xf32>
    %27 = vector.broadcast %26 : vector<40x1xf32> to vector<40x40xf32>
    %28 = arith.subf %24, %27 : vector<40x40xf32>
    %29 = math.exp %28 : vector<40x40xf32>
    %cst_12 = arith.constant dense<0.000000e+00> : vector<40xf32>
    %30 = vector.multi_reduction <add>, %29, %cst_12 [1] : vector<40x40xf32> to vector<40xf32>
    %31 = vector.shape_cast %30 : vector<40xf32> to vector<40x1xf32>
    %32 = tpu.reciprocal %31 {approx = true} : vector<40x1xf32> -> vector<40x1xf32>
    %33 = vector.broadcast %32 : vector<40x1xf32> to vector<40x40xf32>
    %34 = arith.mulf %29, %33 : vector<40x40xf32>
    %35 = arith.truncf %34 : vector<40x40xf32> to vector<40x40xbf16>
    %cst_13 = arith.constant dense<0.000000e+00> : vector<40x32xf32>
    %36 = tpu.matmul %35, %19, %cst_13 {dimension_numbers = #tpu.dot_dimension_numbers<[1], [0], [0], [1], [0, 0, 1, 1], [], []>} : vector<40x40xbf16>, vector<40x32xbf16>, vector<40x32xf32> -> vector<40x32xf32>
    %37 = arith.truncf %36 : vector<40x32xf32> to vector<40x32xbf16>
    %c0_14 = arith.constant 0 : index
    %c0_15 = arith.constant 0 : index
    %c0_16 = arith.constant 0 : index
    %38 = vector.load %arg5[%c0_14, %c0_15, %c0_16] : memref<1x128x128xbf16, #tpu.memory_space<vmem>>, vector<1x32x128xbf16>
    %39 = vector.shape_cast %38 : vector<1x32x128xbf16> to vector<32x128xbf16>
    %cst_17 = arith.constant dense<0.000000e+00> : vector<40x128xf32>
    %40 = tpu.matmul %37, %39, %cst_17 {dimension_numbers = #tpu.dot_dimension_numbers<[1], [0], [0], [1], [0, 0, 1, 1], [], []>} : vector<40x32xbf16>, vector<32x128xbf16>, vector<40x128xf32> -> vector<40x128xf32>
    %41 = arith.addf %16, %40 : vector<40x128xf32>
    %42 = vector.extract_strided_slice %12 {offsets = [0, 32], sizes = [40, 32], strides = [1, 1]} : vector<40x384xbf16> to vector<40x32xbf16>
    %43 = vector.extract_strided_slice %12 {offsets = [0, 160], sizes = [40, 32], strides = [1, 1]} : vector<40x384xbf16> to vector<40x32xbf16>
    %44 = vector.extract_strided_slice %12 {offsets = [0, 288], sizes = [40, 32], strides = [1, 1]} : vector<40x384xbf16> to vector<40x32xbf16>
    %cst_18 = arith.constant dense<0.000000e+00> : vector<40x40xf32>
    %45 = tpu.matmul %42, %43, %cst_18 {dimension_numbers = #tpu.dot_dimension_numbers<[1], [1], [0], [0], [0, 0, 1, 0], [], []>} : vector<40x32xbf16>, vector<40x32xbf16>, vector<40x40xf32> -> vector<40x40xf32>
    %cst_19 = arith.constant -1.000000e+30 : f32
    %46 = vector.shape_cast %15 : vector<1x40xi1> to vector<1x40xi1>
    %47 = vector.broadcast %46 : vector<1x40xi1> to vector<40x40xi1>
    %48 = vector.broadcast %cst_19 : f32 to vector<40x40xf32>
    %49 = arith.select %47, %45, %48 : vector<40x40xi1>, vector<40x40xf32>
    %cst_20 = arith.constant dense<0xFF800000> : vector<40xf32>
    %50 = vector.multi_reduction <maximumf>, %49, %cst_20 [1] : vector<40x40xf32> to vector<40xf32>
    %51 = vector.shape_cast %50 : vector<40xf32> to vector<40x1xf32>
    %52 = vector.broadcast %51 : vector<40x1xf32> to vector<40x40xf32>
    %53 = arith.subf %49, %52 : vector<40x40xf32>
    %54 = math.exp %53 : vector<40x40xf32>
    %cst_21 = arith.constant dense<0.000000e+00> : vector<40xf32>
    %55 = vector.multi_reduction <add>, %54, %cst_21 [1] : vector<40x40xf32> to vector<40xf32>
    %56 = vector.shape_cast %55 : vector<40xf32> to vector<40x1xf32>
    %57 = tpu.reciprocal %56 {approx = true} : vector<40x1xf32> -> vector<40x1xf32>
    %58 = vector.broadcast %57 : vector<40x1xf32> to vector<40x40xf32>
    %59 = arith.mulf %54, %58 : vector<40x40xf32>
    %60 = arith.truncf %59 : vector<40x40xf32> to vector<40x40xbf16>
    %cst_22 = arith.constant dense<0.000000e+00> : vector<40x32xf32>
    %61 = tpu.matmul %60, %44, %cst_22 {dimension_numbers = #tpu.dot_dimension_numbers<[1], [0], [0], [1], [0, 0, 1, 1], [], []>} : vector<40x40xbf16>, vector<40x32xbf16>, vector<40x32xf32> -> vector<40x32xf32>
    %62 = arith.truncf %61 : vector<40x32xf32> to vector<40x32xbf16>
    %c0_23 = arith.constant 0 : index
    %c32 = arith.constant 32 : index
    %c0_24 = arith.constant 0 : index
    %63 = vector.load %arg5[%c0_23, %c32, %c0_24] : memref<1x128x128xbf16, #tpu.memory_space<vmem>>, vector<1x32x128xbf16>
    %64 = vector.shape_cast %63 : vector<1x32x128xbf16> to vector<32x128xbf16>
    %cst_25 = arith.constant dense<0.000000e+00> : vector<40x128xf32>
    %65 = tpu.matmul %62, %64, %cst_25 {dimension_numbers = #tpu.dot_dimension_numbers<[1], [0], [0], [1], [0, 0, 1, 1], [], []>} : vector<40x32xbf16>, vector<32x128xbf16>, vector<40x128xf32> -> vector<40x128xf32>
    %66 = arith.addf %41, %65 : vector<40x128xf32>
    %67 = vector.extract_strided_slice %12 {offsets = [0, 64], sizes = [40, 32], strides = [1, 1]} : vector<40x384xbf16> to vector<40x32xbf16>
    %68 = vector.extract_strided_slice %12 {offsets = [0, 192], sizes = [40, 32], strides = [1, 1]} : vector<40x384xbf16> to vector<40x32xbf16>
    %69 = vector.extract_strided_slice %12 {offsets = [0, 320], sizes = [40, 32], strides = [1, 1]} : vector<40x384xbf16> to vector<40x32xbf16>
    %cst_26 = arith.constant dense<0.000000e+00> : vector<40x40xf32>
    %70 = tpu.matmul %67, %68, %cst_26 {dimension_numbers = #tpu.dot_dimension_numbers<[1], [1], [0], [0], [0, 0, 1, 0], [], []>} : vector<40x32xbf16>, vector<40x32xbf16>, vector<40x40xf32> -> vector<40x40xf32>
    %cst_27 = arith.constant -1.000000e+30 : f32
    %71 = vector.shape_cast %15 : vector<1x40xi1> to vector<1x40xi1>
    %72 = vector.broadcast %71 : vector<1x40xi1> to vector<40x40xi1>
    %73 = vector.broadcast %cst_27 : f32 to vector<40x40xf32>
    %74 = arith.select %72, %70, %73 : vector<40x40xi1>, vector<40x40xf32>
    %cst_28 = arith.constant dense<0xFF800000> : vector<40xf32>
    %75 = vector.multi_reduction <maximumf>, %74, %cst_28 [1] : vector<40x40xf32> to vector<40xf32>
    %76 = vector.shape_cast %75 : vector<40xf32> to vector<40x1xf32>
    %77 = vector.broadcast %76 : vector<40x1xf32> to vector<40x40xf32>
    %78 = arith.subf %74, %77 : vector<40x40xf32>
    %79 = math.exp %78 : vector<40x40xf32>
    %cst_29 = arith.constant dense<0.000000e+00> : vector<40xf32>
    %80 = vector.multi_reduction <add>, %79, %cst_29 [1] : vector<40x40xf32> to vector<40xf32>
    %81 = vector.shape_cast %80 : vector<40xf32> to vector<40x1xf32>
    %82 = tpu.reciprocal %81 {approx = true} : vector<40x1xf32> -> vector<40x1xf32>
    %83 = vector.broadcast %82 : vector<40x1xf32> to vector<40x40xf32>
    %84 = arith.mulf %79, %83 : vector<40x40xf32>
    %85 = arith.truncf %84 : vector<40x40xf32> to vector<40x40xbf16>
    %cst_30 = arith.constant dense<0.000000e+00> : vector<40x32xf32>
    %86 = tpu.matmul %85, %69, %cst_30 {dimension_numbers = #tpu.dot_dimension_numbers<[1], [0], [0], [1], [0, 0, 1, 1], [], []>} : vector<40x40xbf16>, vector<40x32xbf16>, vector<40x32xf32> -> vector<40x32xf32>
    %87 = arith.truncf %86 : vector<40x32xf32> to vector<40x32xbf16>
    %c0_31 = arith.constant 0 : index
    %c64 = arith.constant 64 : index
    %c0_32 = arith.constant 0 : index
    %88 = vector.load %arg5[%c0_31, %c64, %c0_32] : memref<1x128x128xbf16, #tpu.memory_space<vmem>>, vector<1x32x128xbf16>
    %89 = vector.shape_cast %88 : vector<1x32x128xbf16> to vector<32x128xbf16>
    %cst_33 = arith.constant dense<0.000000e+00> : vector<40x128xf32>
    %90 = tpu.matmul %87, %89, %cst_33 {dimension_numbers = #tpu.dot_dimension_numbers<[1], [0], [0], [1], [0, 0, 1, 1], [], []>} : vector<40x32xbf16>, vector<32x128xbf16>, vector<40x128xf32> -> vector<40x128xf32>
    %91 = arith.addf %66, %90 : vector<40x128xf32>
    %92 = vector.extract_strided_slice %12 {offsets = [0, 96], sizes = [40, 32], strides = [1, 1]} : vector<40x384xbf16> to vector<40x32xbf16>
    %93 = vector.extract_strided_slice %12 {offsets = [0, 224], sizes = [40, 32], strides = [1, 1]} : vector<40x384xbf16> to vector<40x32xbf16>
    %94 = vector.extract_strided_slice %12 {offsets = [0, 352], sizes = [40, 32], strides = [1, 1]} : vector<40x384xbf16> to vector<40x32xbf16>
    %cst_34 = arith.constant dense<0.000000e+00> : vector<40x40xf32>
    %95 = tpu.matmul %92, %93, %cst_34 {dimension_numbers = #tpu.dot_dimension_numbers<[1], [1], [0], [0], [0, 0, 1, 0], [], []>} : vector<40x32xbf16>, vector<40x32xbf16>, vector<40x40xf32> -> vector<40x40xf32>
    %cst_35 = arith.constant -1.000000e+30 : f32
    %96 = vector.shape_cast %15 : vector<1x40xi1> to vector<1x40xi1>
    %97 = vector.broadcast %96 : vector<1x40xi1> to vector<40x40xi1>
    %98 = vector.broadcast %cst_35 : f32 to vector<40x40xf32>
    %99 = arith.select %97, %95, %98 : vector<40x40xi1>, vector<40x40xf32>
    %cst_36 = arith.constant dense<0xFF800000> : vector<40xf32>
    %100 = vector.multi_reduction <maximumf>, %99, %cst_36 [1] : vector<40x40xf32> to vector<40xf32>
    %101 = vector.shape_cast %100 : vector<40xf32> to vector<40x1xf32>
    %102 = vector.broadcast %101 : vector<40x1xf32> to vector<40x40xf32>
    %103 = arith.subf %99, %102 : vector<40x40xf32>
    %104 = math.exp %103 : vector<40x40xf32>
    %cst_37 = arith.constant dense<0.000000e+00> : vector<40xf32>
    %105 = vector.multi_reduction <add>, %104, %cst_37 [1] : vector<40x40xf32> to vector<40xf32>
    %106 = vector.shape_cast %105 : vector<40xf32> to vector<40x1xf32>
    %107 = tpu.reciprocal %106 {approx = true} : vector<40x1xf32> -> vector<40x1xf32>
    %108 = vector.broadcast %107 : vector<40x1xf32> to vector<40x40xf32>
    %109 = arith.mulf %104, %108 : vector<40x40xf32>
    %110 = arith.truncf %109 : vector<40x40xf32> to vector<40x40xbf16>
    %cst_38 = arith.constant dense<0.000000e+00> : vector<40x32xf32>
    %111 = tpu.matmul %110, %94, %cst_38 {dimension_numbers = #tpu.dot_dimension_numbers<[1], [0], [0], [1], [0, 0, 1, 1], [], []>} : vector<40x40xbf16>, vector<40x32xbf16>, vector<40x32xf32> -> vector<40x32xf32>
    %112 = arith.truncf %111 : vector<40x32xf32> to vector<40x32xbf16>
    %c0_39 = arith.constant 0 : index
    %c96 = arith.constant 96 : index
    %c0_40 = arith.constant 0 : index
    %113 = vector.load %arg5[%c0_39, %c96, %c0_40] : memref<1x128x128xbf16, #tpu.memory_space<vmem>>, vector<1x32x128xbf16>
    %114 = vector.shape_cast %113 : vector<1x32x128xbf16> to vector<32x128xbf16>
    %cst_41 = arith.constant dense<0.000000e+00> : vector<40x128xf32>
    %115 = tpu.matmul %112, %114, %cst_41 {dimension_numbers = #tpu.dot_dimension_numbers<[1], [0], [0], [1], [0, 0, 1, 1], [], []>} : vector<40x32xbf16>, vector<32x128xbf16>, vector<40x128xf32> -> vector<40x128xf32>
    %116 = arith.addf %91, %115 : vector<40x128xf32>
    %c0_42 = arith.constant 0 : index
    %c0_43 = arith.constant 0 : index
    %c0_44 = arith.constant 0 : index
    %117 = vector.load %arg6[%c0_42, %c0_43, %c0_44] : memref<1x1x128xf32, #tpu.memory_space<vmem>>, vector<1x1x128xf32>
    %118 = vector.shape_cast %117 : vector<1x1x128xf32> to vector<1x128xf32>
    %119 = vector.broadcast %118 : vector<1x128xf32> to vector<40x128xf32>
    %120 = arith.addf %116, %119 : vector<40x128xf32>
    %121 = arith.addf %3, %120 : vector<40x128xf32>
    %c0_45 = arith.constant 0 : index
    %c0_46 = arith.constant 0 : index
    %c0_47 = arith.constant 0 : index
    %122 = vector.load %arg7[%c0_45, %c0_46, %c0_47] : memref<1x1x128xf32, #tpu.memory_space<vmem>>, vector<1x1x128xf32>
    %123 = vector.shape_cast %122 : vector<1x1x128xf32> to vector<1x128xf32>
    %c0_48 = arith.constant 0 : index
    %c0_49 = arith.constant 0 : index
    %c0_50 = arith.constant 0 : index
    %124 = vector.load %arg8[%c0_48, %c0_49, %c0_50] : memref<1x1x128xf32, #tpu.memory_space<vmem>>, vector<1x1x128xf32>
    %125 = vector.shape_cast %124 : vector<1x1x128xf32> to vector<1x128xf32>
    %cst_51 = arith.constant dense<0.000000e+00> : vector<40xf32>
    %126 = vector.multi_reduction <add>, %121, %cst_51 [1] : vector<40x128xf32> to vector<40xf32>
    %127 = vector.shape_cast %126 : vector<40xf32> to vector<40x1xf32>
    %cst_52 = arith.constant 1.280000e+02 : f32
    %128 = vector.broadcast %cst_52 : f32 to vector<40x1xf32>
    %129 = arith.divf %127, %128 : vector<40x1xf32>
    %130 = vector.broadcast %129 : vector<40x1xf32> to vector<40x128xf32>
    %131 = arith.subf %121, %130 : vector<40x128xf32>
    %132 = arith.mulf %131, %131 : vector<40x128xf32>
    %cst_53 = arith.constant dense<0.000000e+00> : vector<40xf32>
    %133 = vector.multi_reduction <add>, %132, %cst_53 [1] : vector<40x128xf32> to vector<40xf32>
    %134 = vector.shape_cast %133 : vector<40xf32> to vector<40x1xf32>
    %cst_54 = arith.constant 1.280000e+02 : f32
    %135 = vector.broadcast %cst_54 : f32 to vector<40x1xf32>
    %136 = arith.divf %134, %135 : vector<40x1xf32>
    %137 = vector.broadcast %129 : vector<40x1xf32> to vector<40x128xf32>
    %138 = arith.subf %121, %137 : vector<40x128xf32>
    %cst_55 = arith.constant 9.99999974E-6 : f32
    %139 = vector.broadcast %cst_55 : f32 to vector<40x1xf32>
    %140 = arith.addf %136, %139 : vector<40x1xf32>
    %141 = math.rsqrt %140 : vector<40x1xf32>
    %142 = vector.broadcast %141 : vector<40x1xf32> to vector<40x128xf32>
    %143 = arith.mulf %138, %142 : vector<40x128xf32>
    %144 = vector.broadcast %123 : vector<1x128xf32> to vector<40x128xf32>
    %145 = arith.mulf %143, %144 : vector<40x128xf32>
    %146 = vector.broadcast %125 : vector<1x128xf32> to vector<40x128xf32>
    %147 = arith.addf %145, %146 : vector<40x128xf32>
    %148 = arith.truncf %147 : vector<40x128xf32> to vector<40x128xbf16>
    %c0_56 = arith.constant 0 : index
    %c0_57 = arith.constant 0 : index
    %c0_58 = arith.constant 0 : index
    %149 = vector.load %arg9[%c0_56, %c0_57, %c0_58] : memref<1x128x256xbf16, #tpu.memory_space<vmem>>, vector<1x128x256xbf16>
    %150 = vector.shape_cast %149 : vector<1x128x256xbf16> to vector<128x256xbf16>
    %cst_59 = arith.constant dense<0.000000e+00> : vector<40x256xf32>
    %151 = tpu.matmul %148, %150, %cst_59 {dimension_numbers = #tpu.dot_dimension_numbers<[1], [0], [0], [1], [0, 0, 1, 1], [], []>} : vector<40x128xbf16>, vector<128x256xbf16>, vector<40x256xf32> -> vector<40x256xf32>
    %c0_60 = arith.constant 0 : index
    %c0_61 = arith.constant 0 : index
    %c0_62 = arith.constant 0 : index
    %152 = vector.load %arg10[%c0_60, %c0_61, %c0_62] : memref<1x1x256xf32, #tpu.memory_space<vmem>>, vector<1x1x256xf32>
    %153 = vector.shape_cast %152 : vector<1x1x256xf32> to vector<1x256xf32>
    %154 = vector.broadcast %153 : vector<1x256xf32> to vector<40x256xf32>
    %155 = arith.addf %151, %154 : vector<40x256xf32>
    %156 = arith.mulf %155, %155 : vector<40x256xf32>
    %157 = arith.mulf %155, %156 : vector<40x256xf32>
    %cst_63 = arith.constant 4.471500e-02 : f32
    %158 = vector.broadcast %cst_63 : f32 to vector<40x256xf32>
    %159 = arith.mulf %158, %157 : vector<40x256xf32>
    %160 = arith.addf %155, %159 : vector<40x256xf32>
    %cst_64 = arith.constant 0.797884583 : f32
    %161 = vector.broadcast %cst_64 : f32 to vector<40x256xf32>
    %162 = arith.mulf %161, %160 : vector<40x256xf32>
    %163 = math.tanh %162 : vector<40x256xf32>
    %cst_65 = arith.constant 1.000000e+00 : f32
    %164 = vector.broadcast %cst_65 : f32 to vector<40x256xf32>
    %165 = arith.addf %164, %163 : vector<40x256xf32>
    %cst_66 = arith.constant 5.000000e-01 : f32
    %166 = vector.broadcast %cst_66 : f32 to vector<40x256xf32>
    %167 = arith.mulf %166, %165 : vector<40x256xf32>
    %168 = arith.mulf %155, %167 : vector<40x256xf32>
    %169 = arith.truncf %168 : vector<40x256xf32> to vector<40x256xbf16>
    %c0_67 = arith.constant 0 : index
    %c0_68 = arith.constant 0 : index
    %c0_69 = arith.constant 0 : index
    %170 = vector.load %arg11[%c0_67, %c0_68, %c0_69] : memref<1x256x128xbf16, #tpu.memory_space<vmem>>, vector<1x256x128xbf16>
    %171 = vector.shape_cast %170 : vector<1x256x128xbf16> to vector<256x128xbf16>
    %cst_70 = arith.constant dense<0.000000e+00> : vector<40x128xf32>
    %172 = tpu.matmul %169, %171, %cst_70 {dimension_numbers = #tpu.dot_dimension_numbers<[1], [0], [0], [1], [0, 0, 1, 1], [], []>} : vector<40x256xbf16>, vector<256x128xbf16>, vector<40x128xf32> -> vector<40x128xf32>
    %c0_71 = arith.constant 0 : index
    %c0_72 = arith.constant 0 : index
    %c0_73 = arith.constant 0 : index
    %173 = vector.load %arg12[%c0_71, %c0_72, %c0_73] : memref<1x1x128xf32, #tpu.memory_space<vmem>>, vector<1x1x128xf32>
    %174 = vector.shape_cast %173 : vector<1x1x128xf32> to vector<1x128xf32>
    %175 = vector.broadcast %174 : vector<1x128xf32> to vector<40x128xf32>
    %176 = arith.addf %172, %175 : vector<40x128xf32>
    %177 = arith.addf %147, %176 : vector<40x128xf32>
    %c0_74 = arith.constant 0 : index
    %c0_75 = arith.constant 0 : index
    %c0_76 = arith.constant 0 : index
    %178 = vector.load %arg13[%c0_74, %c0_75, %c0_76] : memref<1x1x128xf32, #tpu.memory_space<vmem>>, vector<1x1x128xf32>
    %179 = vector.shape_cast %178 : vector<1x1x128xf32> to vector<1x128xf32>
    %c0_77 = arith.constant 0 : index
    %c0_78 = arith.constant 0 : index
    %c0_79 = arith.constant 0 : index
    %180 = vector.load %arg14[%c0_77, %c0_78, %c0_79] : memref<1x1x128xf32, #tpu.memory_space<vmem>>, vector<1x1x128xf32>
    %181 = vector.shape_cast %180 : vector<1x1x128xf32> to vector<1x128xf32>
    %cst_80 = arith.constant dense<0.000000e+00> : vector<40xf32>
    %182 = vector.multi_reduction <add>, %177, %cst_80 [1] : vector<40x128xf32> to vector<40xf32>
    %183 = vector.shape_cast %182 : vector<40xf32> to vector<40x1xf32>
    %cst_81 = arith.constant 1.280000e+02 : f32
    %184 = vector.broadcast %cst_81 : f32 to vector<40x1xf32>
    %185 = arith.divf %183, %184 : vector<40x1xf32>
    %186 = vector.broadcast %185 : vector<40x1xf32> to vector<40x128xf32>
    %187 = arith.subf %177, %186 : vector<40x128xf32>
    %188 = arith.mulf %187, %187 : vector<40x128xf32>
    %cst_82 = arith.constant dense<0.000000e+00> : vector<40xf32>
    %189 = vector.multi_reduction <add>, %188, %cst_82 [1] : vector<40x128xf32> to vector<40xf32>
    %190 = vector.shape_cast %189 : vector<40xf32> to vector<40x1xf32>
    %cst_83 = arith.constant 1.280000e+02 : f32
    %191 = vector.broadcast %cst_83 : f32 to vector<40x1xf32>
    %192 = arith.divf %190, %191 : vector<40x1xf32>
    %193 = vector.broadcast %185 : vector<40x1xf32> to vector<40x128xf32>
    %194 = arith.subf %177, %193 : vector<40x128xf32>
    %cst_84 = arith.constant 9.99999974E-6 : f32
    %195 = vector.broadcast %cst_84 : f32 to vector<40x1xf32>
    %196 = arith.addf %192, %195 : vector<40x1xf32>
    %197 = math.rsqrt %196 : vector<40x1xf32>
    %198 = vector.broadcast %197 : vector<40x1xf32> to vector<40x128xf32>
    %199 = arith.mulf %194, %198 : vector<40x128xf32>
    %200 = vector.broadcast %179 : vector<1x128xf32> to vector<40x128xf32>
    %201 = arith.mulf %199, %200 : vector<40x128xf32>
    %202 = vector.broadcast %181 : vector<1x128xf32> to vector<40x128xf32>
    %203 = arith.addf %201, %202 : vector<40x128xf32>
    %c0_85 = arith.constant 0 : index
    %c0_86 = arith.constant 0 : index
    %204 = vector.load %arg16[%c0_85, %c0_86] : memref<40x128xf32, #tpu.memory_space<vmem>>, vector<40x128xf32>
    tpu.vector_store %arg16[%c0_85, %c0_86], %203 {strides = array<i32>} : memref<40x128xf32, #tpu.memory_space<vmem>>, vector<40x128xf32>,
    %c1_i32 = arith.constant 1 : i32
    %205 = arith.cmpi eq, %arg1, %c1_i32 : i32
    %206 = arith.extui %205 : i1 to i32
    %c0_i32_87 = arith.constant 0 : i32
    %207 = arith.cmpi ne, %206, %c0_i32_87 : i32
    scf.if %207 {
      %208 = arith.truncf %203 : vector<40x128xf32> to vector<40x128xbf16>
      %c0_88 = arith.constant 0 : index
      %c0_89 = arith.constant 0 : index
      %c0_90 = arith.constant 0 : index
      %209 = vector.load %arg15[%c0_88, %c0_89, %c0_90] : memref<1x40x128xbf16, #tpu.memory_space<vmem>>, vector<1x40x128xbf16>
      %210 = vector.shape_cast %209 : vector<1x40x128xbf16> to vector<40x128xbf16>
      %211 = vector.shape_cast %208 : vector<40x128xbf16> to vector<1x40x128xbf16>
      tpu.vector_store %arg15[%c0_88, %c0_89, %c0_90], %211 {strides = array<i32>} : memref<1x40x128xbf16, #tpu.memory_space<vmem>>, vector<1x40x128xbf16>,
    } else {
    }
    return
  }
  func.func @transform_0(%arg0: i32, %arg1: i32) -> (i32, i32, i32) {
    %c0_i32 = arith.constant 0 : i32
    %c0_i32_0 = arith.constant 0 : i32
    %c0_i32_1 = arith.constant 0 : i32
    return %arg0, %c0_i32, %c0_i32_0 : i32, i32, i32
  }
  func.func @transform_1(%arg0: i32, %arg1: i32) -> (i32, i32, i32) {
    %c0_i32 = arith.constant 0 : i32
    %c0_i32_0 = arith.constant 0 : i32
    %c0_i32_1 = arith.constant 0 : i32
    return %arg1, %c0_i32, %c0_i32_0 : i32, i32, i32
  }
  func.func @transform_2(%arg0: i32, %arg1: i32) -> (i32, i32, i32) {
    %c0_i32 = arith.constant 0 : i32
    %c0_i32_0 = arith.constant 0 : i32
    %c0_i32_1 = arith.constant 0 : i32
    return %arg1, %c0_i32, %c0_i32_0 : i32, i32, i32
  }
  func.func @transform_3(%arg0: i32, %arg1: i32) -> (i32, i32, i32) {
    %c0_i32 = arith.constant 0 : i32
    %c0_i32_0 = arith.constant 0 : i32
    %c0_i32_1 = arith.constant 0 : i32
    return %arg1, %c0_i32, %c0_i32_0 : i32, i32, i32
  }
  func.func @transform_4(%arg0: i32, %arg1: i32) -> (i32, i32, i32) {
    %c0_i32 = arith.constant 0 : i32
    %c0_i32_0 = arith.constant 0 : i32
    %c0_i32_1 = arith.constant 0 : i32
    return %arg1, %c0_i32, %c0_i32_0 : i32, i32, i32
  }
  func.func @transform_5(%arg0: i32, %arg1: i32) -> (i32, i32, i32) {
    %c0_i32 = arith.constant 0 : i32
    %c0_i32_0 = arith.constant 0 : i32
    %c0_i32_1 = arith.constant 0 : i32
    return %arg1, %c0_i32, %c0_i32_0 : i32, i32, i32
  }
  func.func @transform_6(%arg0: i32, %arg1: i32) -> (i32, i32, i32) {
    %c0_i32 = arith.constant 0 : i32
    %c0_i32_0 = arith.constant 0 : i32
    %c0_i32_1 = arith.constant 0 : i32
    return %arg1, %c0_i32, %c0_i32_0 : i32, i32, i32
  }
  func.func @transform_7(%arg0: i32, %arg1: i32) -> (i32, i32, i32) {
    %c0_i32 = arith.constant 0 : i32
    %c0_i32_0 = arith.constant 0 : i32
    %c0_i32_1 = arith.constant 0 : i32
    return %arg1, %c0_i32, %c0_i32_0 : i32, i32, i32
  }
  func.func @transform_8(%arg0: i32, %arg1: i32) -> (i32, i32, i32) {
    %c0_i32 = arith.constant 0 : i32
    %c0_i32_0 = arith.constant 0 : i32
    %c0_i32_1 = arith.constant 0 : i32
    return %arg1, %c0_i32, %c0_i32_0 : i32, i32, i32
  }
  func.func @transform_9(%arg0: i32, %arg1: i32) -> (i32, i32, i32) {
    %c0_i32 = arith.constant 0 : i32
    %c0_i32_0 = arith.constant 0 : i32
    %c0_i32_1 = arith.constant 0 : i32
    return %arg1, %c0_i32, %c0_i32_0 : i32, i32, i32
  }
  func.func @transform_10(%arg0: i32, %arg1: i32) -> (i32, i32, i32) {
    %c0_i32 = arith.constant 0 : i32
    %c0_i32_0 = arith.constant 0 : i32
    %c0_i32_1 = arith.constant 0 : i32
    return %arg1, %c0_i32, %c0_i32_0 : i32, i32, i32
  }
  func.func @transform_11(%arg0: i32, %arg1: i32) -> (i32, i32, i32) {
    %c0_i32 = arith.constant 0 : i32
    %c0_i32_0 = arith.constant 0 : i32
    %c0_i32_1 = arith.constant 0 : i32
    return %arg1, %c0_i32, %c0_i32_0 : i32, i32, i32
  }
  func.func @transform_12(%arg0: i32, %arg1: i32) -> (i32, i32, i32) {
    %c0_i32 = arith.constant 0 : i32
    %c0_i32_0 = arith.constant 0 : i32
    %c0_i32_1 = arith.constant 0 : i32
    return %arg1, %c0_i32, %c0_i32_0 : i32, i32, i32
  }
  func.func @transform_13(%arg0: i32, %arg1: i32) -> (i32, i32, i32) {
    %c0_i32 = arith.constant 0 : i32
    %c0_i32_0 = arith.constant 0 : i32
    %c0_i32_1 = arith.constant 0 : i32
    return %arg0, %c0_i32, %c0_i32_0 : i32, i32, i32
  }
}

</mosaic_0001>

<bundles_post_ra>
// kernel: wav2vec2_speech_model.8
= control target key start
LH: loop header
LB: loop body
LE: loop exit
PB: predicated region body
PF: predicated region fallthrough
CT: control target
= control target key end

     0   :  { %s851_s9 = smov 0   ;;  %s979_s0 = inlined_call_operand.vmem [shape: bf16[2,39,384], index: 0, kind: input, shape index: {}]   ;;  %s980_s1 = inlined_call_operand.vmem [shape: bf16[384,128], index: 1, kind: input, shape index: {}]   ;;  %s981_s2 = inlined_call_operand.vmem [shape: bf16[2,39,128], index: 2, kind: output, shape index: {}]  }
   0x1 LB: > { %s633_s10 = sadd.s32 4294967295, %s832_s9   ;;  %p637_p0 = scmp.ge.s32.totalorder %s832_s9, 1  ;;  %s832_s9 = sphi %s851_s9, %s12_s9  }
   0x2   : > { %p112_p1 = scmp.lt.s32.totalorder %s832_s9, 3 }
   0x4   : > { %p113_p2 = pnand %p637_p0, %p112_p1 }
   0x5   : > { %p134_p3 = scmp.lt.s32.totalorder (!%p113_p2), %s633_s10, 1 }
   0x6   : > { %116 = sbr.rel (%p113_p2) target bundleno = 294 (0x126), region = 28 }
   0xb   : > { %v781_v0 = vld [vmem:[%s980_s1 + $0x78] sm:$0xff]   ;;  %v834_v1 = vmov 0.0   ;;  %vm835_vm0 = vmmov 0   ;;  %v784_v4 = vld [vmem:[%s980_s1 + $0x70] sm:$0xff]   ;;  %v787_v7 = vld [vmem:[%s980_s1 + $0x68] sm:$0xff]   ;;  %s983_s10 = smov (!%p134_p3, %s633_s10), 1 }
   0xc   : > { %741 = vmatprep.subr.bf16.mxu1 %v834_v1  ;;  %v782_v2 = vld [vmem:[%s980_s1 + $0xb8] sm:$0xff]   ;;  %696 = vmatprep.subr.bf16.mxu0 %v781_v0  ;;  %v785_v5 = vld [vmem:[%s980_s1 + $0xb0] sm:$0xff]   ;;  %v788_v8 = vld [vmem:[%s980_s1 + $0xa8] sm:$0xff]   ;;  %s769_s17 = smul.u32 60, %s983_s10  ;;  %vm572_vm1 = vcmask 1043456  }
   0xd   : > { %v783_v3 = vld [vmem:[%s980_s1 + $0x38] sm:$0xff]   ;;  %757 = vmatprep.mubr.msk.bf16.mxu1 %vm835_vm0, %v834_v1  ;;  %742 = vmatpush3.bf16.msra.mxu1 %v782_v2  ;;  %v786_v6 = vld [vmem:[%s980_s1 + $0x30] sm:$0xff]   ;;  %v789_v9 = vld [vmem:[%s980_s1 + $0x28] sm:$0xff]   ;;  %s770_s11 = smul.u32 20, %s983_s10  ;;  %vm573_vm2 = vsmask.f32 3328 }
   0xe   : > { %697 = vmatpush3.bf16.msra.mxu0 %v783_v3  ;;  %743 = vmatprep.subr.bf16.mxu1 %v834_v1  ;;  %v790_v10 = vld [vmem:[%s980_s1 + $0x60] sm:$0xff]   ;;  %v793_v13 = vld [vmem:[%s980_s1 + $0x58] sm:$0xff]   ;;  %v796_v16 = vld [vmem:[%s980_s1 + $0x50] sm:$0xff]   ;;  %s937_s28 = scalar_lea.vmem %s979_s0, %s769_s17 }
   0xf   : > { %698 = vmatprep.subr.bf16.mxu0 %v784_v4  ;;  %v791_v11 = vld [vmem:[%s980_s1 + $0xa0] sm:$0xff]   ;;  %v794_v14 = vld [vmem:[%s980_s1 + $0x98] sm:$0xff]   ;;  %v797_v17 = vld [vmem:[%s980_s1 + $0x90] sm:$0xff]   ;;  %s143_s14 = scalar_lea.vmem %s981_s2, %s770_s11 }
  0x10   : > { %v792_v12 = vld [vmem:[%s980_s1 + $0x20] sm:$0xff]   ;;  %v795_v15 = vld [vmem:[%s980_s1 + $0x18] sm:$0xff]   ;;  %v798_v18 = vld [vmem:[%s980_s1 + $0x10] sm:$0xff]  }
  0x11   : > { %744 = vmatpush3.bf16.msra.mxu1 %v785_v5  ;;  %v799_v19 = vld [vmem:[%s980_s1 + $0x48] sm:$0xff]   ;;  %v802_v22 = vld [vmem:[%s980_s1 + $0x40] sm:$0xff]   ;;  %v153_v29 = vld [vmem:[%s937_s28 + $0x30] sm:$0xff] }
  0x12   : > { %699 = vmatpush3.bf16.msra.mxu0 %v786_v6  ;;  %745 = vmatprep.subr.bf16.mxu1 %v834_v1  ;;  %v800_v20 = vld [vmem:[%s980_s1 + $0x88] sm:$0xff]   ;;  %v807_v23 = vld [vmem:[%s937_s28 + $0x4] ss:$12 sps:$4 sm:$0xff]   ;;  %v647_v32 = vcombine.high %v153_v29, %v153_v29  ;;  %v814_v33 = vld [vmem:[%s937_s28 + $0x38] ss:$0 sps:$4 sm:$0xff]   ;;  %v646_v34 = vcombine.low %v153_v29, %v153_v29 }
  0x13   : > { %700 = vmatprep.subr.bf16.mxu0 %v787_v7  ;;  %v801_v21 = vld [vmem:[%s980_s1 + $0x8] sm:$0xff]   ;;  %v803_v24 = vld [vmem:[%s980_s1 + $0x80] sm:$0xff]   ;;  %422 = vmatprep.mubr.bf16.mxu0 %v807_v23  ;;  %vm574_vm3 = vmand %vm572_vm1, %vm573_vm2 }
  0x14   : > { %v804_v25 = vld [vmem:[%s980_s1] sm:$0xff]   ;;  %v808_v26 = vld [vmem:[%s937_s28 + $0x8] ss:$12 sps:$4 sm:$0xff]  }
  0x15   : > { %746 = vmatpush3.bf16.msra.mxu1 %v788_v8  ;;  %v805_v27 = vld [vmem:[%s937_s28] ss:$12 sps:$4 sm:$0xff]   ;;  %v809_v28 = vld [vmem:[%s937_s28 + $0x1c] ss:$12 sps:$4 sm:$0xff]   ;;  %v812_v31 = vld [vmem:[%s937_s28 + $0x18] ss:$12 sps:$4 sm:$0xff]  }
  0x16   : > { %701 = vmatpush3.bf16.msra.mxu0 %v789_v9  ;;  %747 = vmatprep.subr.bf16.mxu1 %v834_v1  ;;  %v811_v30 = vld [vmem:[%s937_s28 + $0x20] ss:$12 sps:$4 sm:$0xff]  }
  0x17   : > { %702 = vmatprep.subr.bf16.mxu0 %v790_v10 }
  0x19   : > { %748 = vmatpush3.bf16.msra.mxu1 %v791_v11 }
  0x1a   : > { %703 = vmatpush3.bf16.msra.mxu0 %v792_v12  ;;  %749 = vmatprep.subr.bf16.mxu1 %v834_v1 }
  0x1b   : > { %704 = vmatprep.subr.bf16.mxu0 %v793_v13 }
  0x1d   : > { %750 = vmatpush3.bf16.msra.mxu1 %v794_v14 }
  0x1e   : > { %705 = vmatpush3.bf16.msra.mxu0 %v795_v15  ;;  %751 = vmatprep.subr.bf16.mxu1 %v834_v1 }
  0x1f   : > { %706 = vmatprep.subr.bf16.mxu0 %v796_v16 }
  0x21   : > { %752 = vmatpush3.bf16.msra.mxu1 %v797_v17 }
  0x22   : > { %707 = vmatpush3.bf16.msra.mxu0 %v798_v18  ;;  %753 = vmatprep.subr.bf16.mxu1 %v834_v1 }
  0x23   : > { %708 = vmatprep.subr.bf16.mxu0 %v799_v19 }
  0x25   : > { %754 = vmatpush3.bf16.msra.mxu1 %v800_v20 }
  0x26   : > { %709 = vmatpush3.bf16.msra.mxu0 %v801_v21  ;;  %755 = vmatprep.subr.bf16.mxu1 %v834_v1 }
  0x27   : > { %710 = vmatprep.subr.bf16.mxu0 %v802_v22 }
  0x29   : > { %756 = vmatpush3.bf16.msra.mxu1 %v803_v24 }
  0x2a   : > { %711 = vmatpush3.bf16.msra.mxu0 %v804_v25 }
  0x2c   : > { %758 = vmatmul.mubr.bf16.vlgmr.msra.gmra.mxu1 %v808_v26 }
  0x2d   : > { %423 = vmatmul.mubr.bf16.vlgmr.msra.gmra.mxu0 %v805_v27  ;;  %761 = vmatprep.mubr.msk.bf16.mxu1 %vm835_vm0, %v834_v1 }
  0x2e   : > { %430 = vmatprep.mubr.bf16.mxu0 %v809_v28 }
  0x34   : > { %762 = vmatmul.mubr.bf16.gmra.mxu1 %v811_v30 }
  0x35   : > { %431 = vmatmul.mubr.bf16.gmra.mxu0 %v812_v31  ;;  %765 = vmatprep.mubr.msk.bf16.mxu1 %vm835_vm0, %v834_v1 }
  0x36   : > { %438 = vmatprep.mubr.bf16.mxu0 %v647_v32 }
  0x3c   : > { %766 = vmatmul.mubr.bf16.gmra.mxu1 %v814_v33 }
  0x3d   : > { %439 = vmatmul.mubr.bf16.gmra.mxu0 %v646_v34 }
  0xec   : > { %v480_v35 = vpop.f32.mrf.mxu1 }
  0xed   : > { %v712_v36 = vpop.f32.mrf.mxu0 }
  0xee   : > { %v759_v37 = vpop.f32.mrf.mxu1 }
  0xef   : > { %v713_v38 = vpop.f32.mrf.mxu0 }
  0xf0   : > { %v714_v39 = vadd.f32 %v713_v38, %v712_v36  ;;  %v483_v40 = vpop.f32.mrf.mxu1 }
  0xf1   : > { %v715_v41 = vpop.f32.mrf.mxu0 }
  0xf2   : > { %v965_v42 = vadd.f32 %v714_v39, %v480_v35  ;;  %v760_v43 = vpop.f32.mrf.mxu1 }
  0xf3   : > { %v716_v44 = vpop.f32.mrf.mxu0 }
  0xf4   : > { %v502_v45 = vmul.f32 %v965_v42, %v965_v42  ;;  %v717_v46 = vadd.f32 %v716_v44, %v715_v41  ;;  %v488_v47 = vpop.f32.mrf.mxu1 }
  0xf5   : > { %v718_v48 = vpop.f32.mrf.mxu0 }
  0xf6   : > { %v507_v49 = vmul.f32 %v502_v45, %v965_v42  ;;  %v484_v50 = vadd.f32 %v717_v46, %v483_v40  ;;  %v763_v51 = vpop.f32.mrf.mxu1 }
  0xf7   : > { %v719_v52 = vpop.f32.mrf.mxu0 }
  0xf8   : > { %v512_v53 = vmul.f32 0.044715, %v507_v49  ;;  %v503_v54 = vmul.f32 %v484_v50, %v484_v50  ;;  %v720_v55 = vadd.f32 %v719_v52, %v718_v48  ;;  %v491_v56 = vpop.f32.mrf.mxu1 }
  0xf9   : > { %v721_v57 = vpop.f32.mrf.mxu0 }
  0xfa   : > { %v517_v58 = vadd.f32 %v512_v53, %v965_v42  ;;  %v508_v59 = vmul.f32 %v503_v54, %v484_v50  ;;  %v489_v60 = vadd.f32 %v720_v55, %v488_v47  ;;  %v764_v61 = vpop.f32.mrf.mxu1 }
  0xfb   : > { %v722_v62 = vpop.f32.mrf.mxu0 }
  0xfc   : > { %v522_v63 = vmul.f32 0.7978846, %v517_v58  ;;  %v513_v0 = vmul.f32 0.044715, %v508_v59  ;;  %v504_v1 = vmul.f32 %v489_v60, %v489_v60  ;;  %v723_v2 = vadd.f32 %v722_v62, %v721_v57  ;;  %v496_v3 = vpop.f32.mrf.mxu1 }
  0xfd   : > { %v724_v4 = vpop.f32.mrf.mxu0 }
  0xfe   : > { %816 = vtanh.f32 %v522_v63  ;;  %v518_v5 = vadd.f32 %v513_v0, %v484_v50  ;;  %v509_v6 = vmul.f32 %v504_v1, %v489_v60  ;;  %v492_v7 = vadd.f32 %v723_v2, %v491_v56  ;;  %v767_v8 = vpop.f32.mrf.mxu1 }
  0xff   : > { %v725_v9 = vpop.f32.mrf.mxu0 }
 0x100   : > { %v523_v10 = vmul.f32 0.7978846, %v518_v5  ;;  %v514_v11 = vmul.f32 0.044715, %v509_v6  ;;  %v505_v12 = vmul.f32 %v492_v7, %v492_v7  ;;  %v726_v13 = vadd.f32 %v725_v9, %v724_v4  ;;  %v499_v14 = vpop.f32.mrf.mxu1 }
 0x101   : > { %v727_v15 = vpop.f32.mrf.mxu0 }
 0x102   : > { %818 = vtanh.f32 %v523_v10  ;;  %v519_v16 = vadd.f32 %v514_v11, %v489_v60  ;;  %v510_v17 = vmul.f32 %v505_v12, %v492_v7  ;;  %v497_v18 = vadd.f32 %v726_v13, %v496_v3  ;;  %v768_v19 = vpop.f32.mrf.mxu1 }
 0x103   : > { %v728_v20 = vpop.f32.mrf.mxu0 }
 0x104   : > { %v524_v21 = vmul.f32 0.7978846, %v519_v16  ;;  %v515_v22 = vmul.f32 0.044715, %v510_v17  ;;  %v506_v23 = vmul.f32 %v497_v18, %v497_v18 }
 0x106   : > { %820 = vtanh.f32 %v524_v21  ;;  %v520_v24 = vadd.f32 %v515_v22, %v492_v7  ;;  %v511_v25 = vmul.f32 %v506_v23, %v497_v18 }
 0x108   : > { %v525_v26 = vmul.f32 0.7978846, %v520_v24  ;;  %v516_v27 = vmul.f32 0.044715, %v511_v25 }
 0x10a   : > { %822 = vtanh.f32 %v525_v26  ;;  %v521_v28 = vadd.f32 %v516_v27, %v497_v18 }
 0x10b   : > { %v817_v29 = vpop.eup %816 }
 0x10c   : > { %v532_v30 = vadd.f32 1.0, %v817_v29  ;;  %v526_v31 = vmul.f32 0.7978846, %v521_v28 }
 0x10e   : > { %824 = vtanh.f32 %v526_v31  ;;  %v537_v33 = vmul.f32 0.5, %v532_v30 }
 0x10f   : > { %v819_v32 = vpop.eup %818 }
 0x110   : > { %v533_v34 = vadd.f32 1.0, %v819_v32  ;;  %v542_v37 = vmul.f32 %v537_v33, %v965_v42 }
 0x112   : > { %v538_v35 = vmul.f32 0.5, %v533_v34 }
 0x113   : > { %v821_v36 = vpop.eup %820 }
 0x114   : > { %v543_v38 = vmul.f32 %v538_v35, %v484_v50  ;;  %v534_v39 = vadd.f32 1.0, %v821_v36  ;;  %v575_v50 = vld [vmem:[%s143_s14 + $0x10] sm:$0xf] }
 0x116   : > { %v688_v40 = vpack.c.bf16 %v543_v38, %v542_v37  ;;  %v539_v43 = vmul.f32 0.5, %v534_v39 }
 0x117   : > { %v823_v41 = vpop.eup %822 }
 0x118   : > { %689 = vst [vmem:[%s143_s14] sm:$0xff] %v688_v40   ;;  %v535_v44 = vadd.f32 1.0, %v823_v41  ;;  %v544_v47 = vmul.f32 %v539_v43, %v489_v60 }
 0x11a   : > { %v540_v45 = vmul.f32 0.5, %v535_v44 }
 0x11b   : > { %v825_v46 = vpop.eup %824 }
 0x11c   : > { %v545_v48 = vmul.f32 %v540_v45, %v492_v7  ;;  %v536_v49 = vadd.f32 1.0, %v825_v46 }
 0x11e   : > { %v693_v51 = vpack.c.bf16 %v545_v48, %v544_v47  ;;  %v541_v52 = vmul.f32 0.5, %v536_v49 }
 0x120   : > { %695 = vst [vmem:[%s143_s14 + $0x8] sm:$0xff] %v693_v51   ;;  %v546_v42 = vmul.f32 %v541_v52, %v497_v18 }
 0x122   : > { %v684_v53 = vpack.c.bf16 %v546_v42, %v546_v42 }
 0x124   : > { %v576_v54 = vsel %vm574_vm3, %v684_v53, %v575_v50 }
 0x125   : > { %577 = vst [vmem:[%s143_s14 + $0x10] sm:$0xf] %v576_v54 }
 0x126 PF: > { %s12_s9 = sadd.s32 1, %s832_s9  }
 0x127   : > { %p9_p4 = scmp.ge.s32.totalorder %s12_s9, 4  }
 0x129   :  { %11 = sbr.rel (!%p9_p4) target bundleno = 1 (0x1), region = 58 }

// kernel: wav2vec2_speech_model.6
= control target key start
LH: loop header
LB: loop body
LE: loop exit
PB: predicated region body
PF: predicated region fallthrough
CT: control target
= control target key end

     0   :  { %s1193_s15 = smov 0   ;;  %s1447_s0 = inlined_call_operand.vmem [shape: bf16[2,159,10], index: 0, kind: input, shape index: {}]   ;;  %s1448_s1 = inlined_call_operand.vmem [shape: bf16[10,128], index: 1, kind: input, shape index: {}]   ;;  %s1449_s2 = inlined_call_operand.vmem [shape: f32[1,128], index: 2, kind: input, shape index: {}]   ;;  %s1450_s3 = inlined_call_operand.vmem [shape: f32[1,128], index: 3, kind: input, shape index: {}]   ;;  %s1451_s4 = inlined_call_operand.vmem [shape: bf16[2,159,128], index: 4, kind: output, shape index: {}]  }
   0x1 LB: > { %s936_s16 = sadd.s32 4294967295, %s1166_s15   ;;  %p940_p0 = scmp.ge.s32.totalorder %s1166_s15, 1  ;;  %s1166_s15 = sphi %s1193_s15, %s14_s15  }
   0x2   : > { %p162_p1 = scmp.lt.s32.totalorder %s1166_s15, 3 }
   0x4   : > { %p163_p2 = pnand %p940_p0, %p162_p1 }
   0x5   : > { %p188_p3 = scmp.lt.s32.totalorder (!%p163_p2), %s936_s16, 1 }
   0x6   : > { %166 = sbr.rel (%p163_p2) target bundleno = 414 (0x19e), region = 36 }
   0xb   : > { %v1107_v0 = vld [vmem:[%s1448_s1] sm:$0x1f]   ;;  %vm307_vm0 = vcmask 1044480   ;;  %s1453_s16 = smov (!%p188_p3, %s936_s16), 1  ;;  %vm276_vm1 = vcmask 80896   ;;  %vm442_vm2 = vcmask 1046528  }
   0xc   : > { %1096 = vmatprep.subr.msk.bf16.mxu0 %vm307_vm0, %v1107_v0  ;;  %v309_v1 = vsel %vm307_vm0, %v1107_v0, 0  ;;  %1097 = vmatprep.subr.msk.bf16.mxu1 %vm307_vm0, %v1107_v0  ;;  %s1098_s19 = smul.u32 80, %s1453_s16  ;;  %vm875_vm3 = vcmask 1043456   ;;  %vm876_vm4 = vsmask.f32 3328 }
   0xd   : > { %1073 = vmatpush3.bf16.msra.mxu0 %v309_v1  ;;  %1095 = vmatpush3.bf16.msra.mxu1 %v309_v1  ;;  %vm877_vm5 = vmand %vm875_vm3, %vm876_vm4 }
   0xe   : > { %s192_s22 = scalar_lea.vmem %s1447_s0, %s1098_s19  ;;  %s1412_s29 = scalar_lea.vmem %s1451_s4, %s1098_s19 }
   0xf   : > { %v1108_v2 = vld [vmem:[%s192_s22] sm:$0xff]   ;;  %v1109_v3 = vld [vmem:[%s192_s22 + $0x8] sm:$0xff]   ;;  %v1110_v4 = vld [vmem:[%s192_s22 + $0x10] sm:$0xff]  }
  0x10   : > { %1074 = vmatprep.mubr.msk.bf16.mxu0 %vm276_vm1, %v1108_v2  ;;  %v1111_v5 = vld [vmem:[%s192_s22 + $0x18] sm:$0xff]   ;;  %v1112_v6 = vld [vmem:[%s192_s22 + $0x20] sm:$0xff]   ;;  %v1114_v7 = vld [vmem:[%s192_s22 + $0x30] sm:$0xff]  }
  0x11   : > { %1075 = vmatmul.mubr.msk.bf16.vlgmr.msra.gmra.mxu0 %vm276_vm1, %v1109_v3  ;;  %v1115_v8 = vld [vmem:[%s192_s22 + $0x38] sm:$0xff]   ;;  %1086 = vmatprep.mubr.msk.bf16.mxu1 %vm276_vm1, %v1114_v7  ;;  %v1116_v9 = vld [vmem:[%s192_s22 + $0x40] sm:$0xff]   ;;  %v1117_v10 = vld [vmem:[%s192_s22 + $0x48] sm:$0xff]  }
  0x12   : > { %1078 = vmatprep.mubr.msk.bf16.mxu0 %vm276_vm1, %v1110_v4  ;;  %1087 = vmatmul.mubr.msk.bf16.vlgmr.msra.gmra.mxu1 %vm276_vm1, %v1115_v8  ;;  %v1113_v11 = vld [vmem:[%s192_s22 + $0x28] sm:$0xff]  }
  0x13   : > { %1090 = vmatprep.mubr.msk.bf16.mxu1 %vm276_vm1, %v1116_v9 }
  0x19   : > { %1079 = vmatmul.mubr.msk.bf16.gmra.mxu0 %vm276_vm1, %v1111_v5 }
  0x1a   : > { %1082 = vmatprep.mubr.msk.bf16.mxu0 %vm276_vm1, %v1112_v6  ;;  %1091 = vmatmul.mubr.msk.bf16.gmra.mxu1 %vm276_vm1, %v1117_v10 }
  0x21   : > { %1083 = vmatmul.mubr.msk.bf16.gmra.mxu0 %vm276_vm1, %v1113_v11 }
  0xd1   : > { %v1076_v12 = vpop.f32.mrf.mxu0 }
  0xd2   : > { %v1222_v20 = vpop.f32.mrf.mxu1 }
  0xd3   : > { %v345_v13 = vpop.f32.mrf.mxu0 }
  0xd4   : > { %v1224_v25 = vpop.f32.mrf.mxu1 }
  0xd5   : > { %v1077_v14 = vpop.f32.mrf.mxu0 }
  0xd6   : > { %v1226_v30 = vpop.f32.mrf.mxu1 }
  0xd7   : > { %v348_v15 = vpop.f32.mrf.mxu0 }
  0xd8   : > { %v424_v16 = vadd.f32 %v348_v15, %v345_v13  ;;  %v396_v35 = vpop.f32.mrf.mxu1 }
  0xd9   : > { %v1080_v17 = vpop.f32.mrf.mxu0 }
  0xda   : > { %v425_v18 = vadd.f32 %v1076_v12, %v424_v16  ;;  %v1228_v38 = vpop.f32.mrf.mxu1 }
  0xdb   : > { %v361_v19 = vpop.f32.mrf.mxu0 }
  0xdc   : > { %v426_v21 = vadd.f32 %v1077_v14, %v425_v18  ;;  %v409_v41 = vpop.f32.mrf.mxu1 }
  0xdd   : > { %v1081_v22 = vpop.f32.mrf.mxu0 }
  0xde   : > { %v427_v23 = vadd.f32 %v426_v21, %v361_v19  ;;  %v1232_v44 = vpop.f32.mrf.mxu1 }
  0xdf   : > { %v364_v24 = vpop.f32.mrf.mxu0  ;;  %v443_v50 = vsel %vm442_vm2, %v1232_v44, 0.0 }
  0xe0   : > { %v428_v26 = vadd.f32 %v427_v23, %v364_v24  ;;  %v412_v47 = vpop.f32.mrf.mxu1 }
  0xe1   : > { %v1084_v27 = vpop.f32.mrf.mxu0 }
  0xe2   : > { %v429_v28 = vadd.f32 %v1080_v17, %v428_v26 }
  0xe3   : > { %v377_v29 = vpop.f32.mrf.mxu0 }
  0xe4   : > { %v430_v31 = vadd.f32 %v1081_v22, %v429_v28 }
  0xe5   : > { %v1085_v32 = vpop.f32.mrf.mxu0 }
  0xe6   : > { %v431_v33 = vadd.f32 %v430_v31, %v377_v29 }
  0xe7   : > { %v380_v34 = vpop.f32.mrf.mxu0 }
  0xe8   : > { %v432_v36 = vadd.f32 %v431_v33, %v380_v34 }
  0xea   : > { %v433_v37 = vadd.f32 %v1084_v27, %v432_v36 }
  0xec   : > { %v434_v39 = vadd.f32 %v1085_v32, %v433_v37 }
  0xee   : > { %v435_v40 = vadd.f32 %v434_v39, %v1224_v25 }
  0xf0   : > { %v436_v42 = vadd.f32 %v435_v40, %v396_v35 }
  0xf2   : > { %v437_v43 = vadd.f32 %v1222_v20, %v436_v42 }
  0xf4   : > { %v438_v45 = vadd.f32 %v1226_v30, %v437_v43 }
  0xf6   : > { %v439_v46 = vadd.f32 %v438_v45, %v409_v41 }
  0xf8   : > { %v440_v48 = vadd.f32 %v439_v46, %v412_v47 }
  0xfa   : > { %v441_v49 = vadd.f32 %v1228_v38, %v440_v48 }
  0xfc   : > { %v444_v51 = vadd.f32 %v443_v50, %v441_v49 }
  0xfe   : > { %v445_v52 = vrot.slane %v444_v51, 4 }
 0x100   : > { %v446_v53 = vadd.f32 %v445_v52, %v444_v51 }
 0x102   : > { %v447_v54 = vrot.slane %v446_v53, 2 }
 0x104   : > { %v448_v55 = vadd.f32 %v447_v54, %v446_v53 }
 0x106   : > { %v449_v56 = vrot.slane %v448_v55, 1 }
 0x108   : > { %v450_v57 = vadd.f32 %v449_v56, %v448_v55 }
 0x10a   : > { %v452_v58 = vmul.f32 0.006289308, %v450_v57 }
 0x10c   : > { %v1238_v59 = vsub.f32 %v345_v13, %v452_v58  ;;  %v1240_v60 = vsub.f32 %v348_v15, %v452_v58  ;;  %v1242_v61 = vsub.f32 %v1076_v12, %v452_v58  ;;  %v1248_v0 = vsub.f32 %v1077_v14, %v452_v58 }
 0x10d   : > { %v1250_v1 = vsub.f32 %v361_v19, %v452_v58  ;;  %v1254_v4 = vsub.f32 %v364_v24, %v452_v58  ;;  %v1258_v7 = vsub.f32 %v1080_v17, %v452_v58  ;;  %v460_v10 = vsub.f32 %v1081_v22, %v452_v58 }
 0x10e   : > { %v473_v62 = vmul.f32 %v1238_v59, %v1238_v59  ;;  %v474_v63 = vmul.f32 %v1240_v60, %v1240_v60  ;;  %v475_v2 = vmul.f32 %v1242_v61, %v1242_v61  ;;  %v476_v5 = vmul.f32 %v1248_v0, %v1248_v0 }
 0x10f   : > { %v477_v8 = vmul.f32 %v1250_v1, %v1250_v1  ;;  %v478_v11 = vmul.f32 %v1254_v4, %v1254_v4  ;;  %v461_v13 = vsub.f32 %v377_v29, %v452_v58  ;;  %v479_v14 = vmul.f32 %v1258_v7, %v1258_v7 }
 0x110   : > { %v493_v3 = vadd.f32 %v474_v63, %v473_v62  ;;  %v462_v16 = vsub.f32 %v380_v34, %v452_v58  ;;  %v480_v18 = vmul.f32 %v460_v10, %v460_v10  ;;  %v463_v21 = vsub.f32 %v1084_v27, %v452_v58 }
 0x111   : > { %v481_v17 = vmul.f32 %v461_v13, %v461_v13  ;;  %v464_v24 = vsub.f32 %v1085_v32, %v452_v58  ;;  %v465_v22 = vsub.f32 %v1224_v25, %v452_v58  ;;  %v466_v36 = vsub.f32 %v396_v35, %v452_v58 }
 0x112   : > { %v494_v6 = vadd.f32 %v493_v3, %v475_v2  ;;  %v482_v26 = vmul.f32 %v462_v16, %v462_v16  ;;  %v483_v31 = vmul.f32 %v463_v21, %v463_v21  ;;  %v467_v39 = vsub.f32 %v1222_v20, %v452_v58 }
 0x113   : > { %v484_v37 = vmul.f32 %v464_v24, %v464_v24  ;;  %v485_v40 = vmul.f32 %v465_v22, %v465_v22  ;;  %v468_v34 = vsub.f32 %v1226_v30, %v452_v58  ;;  %v486_v43 = vmul.f32 %v466_v36, %v466_v36 }
 0x114   : > { %v495_v9 = vadd.f32 %v494_v6, %v476_v5  ;;  %v469_v45 = vsub.f32 %v409_v41, %v452_v58  ;;  %v487_v46 = vmul.f32 %v467_v39, %v467_v39  ;;  %v470_v48 = vsub.f32 %v412_v47, %v452_v58 }
 0x115   : > { %v488_v49 = vmul.f32 %v468_v34, %v468_v34  ;;  %v472_v25 = vsub.f32 %v1232_v44, %v452_v58  ;;  %v471_v35 = vsub.f32 %v1228_v38, %v452_v58 }
 0x116   : > { %v496_v12 = vadd.f32 %v495_v9, %v477_v8  ;;  %v489_v51 = vmul.f32 %v469_v45, %v469_v45  ;;  %v490_v53 = vmul.f32 %v470_v48, %v470_v48 }
 0x117   : > { %v492_v54 = vmul.f32 %v472_v25, %v472_v25  ;;  %v491_v55 = vmul.f32 %v471_v35, %v471_v35 }
 0x118   : > { %v497_v15 = vadd.f32 %v496_v12, %v478_v11 }
 0x119   : > { %v511_v57 = vsel %vm442_vm2, %v492_v54, 0.0 }
 0x11a   : > { %v498_v19 = vadd.f32 %v497_v15, %v479_v14 }
 0x11c   : > { %v499_v23 = vadd.f32 %v498_v19, %v480_v18 }
 0x11e   : > { %v500_v28 = vadd.f32 %v499_v23, %v481_v17 }
 0x120   : > { %v501_v33 = vadd.f32 %v500_v28, %v482_v26 }
 0x122   : > { %v502_v29 = vadd.f32 %v501_v33, %v483_v31 }
 0x124   : > { %v503_v42 = vadd.f32 %v502_v29, %v484_v37 }
 0x126   : > { %v504_v27 = vadd.f32 %v503_v42, %v485_v40  ;;  %v965_v40 = vld [vmem:[%s1450_s3] ss:$0 sm:$0xff] }
 0x128   : > { %v505_v32 = vadd.f32 %v504_v27, %v486_v43 }
 0x12a   : > { %v506_v50 = vadd.f32 %v505_v32, %v487_v46 }
 0x12c   : > { %v507_v52 = vadd.f32 %v506_v50, %v488_v49 }
 0x12e   : > { %v508_v20 = vadd.f32 %v507_v52, %v489_v51 }
 0x130   : > { %v509_v56 = vadd.f32 %v508_v20, %v490_v53 }
 0x132   : > { %v510_v30 = vadd.f32 %v509_v56, %v491_v55 }
 0x134   : > { %v512_v41 = vadd.f32 %v511_v57, %v510_v30 }
 0x136   : > { %v513_v62 = vrot.slane %v512_v41, 4 }
 0x138   : > { %v514_v63 = vadd.f32 %v513_v62, %v512_v41 }
 0x13a   : > { %v515_v47 = vrot.slane %v514_v63, 2 }
 0x13c   : > { %v516_v2 = vadd.f32 %v515_v47, %v514_v63 }
 0x13e   : > { %v517_v3 = vrot.slane %v516_v2, 1 }
 0x140   : > { %v518_v5 = vadd.f32 %v517_v3, %v516_v2 }
 0x142   : > { %v519_v44 = vmul.f32 0.006289308, %v518_v5 }
 0x144   : > { %v520_v6 = vadd.f32 1e-05, %v519_v44 }
 0x146   : > { %1118 = vrsqrt.f32 %v520_v6 }
 0x153   : > { %v1119_v38 = vpop.eup %1118 }
 0x154   : > { %v522_v58 = vmul.f32 %v1119_v38, %v1238_v59  ;;  %v523_v8 = vmul.f32 %v1119_v38, %v1240_v60  ;;  %v524_v9 = vmul.f32 %v1119_v38, %v1242_v61  ;;  %v525_v11 = vmul.f32 %v1119_v38, %v1248_v0  ;;  %v964_v59 = vld [vmem:[%s1449_s2] ss:$0 sm:$0xff] }
 0x155   : > { %v526_v12 = vmul.f32 %v1119_v38, %v1250_v1  ;;  %v527_v14 = vmul.f32 %v1119_v38, %v1254_v4  ;;  %v528_v15 = vmul.f32 %v1119_v38, %v1258_v7  ;;  %v529_v18 = vmul.f32 %v1119_v38, %v460_v10 }
 0x156   : > { %v530_v19 = vmul.f32 %v1119_v38, %v461_v13  ;;  %v531_v17 = vmul.f32 %v1119_v38, %v462_v16  ;;  %v532_v23 = vmul.f32 %v1119_v38, %v463_v21  ;;  %v533_v26 = vmul.f32 %v1119_v38, %v464_v24 }
 0x157   : > { %v534_v60 = vmul.f32 %v1119_v38, %v465_v22  ;;  %v535_v28 = vmul.f32 %v1119_v38, %v466_v36  ;;  %v536_v61 = vmul.f32 %v1119_v38, %v467_v39  ;;  %v537_v31 = vmul.f32 %v1119_v38, %v468_v34 }
 0x158   : > { %v538_v0 = vmul.f32 %v1119_v38, %v469_v45  ;;  %v539_v33 = vmul.f32 %v1119_v38, %v470_v48  ;;  %v540_v1 = vmul.f32 %v1119_v38, %v471_v35  ;;  %v541_v37 = vmul.f32 %v1119_v38, %v472_v25 }
 0x159   : > { %v549_v4 = vmul.f32 %v964_v59, %v522_v58  ;;  %v550_v29 = vmul.f32 %v964_v59, %v523_v8  ;;  %v551_v7 = vmul.f32 %v964_v59, %v524_v9  ;;  %v552_v10 = vmul.f32 %v964_v59, %v525_v11 }
 0x15a   : > { %v553_v13 = vmul.f32 %v964_v59, %v526_v12  ;;  %v554_v16 = vmul.f32 %v964_v59, %v527_v14  ;;  %v555_v21 = vmul.f32 %v964_v59, %v528_v15  ;;  %v556_v24 = vmul.f32 %v964_v59, %v529_v18 }
 0x15b   : > { %v557_v22 = vmul.f32 %v964_v59, %v530_v19  ;;  %v558_v36 = vmul.f32 %v964_v59, %v531_v17  ;;  %v559_v39 = vmul.f32 %v964_v59, %v532_v23  ;;  %v560_v42 = vmul.f32 %v964_v59, %v533_v26 }
 0x15c   : > { %v561_v34 = vmul.f32 %v964_v59, %v534_v60  ;;  %v562_v43 = vmul.f32 %v964_v59, %v535_v28  ;;  %v563_v27 = vmul.f32 %v964_v59, %v536_v61  ;;  %v564_v45 = vmul.f32 %v964_v59, %v537_v31 }
 0x15d   : > { %v565_v46 = vmul.f32 %v964_v59, %v538_v0  ;;  %v566_v32 = vmul.f32 %v964_v59, %v539_v33  ;;  %v1285_v48 = vadd.f32 %v965_v40, %v549_v4  ;;  %v1287_v49 = vadd.f32 %v965_v40, %v550_v29 }
 0x15e   : > { %v567_v50 = vmul.f32 %v964_v59, %v540_v1  ;;  %v568_v25 = vmul.f32 %v964_v59, %v541_v37  ;;  %v1289_v35 = vadd.f32 %v965_v40, %v551_v7  ;;  %v1291_v51 = vadd.f32 %v965_v40, %v552_v10 }
 0x15f   : > { %v1293_v52 = vadd.f32 %v965_v40, %v553_v13  ;;  %v1295_v53 = vadd.f32 %v965_v40, %v554_v16  ;;  %v1297_v20 = vadd.f32 %v965_v40, %v555_v21  ;;  %v1299_v54 = vadd.f32 %v965_v40, %v556_v24 }
 0x160   : > { %v1301_v55 = vadd.f32 %v965_v40, %v557_v22  ;;  %v1303_v56 = vadd.f32 %v965_v40, %v558_v36  ;;  %v1305_v30 = vadd.f32 %v965_v40, %v559_v39  ;;  %v1307_v57 = vadd.f32 %v965_v40, %v560_v42 }
 0x161   : > { %v1309_v41 = vadd.f32 %v965_v40, %v561_v34  ;;  %v1311_v62 = vadd.f32 %v965_v40, %v562_v43  ;;  %v596_v63 = vmul.f32 %v1285_v48, %v1285_v48  ;;  %v597_v47 = vmul.f32 %v1287_v49, %v1287_v49 }
 0x162   : > { %v1317_v2 = vadd.f32 %v965_v40, %v563_v27  ;;  %v1319_v3 = vadd.f32 %v965_v40, %v564_v45  ;;  %v598_v5 = vmul.f32 %v1289_v35, %v1289_v35  ;;  %v599_v44 = vmul.f32 %v1291_v51, %v1291_v51 }
 0x163   : > { %v1325_v6 = vadd.f32 %v965_v40, %v565_v46  ;;  %v1327_v38 = vadd.f32 %v965_v40, %v566_v32  ;;  %v1329_v58 = vadd.f32 %v965_v40, %v567_v50  ;;  %v600_v8 = vmul.f32 %v1293_v52, %v1293_v52 }
 0x164   : > { %v1333_v9 = vadd.f32 %v965_v40, %v568_v25  ;;  %v601_v11 = vmul.f32 %v1295_v53, %v1295_v53  ;;  %v602_v12 = vmul.f32 %v1297_v20, %v1297_v20  ;;  %v603_v14 = vmul.f32 %v1299_v54, %v1299_v54 }
 0x165   : > { %v604_v15 = vmul.f32 %v1301_v55, %v1301_v55  ;;  %v605_v18 = vmul.f32 %v1303_v56, %v1303_v56  ;;  %v616_v19 = vmul.f32 %v596_v63, %v1285_v48  ;;  %v617_v17 = vmul.f32 %v597_v47, %v1287_v49 }
 0x166   : > { %v606_v23 = vmul.f32 %v1305_v30, %v1305_v30  ;;  %v607_v26 = vmul.f32 %v1307_v57, %v1307_v57  ;;  %v618_v59 = vmul.f32 %v598_v5, %v1289_v35  ;;  %v619_v60 = vmul.f32 %v599_v44, %v1291_v51 }
 0x167   : > { %v608_v28 = vmul.f32 %v1309_v41, %v1309_v41  ;;  %v609_v61 = vmul.f32 %v1311_v62, %v1311_v62  ;;  %v610_v31 = vmul.f32 %v1317_v2, %v1317_v2  ;;  %v620_v0 = vmul.f32 %v600_v8, %v1293_v52 }
 0x168   : > { %v611_v33 = vmul.f32 %v1319_v3, %v1319_v3  ;;  %v612_v1 = vmul.f32 %v1325_v6, %v1325_v6  ;;  %v613_v37 = vmul.f32 %v1327_v38, %v1327_v38  ;;  %v621_v4 = vmul.f32 %v601_v11, %v1295_v53 }
 0x169   : > { %v614_v29 = vmul.f32 %v1329_v58, %v1329_v58  ;;  %v622_v7 = vmul.f32 %v602_v12, %v1297_v20  ;;  %v636_v10 = vmul.f32 0.044715, %v616_v19  ;;  %v637_v13 = vmul.f32 0.044715, %v617_v17 }
 0x16a   : > { %v615_v16 = vmul.f32 %v1333_v9, %v1333_v9  ;;  %v623_v21 = vmul.f32 %v603_v14, %v1299_v54  ;;  %v638_v24 = vmul.f32 0.044715, %v618_v59  ;;  %v639_v40 = vmul.f32 0.044715, %v619_v60 }
 0x16b   : > { %v624_v22 = vmul.f32 %v604_v15, %v1301_v55  ;;  %v625_v36 = vmul.f32 %v605_v18, %v1303_v56  ;;  %v626_v39 = vmul.f32 %v606_v23, %v1305_v30  ;;  %v640_v42 = vmul.f32 0.044715, %v620_v0 }
 0x16c   : > { %v627_v34 = vmul.f32 %v607_v26, %v1307_v57  ;;  %v628_v43 = vmul.f32 %v608_v28, %v1309_v41  ;;  %v629_v27 = vmul.f32 %v609_v61, %v1311_v62  ;;  %v641_v45 = vmul.f32 0.044715, %v621_v4 }
 0x16d   : > { %v630_v46 = vmul.f32 %v610_v31, %v1317_v2  ;;  %v642_v32 = vmul.f32 0.044715, %v622_v7  ;;  %v656_v50 = vadd.f32 %v636_v10, %v1285_v48  ;;  %v657_v25 = vadd.f32 %v637_v13, %v1287_v49 }
 0x16e   : > { %v631_v63 = vmul.f32 %v611_v33, %v1319_v3  ;;  %v643_v47 = vmul.f32 0.044715, %v623_v21  ;;  %v658_v5 = vadd.f32 %v638_v24, %v1289_v35  ;;  %v659_v44 = vadd.f32 %v639_v40, %v1291_v51 }
 0x16f   : > { %v632_v8 = vmul.f32 %v612_v1, %v1325_v6  ;;  %v633_v11 = vmul.f32 %v613_v37, %v1327_v38  ;;  %v644_v12 = vmul.f32 0.044715, %v624_v22  ;;  %v660_v14 = vadd.f32 %v640_v42, %v1293_v52 }
 0x170   : > { %v634_v15 = vmul.f32 %v614_v29, %v1329_v58  ;;  %v635_v18 = vmul.f32 %v615_v16, %v1333_v9  ;;  %v645_v19 = vmul.f32 0.044715, %v625_v36  ;;  %v661_v17 = vadd.f32 %v641_v45, %v1295_v53 }
 0x171   : > { %v646_v23 = vmul.f32 0.044715, %v626_v39  ;;  %v662_v26 = vadd.f32 %v642_v32, %v1297_v20  ;;  %v676_v59 = vmul.f32 0.7978846, %v656_v50  ;;  %v677_v60 = vmul.f32 0.7978846, %v657_v25 }
 0x172   : > { %v647_v28 = vmul.f32 0.044715, %v627_v34  ;;  %v663_v61 = vadd.f32 %v643_v47, %v1299_v54  ;;  %v678_v31 = vmul.f32 0.7978846, %v658_v5  ;;  %v679_v0 = vmul.f32 0.7978846, %v659_v44 }
 0x173   : > { %v648_v33 = vmul.f32 0.044715, %v628_v43  ;;  %v664_v1 = vadd.f32 %v644_v12, %v1301_v55  ;;  %v680_v37 = vmul.f32 0.7978846, %v660_v14  ;;  %1120 = vtanh.f32 %v676_v59 }
 0x174   : > { %v649_v4 = vmul.f32 0.044715, %v629_v27  ;;  %v665_v29 = vadd.f32 %v645_v19, %v1303_v56  ;;  %v681_v7 = vmul.f32 0.7978846, %v661_v17  ;;  %1122 = vtanh.f32 %v677_v60 }
 0x175   : > { %v650_v10 = vmul.f32 0.044715, %v630_v46  ;;  %v666_v13 = vadd.f32 %v646_v23, %v1305_v30  ;;  %v682_v16 = vmul.f32 0.7978846, %v662_v26  ;;  %1124 = vtanh.f32 %v678_v31 }
 0x176   : > { %v651_v21 = vmul.f32 0.044715, %v631_v63  ;;  %v667_v24 = vadd.f32 %v647_v28, %v1307_v57  ;;  %v683_v40 = vmul.f32 0.7978846, %v663_v61  ;;  %1126 = vtanh.f32 %v679_v0 }
 0x177   : > { %v652_v22 = vmul.f32 0.044715, %v632_v8  ;;  %v668_v36 = vadd.f32 %v648_v33, %v1309_v41  ;;  %v684_v39 = vmul.f32 0.7978846, %v664_v1  ;;  %1128 = vtanh.f32 %v680_v37 }
 0x178   : > { %v653_v42 = vmul.f32 0.044715, %v633_v11  ;;  %v669_v34 = vadd.f32 %v649_v4, %v1311_v62  ;;  %v685_v43 = vmul.f32 0.7978846, %v665_v29  ;;  %1130 = vtanh.f32 %v681_v7 }
 0x179   : > { %v654_v27 = vmul.f32 0.044715, %v634_v15  ;;  %v670_v45 = vadd.f32 %v650_v10, %v1317_v2  ;;  %v686_v46 = vmul.f32 0.7978846, %v666_v13  ;;  %1132 = vtanh.f32 %v682_v16 }
 0x17a   : > { %v655_v32 = vmul.f32 0.044715, %v635_v18  ;;  %v671_v50 = vadd.f32 %v651_v21, %v1319_v3  ;;  %v687_v25 = vmul.f32 0.7978846, %v667_v24  ;;  %1134 = vtanh.f32 %v683_v40 }
 0x17b   : > { %v672_v63 = vadd.f32 %v652_v22, %v1325_v6  ;;  %v688_v47 = vmul.f32 0.7978846, %v668_v36  ;;  %1136 = vtanh.f32 %v684_v39  ;;  %v673_v5 = vadd.f32 %v653_v42, %v1327_v38 }
 0x17c   : > { %v689_v44 = vmul.f32 0.7978846, %v669_v34  ;;  %1138 = vtanh.f32 %v685_v43  ;;  %v674_v8 = vadd.f32 %v654_v27, %v1329_v58  ;;  %v690_v11 = vmul.f32 0.7978846, %v670_v45 }
 0x17d   : > { %1140 = vtanh.f32 %v686_v46  ;;  %v675_v12 = vadd.f32 %v655_v32, %v1333_v9  ;;  %v691_v14 = vmul.f32 0.7978846, %v671_v50  ;;  %v692_v15 = vmul.f32 0.7978846, %v672_v63 }
 0x17e   : > { %1142 = vtanh.f32 %v687_v25  ;;  %v693_v19 = vmul.f32 0.7978846, %v673_v5  ;;  %v694_v23 = vmul.f32 0.7978846, %v674_v8 }
 0x17f   : > { %1144 = vtanh.f32 %v688_v47  ;;  %v695_v60 = vmul.f32 0.7978846, %v675_v12 }
 0x180   : > { %v1121_v18 = vpop.eup %1120  ;;  %1146 = vtanh.f32 %v689_v44 }
 0x181   : > { %v1123_v17 = vpop.eup %1122  ;;  %1148 = vtanh.f32 %v690_v11  ;;  %v716_v26 = vadd.f32 1.0, %v1121_v18 }
 0x182   : > { %v1125_v59 = vpop.eup %1124  ;;  %1150 = vtanh.f32 %v691_v14  ;;  %v717_v28 = vadd.f32 1.0, %v1123_v17 }
 0x183   : > { %v1127_v61 = vpop.eup %1126  ;;  %1152 = vtanh.f32 %v692_v15  ;;  %v718_v31 = vadd.f32 1.0, %v1125_v59  ;;  %v736_v0 = vmul.f32 0.5, %v716_v26 }
 0x184   : > { %v1129_v33 = vpop.eup %1128  ;;  %1154 = vtanh.f32 %v693_v19  ;;  %v719_v1 = vadd.f32 1.0, %v1127_v61  ;;  %v737_v37 = vmul.f32 0.5, %v717_v28 }
 0x185   : > { %v1131_v4 = vpop.eup %1130  ;;  %1156 = vtanh.f32 %v694_v23  ;;  %v720_v29 = vadd.f32 1.0, %v1129_v33  ;;  %v738_v7 = vmul.f32 0.5, %v718_v31  ;;  %v756_v10 = vmul.f32 %v736_v0, %v1285_v48 }
 0x186   : > { %v1133_v13 = vpop.eup %1132  ;;  %1158 = vtanh.f32 %v695_v60  ;;  %v721_v16 = vadd.f32 1.0, %v1131_v4  ;;  %v739_v21 = vmul.f32 0.5, %v719_v1  ;;  %v757_v24 = vmul.f32 %v737_v37, %v1287_v49 }
 0x187   : > { %v1135_v40 = vpop.eup %1134  ;;  %v722_v22 = vadd.f32 1.0, %v1133_v13  ;;  %v740_v36 = vmul.f32 0.5, %v720_v29  ;;  %v758_v39 = vmul.f32 %v738_v7, %v1289_v35 }
 0x188   : > { %v1137_v42 = vpop.eup %1136  ;;  %v723_v48 = vadd.f32 1.0, %v1135_v40  ;;  %v741_v34 = vmul.f32 0.5, %v721_v16  ;;  %v759_v43 = vmul.f32 %v739_v21, %v1291_v51  ;;  %v1011_v27 = vpack.c.bf16 %v757_v24, %v756_v10 }
 0x189   : > { %v1139_v45 = vpop.eup %1138  ;;  %v724_v49 = vadd.f32 1.0, %v1137_v42  ;;  %v742_v46 = vmul.f32 0.5, %v722_v22  ;;  %v760_v32 = vmul.f32 %v740_v36, %v1293_v52 }
 0x18a   : > { %v1141_v50 = vpop.eup %1140  ;;  %v725_v25 = vadd.f32 1.0, %v1139_v45  ;;  %v743_v63 = vmul.f32 0.5, %v723_v48  ;;  %v761_v47 = vmul.f32 %v741_v34, %v1295_v53  ;;  %1012 = vst [vmem:[%s1412_s29] sm:$0xff] %v1011_v27   ;;  %v1016_v5 = vpack.c.bf16 %v759_v43, %v758_v39 }
 0x18b   : > { %v1143_v35 = vpop.eup %1142  ;;  %v726_v44 = vadd.f32 1.0, %v1141_v50  ;;  %v744_v8 = vmul.f32 0.5, %v724_v49  ;;  %v762_v51 = vmul.f32 %v742_v46, %v1297_v20  ;;  %v878_v46 = vld [vmem:[%s1412_s29 + $0x4c] sm:$0xf] }
 0x18c   : > { %v1145_v11 = vpop.eup %1144  ;;  %v727_v12 = vadd.f32 1.0, %v1143_v35  ;;  %v745_v14 = vmul.f32 0.5, %v725_v25  ;;  %v763_v15 = vmul.f32 %v743_v63, %v1299_v54  ;;  %1053 = vst [vmem:[%s1412_s29 + $0x8] sm:$0xff] %v1016_v5   ;;  %v1021_v52 = vpack.c.bf16 %v761_v47, %v760_v32 }
 0x18d   : > { %v1147_v18 = vpop.eup %1146  ;;  %v728_v19 = vadd.f32 1.0, %v1145_v11  ;;  %v746_v17 = vmul.f32 0.5, %v726_v44  ;;  %v764_v53 = vmul.f32 %v744_v8, %v1301_v55 }
 0x18e   : > { %v1149_v23 = vpop.eup %1148  ;;  %v729_v26 = vadd.f32 1.0, %v1147_v18  ;;  %v747_v59 = vmul.f32 0.5, %v727_v12  ;;  %v765_v60 = vmul.f32 %v745_v14, %v1303_v56  ;;  %1054 = vst [vmem:[%s1412_s29 + $0x10] sm:$0xff] %v1021_v52   ;;  %v1026_v20 = vpack.c.bf16 %v763_v15, %v762_v51 }
 0x18f   : > { %v1151_v28 = vpop.eup %1150  ;;  %v730_v61 = vadd.f32 1.0, %v1149_v23  ;;  %v748_v31 = vmul.f32 0.5, %v728_v19  ;;  %v766_v54 = vmul.f32 %v746_v17, %v1305_v30 }
 0x190   : > { %v1153_v0 = vpop.eup %1152  ;;  %v731_v33 = vadd.f32 1.0, %v1151_v28  ;;  %v749_v1 = vmul.f32 0.5, %v729_v26  ;;  %v767_v37 = vmul.f32 %v747_v59, %v1307_v57  ;;  %1055 = vst [vmem:[%s1412_s29 + $0x18] sm:$0xff] %v1026_v20   ;;  %v1031_v55 = vpack.c.bf16 %v765_v60, %v764_v53 }
 0x191   : > { %v1155_v4 = vpop.eup %1154  ;;  %v732_v29 = vadd.f32 1.0, %v1153_v0  ;;  %v750_v7 = vmul.f32 0.5, %v730_v61  ;;  %v768_v56 = vmul.f32 %v748_v31, %v1309_v41 }
 0x192   : > { %v1157_v10 = vpop.eup %1156  ;;  %v733_v13 = vadd.f32 1.0, %v1155_v4  ;;  %v751_v16 = vmul.f32 0.5, %v731_v33  ;;  %v769_v21 = vmul.f32 %v749_v1, %v1311_v62  ;;  %1056 = vst [vmem:[%s1412_s29 + $0x20] sm:$0xff] %v1031_v55   ;;  %v1036_v30 = vpack.c.bf16 %v767_v37, %v766_v54 }
 0x193   : > { %v1159_v24 = vpop.eup %1158  ;;  %v734_v40 = vadd.f32 1.0, %v1157_v10  ;;  %v752_v22 = vmul.f32 0.5, %v732_v29  ;;  %v770_v57 = vmul.f32 %v750_v7, %v1317_v2 }
 0x194   : > { %v735_v36 = vadd.f32 1.0, %v1159_v24  ;;  %v753_v39 = vmul.f32 0.5, %v733_v13  ;;  %v771_v42 = vmul.f32 %v751_v16, %v1319_v3  ;;  %1057 = vst [vmem:[%s1412_s29 + $0x28] sm:$0xff] %v1036_v30   ;;  %v1041_v41 = vpack.c.bf16 %v769_v21, %v768_v56 }
 0x195   : > { %v754_v48 = vmul.f32 0.5, %v734_v40  ;;  %v772_v62 = vmul.f32 %v752_v22, %v1325_v6 }
 0x196   : > { %v755_v34 = vmul.f32 0.5, %v735_v36  ;;  %v773_v43 = vmul.f32 %v753_v39, %v1327_v38  ;;  %1058 = vst [vmem:[%s1412_s29 + $0x30] sm:$0xff] %v1041_v41   ;;  %v1046_v2 = vpack.c.bf16 %v771_v42, %v770_v57 }
 0x197   : > { %v774_v27 = vmul.f32 %v754_v48, %v1329_v58 }
 0x198   : > { %v775_v3 = vmul.f32 %v755_v34, %v1333_v9  ;;  %1059 = vst [vmem:[%s1412_s29 + $0x38] sm:$0xff] %v1046_v2   ;;  %v1051_v45 = vpack.c.bf16 %v773_v43, %v772_v62 }
 0x199   : > { %v1006_v49 = vpack.c.bf16 %v774_v27, %v774_v27 }
 0x19a   : > { %v1007_v32 = vpack.c.bf16 %v775_v3, %v775_v3  ;;  %1060 = vst [vmem:[%s1412_s29 + $0x40] sm:$0xff] %v1051_v45  }
 0x19b   : > { %874 = vst [vmem:[%s1412_s29 + $0x48] sm:$0xf] %v1006_v49 }
 0x19c   : > { %v879_v6 = vsel %vm877_vm5, %v1007_v32, %v878_v46 }
 0x19d   : > { %880 = vst [vmem:[%s1412_s29 + $0x4c] sm:$0xf] %v879_v6 }
 0x19e PF: > { %s14_s15 = sadd.s32 1, %s1166_s15  }
 0x19f   : > { %p11_p4 = scmp.ge.s32.totalorder %s14_s15, 4  }
 0x1a1   :  { %13 = sbr.rel (!%p11_p4) target bundleno = 1 (0x1), region = 66 }

// kernel: wav2vec2_speech_model.7
= control target key start
LH: loop header
LB: loop body
LE: loop exit
PB: predicated region body
PF: predicated region fallthrough
CT: control target
= control target key end

     0   :  { %s1070_s9 = smov 0   ;;  %s1267_s0 = inlined_call_operand.vmem [shape: bf16[2,79,384], index: 0, kind: input, shape index: {}]   ;;  %s1268_s1 = inlined_call_operand.vmem [shape: bf16[384,128], index: 1, kind: input, shape index: {}]   ;;  %s1269_s2 = inlined_call_operand.vmem [shape: bf16[2,79,128], index: 2, kind: output, shape index: {}]  }
   0x1 LB: > { %s783_s10 = sadd.s32 4294967295, %s1051_s9   ;;  %p787_p0 = scmp.ge.s32.totalorder %s1051_s9, 1  ;;  %s1051_s9 = sphi %s1070_s9, %s12_s9  }
   0x2   : > { %p112_p1 = scmp.lt.s32.totalorder %s1051_s9, 3 }
   0x4   : > { %p113_p2 = pnand %p787_p0, %p112_p1 }
   0x5   : > { %p134_p3 = scmp.lt.s32.totalorder (!%p113_p2), %s783_s10, 1 }
   0x6   : > { %116 = sbr.rel (%p113_p2) target bundleno = 314 (0x13a), region = 28 }
   0xb   : > { %v981_v0 = vld [vmem:[%s1268_s1 + $0x78] sm:$0xff]   ;;  %v1053_v1 = vmov 0.0   ;;  %vm1054_vm0 = vmmov 0   ;;  %v984_v4 = vld [vmem:[%s1268_s1 + $0x70] sm:$0xff]   ;;  %v987_v7 = vld [vmem:[%s1268_s1 + $0x68] sm:$0xff]   ;;  %s1271_s10 = smov (!%p134_p3, %s783_s10), 1 }
   0xc   : > { %933 = vmatprep.subr.bf16.mxu1 %v1053_v1  ;;  %v982_v2 = vld [vmem:[%s1268_s1 + $0xb8] sm:$0xff]   ;;  %874 = vmatprep.subr.bf16.mxu0 %v981_v0  ;;  %v985_v5 = vld [vmem:[%s1268_s1 + $0xb0] sm:$0xff]   ;;  %v988_v8 = vld [vmem:[%s1268_s1 + $0xa8] sm:$0xff]   ;;  %s969_s17 = smul.u32 120, %s1271_s10  ;;  %vm722_vm1 = vcmask 1043456  }
   0xd   : > { %v983_v3 = vld [vmem:[%s1268_s1 + $0x38] sm:$0xff]   ;;  %949 = vmatprep.mubr.msk.bf16.mxu1 %vm1054_vm0, %v1053_v1  ;;  %934 = vmatpush3.bf16.msra.mxu1 %v982_v2  ;;  %v986_v6 = vld [vmem:[%s1268_s1 + $0x30] sm:$0xff]   ;;  %v989_v9 = vld [vmem:[%s1268_s1 + $0x28] sm:$0xff]   ;;  %s970_s11 = smul.u32 40, %s1271_s10  ;;  %vm723_vm2 = vsmask.f32 3328 }
   0xe   : > { %875 = vmatpush3.bf16.msra.mxu0 %v983_v3  ;;  %935 = vmatprep.subr.bf16.mxu1 %v1053_v1  ;;  %v990_v10 = vld [vmem:[%s1268_s1 + $0x60] sm:$0xff]   ;;  %v993_v13 = vld [vmem:[%s1268_s1 + $0x58] sm:$0xff]   ;;  %v996_v16 = vld [vmem:[%s1268_s1 + $0x50] sm:$0xff]   ;;  %s1156_s28 = scalar_lea.vmem %s1267_s0, %s969_s17 }
   0xf   : > { %876 = vmatprep.subr.bf16.mxu0 %v984_v4  ;;  %v991_v11 = vld [vmem:[%s1268_s1 + $0xa0] sm:$0xff]   ;;  %v994_v14 = vld [vmem:[%s1268_s1 + $0x98] sm:$0xff]   ;;  %v997_v17 = vld [vmem:[%s1268_s1 + $0x90] sm:$0xff]   ;;  %s1248_s13 = scalar_lea.vmem %s1269_s2, %s970_s11 }
  0x10   : > { %v992_v12 = vld [vmem:[%s1268_s1 + $0x20] sm:$0xff]   ;;  %v995_v15 = vld [vmem:[%s1268_s1 + $0x18] sm:$0xff]   ;;  %v998_v18 = vld [vmem:[%s1268_s1 + $0x10] sm:$0xff]  }
  0x11   : > { %936 = vmatpush3.bf16.msra.mxu1 %v985_v5  ;;  %v999_v19 = vld [vmem:[%s1268_s1 + $0x48] sm:$0xff]   ;;  %v1002_v22 = vld [vmem:[%s1268_s1 + $0x40] sm:$0xff]   ;;  %v1016_v33 = vld [vmem:[%s1156_s28 + $0x30] ss:$12 sps:$4 sm:$0xff]  }
  0x12   : > { %877 = vmatpush3.bf16.msra.mxu0 %v986_v6  ;;  %937 = vmatprep.subr.bf16.mxu1 %v1053_v1  ;;  %v1000_v20 = vld [vmem:[%s1268_s1 + $0x88] sm:$0xff]   ;;  %v1007_v23 = vld [vmem:[%s1156_s28 + $0x4] ss:$12 sps:$4 sm:$0xff]   ;;  %v1013_v31 = vld [vmem:[%s1156_s28 + $0x34] ss:$12 sps:$4 sm:$0xff]  }
  0x13   : > { %878 = vmatprep.subr.bf16.mxu0 %v987_v7  ;;  %v1001_v21 = vld [vmem:[%s1268_s1 + $0x8] sm:$0xff]   ;;  %v1003_v24 = vld [vmem:[%s1268_s1 + $0x80] sm:$0xff]   ;;  %469 = vmatprep.mubr.bf16.mxu0 %v1007_v23  ;;  %v1019_v35 = vld [vmem:[%s1156_s28 + $0x50] ss:$12 sps:$4 sm:$0xff]  }
  0x14   : > { %v1004_v25 = vld [vmem:[%s1268_s1] sm:$0xff]   ;;  %v1008_v26 = vld [vmem:[%s1156_s28 + $0x8] ss:$12 sps:$4 sm:$0xff]   ;;  %v1017_v34 = vld [vmem:[%s1156_s28 + $0x4c] ss:$12 sps:$4 sm:$0xff]  }
  0x15   : > { %938 = vmatpush3.bf16.msra.mxu1 %v988_v8  ;;  %v1005_v27 = vld [vmem:[%s1156_s28] ss:$12 sps:$4 sm:$0xff]   ;;  %v1009_v28 = vld [vmem:[%s1156_s28 + $0x1c] ss:$12 sps:$4 sm:$0xff]   ;;  %v1012_v30 = vld [vmem:[%s1156_s28 + $0x18] ss:$12 sps:$4 sm:$0xff]  }
  0x16   : > { %879 = vmatpush3.bf16.msra.mxu0 %v989_v9  ;;  %939 = vmatprep.subr.bf16.mxu1 %v1053_v1  ;;  %v1011_v29 = vld [vmem:[%s1156_s28 + $0x20] ss:$12 sps:$4 sm:$0xff]   ;;  %v1015_v32 = vld [vmem:[%s1156_s28 + $0x38] ss:$12 sps:$4 sm:$0xff]   ;;  %v1020_v36 = vld [vmem:[%s1156_s28 + $0x48] ss:$12 sps:$4 sm:$0xff]  }
  0x17   : > { %880 = vmatprep.subr.bf16.mxu0 %v990_v10  ;;  %v1021_v37 = vld [vmem:[%s1156_s28 + $0x64] ss:$12 sps:$4 sm:$0xff]   ;;  %v1023_v38 = vld [vmem:[%s1156_s28 + $0x68] ss:$12 sps:$4 sm:$0xff]   ;;  %v1024_v39 = vld [vmem:[%s1156_s28 + $0x60] ss:$12 sps:$4 sm:$0xff]  }
  0x18   : > { %vm724_vm3 = vmand %vm722_vm1, %vm723_vm2 }
  0x19   : > { %940 = vmatpush3.bf16.msra.mxu1 %v991_v11 }
  0x1a   : > { %881 = vmatpush3.bf16.msra.mxu0 %v992_v12  ;;  %941 = vmatprep.subr.bf16.mxu1 %v1053_v1 }
  0x1b   : > { %882 = vmatprep.subr.bf16.mxu0 %v993_v13 }
  0x1d   : > { %942 = vmatpush3.bf16.msra.mxu1 %v994_v14 }
  0x1e   : > { %883 = vmatpush3.bf16.msra.mxu0 %v995_v15  ;;  %943 = vmatprep.subr.bf16.mxu1 %v1053_v1 }
  0x1f   : > { %884 = vmatprep.subr.bf16.mxu0 %v996_v16 }
  0x21   : > { %944 = vmatpush3.bf16.msra.mxu1 %v997_v17 }
  0x22   : > { %885 = vmatpush3.bf16.msra.mxu0 %v998_v18  ;;  %945 = vmatprep.subr.bf16.mxu1 %v1053_v1 }
  0x23   : > { %886 = vmatprep.subr.bf16.mxu0 %v999_v19 }
  0x25   : > { %946 = vmatpush3.bf16.msra.mxu1 %v1000_v20 }
  0x26   : > { %887 = vmatpush3.bf16.msra.mxu0 %v1001_v21  ;;  %947 = vmatprep.subr.bf16.mxu1 %v1053_v1 }
  0x27   : > { %888 = vmatprep.subr.bf16.mxu0 %v1002_v22 }
  0x29   : > { %948 = vmatpush3.bf16.msra.mxu1 %v1003_v24 }
  0x2a   : > { %889 = vmatpush3.bf16.msra.mxu0 %v1004_v25 }
  0x2c   : > { %950 = vmatmul.mubr.bf16.vlgmr.msra.gmra.mxu1 %v1008_v26 }
  0x2d   : > { %470 = vmatmul.mubr.bf16.vlgmr.msra.gmra.mxu0 %v1005_v27  ;;  %953 = vmatprep.mubr.msk.bf16.mxu1 %vm1054_vm0, %v1053_v1 }
  0x2e   : > { %477 = vmatprep.mubr.bf16.mxu0 %v1009_v28 }
  0x34   : > { %954 = vmatmul.mubr.bf16.gmra.mxu1 %v1011_v29 }
  0x35   : > { %478 = vmatmul.mubr.bf16.gmra.mxu0 %v1012_v30  ;;  %957 = vmatprep.mubr.msk.bf16.mxu1 %vm1054_vm0, %v1053_v1 }
  0x36   : > { %485 = vmatprep.mubr.bf16.mxu0 %v1013_v31 }
  0x3c   : > { %958 = vmatmul.mubr.bf16.gmra.mxu1 %v1015_v32 }
  0x3d   : > { %486 = vmatmul.mubr.bf16.gmra.mxu0 %v1016_v33  ;;  %961 = vmatprep.mubr.msk.bf16.mxu1 %vm1054_vm0, %v1053_v1 }
  0x3e   : > { %493 = vmatprep.mubr.bf16.mxu0 %v1017_v34 }
  0x44   : > { %962 = vmatmul.mubr.bf16.gmra.mxu1 %v1019_v35 }
  0x45   : > { %494 = vmatmul.mubr.bf16.gmra.mxu0 %v1020_v36  ;;  %965 = vmatprep.mubr.msk.bf16.mxu1 %vm1054_vm0, %v1053_v1 }
  0x46   : > { %501 = vmatprep.mubr.bf16.mxu0 %v1021_v37 }
  0x4c   : > { %966 = vmatmul.mubr.bf16.gmra.mxu1 %v1023_v38 }
  0x4d   : > { %502 = vmatmul.mubr.bf16.gmra.mxu0 %v1024_v39 }
  0xec   : > { %v544_v40 = vpop.f32.mrf.mxu1 }
  0xed   : > { %v890_v41 = vpop.f32.mrf.mxu0 }
  0xee   : > { %v951_v42 = vpop.f32.mrf.mxu1 }
  0xef   : > { %v891_v43 = vpop.f32.mrf.mxu0 }
  0xf0   : > { %v892_v44 = vadd.f32 %v891_v43, %v890_v41  ;;  %v547_v45 = vpop.f32.mrf.mxu1 }
  0xf1   : > { %v893_v46 = vpop.f32.mrf.mxu0 }
  0xf2   : > { %v1195_v47 = vadd.f32 %v892_v44, %v544_v40  ;;  %v952_v48 = vpop.f32.mrf.mxu1 }
  0xf3   : > { %v894_v49 = vpop.f32.mrf.mxu0 }
  0xf4   : > { %v583_v50 = vmul.f32 %v1195_v47, %v1195_v47  ;;  %v895_v51 = vadd.f32 %v894_v49, %v893_v46  ;;  %v552_v52 = vpop.f32.mrf.mxu1 }
  0xf5   : > { %v896_v53 = vpop.f32.mrf.mxu0 }
  0xf6   : > { %v593_v54 = vmul.f32 %v583_v50, %v1195_v47  ;;  %v1200_v55 = vadd.f32 %v895_v51, %v547_v45  ;;  %v955_v56 = vpop.f32.mrf.mxu1 }
  0xf7   : > { %v897_v57 = vpop.f32.mrf.mxu0 }
  0xf8   : > { %v603_v58 = vmul.f32 0.044715, %v593_v54  ;;  %v584_v59 = vmul.f32 %v1200_v55, %v1200_v55  ;;  %v898_v60 = vadd.f32 %v897_v57, %v896_v53  ;;  %v555_v61 = vpop.f32.mrf.mxu1 }
  0xf9   : > { %v899_v62 = vpop.f32.mrf.mxu0 }
  0xfa   : > { %v613_v63 = vadd.f32 %v603_v58, %v1195_v47  ;;  %v594_v0 = vmul.f32 %v584_v59, %v1200_v55  ;;  %v1206_v1 = vadd.f32 %v898_v60, %v552_v52  ;;  %v956_v2 = vpop.f32.mrf.mxu1 }
  0xfb   : > { %v900_v3 = vpop.f32.mrf.mxu0 }
  0xfc   : > { %v623_v4 = vmul.f32 0.7978846, %v613_v63  ;;  %v604_v5 = vmul.f32 0.044715, %v594_v0  ;;  %v585_v6 = vmul.f32 %v1206_v1, %v1206_v1  ;;  %v901_v7 = vadd.f32 %v900_v3, %v899_v62  ;;  %v560_v8 = vpop.f32.mrf.mxu1 }
  0xfd   : > { %v902_v9 = vpop.f32.mrf.mxu0 }
  0xfe   : > { %1025 = vtanh.f32 %v623_v4  ;;  %v614_v10 = vadd.f32 %v604_v5, %v1200_v55  ;;  %v595_v11 = vmul.f32 %v585_v6, %v1206_v1  ;;  %v1212_v12 = vadd.f32 %v901_v7, %v555_v61  ;;  %v959_v13 = vpop.f32.mrf.mxu1 }
  0xff   : > { %v903_v14 = vpop.f32.mrf.mxu0 }
 0x100   : > { %v624_v15 = vmul.f32 0.7978846, %v614_v10  ;;  %v605_v16 = vmul.f32 0.044715, %v595_v11  ;;  %v586_v17 = vmul.f32 %v1212_v12, %v1212_v12  ;;  %v904_v18 = vadd.f32 %v903_v14, %v902_v9  ;;  %v563_v19 = vpop.f32.mrf.mxu1 }
 0x101   : > { %v905_v20 = vpop.f32.mrf.mxu0 }
 0x102   : > { %1027 = vtanh.f32 %v624_v15  ;;  %v615_v21 = vadd.f32 %v605_v16, %v1206_v1  ;;  %v596_v22 = vmul.f32 %v586_v17, %v1212_v12  ;;  %v1218_v23 = vadd.f32 %v904_v18, %v560_v8  ;;  %v960_v24 = vpop.f32.mrf.mxu1 }
 0x103   : > { %v906_v25 = vpop.f32.mrf.mxu0 }
 0x104   : > { %v625_v26 = vmul.f32 0.7978846, %v615_v21  ;;  %v606_v27 = vmul.f32 0.044715, %v596_v22  ;;  %v587_v28 = vmul.f32 %v1218_v23, %v1218_v23  ;;  %v907_v29 = vadd.f32 %v906_v25, %v905_v20  ;;  %v568_v30 = vpop.f32.mrf.mxu1 }
 0x105   : > { %v908_v31 = vpop.f32.mrf.mxu0 }
 0x106   : > { %1029 = vtanh.f32 %v625_v26  ;;  %v616_v32 = vadd.f32 %v606_v27, %v1212_v12  ;;  %v597_v33 = vmul.f32 %v587_v28, %v1218_v23  ;;  %v1224_v34 = vadd.f32 %v907_v29, %v563_v19  ;;  %v963_v35 = vpop.f32.mrf.mxu1 }
 0x107   : > { %v909_v36 = vpop.f32.mrf.mxu0 }
 0x108   : > { %v626_v37 = vmul.f32 0.7978846, %v616_v32  ;;  %v607_v38 = vmul.f32 0.044715, %v597_v33  ;;  %v588_v39 = vmul.f32 %v1224_v34, %v1224_v34  ;;  %v910_v40 = vadd.f32 %v909_v36, %v908_v31  ;;  %v571_v41 = vpop.f32.mrf.mxu1 }
 0x109   : > { %v911_v42 = vpop.f32.mrf.mxu0 }
 0x10a   : > { %1031 = vtanh.f32 %v626_v37  ;;  %v617_v43 = vadd.f32 %v607_v38, %v1218_v23  ;;  %v598_v44 = vmul.f32 %v588_v39, %v1224_v34  ;;  %v1230_v45 = vadd.f32 %v910_v40, %v568_v30  ;;  %v964_v46 = vpop.f32.mrf.mxu1 }
 0x10b   : > { %v1026_v48 = vpop.eup %1025  ;;  %v912_v49 = vpop.f32.mrf.mxu0 }
 0x10c   : > { %v643_v50 = vadd.f32 1.0, %v1026_v48  ;;  %v627_v51 = vmul.f32 0.7978846, %v617_v43  ;;  %v608_v52 = vmul.f32 0.044715, %v598_v44  ;;  %v589_v53 = vmul.f32 %v1230_v45, %v1230_v45  ;;  %v576_v54 = vpop.f32.mrf.mxu1 }
 0x10d   : > { %v913_v56 = vadd.f32 %v912_v49, %v911_v42  ;;  %v914_v57 = vpop.f32.mrf.mxu0 }
 0x10e   : > { %1033 = vtanh.f32 %v627_v51  ;;  %v618_v58 = vadd.f32 %v608_v52, %v1224_v34  ;;  %v599_v59 = vmul.f32 %v589_v53, %v1230_v45  ;;  %v967_v60 = vpop.f32.mrf.mxu1  ;;  %v653_v62 = vmul.f32 0.5, %v643_v50 }
 0x10f   : > { %v1028_v61 = vpop.eup %1027  ;;  %v1236_v63 = vadd.f32 %v913_v56, %v571_v41  ;;  %v915_v0 = vpop.f32.mrf.mxu0 }
 0x110   : > { %v644_v2 = vadd.f32 1.0, %v1028_v61  ;;  %v628_v3 = vmul.f32 0.7978846, %v618_v58  ;;  %v609_v4 = vmul.f32 0.044715, %v599_v59  ;;  %v579_v5 = vpop.f32.mrf.mxu1  ;;  %v916_v7 = vadd.f32 %v915_v0, %v914_v57 }
 0x111   : > { %v590_v6 = vmul.f32 %v1236_v63, %v1236_v63  ;;  %v917_v8 = vpop.f32.mrf.mxu0  ;;  %v663_v14 = vmul.f32 %v653_v62, %v1195_v47 }
 0x112   : > { %v654_v9 = vmul.f32 0.5, %v644_v2  ;;  %1035 = vtanh.f32 %v628_v3  ;;  %v619_v10 = vadd.f32 %v609_v4, %v1230_v45  ;;  %v968_v11 = vpop.f32.mrf.mxu1  ;;  %v577_v16 = vadd.f32 %v916_v7, %v576_v54 }
 0x113   : > { %v1030_v13 = vpop.eup %1029  ;;  %v600_v15 = vmul.f32 %v590_v6, %v1236_v63  ;;  %v918_v17 = vpop.f32.mrf.mxu0 }
 0x114   : > { %v664_v18 = vmul.f32 %v654_v9, %v1200_v55  ;;  %v645_v19 = vadd.f32 1.0, %v1030_v13  ;;  %v629_v20 = vmul.f32 0.7978846, %v619_v10  ;;  %v919_v21 = vadd.f32 %v918_v17, %v917_v8  ;;  %v725_v8 = vld [vmem:[%s1248_s13 + $0x24] sm:$0xf] }
 0x115   : > { %v610_v22 = vmul.f32 0.044715, %v600_v15  ;;  %v591_v24 = vmul.f32 %v577_v16, %v577_v16 }
 0x116   : > { %v854_v25 = vpack.c.bf16 %v664_v18, %v663_v14  ;;  %1037 = vtanh.f32 %v629_v20  ;;  %v580_v47 = vadd.f32 %v919_v21, %v579_v5  ;;  %v655_v55 = vmul.f32 0.5, %v645_v19 }
 0x117   : > { %v1032_v26 = vpop.eup %1031  ;;  %v620_v27 = vadd.f32 %v610_v22, %v1236_v63  ;;  %v601_v28 = vmul.f32 %v591_v24, %v577_v16 }
 0x118   : > { %855 = vst [vmem:[%s1248_s13] sm:$0xff] %v854_v25   ;;  %v646_v29 = vadd.f32 1.0, %v1032_v26  ;;  %v592_v30 = vmul.f32 %v580_v47, %v580_v47  ;;  %v665_v38 = vmul.f32 %v655_v55, %v1206_v1 }
 0x119   : > { %v630_v31 = vmul.f32 0.7978846, %v620_v27  ;;  %v611_v32 = vmul.f32 0.044715, %v601_v28 }
 0x11a   : > { %v656_v33 = vmul.f32 0.5, %v646_v29  ;;  %v602_v35 = vmul.f32 %v592_v30, %v580_v47 }
 0x11b   : > { %v1034_v36 = vpop.eup %1033  ;;  %1039 = vtanh.f32 %v630_v31  ;;  %v621_v37 = vadd.f32 %v611_v32, %v577_v16 }
 0x11c   : > { %v666_v39 = vmul.f32 %v656_v33, %v1212_v12  ;;  %v647_v40 = vadd.f32 1.0, %v1034_v36  ;;  %v612_v41 = vmul.f32 0.044715, %v602_v35 }
 0x11d   : > { %v631_v42 = vmul.f32 0.7978846, %v621_v37 }
 0x11e   : > { %v859_v43 = vpack.c.bf16 %v666_v39, %v665_v38  ;;  %v622_v44 = vadd.f32 %v612_v41, %v580_v47  ;;  %v657_v48 = vmul.f32 0.5, %v647_v40 }
 0x11f   : > { %v1036_v46 = vpop.eup %1035  ;;  %1041 = vtanh.f32 %v631_v42 }
 0x120   : > { %871 = vst [vmem:[%s1248_s13 + $0x8] sm:$0xff] %v859_v43   ;;  %v648_v49 = vadd.f32 1.0, %v1036_v46  ;;  %v632_v50 = vmul.f32 0.7978846, %v622_v44  ;;  %v667_v53 = vmul.f32 %v657_v48, %v1218_v23 }
 0x122   : > { %v658_v51 = vmul.f32 0.5, %v648_v49  ;;  %1043 = vtanh.f32 %v632_v50 }
 0x123   : > { %v1038_v52 = vpop.eup %1037 }
 0x124   : > { %v668_v1 = vmul.f32 %v658_v51, %v1224_v34  ;;  %v649_v12 = vadd.f32 1.0, %v1038_v52 }
 0x126   : > { %v864_v54 = vpack.c.bf16 %v668_v1, %v667_v53  ;;  %v659_v57 = vmul.f32 0.5, %v649_v12 }
 0x128   : > { %v1040_v56 = vpop.eup %1039  ;;  %872 = vst [vmem:[%s1248_s13 + $0x10] sm:$0xff] %v864_v54   ;;  %v669_v61 = vmul.f32 %v659_v57, %v1230_v45 }
 0x129   : > { %v650_v58 = vadd.f32 1.0, %v1040_v56 }
 0x12b   : > { %v660_v59 = vmul.f32 0.5, %v650_v58 }
 0x12c   : > { %v1042_v60 = vpop.eup %1041 }
 0x12d   : > { %v670_v62 = vmul.f32 %v660_v59, %v1236_v63  ;;  %v651_v0 = vadd.f32 1.0, %v1042_v60 }
 0x12f   : > { %v1044_v2 = vpop.eup %1043  ;;  %v869_v23 = vpack.c.bf16 %v670_v62, %v669_v61  ;;  %v661_v34 = vmul.f32 0.5, %v651_v0 }
 0x130   : > { %v652_v3 = vadd.f32 1.0, %v1044_v2 }
 0x131   : > { %873 = vst [vmem:[%s1248_s13 + $0x18] sm:$0xff] %v869_v23   ;;  %v671_v4 = vmul.f32 %v661_v34, %v577_v16 }
 0x132   : > { %v662_v5 = vmul.f32 0.5, %v652_v3 }
 0x133   : > { %v849_v6 = vpack.c.bf16 %v671_v4, %v671_v4 }
 0x134   : > { %v672_v7 = vmul.f32 %v662_v5, %v580_v47 }
 0x135   : > { %721 = vst [vmem:[%s1248_s13 + $0x20] sm:$0xf] %v849_v6 }
 0x136   : > { %v850_v45 = vpack.c.bf16 %v672_v7, %v672_v7 }
 0x138   : > { %v726_v9 = vsel %vm724_vm3, %v850_v45, %v725_v8 }
 0x139   : > { %727 = vst [vmem:[%s1248_s13 + $0x24] sm:$0xf] %v726_v9 }
 0x13a PF: > { %s12_s9 = sadd.s32 1, %s1051_s9  }
 0x13b   : > { %p9_p4 = scmp.ge.s32.totalorder %s12_s9, 4  }
 0x13d   :  { %11 = sbr.rel (!%p9_p4) target bundleno = 1 (0x1), region = 58 }

// kernel: wav2vec2_speech_model.11
= control target key start
LH: loop header
LB: loop body
LE: loop exit
PB: predicated region body
PF: predicated region fallthrough
CT: control target
= control target key end

     0   :  { %v293_v1 = vmov 0.0   ;;  %vm294_vm0 = vmmov 0   ;;  %s361_s0 = inlined_call_operand.vmem [shape: bf16[2,40,128], index: 0, kind: input, shape index: {}]   ;;  %s362_s1 = inlined_call_operand.vmem [shape: bf16[128,5], index: 1, kind: input, shape index: {}]   ;;  %s363_s2 = inlined_call_operand.vmem [shape: f32[1,5], index: 2, kind: input, shape index: {}]   ;;  %s364_s3 = inlined_call_operand.hbm [shape: f32[2,5], index: 3, kind: output, shape index: {}]  }
   0x1   :  { %v263_v0 = vld [vmem:[%s362_s1 + $0x38] sm:$0xff]   ;;  %240 = vmatprep.subr.bf16.mxu0 %v293_v1  ;;  %v264_v2 = vld [vmem:[%s362_s1 + $0x30] sm:$0xff]   ;;  %256 = vmatprep.mubr.msk.bf16.mxu0 %vm294_vm0, %v293_v1  ;;  %v265_v3 = vld [vmem:[%s362_s1 + $0x28] sm:$0xff]  }
   0x2   :  { %241 = vmatpush3.bf16.msra.mxu0 %v263_v0  ;;  %v208_v4 = vld [vmem:[%s361_s0] sm:$0xff]   ;;  %v227_v5 = vld [vmem:[%s361_s0 + $0x8] sm:$0xff]   ;;  %v228_v6 = vld [vmem:[%s361_s0 + $0x10] sm:$0xff]  }
   0x3   :  { %242 = vmatprep.subr.bf16.mxu0 %v293_v1  ;;  %v209_v7 = vunpack.c.l.bf16 %v208_v4  ;;  %v210_v8 = vunpack.c.h.bf16 %v208_v4  ;;  %v213_v9 = vunpack.c.l.bf16 %v227_v5  ;;  %v229_v10 = vld [vmem:[%s361_s0 + $0x18] sm:$0xff]   ;;  %v230_v11 = vld [vmem:[%s361_s0 + $0x20] sm:$0xff]   ;;  %v217_v13 = vunpack.c.l.bf16 %v228_v6 }
   0x4   :  { %v266_v12 = vld [vmem:[%s362_s1 + $0x20] sm:$0xff]   ;;  %v218_v14 = vunpack.c.h.bf16 %v228_v6  ;;  %v221_v15 = vunpack.c.l.bf16 %v229_v10  ;;  %v222_v16 = vunpack.c.h.bf16 %v229_v10 }
   0x6   :  { %243 = vmatpush3.bf16.msra.mxu0 %v264_v2 }
   0x7   :  { %244 = vmatprep.subr.bf16.mxu0 %v293_v1 }
   0xa   :  { %245 = vmatpush3.bf16.msra.mxu0 %v265_v3 }
   0xb   :  { %8 = vsyncpa [#allocation3], 0  ;;  %246 = vmatprep.subr.bf16.mxu0 %v293_v1  ;;  %v214_v17 = vunpack.c.h.bf16 %v227_v5  ;;  %v226_v18 = vunpack.c.h.bf16 %v230_v11  ;;  %v36_v19 = vadd.f32 %v210_v8, %v209_v7  ;;  %vm39_vm1 = vcmask 1046528   ;;  %v267_v23 = vld [vmem:[%s362_s1 + $0x18] sm:$0xff]   ;;  %v268_v30 = vld [vmem:[%s362_s1 + $0x10] sm:$0xff]  }
   0xc   :  { %v225_v20 = vunpack.c.l.bf16 %v230_v11  ;;  %v48_v21 = vadd.f32 %v221_v15, %v218_v14  ;;  %v40_v24 = vsel %vm39_vm1, %v217_v13, 0.0  ;;  %v269_v35 = vld [vmem:[%s362_s1 + $0x8] sm:$0xff]   ;;  %v270_v40 = vld [vmem:[%s362_s1] sm:$0xff]   ;;  %vm90_vm2 = vcmask 1041409   ;;  %s295_s1 = smov [#allocation2]  }
   0xd   :  { %v37_v22 = vadd.f32 %v213_v9, %v36_v19  ;;  %v51_v27 = vsel %vm39_vm1, %v226_v18, 0.0  ;;  %v198_v54 = vld [vmem:[%s363_s2] ss:$0 sm:$0xff]  ;;  %s190_s12 = sshll.u32 %s295_s1, 4  ;;  %vm182_vm3 = vcmask 33792   ;;  %s191_s12 = int_to_ptr.vmem [resolvable:$true] %s190_s12 }
   0xe   :  { %247 = vmatpush3.bf16.msra.mxu0 %v266_v12  ;;  %v49_v25 = vadd.f32 %v222_v16, %v48_v21  ;;  %s271_s13 = scalar_lea.vmem %s191_s12, 32  ;;  %p276_p1 = scmp.lt.s32.totalorder %s191_s12, %s191_s12 }
   0xf   :  { %248 = vmatprep.subr.bf16.mxu0 %v293_v1  ;;  %v38_v26 = vadd.f32 %v214_v17, %v37_v22  ;;  %p272_p0 = scmp.ne.s32.totalorder %s191_s12, %s271_s13  ;;  %p277_p2 = scmp.lt.s32.totalorder %s271_s13, %s271_s13 }
  0x10   :  { %v50_v28 = vadd.f32 %v225_v20, %v49_v25 }
  0x11   :  { %v41_v29 = vadd.f32 %v40_v24, %v38_v26  ;;  %p278_p3 = por %p277_p2, %p276_p1 }
  0x12   :  { %249 = vmatpush3.bf16.msra.mxu0 %v267_v23  ;;  %v52_v31 = vadd.f32 %v51_v27, %v50_v28 }
  0x13   :  { %250 = vmatprep.subr.bf16.mxu0 %v293_v1  ;;  %v42_v32 = vrot.slane %v41_v29, 4  ;;  %p279_p4 = pnand %p278_p3, %p272_p0 }
  0x14   :  { %v53_v33 = vrot.slane %v52_v31, 4 }
  0x15   :  { %v43_v34 = vadd.f32 %v42_v32, %v41_v29 }
  0x16   :  { %251 = vmatpush3.bf16.msra.mxu0 %v268_v30  ;;  %v54_v36 = vadd.f32 %v53_v33, %v52_v31 }
  0x17   :  { %252 = vmatprep.subr.bf16.mxu0 %v293_v1  ;;  %v44_v37 = vrot.slane %v43_v34, 2 }
  0x18   :  { %v55_v38 = vrot.slane %v54_v36, 2 }
  0x19   :  { %v45_v39 = vadd.f32 %v44_v37, %v43_v34 }
  0x1a   :  { %253 = vmatpush3.bf16.msra.mxu0 %v269_v35  ;;  %v56_v41 = vadd.f32 %v55_v38, %v54_v36 }
  0x1b   :  { %254 = vmatprep.subr.bf16.mxu0 %v293_v1  ;;  %v46_v42 = vrot.slane %v45_v39, 1 }
  0x1c   :  { %v57_v43 = vrot.slane %v56_v41, 1 }
  0x1d   :  { %v47_v44 = vadd.f32 %v46_v42, %v45_v39 }
  0x1e   :  { %255 = vmatpush3.bf16.msra.mxu0 %v270_v40  ;;  %v58_v45 = vadd.f32 %v57_v43, %v56_v41 }
  0x1f   :  { %v59_v46 = vmul.f32 0.025641026, %v47_v44 }
  0x20   :  { %v60_v47 = vmul.f32 0.025641026, %v58_v45 }
  0x21   :  { %v61_v48 = vpack.c.bf16 %v59_v46, %v59_v46 }
  0x22   :  { %v62_v49 = vpack.c.bf16 %v60_v47, %v60_v47 }
  0x23   :  { %v88_v50 = vunpack.c.l.b16 %v61_v48 }
  0x24   :  { %v89_v51 = vunpack.c.l.b16 %v62_v49 }
  0x26   :  { %v91_v52 = vsel %vm90_vm2, %v89_v51, %v88_v50 }
  0x27   :  { %v92_v53 = vpack.c.b16 %v91_v52, %v91_v52 }
  0x29   :  { %257 = vmatmul.mubr.bf16.vlgmr.msra.gmra.mxu0 %v92_v53 }
  0xe9   :  { %v176_v55 = vpop.f32.mrf.mxu0 }
  0xea   :  { %v177_v56 = vadd.f32 %v198_v54, %v176_v55 }
  0xeb   :  { %v258_v57 = vpop.f32.mrf.mxu0 }
  0xec   :  { %183 = vst.msk [vmem:[#allocation2] sm:$0x3] %vm182_vm3, %v177_v56 }
  0xed   :  { %v179_v58 = vpop.f32.mrf.mxu0 }
  0xee   :  { %282 = shalt.err (!%p279_p4)
}
  0xef   :  { %193 = dma.vmem_to_hbm [thread:$0]  %s191_s12, 32, %s364_s3, [#allocation3]   ;;  %v259_v59 = vpop.f32.mrf.mxu0 }
  0xf0   :  { %291 = dma.done.wait [#allocation3], 32  }
  0xf1   :  { %292 = vsyncadd [#allocation3], 4294967264 }
  0xf2   :  { %197 = vsyncpa [#allocation3], 1 }

// kernel: wav2vec2_speech_model.9
= control target key start
LH: loop header
LB: loop body
LE: loop exit
PB: predicated region body
PF: predicated region fallthrough
CT: control target
= control target key end

     0   :  { %s2632_s30 = smov 0   ;;  %s3501_s0 = inlined_call_operand.vmem [shape: bf16[2,40,128], index: 0, kind: input, shape index: {}]   ;;  %s3502_s1 = inlined_call_operand.vmem [shape: f32[1,128], index: 1, kind: input, shape index: {}]   ;;  %s3503_s2 = inlined_call_operand.vmem [shape: f32[1,128], index: 2, kind: input, shape index: {}]   ;;  %s3504_s3 = inlined_call_operand.vmem [shape: bf16[128,128], index: 3, kind: input, shape index: {}]   ;;  %s3505_s4 = inlined_call_operand.vmem [shape: f32[1,128], index: 4, kind: input, shape index: {}]   ;;  %s3506_s5 = inlined_call_operand.vmem [shape: bf16[4,256,32], index: 5, kind: input, shape index: {}]   ;;  %s3507_s6 = inlined_call_operand.vmem [shape: f32[1,128], index: 6, kind: input, shape index: {}]   ;;  %s3508_s7 = inlined_call_operand.vmem [shape: f32[1,128], index: 7, kind: input, shape index: {}]   ;;  %s3509_s8 = inlined_call_operand.vmem [shape: f32[1,128], index: 8, kind: input, shape index: {}]   ;;  %s3510_s9 = inlined_call_operand.vmem [shape: bf16[2,40,128], index: 9, kind: output, shape index: {}]  }
   0x1 LB: > { %s2049_s10 = sadd.s32 4294967295, %s2575_s30   ;;  %p2053_p0 = scmp.ge.s32.totalorder %s2575_s30, 1  ;;  %s2575_s30 = sphi %s2632_s30, %s19_s30  }
   0x2   : > { %p287_p1 = scmp.lt.s32.totalorder %s2575_s30, 3 }
   0x4   : > { %p288_p2 = pnand %p2053_p0, %p287_p1 }
   0x6   : > { %291 = sbr.rel (%p288_p2) target bundleno = 1469 (0x5bd), region = 56 }
   0xb   : > { %p323_p3 = scmp.lt.s32.totalorder %s2049_s10, 1  ;;  %v2467_v8 = vld [vmem:[%s3504_s3 + $0x38] sm:$0xff]   ;;  %v2577_v9 = vmov 0.0   ;;  %v2468_v30 = vld [vmem:[%s3504_s3 + $0x30] sm:$0xff]   ;;  %v2469_v31 = vld [vmem:[%s3504_s3 + $0x28] sm:$0xff]   ;;  %vm2578_vm0 = vmmov 0  }
   0xc   : > { %2409 = vmatprep.subr.bf16.mxu0 %v2577_v9  ;;  %v2470_v32 = vld [vmem:[%s3504_s3 + $0x20] sm:$0xff]   ;;  %v2471_v33 = vld [vmem:[%s3504_s3 + $0x18] sm:$0xff]   ;;  %2425 = vmatprep.mubr.msk.bf16.mxu0 %vm2578_vm0, %v2577_v9  ;;  %v2472_v34 = vld [vmem:[%s3504_s3 + $0x10] sm:$0xff]   ;;  %vm586_vm1 = vcmask 1041408   ;;  %s2579_s15 = smov 96   ;;  %s2580_s16 = smov 64  }
   0xd   : > { %s3533_s10 = smov (!%p323_p3, %s2049_s10), 1  ;;  %2410 = vmatpush3.bf16.msra.mxu0 %v2467_v8  ;;  %v2473_v35 = vld [vmem:[%s3504_s3 + $0x8] sm:$0xff]   ;;  %v2474_v36 = vld [vmem:[%s3504_s3] sm:$0xff]   ;;  %vm683_vm3 = vcmask 1044480   ;;  %vm596_vm4 = vcmask 1045504   ;;  %vm629_vm5 = vcmask 1046528  }
   0xe   : > { %s2453_s11 = smul.u32 20, %s3533_s10  ;;  %2411 = vmatprep.subr.bf16.mxu0 %v2577_v9  ;;  %v2056_v54 = vld [vmem:[%s3502_s1] ss:$0 sm:$0xff]  ;;  %s2581_s25 = smov 32   ;;  %vm599_vm6 = vsmask.f32 7424 }
   0xf   : > { %v2057_v59 = vld [vmem:[%s3503_s2] ss:$0 sm:$0xff]  ;;  %vm665_vm7 = vsmask.f32 5376  ;;  %vm641_vm8 = vsmask.f32 6400 }
  0x10   : > { %s327_s14 = scalar_lea.vmem %s3501_s0, %s2453_s11  ;;  %vm695_vm9 = vsmask.f32 4352  ;;  %vm713_vm10 = vcmask 261120   ;;  %vm727_vm11 = vcmask 785408   ;;  %vm720_vm12 = vcmask 523264   ;;  %s332_s12 = scalar_lea.vmem %s3510_s9, %s2453_s11 }
  0x11   : > { %v2243_v0 = vld [vmem:[%s327_s14] sm:$0xff]   ;;  %v2260_v1 = vld [vmem:[%s327_s14 + $0x8] sm:$0xff]   ;;  %v338_v4 = vld [vmem:[%s327_s14 + $0x10] sm:$0xf]  ;;  %2412 = vmatpush3.bf16.msra.mxu0 %v2468_v30 }
  0x12   : > { %v2244_v2 = vunpack.c.l.bf16 %v2243_v0  ;;  %v2248_v3 = vunpack.c.l.bf16 %v2260_v1  ;;  %v2245_v5 = vunpack.c.h.bf16 %v2243_v0  ;;  %v2249_v6 = vunpack.c.h.bf16 %v2260_v1  ;;  %2413 = vmatprep.subr.bf16.mxu0 %v2577_v9 }
  0x13   : > { %v343_v7 = vunpack.c.l.bf16 %v338_v4 }
  0x14   : > { %346 = vadd.xlane.f32.xlu0 %v2244_v2  ;;  %350 = vadd.xlane.f32.xlu1 %v2248_v3 }
  0x15   : > { %2414 = vmatpush3.bf16.msra.mxu0 %v2469_v31 }
  0x16   : > { %2415 = vmatprep.subr.bf16.mxu0 %v2577_v9 }
  0x18   : > { %348 = vadd.xlane.f32.xlu0 %v2245_v5  ;;  %352 = vadd.xlane.f32.xlu1 %v2249_v6 }
  0x19   : > { %2416 = vmatpush3.bf16.msra.mxu0 %v2470_v32  ;;  %v2481_v32 = vld [vmem:[%s3506_s5 + $0xf8] sm:$0xff]  }
  0x1a   : > { %2417 = vmatprep.subr.bf16.mxu0 %v2577_v9 }
  0x1c   : > { %354 = vadd.xlane.f32.xlu0 %v343_v7 }
  0x1d   : > { %2418 = vmatpush3.bf16.msra.mxu0 %v2471_v33 }
  0x1e   : > { %2419 = vmatprep.subr.bf16.mxu0 %v2577_v9 }
  0x21   : > { %2420 = vmatpush3.bf16.msra.mxu0 %v2472_v34 }
  0x22   : > { %2421 = vmatprep.subr.bf16.mxu0 %v2577_v9 }
  0x25   : > { %2422 = vmatpush3.bf16.msra.mxu0 %v2473_v35  ;;  %v2482_v35 = vld [vmem:[%s3506_s5 + $0x60] sm:$0xff]  }
  0x26   : > { %2423 = vmatprep.subr.bf16.mxu0 %v2577_v9 }
  0x29   : > { %2424 = vmatpush3.bf16.msra.mxu0 %v2474_v36  ;;  %v2483_v36 = vld [vmem:[%s3506_s5 + $0xb8] sm:$0xff]  }
  0x2a   : > { %2307 = vmatprep.subr.bf16.mxu0 %v2481_v32 }
  0x9d   : > { %v347_v10 = vpop.xlane.xlu0 %346  ;;  %v351_v11 = vpop.xlane.xlu1 %350 }
  0x9e   : > { %v357_v12 = vmul.f32 0.0078125, %v347_v10  ;;  %v359_v13 = vmul.f32 0.0078125, %v351_v11 }
  0xa0   : > { %v2653_v14 = vsub.f32 %v2244_v2, %v357_v12  ;;  %v2655_v15 = vsub.f32 %v2248_v3, %v359_v13 }
  0xa1   : > { %v349_v16 = vpop.xlane.xlu0 %348  ;;  %v353_v17 = vpop.xlane.xlu1 %352 }
  0xa2   : > { %v358_v18 = vmul.f32 0.0078125, %v349_v16  ;;  %v367_v19 = vmul.f32 %v2653_v14, %v2653_v14  ;;  %v360_v20 = vmul.f32 0.0078125, %v353_v17  ;;  %v369_v21 = vmul.f32 %v2655_v15, %v2655_v15  ;;  %v2476_v16 = vld [vmem:[%s3506_s5 + $0x38] sm:$0xff]   ;;  %v2058_v17 = vld [vmem:[%s3505_s4] ss:$0 sm:$0xff] }
  0xa4   : > { %372 = vadd.xlane.f32.xlu1 %v367_v19  ;;  %v363_v22 = vsub.f32 %v2245_v5, %v358_v18  ;;  %v2661_v23 = vsub.f32 %v2249_v6, %v360_v20  ;;  %v2477_v19 = vld [vmem:[%s3506_s5 + $0x70] sm:$0xff]  }
  0xa5   : > { %v355_v24 = vpop.xlane.xlu0 %354  ;;  %v2478_v20 = vld [vmem:[%s3506_s5 + $0x30] sm:$0xff]  }
  0xa6   : > { %v361_v25 = vmul.f32 0.0078125, %v355_v24  ;;  %v368_v26 = vmul.f32 %v363_v22, %v363_v22  ;;  %v370_v27 = vmul.f32 %v2661_v23, %v2661_v23  ;;  %v554_v24 = vlaneseq }
  0xa8   : > { %376 = vadd.xlane.f32.xlu1 %v369_v21  ;;  %374 = vadd.xlane.f32.xlu0 %v368_v26  ;;  %v2665_v28 = vsub.f32 %v343_v7, %v361_v25  ;;  %v555_v31 = vshrl.u32 %v554_v24, 7 }
  0xaa   : > { %v371_v29 = vmul.f32 %v2665_v28, %v2665_v28 }
  0xac   : > { %378 = vadd.xlane.f32.xlu0 %v370_v27  ;;  %380 = vadd.xlane.f32.xlu1 %v371_v29  ;;  %v2479_v27 = vld [vmem:[%s3506_s5 + $0x68] sm:$0xff]  }
 0x12d   : > { %v373_v37 = vpop.xlane.xlu1 %372 }
 0x12e   : > { %v382_v38 = vmul.f32 0.0078125, %v373_v37 }
 0x130   : > { %v387_v39 = vadd.f32 1e-05, %v382_v38 }
 0x131   : > { %v377_v40 = vpop.xlane.xlu1 %376  ;;  %v375_v41 = vpop.xlane.xlu0 %374 }
 0x132   : > { %2539 = vrsqrt.f32 %v387_v39  ;;  %v384_v42 = vmul.f32 0.0078125, %v377_v40  ;;  %v383_v43 = vmul.f32 0.0078125, %v375_v41  ;;  %v2484_v39 = vld [vmem:[%s3506_s5 + $0x20] sm:$0xff]   ;;  %v559_v41 = vadd.s32 32, %v555_v31 }
 0x134   : > { %v388_v44 = vadd.f32 1e-05, %v383_v43  ;;  %v389_v45 = vadd.f32 1e-05, %v384_v42  ;;  %v2485_v43 = vld [vmem:[%s3506_s5 + $0xf0] sm:$0xff]   ;;  %vm564_vm2 = vcmp.lt.s32.totalorder %v559_v41, 39 }
 0x135   : > { %v381_v46 = vpop.xlane.xlu1 %380  ;;  %v379_v47 = vpop.xlane.xlu0 %378  ;;  %v2504_v41 = vld [vmem:[%s3506_s5 + $0x88] sm:$0xff]  }
 0x136   : > { %v385_v48 = vmul.f32 0.0078125, %v379_v47  ;;  %2541 = vrsqrt.f32 %v388_v44  ;;  %v386_v49 = vmul.f32 0.0078125, %v381_v46  ;;  %v2487_v46 = vld [vmem:[%s3506_s5 + $0xb0] sm:$0xff]   ;;  %v2488_v47 = vld [vmem:[%s3506_s5 + $0x18] sm:$0xff]  }
 0x137   : > { %2543 = vrsqrt.f32 %v389_v45  ;;  %v2486_v45 = vld [vmem:[%s3506_s5 + $0x58] sm:$0xff]  }
 0x138   : > { %v390_v50 = vadd.f32 1e-05, %v385_v48  ;;  %v391_v51 = vadd.f32 1e-05, %v386_v49 }
 0x13a   : > { %2545 = vrsqrt.f32 %v390_v50 }
 0x13b   : > { %2547 = vrsqrt.f32 %v391_v51 }
 0x13f   : > { %v2540_v52 = vpop.eup %2539 }
 0x140   : > { %v397_v53 = vmul.f32 %v2540_v52, %v2653_v14  ;;  %v2489_v52 = vld [vmem:[%s3506_s5 + $0xe8] sm:$0xff]  }
 0x142   : > { %v408_v57 = vmul.f32 %v2056_v54, %v397_v53 }
 0x143   : > { %v2542_v55 = vpop.eup %2541 }
 0x144   : > { %v398_v56 = vmul.f32 %v2542_v55, %v363_v22  ;;  %v2544_v58 = vpop.eup %2543  ;;  %v419_v62 = vadd.f32 %v2057_v59, %v408_v57 }
 0x145   : > { %v399_v0 = vmul.f32 %v2544_v58, %v2655_v15  ;;  %v2475_v15 = vld [vmem:[%s3506_s5 + $0x78] sm:$0xff]   ;;  %v2490_v58 = vld [vmem:[%s3506_s5 + $0x50] sm:$0xff]  }
 0x146   : > { %v409_v60 = vmul.f32 %v2056_v54, %v398_v56  ;;  %2273 = vmatprep.subr.bf16.mxu1 %v2475_v15  ;;  %v2498_v15 = vld [vmem:[%s3506_s5 + $0x40] sm:$0xff]  }
 0x147   : > { %v2546_v61 = vpop.eup %2545  ;;  %v410_v5 = vmul.f32 %v2056_v54, %v399_v0  ;;  %2274 = vmatpush3.bf16.msra.mxu1 %v2476_v16  ;;  %v2499_v16 = vld [vmem:[%s3506_s5 + $0x98] sm:$0xff]  }
 0x148   : > { %v420_v63 = vadd.f32 %v2057_v59, %v409_v60  ;;  %v400_v1 = vmul.f32 %v2546_v61, %v2661_v23  ;;  %v2548_v4 = vpop.eup %2547  ;;  %2275 = vmatprep.subr.bf16.mxu1 %v2477_v19  ;;  %v2492_v61 = vld [vmem:[%s3506_s5 + $0x10] sm:$0xff]  }
 0x149   : > { %v401_v7 = vmul.f32 %v2548_v4, %v2665_v28  ;;  %v421_v8 = vadd.f32 %v2057_v59, %v410_v5  ;;  %v2480_v28 = vld [vmem:[%s3506_s5 + $0x28] sm:$0xff]   ;;  %v2495_v5 = vld [vmem:[%s3506_s5 + $0xa0] sm:$0xff]   ;;  %v2501_v19 = vld [vmem:[%s3506_s5 + $0xd0] sm:$0xff]  }
 0x14a   : > { %v424_v2 = vpack.c.bf16 %v420_v63, %v419_v62  ;;  %v411_v3 = vmul.f32 %v2056_v54, %v400_v1  ;;  %v2494_v4 = vld [vmem:[%s3506_s5 + $0x48] sm:$0xff]  }
 0x14b   : > { %v412_v11 = vmul.f32 %v2056_v54, %v401_v7  ;;  %2276 = vmatpush3.bf16.msra.mxu1 %v2478_v20 }
 0x14c   : > { %2426 = vmatmul.mubr.bf16.vlgmr.msra.gmra.mxu0 %v424_v2  ;;  %v422_v6 = vadd.f32 %v2057_v59, %v411_v3  ;;  %2277 = vmatprep.subr.bf16.mxu1 %v2479_v27  ;;  %v2493_v2 = vld [vmem:[%s3506_s5 + $0xe0] sm:$0xff]  }
 0x14d   : > { %2429 = vmatprep.mubr.msk.bf16.mxu0 %vm2578_vm0, %v2577_v9  ;;  %v423_v12 = vadd.f32 %v2057_v59, %v412_v11  ;;  %2308 = vmatpush3.bf16.msra.mxu0 %v2483_v36  ;;  %v2491_v59 = vld [vmem:[%s3506_s5 + $0xa8] sm:$0xff]  }
 0x14e   : > { %v425_v10 = vpack.c.bf16 %v422_v6, %v421_v8  ;;  %2309 = vmatprep.subr.bf16.mxu0 %v2485_v43  ;;  %v2496_v8 = vld [vmem:[%s3506_s5 + $0x8] sm:$0xff]  }
 0x14f   : > { %v426_v13 = vpack.c.bf16 %v423_v12, %v423_v12  ;;  %2278 = vmatpush3.bf16.msra.mxu1 %v2480_v28 }
 0x150   : > { %2279 = vmatprep.subr.bf16.mxu1 %v2482_v35 }
 0x151   : > { %2310 = vmatpush3.bf16.msra.mxu0 %v2487_v46 }
 0x152   : > { %2311 = vmatprep.subr.bf16.mxu0 %v2489_v52  ;;  %v2506_v52 = vld [vmem:[%s3506_s5 + $0x80] sm:$0xff]  }
 0x153   : > { %2280 = vmatpush3.bf16.msra.mxu1 %v2484_v39 }
 0x154   : > { %2430 = vmatmul.mubr.bf16.gmra.mxu0 %v425_v10  ;;  %2281 = vmatprep.subr.bf16.mxu1 %v2486_v45 }
 0x155   : > { %2433 = vmatprep.mubr.msk.bf16.mxu0 %vm2578_vm0, %v2577_v9  ;;  %2312 = vmatpush3.bf16.msra.mxu0 %v2491_v59 }
 0x156   : > { %2313 = vmatprep.subr.bf16.mxu0 %v2493_v2 }
 0x157   : > { %2282 = vmatpush3.bf16.msra.mxu1 %v2488_v47 }
 0x158   : > { %2283 = vmatprep.subr.bf16.mxu1 %v2490_v58 }
 0x159   : > { %2314 = vmatpush3.bf16.msra.mxu0 %v2495_v5 }
 0x15b   : > { %2284 = vmatpush3.bf16.msra.mxu1 %v2492_v61 }
 0x15c   : > { %2434 = vmatmul.mubr.bf16.gmra.mxu0 %v426_v13  ;;  %2285 = vmatprep.subr.bf16.mxu1 %v2494_v4  ;;  %v2497_v13 = vld [vmem:[%s3506_s5 + $0xd8] sm:$0xff]  }
 0x15d   : > { %2315 = vmatprep.subr.bf16.mxu0 %v2497_v13  ;;  %v2507_v13 = vld [vmem:[%s3506_s5 + $0x178] sm:$0xff]  }
 0x15e   : > { %2316 = vmatpush3.bf16.msra.mxu0 %v2499_v16 }
 0x15f   : > { %2286 = vmatpush3.bf16.msra.mxu1 %v2496_v8  ;;  %2317 = vmatprep.subr.bf16.mxu0 %v2501_v19 }
 0x160   : > { %2287 = vmatprep.subr.bf16.mxu1 %v2498_v15 }
 0x20c   : > { %v532_v14 = vpop.f32.mrf.mxu0 }
 0x20d   : > { %v2727_v21 = vadd.f32 %v2058_v17, %v532_v14 }
 0x20e   : > { %v2427_v18 = vpop.f32.mrf.mxu0 }
 0x20f   : > { %3518 = vst [vmem:[#allocation2_spill] sm:$0xff] %v2727_v21 }
 0x210   : > { %v535_v9 = vpop.f32.mrf.mxu0 }
 0x211   : > { %v2729_v22 = vadd.f32 %v2058_v17, %v535_v9  ;;  %v2500_v9 = vld [vmem:[%s3506_s5] sm:$0xff]  }
 0x212   : > { %v2428_v23 = vpop.f32.mrf.mxu0  ;;  %2288 = vmatpush3.bf16.msra.mxu1 %v2500_v9 }
 0x213   : > { %3519 = vst [vmem:[#allocation3_spill] sm:$0xff] %v2729_v22  ;;  %v580_v25 = vpack.c.bf16 %v2729_v22, %v2727_v21  ;;  %2341 = vmatprep.subr.bf16.mxu1 %v2507_v13 }
 0x214   : > { %v540_v26 = vpop.f32.mrf.mxu0 }
 0x215   : > { %v587_v29 = vrot.slane %v580_v25, 6  ;;  %v2755_v37 = vadd.f32 %v2058_v17, %v540_v26 }
 0x216   : > { %v2431_v30 = vpop.f32.mrf.mxu0 }
 0x217   : > { %v2743_v33 = vsel %vm586_vm1, 0, %v587_v29  ;;  %3520 = vst [vmem:[#allocation4_spill] sm:$0xff] %v2755_v37 }
 0x218   : > { %945 = vrot.lane.b32.xlu1 %v2743_v33, %s2579_s15  ;;  %1214 = vrot.lane.b32.xlu0 %v2743_v33, %s2580_s16  ;;  %v543_v34 = vpop.f32.mrf.mxu0  ;;  %v684_v54 = vrot.slane %v2743_v33, 3  ;;  %v660_v56 = vrot.slane %v2743_v33, 2  ;;  %v630_v6 = vrot.slane %v2743_v33, 1  ;;  %v2833_v7 = vshll.u32 %v2743_v33, 16 }
 0x219   : > { %v2757_v38 = vadd.f32 %v2058_v17, %v543_v34 }
 0x21a   : > { %v2432_v40 = vpop.f32.mrf.mxu0  ;;  %v604_v18 = vrot.slane %v2833_v7, 1  ;;  %v667_v28 = vrot.slane %v2833_v7, 3  ;;  %v697_v46 = vrot.slane %v2833_v7, 4 }
 0x21b   : > { %3521 = vst [vmem:[#allocation5_spill] sm:$0xff] %v2757_v38  ;;  %v581_v42 = vpack.c.bf16 %v2757_v38, %v2755_v37  ;;  %v2503_v40 = vld [vmem:[%s3506_s5 + $0xc8] sm:$0xff]  }
 0x21c   : > { %v548_v44 = vpop.f32.mrf.mxu0 }
 0x21d   : > { %v2776_v48 = vrot.slane %v581_v42, 6  ;;  %v549_v49 = vadd.f32 %v2058_v17, %v548_v44  ;;  %v600_v17 = vshrl.u32 %v2743_v33, 16  ;;  %v643_v44 = vrot.slane %v2833_v7, 2 }
 0x21e   : > { %v2435_v50 = vpop.f32.mrf.mxu0 }
 0x21f   : > { %v2780_v51 = vsel %vm586_vm1, %v587_v29, %v2776_v48  ;;  %v2800_v60 = vsel %vm564_vm2, %v549_v49, 0.0  ;;  %v605_v26 = vor.u32 %v604_v18, %v600_v17  ;;  %v666_v27 = vrot.slane %v600_v17, 2  ;;  %v2502_v29 = vld [vmem:[%s3506_s5 + $0x90] sm:$0xff]   ;;  %v2505_v50 = vld [vmem:[%s3506_s5 + $0xc0] sm:$0xff]  }
 0x220   : > { %947 = vrot.lane.b32.xlu1 %v2780_v51, %s2579_s15  ;;  %1216 = vrot.lane.b32.xlu0 %v2780_v51, %s2580_s16  ;;  %v551_v53 = vpop.f32.mrf.mxu0  ;;  %v685_v55 = vrot.slane %v2780_v51, 3  ;;  %v661_v57 = vrot.slane %v2780_v51, 2  ;;  %3522 = vst [vmem:[#allocation6_spill] sm:$0xff] %v2800_v60  ;;  %v631_v1 = vrot.slane %v2780_v51, 1  ;;  %v582_v3 = vpack.c.bf16 %v2800_v60, %v2800_v60 }
 0x221   : > { %v2844_v11 = vshll.u32 %v2780_v51, 16  ;;  %v2847_v12 = vshrl.u32 %v2780_v51, 16  ;;  %2318 = vmatpush3.bf16.msra.mxu0 %v2502_v29  ;;  %v642_v42 = vrot.slane %v600_v17, 1  ;;  %v668_v43 = vor.u32 %v667_v28, %v666_v27 }
 0x222   : > { %v2436_v62 = vpop.f32.mrf.mxu0  ;;  %v2808_v63 = vsel %vm683_vm3, %v684_v54, %v685_v55  ;;  %v2813_v0 = vsel %vm596_vm4, %v660_v56, %v661_v57  ;;  %v2841_v10 = vsel %vm629_vm5, %v630_v6, %v631_v1  ;;  %v590_v14 = vrot.slane %v582_v3, 6  ;;  %2319 = vmatprep.subr.bf16.mxu0 %v2503_v40 }
 0x223   : > { %v609_v20 = vrot.slane %v2844_v11, 1  ;;  %v669_v23 = vrot.slane %v2847_v12, 2  ;;  %v670_v24 = vrot.slane %v2844_v11, 3  ;;  %v645_v30 = vrot.slane %v2847_v12, 1 }
 0x224   : > { %689 = vrot.lane.b32.xlu1 %v2808_v63, %s2580_s16  ;;  %1232 = vrot.lane.b32.xlu0 %v2813_v0, %s2580_s16  ;;  %v591_v25 = vsel %vm586_vm1, %v2776_v48, %v590_v14  ;;  %v646_v31 = vrot.slane %v2844_v11, 2  ;;  %v699_v32 = vrot.slane %v2847_v12, 3  ;;  %v700_v39 = vrot.slane %v2844_v11, 4 }
 0x225   : > { %v2887_v34 = vsel %vm596_vm4, %v591_v25, 0  ;;  %v2892_v35 = vsel %vm599_vm6, %v605_v26, %v609_v20  ;;  %v2894_v36 = vor.u32 %v670_v24, %v669_v23  ;;  %v696_v45 = vrot.slane %v600_v17, 3  ;;  %2320 = vmatpush3.bf16.msra.mxu0 %v2504_v41  ;;  %v3063_v24 = vld [vmem:[%s3506_s5 + $0x1f8] sm:$0xff]  }
 0x226   : > { %v2913_v48 = vor.u32 %v646_v31, %v645_v30  ;;  %v2915_v49 = vor.u32 %v700_v39, %v699_v32  ;;  %v644_v53 = vor.u32 %v643_v44, %v642_v42  ;;  %2321 = vmatprep.subr.bf16.mxu0 %v2505_v50  ;;  %v2948_v59 = vrot.slane %v2887_v34, 3 }
 0x227   : > { %v2911_v47 = vsel %vm665_vm7, %v668_v43, %v2894_v36  ;;  %v698_v54 = vor.u32 %v697_v46, %v696_v45  ;;  %v2955_v61 = vrot.slane %v2887_v34, 2  ;;  %v2958_v62 = vrot.slane %v2887_v34, 1 }
 0x228   : > { %963 = vrot.lane.b32.xlu0 %v2813_v0, %s2579_s15  ;;  %635 = vrot.lane.b32.xlu1 %v2841_v10, %s2580_s16  ;;  %v2929_v56 = vsel %vm641_vm8, %v644_v53, %v2913_v48  ;;  %v2968_v2 = vsel %vm683_vm3, %v685_v55, %v2948_v59  ;;  %v614_v4 = vshll.u32 %v2887_v34, 16  ;;  %v618_v6 = vshrl.u32 %v2887_v34, 16 }
 0x229   : > { %3523 = vst [vmem:[#allocation7_spill] sm:$0xff] %v2929_v56  ;;  %v2933_v58 = vsel %vm695_vm9, %v698_v54, %v2915_v49  ;;  %2322 = vmatpush3.bf16.msra.mxu0 %v2506_v52  ;;  %v2974_v3 = vsel %vm629_vm5, %v631_v1, %v2958_v62  ;;  %v2985_v55 = vsel %vm596_vm4, %v661_v57, %v2955_v61 }
 0x22a   : > { %v616_v5 = vrot.slane %v614_v4, 1  ;;  %v613_v1 = vor.u32 %v2847_v12, %v609_v20  ;;  %v673_v57 = vrot.slane %v618_v6, 2  ;;  %v674_v8 = vrot.slane %v614_v4, 3  ;;  %2375 = vmatprep.subr.bf16.mxu0 %v3063_v24 }
 0x22b   : > { %v703_v11 = vrot.slane %v618_v6, 3  ;;  %v704_v12 = vrot.slane %v614_v4, 4  ;;  %v649_v16 = vrot.slane %v618_v6, 1  ;;  %v650_v17 = vrot.slane %v614_v4, 2 }
 0x22c   : > { %969 = vrot.lane.b32.xlu0 %v2808_v63, %s2581_s25  ;;  %951 = vrot.lane.b32.xlu1 %v2841_v10, %s2581_s25  ;;  %v617_v7 = vsel %vm599_vm6, %v613_v1, %v616_v5  ;;  %v3005_v14 = vor.u32 %v674_v8, %v673_v57  ;;  %v3007_v15 = vor.u32 %v618_v6, %v616_v5  ;;  %v2510_v6 = vld [vmem:[%s3506_s5 + $0x130] sm:$0xff]   ;;  %v2511_v57 = vld [vmem:[%s3506_s5 + $0x168] sm:$0xff]  }
 0x22d   : > { %v3013_v18 = vor.u32 %v704_v12, %v703_v11  ;;  %v3015_v9 = vor.u32 %v650_v17, %v649_v16 }
 0x22e   : > { %v3028_v19 = vsel %vm665_vm7, %v2894_v36, %v3005_v14 }
 0x22f   : > { %3524 = vst [vmem:[#allocation8_spill] sm:$0xff] %v3015_v9  ;;  %v3037_v20 = vsel %vm695_vm9, %v2915_v49, %v3013_v18  ;;  %v3050_v23 = vsel %vm641_vm8, %v2913_v48, %v3015_v9 }
 0x230   : > { %621 = vrot.lane.b32.xlu1 %v2892_v35, %s2581_s25  ;;  %1218 = vrot.lane.b32.xlu0 %v2887_v34, %s2580_s16 }
 0x234   : > { %1220 = vrot.lane.b32.xlu1 %v2892_v35, %s2579_s15  ;;  %677 = vrot.lane.b32.xlu0 %v2911_v47, %s2581_s25 }
 0x238   : > { %653 = vrot.lane.b32.xlu1 %v2929_v56, %s2579_s15  ;;  %707 = vrot.lane.b32.xlu0 %v2933_v58, %s2579_s15 }
 0x23c   : > { %1238 = vrot.lane.b32.xlu1 %v2911_v47, %s2579_s15  ;;  %1244 = vrot.lane.b32.xlu0 %v2933_v58, %s2581_s25 }
 0x240   : > { %1226 = vrot.lane.b32.xlu1 %v2929_v56, %s2581_s25  ;;  %975 = vrot.lane.b32.xlu0 %v2933_v58, %s2580_s16 }
 0x244   : > { %957 = vrot.lane.b32.xlu1 %v2929_v56, %s2580_s16  ;;  %693 = vrot.lane.b32.xlu0 %v2948_v59, %s2580_s16 }
 0x248   : > { %1236 = vrot.lane.b32.xlu0 %v2955_v61, %s2580_s16  ;;  %639 = vrot.lane.b32.xlu1 %v2958_v62, %s2580_s16 }
 0x24c   : > { %691 = vrot.lane.b32.xlu0 %v2968_v2, %s2580_s16  ;;  %637 = vrot.lane.b32.xlu1 %v2974_v3, %s2580_s16 }
 0x250   : > { %1234 = vrot.lane.b32.xlu0 %v2985_v55, %s2580_s16  ;;  %953 = vrot.lane.b32.xlu1 %v2974_v3, %s2581_s25 }
 0x254   : > { %965 = vrot.lane.b32.xlu0 %v2985_v55, %s2579_s15  ;;  %623 = vrot.lane.b32.xlu1 %v617_v7, %s2581_s25 }
 0x258   : > { %971 = vrot.lane.b32.xlu0 %v2968_v2, %s2581_s25  ;;  %1222 = vrot.lane.b32.xlu1 %v617_v7, %s2579_s15 }
 0x25c   : > { %681 = vrot.lane.b32.xlu0 %v3005_v14, %s2581_s25  ;;  %625 = vrot.lane.b32.xlu1 %v3007_v15, %s2581_s25 }
 0x260   : > { %711 = vrot.lane.b32.xlu0 %v3013_v18, %s2579_s15  ;;  %657 = vrot.lane.b32.xlu1 %v3015_v9, %s2579_s15 }
 0x264   : > { %1248 = vrot.lane.b32.xlu0 %v3013_v18, %s2581_s25  ;;  %1242 = vrot.lane.b32.xlu1 %v3005_v14, %s2579_s15 }
 0x268   : > { %679 = vrot.lane.b32.xlu0 %v3028_v19, %s2581_s25  ;;  %1224 = vrot.lane.b32.xlu1 %v3007_v15, %s2579_s15 }
 0x26c   : > { %709 = vrot.lane.b32.xlu0 %v3037_v20, %s2579_s15  ;;  %1230 = vrot.lane.b32.xlu1 %v3015_v9, %s2581_s25 }
 0x270   : > { %967 = vrot.lane.b32.xlu0 %v2955_v61, %s2579_s15  ;;  %949 = vrot.lane.b32.xlu1 %v2887_v34, %s2579_s15 }
 0x274   : > { %973 = vrot.lane.b32.xlu0 %v2948_v59, %s2581_s25  ;;  %655 = vrot.lane.b32.xlu1 %v3050_v23, %s2579_s15 }
 0x278   : > { %979 = vrot.lane.b32.xlu0 %v3013_v18, %s2580_s16  ;;  %955 = vrot.lane.b32.xlu1 %v2958_v62, %s2581_s25 }
 0x27c   : > { %1503 = vrot.lane.b32.xlu0 %v2985_v55, %s2581_s25  ;;  %961 = vrot.lane.b32.xlu1 %v3015_v9, %s2580_s16 }
 0x280   : > { %1485 = vrot.lane.b32.xlu0 %v2780_v51, %s2581_s25  ;;  %1491 = vrot.lane.b32.xlu1 %v617_v7, %s2580_s16 }
 0x284   : > { %1515 = vrot.lane.b32.xlu0 %v2968_v2, %s2579_s15  ;;  %1497 = vrot.lane.b32.xlu1 %v2974_v3, %s2579_s15 }
 0x288   : > { %1501 = vrot.lane.b32.xlu0 %v2813_v0, %s2581_s25  ;;  %1507 = vrot.lane.b32.xlu1 %v2911_v47, %s2580_s16 }
 0x28a   : > { %v3085_v25 = vpop.permute.xlu1 %945  ;;  %v1215_v26 = vpop.permute.xlu0 %1214 }
 0x28c   : > { %1246 = vrot.lane.b32.xlu0 %v3037_v20, %s2581_s25  ;;  %1240 = vrot.lane.b32.xlu1 %v3028_v19, %s2579_s15 }
 0x290   : > { %977 = vrot.lane.b32.xlu0 %v3037_v20, %s2580_s16  ;;  %1228 = vrot.lane.b32.xlu1 %v3050_v23, %s2581_s25 }
 0x292   : > { %v948_v27 = vpop.permute.xlu1 %947  ;;  %v3091_v28 = vpop.permute.xlu0 %1216 }
 0x293   : > { %v3094_v29 = vsel %vm713_vm10, %v948_v27, %v617_v7  ;;  %v2512_v27 = vld [vmem:[%s3506_s5 + $0x128] sm:$0xff]  }
 0x294   : > { %1483 = vrot.lane.b32.xlu0 %v2743_v33, %s2581_s25  ;;  %1489 = vrot.lane.b32.xlu1 %v2892_v35, %s2580_s16 }
 0x296   : > { %v690_v30 = vpop.permute.xlu1 %689  ;;  %v1233_v31 = vpop.permute.xlu0 %1232 }
 0x298   : > { %1513 = vrot.lane.b32.xlu0 %v2808_v63, %s2579_s15  ;;  %959 = vrot.lane.b32.xlu1 %v3050_v23, %s2580_s16 }
 0x29a   : > { %v636_v32 = vpop.permute.xlu1 %635  ;;  %v964_v36 = vpop.permute.xlu0 %963 }
 0x29b   : > { %v1007_v13 = vsel %vm713_vm10, %v964_v36, %v2911_v47 }
 0x29c   : > { %1505 = vrot.lane.b32.xlu0 %v2955_v61, %s2581_s25  ;;  %1495 = vrot.lane.b32.xlu1 %v2841_v10, %s2579_s15 }
 0x29e   : > { %v952_v39 = vpop.permute.xlu1 %951  ;;  %v970_v40 = vpop.permute.xlu0 %969 }
 0x29f   : > { %v1015_v12 = vsel %vm720_vm12, %v1007_v13, %v970_v40  ;;  %v2514_v40 = vld [vmem:[%s3506_s5 + $0x120] sm:$0xff]  }
 0x2a0   : > { %1487 = vrot.lane.b32.xlu0 %v2887_v34, %s2581_s25  ;;  %1509 = vrot.lane.b32.xlu1 %v3028_v19, %s2580_s16 }
 0x2a2   : > { %v622_v41 = vpop.permute.xlu1 %621  ;;  %v3112_v42 = vpop.permute.xlu0 %1218 }
 0x2a3   : > { %v715_v45 = vsel %vm713_vm10, %v2743_v33, %v622_v41  ;;  %v2508_v33 = vld [vmem:[%s3506_s5 + $0x138] sm:$0xff]  }
 0x2a4   : > { %1517 = vrot.lane.b32.xlu0 %v2948_v59, %s2579_s15  ;;  %1511 = vrot.lane.b32.xlu1 %v3005_v14, %s2580_s16  ;;  %v722_v53 = vsel %vm720_vm12, %v715_v45, %v636_v32  ;;  %v2516_v45 = vld [vmem:[%s3506_s5 + $0x118] sm:$0xff]  }
 0x2a6   : > { %v1221_v43 = vpop.permute.xlu1 %1220  ;;  %v678_v44 = vpop.permute.xlu0 %677 }
 0x2a7   : > { %v1252_v46 = vsel %vm713_vm10, %v1215_v26, %v1221_v43  ;;  %v739_v48 = vsel %vm713_vm10, %v2813_v0, %v678_v44  ;;  %v2509_v0 = vld [vmem:[%s3506_s5 + $0x170] sm:$0xff]   ;;  %v2515_v43 = vld [vmem:[%s3506_s5 + $0x158] sm:$0xff]  }
 0x2a8   : > { %1493 = vrot.lane.b32.xlu1 %v3007_v15, %s2580_s16  ;;  %v747_v52 = vsel %vm720_vm12, %v739_v48, %v690_v30  ;;  %v1260_v17 = vsel %vm720_vm12, %v1252_v46, %v2841_v10  ;;  %v2513_v30 = vld [vmem:[%s3506_s5 + $0x160] sm:$0xff]   ;;  %v983_v10 = vsel %vm713_vm10, %v3085_v25, %v2892_v35  ;;  %v3180_v35 = vld [vmem:[%s3506_s5 + $0x1b8] sm:$0xff]   ;;  %v3185_v25 = vld [vmem:[%s3506_s5 + $0x1f0] sm:$0xff]  }
 0x2a9   : > { %v2517_v46 = vld [vmem:[%s3506_s5 + $0x150] sm:$0xff]  }
 0x2aa   : > { %v654_v49 = vpop.permute.xlu1 %653  ;;  %v708_v50 = vpop.permute.xlu0 %707  ;;  %v3202_v48 = vld [vmem:[%s3506_s5 + $0x1b0] sm:$0xff]  }
 0x2ab   : > { %v753_v54 = vsel %vm727_vm11, %v747_v52, %v708_v50  ;;  %v729_v4 = vsel %vm727_vm11, %v722_v53, %v654_v49  ;;  %v3207_v49 = vld [vmem:[%s3506_s5 + $0x1e8] sm:$0xff]   ;;  %v2518_v53 = vld [vmem:[%s3506_s5 + $0x110] sm:$0xff]  }
 0x2ac   : > { %1499 = vrot.lane.b32.xlu1 %v2958_v62, %s2579_s15  ;;  %921 = vmatprep.mubr.bf16.mxu1 %v753_v54  ;;  %v3222_v54 = vld [vmem:[%s3506_s5 + $0x1a8] sm:$0xff]  }
 0x2ad   : > { %922 = vmatmul.mubr.bf16.vlgmr.msra.gmra.mxu1 %v729_v4  ;;  %v3227_v4 = vld [vmem:[%s3506_s5 + $0x1e0] sm:$0xff]  }
 0x2ae   : > { %v1239_v5 = vpop.permute.xlu1 %1238  ;;  %v1245_v1 = vpop.permute.xlu0 %1244  ;;  %2342 = vmatpush3.bf16.msra.mxu1 %v2508_v33  ;;  %v2519_v33 = vld [vmem:[%s3506_s5 + $0x148] sm:$0xff]  }
 0x2af   : > { %v1276_v7 = vsel %vm713_vm10, %v1233_v31, %v1239_v5  ;;  %2343 = vmatprep.subr.bf16.mxu1 %v2509_v0  ;;  %v991_v31 = vsel %vm720_vm12, %v983_v10, %v952_v39 }
 0x2b0   : > { %v1284_v8 = vsel %vm720_vm12, %v1276_v7, %v2808_v63  ;;  %v2521_v7 = vld [vmem:[%s3506_s5 + $0x140] sm:$0xff]  }
 0x2b1   : > { %v3149_v11 = vsel %vm727_vm11, %v1284_v8, %v1245_v1  ;;  %v2520_v1 = vld [vmem:[%s3506_s5 + $0x108] sm:$0xff]   ;;  %v3251_v8 = vld [vmem:[%s3506_s5 + $0x1d8] sm:$0xff]  }
 0x2b2   : > { %v1227_v16 = vpop.permute.xlu1 %1226  ;;  %v976_v26 = vpop.permute.xlu0 %975  ;;  %2344 = vmatpush3.bf16.msra.mxu1 %v2510_v6 }
 0x2b3   : > { %v3158_v63 = vsel %vm727_vm11, %v1260_v17, %v1227_v16  ;;  %v1021_v47 = vsel %vm727_vm11, %v1015_v12, %v976_v26  ;;  %2345 = vmatprep.subr.bf16.mxu1 %v2511_v57  ;;  %v3246_v57 = vld [vmem:[%s3506_s5 + $0x1a0] sm:$0xff]   ;;  %v3263_v16 = vld [vmem:[%s3506_s5 + $0x198] sm:$0xff]   ;;  %v3268_v17 = vld [vmem:[%s3506_s5 + $0x1d0] sm:$0xff]  }
 0x2b4   : > { %1190 = vmatprep.mubr.bf16.mxu0 %v1021_v47  ;;  %v2522_v12 = vld [vmem:[%s3506_s5 + $0x100] sm:$0xff]   ;;  %v3280_v47 = vld [vmem:[%s3506_s5 + $0x190] sm:$0xff]  }
 0x2b6   : > { %v958_v32 = vpop.permute.xlu1 %957  ;;  %v3168_v36 = vpop.permute.xlu0 %693  ;;  %2346 = vmatpush3.bf16.msra.mxu1 %v2512_v27 }
 0x2b7   : > { %v997_v41 = vsel %vm727_vm11, %v991_v31, %v958_v32  ;;  %2347 = vmatprep.subr.bf16.mxu1 %v2513_v30  ;;  %v3285_v30 = vld [vmem:[%s3506_s5 + $0x1c8] sm:$0xff]   ;;  %v3297_v32 = vld [vmem:[%s3506_s5 + $0x1c0] sm:$0xff]  }
 0x2b8   : > { %1191 = vmatmul.mubr.bf16.vlgmr.msra.gmra.mxu0 %v997_v41 }
 0x2b9   : > { %2376 = vmatpush3.bf16.msra.mxu0 %v3180_v35 }
 0x2ba   : > { %v3188_v39 = vpop.permute.xlu1 %639  ;;  %v3190_v44 = vpop.permute.xlu0 %1236  ;;  %2348 = vmatpush3.bf16.msra.mxu1 %v2514_v40  ;;  %2377 = vmatprep.subr.bf16.mxu0 %v3185_v25 }
 0x2bb   : > { %2349 = vmatprep.subr.bf16.mxu1 %v2515_v43  ;;  %v3304_v43 = vld [vmem:[%s3506_s5 + $0x180] sm:$0xff]  }
 0x2bd   : > { %2378 = vmatpush3.bf16.msra.mxu0 %v3202_v48 }
 0x2be   : > { %v3210_v50 = vpop.permute.xlu1 %637  ;;  %v692_v52 = vpop.permute.xlu0 %691  ;;  %2350 = vmatpush3.bf16.msra.mxu1 %v2516_v45  ;;  %2379 = vmatprep.subr.bf16.mxu0 %v3207_v49 }
 0x2bf   : > { %2351 = vmatprep.subr.bf16.mxu1 %v2517_v46 }
 0x2c1   : > { %2380 = vmatpush3.bf16.msra.mxu0 %v3222_v54 }
 0x2c2   : > { %v954_v0 = vpop.permute.xlu1 %953  ;;  %v3230_v5 = vpop.permute.xlu0 %1234  ;;  %2352 = vmatpush3.bf16.msra.mxu1 %v2518_v53  ;;  %2381 = vmatprep.subr.bf16.mxu0 %v3227_v4 }
 0x2c3   : > { %v3238_v6 = vsel %vm720_vm12, %v3094_v29, %v954_v0  ;;  %2353 = vmatprep.subr.bf16.mxu1 %v2519_v33 }
 0x2c5   : > { %2382 = vmatpush3.bf16.msra.mxu0 %v3246_v57 }
 0x2c6   : > { %v624_v13 = vpop.permute.xlu1 %623  ;;  %v3254_v29 = vpop.permute.xlu0 %965  ;;  %2354 = vmatpush3.bf16.msra.mxu1 %v2520_v1  ;;  %2383 = vmatprep.subr.bf16.mxu0 %v3251_v8 }
 0x2c7   : > { %2355 = vmatprep.subr.bf16.mxu1 %v2521_v7  ;;  %v717_v22 = vsel %vm713_vm10, %v2780_v51, %v624_v13 }
 0x2c9   : > { %2384 = vmatpush3.bf16.msra.mxu0 %v3263_v16 }
 0x2ca   : > { %v3271_v26 = vpop.permute.xlu1 %1222  ;;  %v3273_v27 = vpop.permute.xlu0 %971  ;;  %2356 = vmatpush3.bf16.msra.mxu1 %v2522_v12  ;;  %2385 = vmatprep.subr.bf16.mxu0 %v3268_v17 }
 0x2cb   : > { %2437 = vmatprep.subr.bf16.mxu1 %v3063_v24  ;;  %v3292_v24 = vld [vmem:[%s3506_s5 + $0x188] sm:$0xff]  }
 0x2cd   : > { %2386 = vmatpush3.bf16.msra.mxu0 %v3280_v47 }
 0x2ce   : > { %v626_v10 = vpop.permute.xlu1 %625  ;;  %v682_v31 = vpop.permute.xlu0 %681  ;;  %2387 = vmatprep.subr.bf16.mxu0 %v3285_v30 }
 0x2cf   : > { %v745_v21 = vsel %vm713_vm10, %v2955_v61, %v682_v31  ;;  %v719_v61 = vsel %vm713_vm10, %v2887_v34, %v626_v10 }
 0x2d1   : > { %2388 = vmatpush3.bf16.msra.mxu0 %v3292_v24 }
 0x2d2   : > { %v658_v40 = vpop.permute.xlu1 %657  ;;  %v712_v41 = vpop.permute.xlu0 %711  ;;  %2389 = vmatprep.subr.bf16.mxu0 %v3297_v32 }
 0x2d5   : > { %2390 = vmatpush3.bf16.msra.mxu0 %v3304_v43 }
 0x2d6   : > { %v1243_v45 = vpop.permute.xlu1 %1242  ;;  %v1249_v46 = vpop.permute.xlu0 %1248 }
 0x2da   : > { %v3307_v53 = vpop.permute.xlu1 %1224  ;;  %v680_v33 = vpop.permute.xlu0 %679 }
 0x2db   : > { %v742_v0 = vsel %vm713_vm10, %v2985_v55, %v680_v33  ;;  %v724_v55 = vsel %vm720_vm12, %v717_v22, %v3210_v50  ;;  %v726_v22 = vsel %vm720_vm12, %v719_v61, %v3188_v39 }
 0x2dc   : > { %v749_v12 = vsel %vm720_vm12, %v742_v0, %v692_v52  ;;  %v751_v52 = vsel %vm720_vm12, %v745_v21, %v3168_v36 }
 0x2de   : > { %v3311_v1 = vpop.permute.xlu1 %1230  ;;  %v710_v7 = vpop.permute.xlu0 %709 }
 0x2df   : > { %v756_v60 = vsel %vm727_vm11, %v749_v12, %v710_v7  ;;  %v1255_v7 = vsel %vm713_vm10, %v3091_v28, %v3271_v26 }
 0x2e0   : > { %929 = vmatprep.mubr.bf16.mxu1 %v756_v60  ;;  %v759_v60 = vsel %vm727_vm11, %v751_v52, %v712_v41 }
 0x2e2   : > { %v3315_v38 = vpop.permute.xlu1 %949  ;;  %v968_v37 = vpop.permute.xlu0 %967 }
 0x2e6   : > { %v656_v9 = vpop.permute.xlu1 %655  ;;  %v974_v56 = vpop.permute.xlu0 %973 }
 0x2e7   : > { %v732_v33 = vsel %vm727_vm11, %v724_v55, %v656_v9  ;;  %v735_v9 = vsel %vm727_vm11, %v726_v22, %v658_v40 }
 0x2e8   : > { %930 = vmatmul.mubr.bf16.gmra.mxu1 %v732_v33 }
 0x2e9   : > { %937 = vmatprep.mubr.bf16.mxu1 %v759_v60 }
 0x2ea   : > { %v3327_v0 = vpop.permute.xlu1 %955  ;;  %v980_v51 = vpop.permute.xlu0 %979 }
 0x2ee   : > { %v3331_v13 = vpop.permute.xlu1 %961  ;;  %v3333_v31 = vpop.permute.xlu0 %1503 }
 0x2f0   : > { %938 = vmatmul.mubr.bf16.gmra.mxu1 %v735_v9  ;;  %v3526_v9 = vld [vmem:[#allocation8_spill] sm:$0xff] }
 0x2f1   : > { %1459 = vmatprep.mubr.bf16.mxu1 %v3149_v11  ;;  %v1282_v11 = vsel %vm713_vm10, %v3190_v44, %v1243_v45 }
 0x2f2   : > { %v3339_v21 = vpop.permute.xlu1 %1491  ;;  %v3341_v36 = vpop.permute.xlu0 %1485 }
 0x2f6   : > { %v3343_v50 = vpop.permute.xlu1 %1497  ;;  %v3345_v41 = vpop.permute.xlu0 %1515 }
 0x2f8   : > { %1460 = vmatmul.mubr.bf16.vlgmr.msra.gmra.mxu1 %v3158_v63 }
 0x2f9   : > { %2445 = vmatpush3.bf16.msra.mxu1 %v3180_v35 }
 0x2fa   : > { %v1508_v34 = vpop.permute.xlu1 %1507  ;;  %v1502_v10 = vpop.permute.xlu0 %1501  ;;  %2438 = vmatprep.subr.bf16.mxu1 %v3185_v25  ;;  %v1010_v25 = vsel %vm713_vm10, %v3254_v29, %v3028_v19 }
 0x2fb   : > { %v1017_v28 = vsel %vm720_vm12, %v1010_v25, %v3273_v27 }
 0x2fd   : > { %2446 = vmatpush3.bf16.msra.mxu1 %v3202_v48  ;;  %v1288_v48 = vsel %vm720_vm12, %v1282_v11, %v2948_v59 }
 0x2fe   : > { %v1241_v39 = vpop.permute.xlu1 %1240  ;;  %v1247_v40 = vpop.permute.xlu0 %1246  ;;  %2439 = vmatprep.subr.bf16.mxu1 %v3207_v49  ;;  %v1296_v29 = vsel %vm727_vm11, %v1288_v48, %v1249_v46 }
 0x2ff   : > { %v1279_v63 = vsel %vm713_vm10, %v3230_v5, %v1241_v39 }
 0x300   : > { %v1286_v35 = vsel %vm720_vm12, %v1279_v63, %v2968_v2  ;;  %v1262_v2 = vsel %vm720_vm12, %v1255_v7, %v2974_v3  ;;  %v1013_v3 = vsel %vm713_vm10, %v968_v37, %v3005_v14 }
 0x301   : > { %2447 = vmatpush3.bf16.msra.mxu1 %v3222_v54  ;;  %v1293_v44 = vsel %vm727_vm11, %v1286_v35, %v1247_v40  ;;  %v1019_v46 = vsel %vm720_vm12, %v1013_v3, %v974_v56  ;;  %v989_v56 = vsel %vm713_vm10, %v3315_v38, %v3007_v15 }
 0x302   : > { %v1229_v49 = vpop.permute.xlu1 %1228  ;;  %1467 = vmatprep.mubr.bf16.mxu1 %v1293_v44  ;;  %v978_v5 = vpop.permute.xlu0 %977  ;;  %2440 = vmatprep.subr.bf16.mxu1 %v3227_v4  ;;  %v1258_v4 = vsel %vm713_vm10, %v3112_v42, %v3307_v53 }
 0x303   : > { %v1024_v19 = vsel %vm727_vm11, %v1017_v28, %v978_v5  ;;  %v1269_v54 = vsel %vm727_vm11, %v1262_v2, %v1229_v49 }
 0x304   : > { %1198 = vmatprep.mubr.bf16.mxu0 %v1024_v19  ;;  %1468 = vmatmul.mubr.bf16.gmra.mxu1 %v1269_v54 }
 0x305   : > { %2448 = vmatpush3.bf16.msra.mxu1 %v3246_v57  ;;  %1475 = vmatprep.mubr.bf16.mxu1 %v1296_v29  ;;  %v1264_v57 = vsel %vm720_vm12, %v1258_v4, %v2958_v62  ;;  %v1545_v62 = vsel %vm713_vm10, %v1502_v10, %v1508_v34 }
 0x306   : > { %v1490_v59 = vpop.permute.xlu1 %1489  ;;  %v1484_v26 = vpop.permute.xlu0 %1483  ;;  %2441 = vmatprep.subr.bf16.mxu1 %v3251_v8  ;;  %v1272_v42 = vsel %vm727_vm11, %v1264_v57, %v3311_v1 }
 0x307   : > { %v1521_v60 = vsel %vm713_vm10, %v1484_v26, %v1490_v59 }
 0x309   : > { %2449 = vmatpush3.bf16.msra.mxu1 %v3263_v16  ;;  %v1027_v16 = vsel %vm727_vm11, %v1019_v46, %v980_v51 }
 0x30a   : > { %v960_v27 = vpop.permute.xlu1 %959  ;;  %v1514_v45 = vpop.permute.xlu0 %1513  ;;  %2442 = vmatprep.subr.bf16.mxu1 %v3268_v17  ;;  %v995_v17 = vsel %vm720_vm12, %v989_v56, %v3327_v0 }
 0x30b   : > { %v1000_v8 = vsel %vm727_vm11, %v3238_v6, %v960_v27  ;;  %v1553_v6 = vsel %vm720_vm12, %v1545_v62, %v1514_v45  ;;  %v1003_v38 = vsel %vm727_vm11, %v995_v17, %v3331_v13 }
 0x30c   : > { %1199 = vmatmul.mubr.bf16.gmra.mxu0 %v1000_v8  ;;  %1476 = vmatmul.mubr.bf16.gmra.mxu1 %v1272_v42 }
 0x30d   : > { %2450 = vmatpush3.bf16.msra.mxu1 %v3280_v47  ;;  %1206 = vmatprep.mubr.bf16.mxu0 %v1027_v16 }
 0x30e   : > { %v1496_v37 = vpop.permute.xlu1 %1495  ;;  %v1506_v14 = vpop.permute.xlu0 %1505  ;;  %2443 = vmatprep.subr.bf16.mxu1 %v3285_v30  ;;  %v1524_v30 = vsel %vm713_vm10, %v3341_v36, %v3339_v21 }
 0x30f   : > { %v1531_v15 = vsel %vm720_vm12, %v1524_v30, %v3343_v50 }
 0x310   : > { %v1538_v52 = vsel %vm727_vm11, %v1531_v15, %v3050_v23 }
 0x311   : > { %2451 = vmatpush3.bf16.msra.mxu1 %v3292_v24  ;;  %v1559_v24 = vsel %vm727_vm11, %v1553_v6, %v2933_v58  ;;  %v1529_v58 = vsel %vm720_vm12, %v1521_v60, %v1496_v37 }
 0x312   : > { %v1510_v53 = vpop.permute.xlu1 %1509  ;;  %v1488_v47 = vpop.permute.xlu0 %1487  ;;  %2444 = vmatprep.subr.bf16.mxu1 %v3297_v32 }
 0x313   : > { %v1548_v1 = vsel %vm713_vm10, %v3333_v31, %v1510_v53 }
 0x314   : > { %1207 = vmatmul.mubr.bf16.gmra.mxu0 %v1003_v38  ;;  %v1555_v32 = vsel %vm720_vm12, %v1548_v1, %v3345_v41 }
 0x315   : > { %2452 = vmatpush3.bf16.msra.mxu1 %v3304_v43  ;;  %1728 = vmatprep.mubr.bf16.mxu0 %v1559_v24  ;;  %v1562_v12 = vsel %vm727_vm11, %v1555_v32, %v3037_v20  ;;  %v3525_v20 = vld [vmem:[#allocation7_spill] sm:$0xff] }
 0x316   : > { %v1512_v55 = vpop.permute.xlu1 %1511  ;;  %1736 = vmatprep.mubr.bf16.mxu1 %v1562_v12  ;;  %v1518_v33 = vpop.permute.xlu0 %1517  ;;  %v1535_v13 = vsel %vm727_vm11, %v1529_v58, %v3525_v20 }
 0x317   : > { %v1551_v0 = vsel %vm713_vm10, %v1506_v14, %v1512_v55 }
 0x318   : > { %v1557_v51 = vsel %vm720_vm12, %v1551_v0, %v1518_v33  ;;  %1737 = vmatmul.mubr.bf16.vlgmr.msra.gmra.mxu1 %v1538_v52 }
 0x319   : > { %v1565_v43 = vsel %vm727_vm11, %v1557_v51, %v3013_v18 }
 0x31a   : > { %v1494_v61 = vpop.permute.xlu1 %1493  ;;  %1744 = vmatprep.mubr.bf16.mxu1 %v1565_v43 }
 0x31b   : > { %v1527_v23 = vsel %vm713_vm10, %v1488_v47, %v1494_v61 }
 0x31c   : > { %1729 = vmatmul.mubr.bf16.vlgmr.msra.gmra.mxu0 %v1535_v13 }
 0x31e   : > { %v1500_v31 = vpop.permute.xlu1 %1499 }
 0x31f   : > { %v1533_v22 = vsel %vm720_vm12, %v1527_v23, %v1500_v31 }
 0x320   : > { %v1541_v21 = vsel %vm727_vm11, %v1533_v22, %v3526_v9 }
 0x321   : > { %1745 = vmatmul.mubr.bf16.gmra.mxu1 %v1541_v21 }
 0x36d   : > { %v2289_v36 = vpop.f32.mrf.mxu1 }
 0x36f   : > { %v2290_v50 = vpop.f32.mrf.mxu1 }
 0x370   : > { %v3434_v41 = vadd.f32 %v2290_v50, %v2289_v36 }
 0x371   : > { %v2292_v18 = vpop.f32.mrf.mxu1 }
 0x373   : > { %v2293_v34 = vpop.f32.mrf.mxu1 }
 0x374   : > { %v3436_v10 = vadd.f32 %v2293_v34, %v2292_v18 }
 0x378   : > { %v2323_v11 = vpop.f32.mrf.mxu0 }
 0x37a   : > { %v2324_v39 = vpop.f32.mrf.mxu0 }
 0x37b   : > { %v2325_v40 = vadd.f32 %v2324_v39, %v2323_v11 }
 0x37c   : > { %v2326_v7 = vpop.f32.mrf.mxu0 }
 0x37d   : > { %1757 = vrot.lane.b32.xlu0 %v2325_v40, %s2581_s25 }
 0x37e   : > { %v2327_v63 = vpop.f32.mrf.mxu0 }
 0x37f   : > { %v2328_v35 = vadd.f32 %v2327_v63, %v2326_v7 }
 0x381   : > { %1759 = vrot.lane.b32.xlu1 %v2328_v35, %s2581_s25 }
 0x3a8   : > { %v2295_v25 = vpop.f32.mrf.mxu1 }
 0x3aa   : > { %v2296_v44 = vpop.f32.mrf.mxu1 }
 0x3ab   : > { %v3440_v48 = vadd.f32 %v2296_v44, %v2295_v25  ;;  %v2227_v44 = vld [vmem:[%s3507_s6] ss:$0 sm:$0xff] }
 0x3ac   : > { %v2298_v28 = vpop.f32.mrf.mxu1 }
 0x3ae   : > { %v2299_v49 = vpop.f32.mrf.mxu1 }
 0x3af   : > { %v3442_v5 = vadd.f32 %v2299_v49, %v2298_v28 }
 0x3b0   : > { %v2301_v2 = vpop.f32.mrf.mxu1 }
 0x3b2   : > { %v2302_v19 = vpop.f32.mrf.mxu1 }
 0x3b3   : > { %v3444_v54 = vadd.f32 %v2302_v19, %v2301_v2 }
 0x3b4   : > { %v2304_v29 = vpop.f32.mrf.mxu1 }
 0x3b6   : > { %v2305_v59 = vpop.f32.mrf.mxu1 }
 0x3b8   : > { %v2357_v26 = vpop.f32.mrf.mxu1 }
 0x3ba   : > { %v2358_v4 = vpop.f32.mrf.mxu1 }
 0x3bb   : > { %v2359_v38 = vadd.f32 %v2358_v4, %v2357_v26 }
 0x3bc   : > { %v2360_v3 = vpop.f32.mrf.mxu1 }
 0x3be   : > { %v2361_v27 = vpop.f32.mrf.mxu1 }
 0x3bf   : > { %v2362_v20 = vadd.f32 %v2361_v27, %v2360_v3 }
 0x3c4   : > { %v2363_v45 = vpop.f32.mrf.mxu1 }
 0x3c6   : > { %v2364_v57 = vpop.f32.mrf.mxu1 }
 0x3c7   : > { %v2365_v22 = vadd.f32 %v2364_v57, %v2363_v45 }
 0x3c8   : > { %v2366_v46 = vpop.f32.mrf.mxu1 }
 0x3ca   : > { %v2367_v8 = vpop.f32.mrf.mxu1 }
 0x3cb   : > { %v2368_v9 = vadd.f32 %v2367_v8, %v2366_v46 }
 0x3cc   : > { %v2329_v42 = vpop.f32.mrf.mxu0  ;;  %v2369_v16 = vpop.f32.mrf.mxu1 }
 0x3ce   : > { %v2330_v37 = vpop.f32.mrf.mxu0  ;;  %v2370_v14 = vpop.f32.mrf.mxu1 }
 0x3cf   : > { %v2331_v62 = vadd.f32 %v2330_v37, %v2329_v42  ;;  %v2371_v36 = vadd.f32 %v2370_v14, %v2369_v16 }
 0x3d0   : > { %v2332_v56 = vpop.f32.mrf.mxu0  ;;  %v2372_v6 = vpop.f32.mrf.mxu1 }
 0x3d1   : > { %1761 = vrot.lane.b32.xlu0 %v2331_v62, %s2581_s25 }
 0x3d2   : > { %v2333_v17 = vpop.f32.mrf.mxu0  ;;  %v2373_v53 = vpop.f32.mrf.mxu1 }
 0x3d3   : > { %v2334_v47 = vadd.f32 %v2333_v17, %v2332_v56 }
 0x3d4   : > { %v2335_v30 = vpop.f32.mrf.mxu0 }
 0x3d5   : > { %1763 = vrot.lane.b32.xlu1 %v2334_v47, %s2581_s25 }
 0x3d6   : > { %v2336_v1 = vpop.f32.mrf.mxu0 }
 0x3d7   : > { %v2337_v15 = vadd.f32 %v2336_v1, %v2335_v30 }
 0x3d8   : > { %v2397_v24 = vpop.f32.mrf.mxu1  ;;  %v2338_v32 = vpop.f32.mrf.mxu0 }
 0x3d9   : > { %1777 = vrot.lane.b32.xlu1 %v2359_v38, %s2580_s16  ;;  %1765 = vrot.lane.b32.xlu0 %v2337_v15, %s2581_s25 }
 0x3da   : > { %v2398_v12 = vpop.f32.mrf.mxu1  ;;  %v2339_v55 = vpop.f32.mrf.mxu0 }
 0x3db   : > { %v2399_v50 = vadd.f32 %v2398_v12, %v2397_v24 }
 0x3dc   : > { %v2400_v33 = vpop.f32.mrf.mxu1  ;;  %v2391_v52 = vpop.f32.mrf.mxu0 }
 0x3de   : > { %v2392_v60 = vpop.f32.mrf.mxu0  ;;  %v2401_v0 = vpop.f32.mrf.mxu1 }
 0x3df   : > { %v2393_v58 = vadd.f32 %v2392_v60, %v2391_v52  ;;  %v2402_v18 = vadd.f32 %v2401_v0, %v2400_v33 }
 0x3e0   : > { %v2394_v51 = vpop.f32.mrf.mxu0 }
 0x3e1   : > { %1797 = vrot.lane.b32.xlu0 %v2393_v58, %s2579_s15  ;;  %v2403_v43 = vpop.f32.mrf.mxu1 }
 0x3e2   : > { %v2395_v61 = vpop.f32.mrf.mxu0 }
 0x3e3   : > { %v2396_v13 = vadd.f32 %v2395_v61, %v2394_v51  ;;  %v2404_v23 = vpop.f32.mrf.mxu1 }
 0x3e4   : > { %v2405_v34 = vadd.f32 %v2404_v23, %v2403_v43 }
 0x3e5   : > { %1799 = vrot.lane.b32.xlu1 %v2396_v13, %s2579_s15  ;;  %1779 = vrot.lane.b32.xlu0 %v2362_v20, %s2580_s16  ;;  %v2406_v31 = vpop.f32.mrf.mxu1 }
 0x3e7   : > { %v2407_v21 = vpop.f32.mrf.mxu1 }
 0x3e9   : > { %1781 = vrot.lane.b32.xlu1 %v2365_v22, %s2580_s16  ;;  %1783 = vrot.lane.b32.xlu0 %v2368_v9, %s2580_s16 }
 0x3ed   : > { %1785 = vrot.lane.b32.xlu1 %v2371_v36, %s2580_s16  ;;  %1801 = vrot.lane.b32.xlu0 %v2399_v50, %s2579_s15 }
 0x3ef   : > { %v1758_v39 = vpop.permute.xlu0 %1757 }
 0x3f0   : > { %v1812_v25 = vsel %vm713_vm10, %v3434_v41, %v1758_v39 }
 0x3f1   : > { %1803 = vrot.lane.b32.xlu1 %v2402_v18, %s2579_s15  ;;  %1805 = vrot.lane.b32.xlu0 %v2405_v34, %s2579_s15 }
 0x3f3   : > { %v1760_v11 = vpop.permute.xlu1 %1759 }
 0x3f4   : > { %v1813_v29 = vsel %vm713_vm10, %v3436_v10, %v1760_v11 }
 0x443   : > { %v1762_v7 = vpop.permute.xlu0 %1761 }
 0x444   : > { %v1814_v37 = vsel %vm713_vm10, %v3440_v48, %v1762_v7  ;;  %v3527_v7 = vld [vmem:[#allocation2_spill] sm:$0xff] }
 0x447   : > { %v1764_v40 = vpop.permute.xlu1 %1763 }
 0x448   : > { %v1815_v30 = vsel %vm713_vm10, %v3442_v5, %v1764_v40 }
 0x44b   : > { %v1766_v63 = vpop.permute.xlu0 %1765  ;;  %v1778_v35 = vpop.permute.xlu1 %1777 }
 0x44c   : > { %v1817_v28 = vsel %vm720_vm12, %v1812_v25, %v1778_v35  ;;  %v1816_v1 = vsel %vm713_vm10, %v3444_v54, %v1766_v63 }
 0x453   : > { %v1798_v49 = vpop.permute.xlu0 %1797 }
 0x454   : > { %v1822_v2 = vsel %vm727_vm11, %v1817_v28, %v1798_v49  ;;  %v3528_v28 = vld [vmem:[#allocation3_spill] sm:$0xff] }
 0x455   : > { %v1834_v19 = vadd.f32 %v2227_v44, %v1822_v2 }
 0x457   : > { %v1839_v59 = vmul.f32 %v1834_v19, %v1834_v19  ;;  %v1800_v26 = vpop.permute.xlu1 %1799  ;;  %v1780_v4 = vpop.permute.xlu0 %1779 }
 0x458   : > { %v1818_v3 = vsel %vm720_vm12, %v1813_v29, %v1780_v4 }
 0x459   : > { %v1844_v27 = vmul.f32 %v1839_v59, %v1834_v19  ;;  %v1823_v41 = vsel %vm727_vm11, %v1818_v3, %v1800_v26 }
 0x45a   : > { %v1835_v45 = vadd.f32 %v2227_v44, %v1823_v41  ;;  %v3529_v41 = vld [vmem:[#allocation4_spill] sm:$0xff] }
 0x45b   : > { %v1849_v57 = vmul.f32 0.044715, %v1844_v27  ;;  %v1782_v46 = vpop.permute.xlu1 %1781  ;;  %v1784_v8 = vpop.permute.xlu0 %1783 }
 0x45c   : > { %v1840_v42 = vmul.f32 %v1835_v45, %v1835_v45  ;;  %v1819_v10 = vsel %vm720_vm12, %v1814_v37, %v1782_v46  ;;  %v1820_v48 = vsel %vm720_vm12, %v1815_v30, %v1784_v8  ;;  %v3531_v37 = vld [vmem:[#allocation6_spill] sm:$0xff] }
 0x45d   : > { %v1854_v16 = vadd.f32 %v1849_v57, %v1834_v19 }
 0x45e   : > { %v1845_v14 = vmul.f32 %v1840_v42, %v1835_v45 }
 0x45f   : > { %v1859_v62 = vmul.f32 0.7978846, %v1854_v16  ;;  %v1786_v56 = vpop.permute.xlu1 %1785  ;;  %v1802_v6 = vpop.permute.xlu0 %1801  ;;  %v3530_v16 = vld [vmem:[#allocation5_spill] sm:$0xff] }
 0x460   : > { %v1824_v17 = vsel %vm727_vm11, %v1819_v10, %v1802_v6  ;;  %v1850_v53 = vmul.f32 0.044715, %v1845_v14  ;;  %v1821_v15 = vsel %vm720_vm12, %v1816_v1, %v1786_v56 }
 0x461   : > { %2549 = vtanh.f32 %v1859_v62  ;;  %v1836_v47 = vadd.f32 %v2227_v44, %v1824_v17 }
 0x462   : > { %v1855_v38 = vadd.f32 %v1850_v53, %v1835_v45 }
 0x463   : > { %v1841_v24 = vmul.f32 %v1836_v47, %v1836_v47  ;;  %v1804_v32 = vpop.permute.xlu1 %1803  ;;  %v1806_v12 = vpop.permute.xlu0 %1805 }
 0x464   : > { %v1825_v55 = vsel %vm727_vm11, %v1820_v48, %v1804_v32  ;;  %v1826_v33 = vsel %vm727_vm11, %v1821_v15, %v1806_v12  ;;  %v1860_v52 = vmul.f32 0.7978846, %v1855_v38 }
 0x465   : > { %v1846_v60 = vmul.f32 %v1841_v24, %v1836_v47  ;;  %v1837_v0 = vadd.f32 %v2227_v44, %v1825_v55  ;;  %v1838_v58 = vadd.f32 %v2227_v44, %v1826_v33 }
 0x466   : > { %2551 = vtanh.f32 %v1860_v52 }
 0x467   : > { %v1851_v5 = vmul.f32 0.044715, %v1846_v60  ;;  %v1842_v51 = vmul.f32 %v1837_v0, %v1837_v0  ;;  %v1843_v54 = vmul.f32 %v1838_v58, %v1838_v58 }
 0x469   : > { %v1856_v43 = vadd.f32 %v1851_v5, %v1836_v47  ;;  %v1847_v61 = vmul.f32 %v1842_v51, %v1837_v0  ;;  %v1848_v20 = vmul.f32 %v1843_v54, %v1838_v58 }
 0x46b   : > { %v1861_v13 = vmul.f32 0.7978846, %v1856_v43  ;;  %v1852_v23 = vmul.f32 0.044715, %v1847_v61  ;;  %v1853_v31 = vmul.f32 0.044715, %v1848_v20 }
 0x46d   : > { %2553 = vtanh.f32 %v1861_v13  ;;  %v1857_v22 = vadd.f32 %v1852_v23, %v1837_v0  ;;  %v1858_v9 = vadd.f32 %v1853_v31, %v1838_v58 }
 0x46e   : > { %v2550_v21 = vpop.eup %2549 }
 0x46f   : > { %v1862_v36 = vmul.f32 0.7978846, %v1857_v22  ;;  %v1863_v50 = vmul.f32 0.7978846, %v1858_v9  ;;  %v1869_v18 = vadd.f32 1.0, %v2550_v21 }
 0x471   : > { %2555 = vtanh.f32 %v1862_v36  ;;  %v1874_v34 = vmul.f32 0.5, %v1869_v18 }
 0x472   : > { %2557 = vtanh.f32 %v1863_v50 }
 0x473   : > { %v2552_v11 = vpop.eup %2551  ;;  %v1879_v39 = vmul.f32 %v1874_v34, %v1834_v19 }
 0x474   : > { %v1870_v40 = vadd.f32 1.0, %v2552_v11  ;;  %v2228_v11 = vld [vmem:[%s3508_s7] ss:$0 sm:$0xff] }
 0x475   : > { %v1884_v63 = vadd.f32 %v1879_v39, %v3527_v7 }
 0x476   : > { %v1875_v35 = vmul.f32 0.5, %v1870_v40 }
 0x477   : > { %1891 = vadd.xlane.f32.xlu1 %v1884_v63 }
 0x478   : > { %v1880_v25 = vmul.f32 %v1875_v35, %v1835_v45 }
 0x47a   : > { %v2554_v44 = vpop.eup %2553  ;;  %v1885_v49 = vadd.f32 %v1880_v25, %v3528_v28 }
 0x47b   : > { %v1871_v2 = vadd.f32 1.0, %v2554_v44 }
 0x47c   : > { %1893 = vadd.xlane.f32.xlu0 %v1885_v49 }
 0x47d   : > { %v1876_v29 = vmul.f32 0.5, %v1871_v2 }
 0x47e   : > { %v2556_v59 = vpop.eup %2555 }
 0x47f   : > { %v2558_v26 = vpop.eup %2557  ;;  %v1881_v4 = vmul.f32 %v1876_v29, %v1836_v47  ;;  %v1872_v3 = vadd.f32 1.0, %v2556_v59 }
 0x480   : > { %v1873_v27 = vadd.f32 1.0, %v2558_v26 }
 0x481   : > { %v1886_v57 = vadd.f32 %v1881_v4, %v3529_v41  ;;  %v1877_v19 = vmul.f32 0.5, %v1872_v3 }
 0x482   : > { %v1878_v46 = vmul.f32 0.5, %v1873_v27 }
 0x483   : > { %1895 = vadd.xlane.f32.xlu0 %v1886_v57  ;;  %v1882_v8 = vmul.f32 %v1877_v19, %v1837_v0 }
 0x484   : > { %v1883_v42 = vmul.f32 %v1878_v46, %v1838_v58 }
 0x485   : > { %v1887_v45 = vadd.f32 %v1882_v8, %v3530_v16 }
 0x486   : > { %v1888_v14 = vadd.f32 %v1883_v42, %v3531_v37 }
 0x487   : > { %1897 = vadd.xlane.f32.xlu0 %v1887_v45 }
 0x488   : > { %1899 = vadd.xlane.f32.xlu1 %v1888_v14 }
 0x500   : > { %v1892_v62 = vpop.xlane.xlu1 %1891 }
 0x501   : > { %v1901_v10 = vmul.f32 0.0078125, %v1892_v62 }
 0x503   : > { %v1906_v56 = vsub.f32 %v1884_v63, %v1901_v10  ;;  %v2229_v63 = vld [vmem:[%s3509_s8] ss:$0 sm:$0xff] }
 0x505   : > { %v1894_v6 = vpop.xlane.xlu0 %1893  ;;  %v1911_v17 = vmul.f32 %v1906_v56, %v1906_v56 }
 0x506   : > { %v1902_v53 = vmul.f32 0.0078125, %v1894_v6 }
 0x507   : > { %1916 = vadd.xlane.f32.xlu0 %v1911_v17 }
 0x508   : > { %v1907_v47 = vsub.f32 %v1885_v49, %v1902_v53 }
 0x50a   : > { %v1912_v30 = vmul.f32 %v1907_v47, %v1907_v47 }
 0x50c   : > { %1918 = vadd.xlane.f32.xlu1 %v1912_v30  ;;  %v1896_v1 = vpop.xlane.xlu0 %1895 }
 0x50d   : > { %v1903_v38 = vmul.f32 0.0078125, %v1896_v1 }
 0x50f   : > { %v1908_v48 = vsub.f32 %v1886_v57, %v1903_v38 }
 0x510   : > { %v1898_v15 = vpop.xlane.xlu0 %1897 }
 0x511   : > { %v1900_v24 = vpop.xlane.xlu1 %1899  ;;  %v1904_v32 = vmul.f32 0.0078125, %v1898_v15  ;;  %v1913_v12 = vmul.f32 %v1908_v48, %v1908_v48 }
 0x512   : > { %v1905_v55 = vmul.f32 0.0078125, %v1900_v24 }
 0x513   : > { %v1909_v33 = vsub.f32 %v1887_v45, %v1904_v32  ;;  %1920 = vadd.xlane.f32.xlu0 %v1913_v12 }
 0x514   : > { %v1910_v52 = vsub.f32 %v1888_v14, %v1905_v55 }
 0x515   : > { %v1914_v60 = vmul.f32 %v1909_v33, %v1909_v33 }
 0x516   : > { %v1915_v0 = vmul.f32 %v1910_v52, %v1910_v52 }
 0x517   : > { %1922 = vadd.xlane.f32.xlu1 %v1914_v60 }
 0x518   : > { %1924 = vadd.xlane.f32.xlu0 %v1915_v0 }
 0x590   : > { %v1917_v58 = vpop.xlane.xlu0 %1916 }
 0x591   : > { %v1926_v5 = vmul.f32 0.0078125, %v1917_v58 }
 0x593   : > { %v1931_v51 = vadd.f32 1e-05, %v1926_v5 }
 0x595   : > { %2559 = vrsqrt.f32 %v1931_v51  ;;  %v1919_v54 = vpop.xlane.xlu1 %1918 }
 0x596   : > { %v1927_v43 = vmul.f32 0.0078125, %v1919_v54 }
 0x598   : > { %v1932_v61 = vadd.f32 1e-05, %v1927_v43 }
 0x59a   : > { %2561 = vrsqrt.f32 %v1932_v61 }
 0x59c   : > { %v1921_v20 = vpop.xlane.xlu0 %1920 }
 0x59d   : > { %v1928_v13 = vmul.f32 0.0078125, %v1921_v20 }
 0x59f   : > { %v1933_v23 = vadd.f32 1e-05, %v1928_v13 }
 0x5a0   : > { %v1923_v31 = vpop.xlane.xlu1 %1922 }
 0x5a1   : > { %2563 = vrsqrt.f32 %v1933_v23  ;;  %v1929_v22 = vmul.f32 0.0078125, %v1923_v31  ;;  %v1925_v9 = vpop.xlane.xlu0 %1924 }
 0x5a2   : > { %v2560_v21 = vpop.eup %2559  ;;  %v1930_v36 = vmul.f32 0.0078125, %v1925_v9 }
 0x5a3   : > { %v1934_v50 = vadd.f32 1e-05, %v1929_v22  ;;  %v1941_v18 = vmul.f32 %v2560_v21, %v1906_v56 }
 0x5a4   : > { %v1935_v34 = vadd.f32 1e-05, %v1930_v36 }
 0x5a5   : > { %2565 = vrsqrt.f32 %v1934_v50  ;;  %v1952_v40 = vmul.f32 %v2228_v11, %v1941_v18 }
 0x5a6   : > { %2567 = vrsqrt.f32 %v1935_v34 }
 0x5a7   : > { %v2562_v39 = vpop.eup %2561  ;;  %v1963_v25 = vadd.f32 %v2229_v63, %v1952_v40 }
 0x5a8   : > { %v1942_v7 = vmul.f32 %v2562_v39, %v1907_v47 }
 0x5aa   : > { %v1953_v35 = vmul.f32 %v2228_v11, %v1942_v7 }
 0x5ac   : > { %v1964_v44 = vadd.f32 %v2229_v63, %v1953_v35 }
 0x5ae   : > { %v2564_v28 = vpop.eup %2563  ;;  %v2253_v49 = vpack.c.bf16 %v1964_v44, %v1963_v25 }
 0x5af   : > { %v1943_v2 = vmul.f32 %v2564_v28, %v1908_v48 }
 0x5b0   : > { %2254 = vst [vmem:[%s332_s12] sm:$0xff] %v2253_v49  }
 0x5b1   : > { %v1954_v26 = vmul.f32 %v2228_v11, %v1943_v2 }
 0x5b2   : > { %v2566_v29 = vpop.eup %2565 }
 0x5b3   : > { %v2568_v59 = vpop.eup %2567  ;;  %v1944_v4 = vmul.f32 %v2566_v29, %v1909_v33  ;;  %v1965_v57 = vadd.f32 %v2229_v63, %v1954_v26 }
 0x5b4   : > { %v1945_v3 = vmul.f32 %v2568_v59, %v1910_v52 }
 0x5b5   : > { %v1955_v27 = vmul.f32 %v2228_v11, %v1944_v4 }
 0x5b6   : > { %v1956_v41 = vmul.f32 %v2228_v11, %v1945_v3 }
 0x5b7   : > { %v1966_v19 = vadd.f32 %v2229_v63, %v1955_v27 }
 0x5b8   : > { %v1967_v46 = vadd.f32 %v2229_v63, %v1956_v41 }
 0x5b9   : > { %v2258_v8 = vpack.c.bf16 %v1966_v19, %v1965_v57 }
 0x5ba   : > { %v2241_v42 = vpack.c.bf16 %v1967_v46, %v1967_v46 }
 0x5bb   : > { %2261 = vst [vmem:[%s332_s12 + $0x8] sm:$0xff] %v2258_v8  }
 0x5bc   : > { %1993 = vst [vmem:[%s332_s12 + $0x10] sm:$0xf] %v2241_v42 }
 0x5bd PF: > { %s19_s30 = sadd.s32 1, %s2575_s30  }
 0x5be   : > { %p16_p4 = scmp.ge.s32.totalorder %s19_s30, 4  }
 0x5c0   :  { %18 = sbr.rel (!%p16_p4) target bundleno = 1 (0x1), region = 89 }

// kernel: wav2vec2_speech_model.10
= control target key start
LH: loop header
LB: loop body
LE: loop exit
PB: predicated region body
PF: predicated region fallthrough
CT: control target
= control target key end

     0   :  { %s3969_s25 = smov 0   ;;  %s3971_s26 = smov 0   ;;  %s4801_s0 = inlined_call_operand.vmem [shape: bf16[2,40,128], index: 0, kind: input, shape index: {}]   ;;  %s4802_s1 = inlined_call_operand.vmem [shape: bf16[2,128,384], index: 1, kind: input, shape index: {}]   ;;  %s4803_s2 = inlined_call_operand.vmem [shape: f32[2,1,384], index: 2, kind: input, shape index: {}]   ;;  %s4804_s3 = inlined_call_operand.vmem [shape: bf16[2,128,128], index: 3, kind: input, shape index: {}]   ;;  %s4805_s4 = inlined_call_operand.vmem [shape: f32[2,1,128], index: 4, kind: input, shape index: {}]   ;;  %s4806_s5 = inlined_call_operand.vmem [shape: f32[2,1,128], index: 5, kind: input, shape index: {}]   ;;  %s4807_s6 = inlined_call_operand.vmem [shape: f32[2,1,128], index: 6, kind: input, shape index: {}]   ;;  %s4808_s7 = inlined_call_operand.vmem [shape: bf16[2,128,256], index: 7, kind: input, shape index: {}]   ;;  %s4809_s8 = inlined_call_operand.vmem [shape: f32[2,1,256], index: 8, kind: input, shape index: {}]   ;;  %s4810_s9 = inlined_call_operand.vmem [shape: bf16[2,256,128], index: 9, kind: input, shape index: {}]   ;;  %s4811_s10 = inlined_call_operand.vmem [shape: f32[2,1,128], index: 10, kind: input, shape index: {}]   ;;  %s4812_s11 = inlined_call_operand.vmem [shape: f32[2,1,128], index: 11, kind: input, shape index: {}]   ;;  %s4813_s12 = inlined_call_operand.vmem [shape: f32[2,1,128], index: 12, kind: input, shape index: {}]   ;;  %s4814_s13 = inlined_call_operand.vmem [shape: bf16[2,40,128], index: 13, kind: output, shape index: {}]  }
   0x1   :  { %4819 = sst [smem:[#allocation9_spill]] %s4801_s0  ;;  %s3973_s27 = smov 0  }
   0x2   :  { %4820 = sst [smem:[#allocation10_spill]] %s4802_s1  ;;  %s3975_s28 = smov 0  }
   0x3   :  { %4821 = sst [smem:[#allocation11_spill]] %s4803_s2  ;;  %s3977_s29 = smov 0  }
   0x4   :  { %4822 = sst [smem:[#allocation12_spill]] %s4804_s3 }
   0x5   :  { %4823 = sst [smem:[#allocation13_spill]] %s4807_s6 }
   0x6   :  { %4824 = sst [smem:[#allocation14_spill]] %s4808_s7 }
   0x7   :  { %4825 = sst [smem:[#allocation15_spill]] %s4809_s8 }
   0x8   :  { %4826 = sst [smem:[#allocation16_spill]] %s4813_s12 }
   0x9   :  { %4827 = sst [smem:[#allocation17_spill]] %s4814_s13 }
   0xa LB: > { %4828 = sst [smem:[#allocation3_spill]] %s3875_s25  ;;  %s32_s30 = sadd.s32 1, %s3883_s27  ;;  %s3891_s29 = sphi %s3977_s29, %s23_s29   ;;  %s3887_s28 = sphi %s3975_s28, %s4854_s28   ;;  %s3883_s27 = sphi %s3973_s27, %s4853_s27   ;;  %s3879_s26 = sphi %s3971_s26, %s4852_s26   ;;  %s3875_s25 = sphi %s3969_s25, %s4851_s25  }
   0xb   : > { %4829 = sst [smem:[#allocation4_spill]] %s3883_s27  ;;  %s35_s14 = sadd.s32 1, %s3887_s28 }
   0xc   : > { %4830 = sst [smem:[#allocation5_spill]] %s3887_s28  ;;  %p33_p0 = scmp.ge.s32.totalorder %s32_s30, 2 }
   0xd   : > { %4831 = sst [smem:[#allocation6_spill]] %s3891_s29  ;;  %p3096_p1 = scmp.ge.s32.totalorder %s3891_s29, 1 }
   0xe   : > { %p505_p2 = scmp.lt.s32.totalorder %s3891_s29, 5  ;;  %s4856_s30 = smov (%p33_p0, %s32_s30), 0 }
   0xf   : > { %4832 = sst [smem:[#allocation7_spill]] %s4856_s30  ;;  %s4858_s14 = smov (!%p33_p0, %s35_s14), %s3887_s28 }
  0x10   : > { %p506_p3 = pnand %p3096_p1, %p505_p2  ;;  %p37_p4 = scmp.ge.s32.totalorder %s4858_s14, 2 }
  0x11   : > { %p595_p5 = scmp.lt.s32.totalorder (!%p506_p3), %s3879_s26, 1  ;;  %p600_p6 = scmp.lt.s32.totalorder (!%p506_p3), %s3875_s25, 1 }
  0x12   : > { %s4860_s14 = smov (%p37_p4, %s4858_s14), 0  ;;  %509 = sbr.rel (%p506_p3) target bundleno = 3746 (0xea2), region = 72 }
  0x13   : > { %4833 = sst [smem:[#allocation8_spill]] %s4860_s14 }
  0x14   : > { %s4834_s0 = sld [smem:[#allocation9_spill]] (!%p506_p3) }
  0x15   : > { %s4835_s1 = sld [smem:[#allocation10_spill]] (!%p506_p3) }
  0x16   : > { %s4836_s3 = sld [smem:[#allocation12_spill]] (!%p506_p3) }
  0x17   : > { %s4862_s26 = smov (!%p595_p5, %s3879_s26), 1  ;;  %s4837_s2 = sld [smem:[#allocation11_spill]] }
  0x18   : > { %s4003_s15 = scalar_select %p600_p6, %s3875_s25, 1 }
  0x19   : > { %s3599_s16 = smul.u32 20, %s4862_s26  ;;  %s4839_s7 = sld [smem:[#allocation14_spill]] }
  0x1a   : > { %s3600_s17 = smul.u32 192, %s4003_s15  ;;  %s3222_s18 = sshll.u32 %s4003_s15, 6 }
  0x1b   : > { %s599_s21 = scalar_lea.vmem %s4834_s0, %s3599_s16  ;;  %s3601_s22 = smul.u32 3, %s4003_s15 }
  0x1c   : > { %s4014_s14 = scalar_lea.vmem %s4835_s1, %s3600_s17  ;;  %s4019_s27 = scalar_lea.vmem %s4836_s3, %s3222_s18 }
  0x1d   : > { %s4024_s25 = scalar_lea.vmem %s4837_s2, %s3601_s22  ;;  %s3223_s28 = sshll.u32 %s4003_s15, 7 }
  0x1e   : > { %s3103_s30 = sshll.u32 %s4003_s15, 1  ;;  %s4840_s8 = sld [smem:[#allocation15_spill]] }
  0x1f   : > { %s4043_s29 = scalar_lea.vmem %s4839_s7, %s3223_s28  ;;  %s4053_s0 = scalar_lea.vmem %s4810_s9, %s3223_s28 }
  0x20   : > { %s639_s24 = scalar_lea.vmem %s4811_s10, %s4003_s15  ;;  %s642_s3 = scalar_lea.vmem %s4812_s11, %s4003_s15 }
  0x21   : > { %s4841_s7 = sld [smem:[#allocation16_spill]] }
  0x22   : > { %s4842_s26 = sld [smem:[#allocation17_spill]] }
  0x23   : > { %s4843_s20 = sld [smem:[#allocation3_spill]] }
  0x24   : > { %s4048_s13 = scalar_lea.vmem %s4840_s8, %s3103_s30 }
  0x27   : > { %s645_s6 = scalar_lea.vmem %s4841_s7, %s4003_s15 }
  0x28   : > { %s4070_s8 = scalar_lea.vmem %s4842_s26, %s3599_s16 }
  0x29   : > { %p3107_p7 = scmp.ne.s32.totalorder %s4843_s20, 0 }
  0x2b   : > { %655 = sbr.rel (%p3107_p7) target bundleno = 54 (0x36), region = 76 }
  0x30   : > { %v3231_v0 = vld [vmem:[%s599_s21] sm:$0xff]   ;;  %v3248_v1 = vld [vmem:[%s599_s21 + $0x8] sm:$0xff]   ;;  %v660_v2 = vld [vmem:[%s599_s21 + $0x10] sm:$0xf] }
  0x31   : > { %v3232_v3 = vunpack.c.l.bf16 %v3231_v0  ;;  %v3233_v4 = vunpack.c.h.bf16 %v3231_v0  ;;  %v3236_v5 = vunpack.c.l.bf16 %v3248_v1  ;;  %v3237_v6 = vunpack.c.h.bf16 %v3248_v1 }
  0x32   : > { %v665_v7 = vunpack.c.l.bf16 %v660_v2 }
  0x33   : > { %666 = vst [vmem:[#allocation2 + $0x8] sm:$0xff] %v3232_v3  ;;  %667 = vst [vmem:[#allocation2] sm:$0xff] %v3233_v4 }
  0x34   : > { %668 = vst [vmem:[#allocation2 + $0x20] sm:$0xff] %v3236_v5  ;;  %669 = vst [vmem:[#allocation2 + $0x10] sm:$0xff] %v3237_v6 }
  0x35   : > { %670 = vst [vmem:[#allocation2 + $0x18] sm:$0xff] %v665_v7 }
  0x36 PF: > { %v3648_v8 = vld [vmem:[%s4014_s14 + $0xac] ss:$12 sps:$4 sm:$0xff]   ;;  %v3650_v9 = vld [vmem:[%s4014_s14 + $0xa8] ss:$12 sps:$4 sm:$0xff]   ;;  %v3893_v10 = vmov 0   ;;  %v3894_v33 = vmov 0.0   ;;  %v713_v34 = vlaneseq  ;;  %s4845_s23 = scalar_lea.vmem %s4806_s5, %s4003_s15 }
  0x37   : > { %888 = vmatprep.mubr.bf16.mxu0 %v3893_v10  ;;  %856 = vmatprep.subr.bf16.mxu0 %v3648_v8  ;;  %v3651_v11 = vld [vmem:[%s4014_s14 + $0x94] ss:$12 sps:$4 sm:$0xff]   ;;  %v3653_v12 = vld [vmem:[%s4014_s14 + $0x90] ss:$12 sps:$4 sm:$0xff]   ;;  %v3656_v14 = vld [vmem:[%s4014_s14 + $0x78] ss:$12 sps:$4 sm:$0xff]  }
  0x38   : > { %857 = vmatpush1.bf16.msra.mxu0 %v3650_v9  ;;  %v3654_v13 = vld [vmem:[%s4014_s14 + $0x7c] ss:$12 sps:$4 sm:$0xff]   ;;  %v3657_v15 = vld [vmem:[%s4014_s14 + $0x64] ss:$12 sps:$4 sm:$0xff]   ;;  %v3659_v16 = vld [vmem:[%s4014_s14 + $0x60] ss:$12 sps:$4 sm:$0xff]   ;;  %3363 = vmatprep.subr.bf16.mxu1 %v3894_v33 }
  0x39   : > { %858 = vmatprep.subr.bf16.mxu0 %v3651_v11  ;;  %v3660_v17 = vld [vmem:[%s4014_s14 + $0x4c] ss:$12 sps:$4 sm:$0xff]   ;;  %v3662_v18 = vld [vmem:[%s4014_s14 + $0x48] ss:$12 sps:$4 sm:$0xff]   ;;  %v3665_v20 = vld [vmem:[%s4014_s14 + $0x30] ss:$12 sps:$4 sm:$0xff]  }
  0x3a   : > { %v3663_v19 = vld [vmem:[%s4014_s14 + $0x34] ss:$12 sps:$4 sm:$0xff]   ;;  %v3666_v21 = vld [vmem:[%s4014_s14 + $0x1c] ss:$12 sps:$4 sm:$0xff]   ;;  %v3668_v22 = vld [vmem:[%s4014_s14 + $0x18] ss:$12 sps:$4 sm:$0xff]  }
  0x3b   : > { %v3669_v23 = vld [vmem:[%s4014_s14 + $0x4] ss:$12 sps:$4 sm:$0xff]   ;;  %v3671_v24 = vld [vmem:[%s4014_s14] ss:$12 sps:$4 sm:$0xff]   ;;  %vm3895_vm0 = vmmov 0   ;;  %v4108_v35 = vshrl.u32 %v713_v34, 7 }
  0x3c   : > { %859 = vmatpush1.bf16.msra.mxu0 %v3653_v12  ;;  %v671_v25 = vld [vmem:[#allocation2 + $0x8] sm:$0xff]  ;;  %v672_v26 = vld [vmem:[#allocation2] sm:$0xff]  ;;  %v674_v29 = vld [vmem:[#allocation2 + $0x10] sm:$0xff]  ;;  %3379 = vmatprep.mubr.msk.bf16.mxu1 %vm3895_vm0, %v3894_v33  ;;  %s3896_s1 = smov 96   ;;  %vm985_vm1 = vcmask 261120   ;;  %vm1067_vm3 = vcmask 326656  }
  0x3d   : > { %860 = vmatprep.subr.bf16.mxu0 %v3654_v13  ;;  %v4090_v27 = vpack.c.bf16 %v672_v26, %v671_v25  ;;  %v673_v28 = vld [vmem:[#allocation2 + $0x20] sm:$0xff]  ;;  %v675_v31 = vld [vmem:[#allocation2 + $0x18] sm:$0xff]  ;;  %v719_v36 = vsub.s32 1, %v4108_v35  ;;  %v715_v40 = vsub.s32 0, %v4108_v35  ;;  %v3675_v12 = vld [vmem:[%s4014_s14 + $0x68] ss:$12 sps:$4 sm:$0xff]  }
  0x3e   : > { %v4094_v30 = vpack.c.bf16 %v674_v29, %v673_v28  ;;  %v4098_v32 = vpack.c.bf16 %v675_v31, %v675_v31  ;;  %v4112_v38 = vld [vmem:[%s4024_s25] sm:$0x7]  ;;  %v3672_v8 = vld [vmem:[%s4014_s14 + $0xb0] ss:$12 sps:$4 sm:$0xff]   ;;  %v3673_v9 = vld [vmem:[%s4014_s14 + $0x98] ss:$12 sps:$4 sm:$0xff]  }
  0x3f   : > { %v720_v41 = vrot.slane %v4112_v38, %v719_v36  ;;  %v716_v44 = vrot.slane %v4112_v38, %v715_v40  ;;  %3364 = vmatpush3.bf16.msra.mxu1 %v3672_v8  ;;  %v3674_v11 = vld [vmem:[%s4014_s14 + $0x80] ss:$12 sps:$4 sm:$0xff]   ;;  %v3676_v13 = vld [vmem:[%s4014_s14 + $0x50] ss:$12 sps:$4 sm:$0xff]   ;;  %v4207_v26 = vand.u32 127, %v713_v34  ;;  %vm1135_vm4 = vcmask 1043456  }
  0x40   : > { %861 = vmatpush1.bf16.msra.mxu0 %v3656_v14  ;;  %3365 = vmatprep.subr.bf16.mxu1 %v3894_v33  ;;  %v3677_v14 = vld [vmem:[%s4014_s14 + $0x38] ss:$12 sps:$4 sm:$0xff]   ;;  %s3897_s2 = smov 64   ;;  %s3898_s7 = smov 32  }
  0x41   : > { %862 = vmatprep.subr.bf16.mxu0 %v3657_v15  ;;  %v3678_v15 = vld [vmem:[%s4014_s14 + $0x20] ss:$12 sps:$4 sm:$0xff]   ;;  %vm984_vm2 = vcmp.lt.s32.totalorder %v4207_v26, 39  ;;  %s4846_s19 = sld [smem:[#allocation13_spill]] }
  0x43   : > { %3366 = vmatpush3.bf16.msra.mxu1 %v3673_v9 }
  0x44   : > { %863 = vmatpush1.bf16.msra.mxu0 %v3659_v16  ;;  %3367 = vmatprep.subr.bf16.mxu1 %v3894_v33  ;;  %v3679_v16 = vld [vmem:[%s4014_s14 + $0x8] ss:$12 sps:$4 sm:$0xff]   ;;  %s4844_s14 = scalar_lea.vmem %s4805_s4, %s4003_s15 }
  0x45   : > { %864 = vmatprep.subr.bf16.mxu0 %v3660_v17 }
  0x47   : > { %3368 = vmatpush3.bf16.msra.mxu1 %v3674_v11  ;;  %s4847_s12 = scalar_lea.vmem %s4846_s19, %s4003_s15 }
  0x48   : > { %865 = vmatpush1.bf16.msra.mxu0 %v3662_v18  ;;  %3369 = vmatprep.subr.bf16.mxu1 %v3894_v33 }
  0x49   : > { %866 = vmatprep.subr.bf16.mxu0 %v3663_v19 }
  0x4b   : > { %3370 = vmatpush3.bf16.msra.mxu1 %v3675_v12 }
  0x4c   : > { %867 = vmatpush1.bf16.msra.mxu0 %v3665_v20  ;;  %3371 = vmatprep.subr.bf16.mxu1 %v3894_v33 }
  0x4d   : > { %868 = vmatprep.subr.bf16.mxu0 %v3666_v21 }
  0x4f   : > { %3372 = vmatpush3.bf16.msra.mxu1 %v3676_v13 }
  0x50   : > { %869 = vmatpush1.bf16.msra.mxu0 %v3668_v22  ;;  %3373 = vmatprep.subr.bf16.mxu1 %v3894_v33 }
  0x51   : > { %870 = vmatprep.subr.bf16.mxu0 %v3669_v23 }
  0x53   : > { %3374 = vmatpush3.bf16.msra.mxu1 %v3677_v14 }
  0x54   : > { %871 = vmatpush1.bf16.msra.mxu0 %v3671_v24  ;;  %3375 = vmatprep.subr.bf16.mxu1 %v3894_v33 }
  0x55   : > { %3391 = vmatprep.subr.bf16.mxu0 %v3894_v33 }
  0x57   : > { %889 = vmatmul.mubr.bf16.vlgmr.msra.gmra.mxu0 %v4090_v27  ;;  %3376 = vmatpush3.bf16.msra.mxu1 %v3678_v15 }
  0x58   : > { %898 = vmatprep.mubr.bf16.mxu0 %v3893_v10  ;;  %3377 = vmatprep.subr.bf16.mxu1 %v3894_v33 }
  0x5b   : > { %3378 = vmatpush3.bf16.msra.mxu1 %v3679_v16 }
  0x5c   : > { %3409 = vmatprep.subr.bf16.mxu1 %v3894_v33 }
  0x5e   : > { %3380 = vmatmul.mubr.bf16.vlgmr.msra.gmra.mxu1 %v4090_v27 }
  0x5f   : > { %899 = vmatmul.mubr.bf16.gmra.mxu0 %v4094_v30  ;;  %3383 = vmatprep.mubr.msk.bf16.mxu1 %vm3895_vm0, %v3894_v33 }
  0x60   : > { %908 = vmatprep.mubr.bf16.mxu0 %v3893_v10 }
  0x66   : > { %3384 = vmatmul.mubr.bf16.gmra.mxu1 %v4094_v30 }
  0x67   : > { %909 = vmatmul.mubr.bf16.gmra.mxu0 %v4098_v32  ;;  %3387 = vmatprep.mubr.msk.bf16.mxu1 %vm3895_vm0, %v3894_v33 }
  0x68   : > { %3397 = vmatprep.mubr.msk.bf16.mxu0 %vm3895_vm0, %v3894_v33 }
  0x6e   : > { %3388 = vmatmul.mubr.bf16.gmra.mxu1 %v4098_v32 }
  0x6f   : > { %3415 = vmatprep.mubr.msk.bf16.mxu1 %vm3895_vm0, %v3894_v33 }
 0x117   : > { %v890_v37 = vpop.f32.mrf.mxu0 }
 0x118   : > { %v891_v51 = vadd.f32 %v890_v37, %v716_v44 }
 0x119   : > { %v892_v39 = vpop.f32.mrf.mxu0 }
 0x11a   : > { %v893_v45 = vadd.f32 %v892_v39, %v720_v41 }
 0x11b   : > { %v894_v42 = vpop.f32.mrf.mxu0 }
 0x11c   : > { %v895_v48 = vadd.f32 %v894_v42, %v716_v44 }
 0x11d   : > { %v896_v43 = vpop.f32.mrf.mxu0 }
 0x11e   : > { %v897_v46 = vadd.f32 %v896_v43, %v720_v41  ;;  %v4125_v53 = vpack.c.bf16 %v895_v48, %v891_v51 }
 0x11f   : > { %v900_v47 = vpop.f32.mrf.mxu0 }
 0x120   : > { %v4121_v49 = vpack.c.bf16 %v897_v46, %v893_v45  ;;  %v901_v4 = vadd.f32 %v900_v47, %v716_v44 }
 0x121   : > { %v902_v50 = vpop.f32.mrf.mxu0 }
 0x122   : > { %1214 = vrot.lane.b32.xlu1 %v4121_v49, %s3896_s1  ;;  %v903_v0 = vadd.f32 %v902_v50, %v720_v41  ;;  %v996_v7 = vsel %vm985_vm1, %v4121_v49, 0 }
 0x123   : > { %v904_v52 = vpop.f32.mrf.mxu0 }
 0x124   : > { %v905_v2 = vadd.f32 %v904_v52, %v716_v44 }
 0x125   : > { %v906_v54 = vpop.f32.mrf.mxu0 }
 0x126   : > { %1205 = vrot.lane.b32.xlu1 %v4125_v53, %s3896_s1  ;;  %v907_v61 = vadd.f32 %v906_v54, %v720_v41  ;;  %v4144_v5 = vpack.c.bf16 %v905_v2, %v901_v4 }
 0x127   : > { %v910_v55 = vpop.f32.mrf.mxu0 }
 0x128   : > { %v911_v56 = vadd.f32 %v910_v55, %v716_v44  ;;  %v4139_v3 = vpack.c.bf16 %v907_v61, %v903_v0 }
 0x129   : > { %v912_v57 = vpop.f32.mrf.mxu0 }
 0x12a   : > { %v4129_v58 = vpack.c.bf16 %v911_v56, %v911_v56  ;;  %v913_v59 = vadd.f32 %v912_v57, %v720_v41  ;;  %v999_v6 = vsel %vm985_vm1, %v4139_v3, 0  ;;  %v951_v56 = vpop.f32.mrf.mxu1 }
 0x12b   : > { %v914_v60 = vpop.f32.mrf.mxu0 }
 0x12c   : > { %v4131_v62 = vpack.c.bf16 %v913_v59, %v913_v59  ;;  %1209 = vrot.lane.b32.xlu1 %v4129_v58, %s3896_s1  ;;  %v3381_v57 = vpop.f32.mrf.mxu1 }
 0x12d   : > { %v915_v63 = vpop.f32.mrf.mxu0 }
 0x12e   : > { %1218 = vrot.lane.b32.xlu0 %v4131_v62, %s3896_s1  ;;  %v1002_v1 = vsel %vm985_vm1, %v4131_v62, 0  ;;  %v954_v59 = vpop.f32.mrf.mxu1  ;;  %v723_v63 = vsub.s32 2, %v4108_v35 }
 0x12f   : > { %3392 = vmatpush3.bf16.xpose.msra.mxu0 %v1002_v1 }
 0x130   : > { %3393 = vmatprep.subr.bf16.mxu0 %v3894_v33  ;;  %v3382_v60 = vpop.f32.mrf.mxu1  ;;  %v724_v2 = vrot.slane %v4112_v38, %v723_v63 }
 0x132   : > { %1216 = vrot.lane.b32.xlu0 %v4139_v3, %s3896_s1  ;;  %v959_v61 = vpop.f32.mrf.mxu1  ;;  %v952_v15 = vadd.f32 %v951_v56, %v724_v2  ;;  %v955_v16 = vadd.f32 %v954_v59, %v724_v2 }
 0x133   : > { %v960_v8 = vadd.f32 %v959_v61, %v724_v2 }
 0x134   : > { %v3385_v0 = vpop.f32.mrf.mxu1  ;;  %v4249_v38 = vpack.c.bf16 %v955_v16, %v952_v15 }
 0x136   : > { %1207 = vrot.lane.b32.xlu0 %v4144_v5, %s3896_s1  ;;  %v962_v1 = vpop.f32.mrf.mxu1 }
 0x137   : > { %3394 = vmatpush3.bf16.xpose.msra.mxu0 %v999_v6  ;;  %v963_v9 = vadd.f32 %v962_v1, %v724_v2 }
 0x138   : > { %3395 = vmatprep.subr.bf16.mxu0 %v3894_v33  ;;  %v3386_v4 = vpop.f32.mrf.mxu1 }
 0x13a   : > { %v967_v6 = vpop.f32.mrf.mxu1 }
 0x13c   : > { %v3389_v11 = vpop.f32.mrf.mxu1 }
 0x13e   : > { %v970_v13 = vpop.f32.mrf.mxu1 }
 0x13f   : > { %3396 = vmatpush3.bf16.xpose.msra.mxu0 %v996_v7  ;;  %v968_v7 = vadd.f32 %v967_v6, %v724_v2 }
 0x140   : > { %3427 = vmatprep.subr.bf16.mxu0 %v3894_v33 }
 0x141   : > { %v4242_v12 = vpack.c.bf16 %v968_v7, %v968_v7 }
 0x143   : > { %v1137_v14 = vsel %vm1135_vm4, %v4242_v12, 0 }
 0x144   : > { %3410 = vmatpush3.bf16.msra.mxu1 %v1137_v14 }
 0x145   : > { %3411 = vmatprep.subr.bf16.mxu1 %v3894_v33 }
 0x146   : > { %3398 = vmatmul.mubr.msk.bf16.vlgmr.msra.gmra.mxu0 %vm985_vm1, %v4125_v53 }
 0x147   : > { %3401 = vmatprep.mubr.msk.bf16.mxu0 %vm3895_vm0, %v3894_v33 }
 0x14e   : > { %3402 = vmatmul.mubr.msk.bf16.gmra.mxu0 %vm985_vm1, %v4144_v5 }
 0x14f   : > { %3405 = vmatprep.mubr.msk.bf16.mxu0 %vm3895_vm0, %v3894_v33 }
 0x156   : > { %3406 = vmatmul.mubr.msk.bf16.gmra.mxu0 %vm985_vm1, %v4129_v58 }
 0x157   : > { %3433 = vmatprep.mubr.msk.bf16.mxu0 %vm3895_vm0, %v3894_v33 }
 0x194   : > { %v1215_v21 = vpop.permute.xlu1 %1214 }
 0x195   : > { %v1230_v22 = vsel %vm985_vm1, %v1215_v21, 0 }
 0x198   : > { %v1206_v23 = vpop.permute.xlu1 %1205 }
 0x19e   : > { %v1210_v25 = vpop.permute.xlu1 %1209 }
 0x1a0   : > { %v1219_v17 = vpop.permute.xlu0 %1218 }
 0x1a1   : > { %v1236_v18 = vsel %vm985_vm1, %v1219_v17, 0  ;;  %v4246_v17 = vpack.c.bf16 %v963_v9, %v960_v8 }
 0x1a2   : > { %3428 = vmatpush3.bf16.xpose.msra.mxu0 %v1236_v18  ;;  %v3390_v18 = vpop.f32.mrf.mxu1 }
 0x1a3   : > { %3429 = vmatprep.subr.bf16.mxu0 %v3894_v33  ;;  %3412 = vmatpush3.bf16.msra.mxu1 %v4246_v17 }
 0x1a4   : > { %v1217_v19 = vpop.permute.xlu0 %1216  ;;  %3413 = vmatprep.subr.bf16.mxu1 %v3894_v33 }
 0x1a5   : > { %v1233_v20 = vsel %vm985_vm1, %v1217_v19, 0 }
 0x1a7   : > { %3414 = vmatpush3.bf16.msra.mxu1 %v4249_v38 }
 0x1a8   : > { %v1208_v24 = vpop.permute.xlu0 %1207  ;;  %3445 = vmatprep.subr.bf16.mxu1 %v3894_v33 }
 0x1aa   : > { %3430 = vmatpush3.bf16.xpose.msra.mxu0 %v1233_v20 }
 0x1ab   : > { %3431 = vmatprep.subr.bf16.mxu0 %v3894_v33 }
 0x1b2   : > { %3432 = vmatpush3.bf16.xpose.msra.mxu0 %v1230_v22 }
 0x1b3   : > { %3463 = vmatprep.subr.bf16.mxu0 %v3894_v33 }
 0x1b9   : > { %3434 = vmatmul.mubr.msk.bf16.vlgmr.msra.gmra.mxu0 %vm985_vm1, %v1206_v23 }
 0x1ba   : > { %3437 = vmatprep.mubr.msk.bf16.mxu0 %vm3895_vm0, %v3894_v33 }
 0x1c1   : > { %3438 = vmatmul.mubr.msk.bf16.gmra.mxu0 %vm985_vm1, %v1208_v24 }
 0x1c2   : > { %3441 = vmatprep.mubr.msk.bf16.mxu0 %vm3895_vm0, %v3894_v33 }
 0x1c9   : > { %3442 = vmatmul.mubr.msk.bf16.gmra.mxu0 %vm985_vm1, %v1210_v25 }
 0x1ca   : > { %3467 = vmatprep.mubr.msk.bf16.mxu0 %vm3895_vm0, %v3894_v33 }
 0x206   : > { %v1038_v27 = vpop.f32.mrf.mxu0 }
 0x207   : > { %v4212_v28 = vsel %vm984_vm2, %v1038_v27, -1e+30 }
 0x208   : > { %v3399_v29 = vpop.f32.mrf.mxu0  ;;  %v1068_v30 = vsel %vm1067_vm3, %v4212_v28, -inf }
 0x209   : > { %1069 = vmax.xlane.f32.xlu0 %v1068_v30 }
 0x20a   : > { %v1041_v31 = vpop.f32.mrf.mxu0 }
 0x20b   : > { %v4218_v32 = vsel %vm984_vm2, %v1041_v31, -1e+30 }
 0x20c   : > { %v3400_v34 = vpop.f32.mrf.mxu0  ;;  %v1071_v37 = vsel %vm1067_vm3, %v4218_v32, -inf }
 0x20d   : > { %1072 = vmax.xlane.f32.xlu1 %v1071_v37 }
 0x20e   : > { %v1046_v39 = vpop.f32.mrf.mxu0 }
 0x20f   : > { %v4224_v41 = vsel %vm984_vm2, %v1046_v39, -1e+30 }
 0x210   : > { %v3403_v42 = vpop.f32.mrf.mxu0  ;;  %v1074_v43 = vsel %vm1067_vm3, %v4224_v41, -inf }
 0x211   : > { %1075 = vmax.xlane.f32.xlu0 %v1074_v43 }
 0x212   : > { %v1049_v44 = vpop.f32.mrf.mxu0 }
 0x213   : > { %v4230_v45 = vsel %vm984_vm2, %v1049_v44, -1e+30 }
 0x214   : > { %v3404_v46 = vpop.f32.mrf.mxu0  ;;  %v1077_v47 = vsel %vm1067_vm3, %v4230_v45, -inf }
 0x215   : > { %1078 = vmax.xlane.f32.xlu0 %v1077_v47 }
 0x216   : > { %v1054_v48 = vpop.f32.mrf.mxu0 }
 0x217   : > { %v4236_v50 = vsel %vm984_vm2, %v1054_v48, -1e+30 }
 0x218   : > { %v3407_v51 = vpop.f32.mrf.mxu0  ;;  %v1080_v52 = vsel %vm1067_vm3, %v4236_v50, -inf }
 0x219   : > { %1081 = vmax.xlane.f32.xlu1 %v1080_v52 }
 0x21a   : > { %v1057_v54 = vpop.f32.mrf.mxu0 }
 0x21c   : > { %v3408_v55 = vpop.f32.mrf.mxu0 }
 0x279   : > { %v1272_v19 = vpop.f32.mrf.mxu0 }
 0x27a   : > { %v4257_v20 = vsel %vm984_vm2, %v1272_v19, -1e+30 }
 0x27b   : > { %v3435_v21 = vpop.f32.mrf.mxu0  ;;  %v1299_v22 = vsel %vm1067_vm3, %v4257_v20, -inf }
 0x27c   : > { %1300 = vmax.xlane.f32.xlu0 %v1299_v22 }
 0x27d   : > { %v1275_v23 = vpop.f32.mrf.mxu0 }
 0x27e   : > { %v4263_v24 = vsel %vm984_vm2, %v1275_v23, -1e+30 }
 0x27f   : > { %v3436_v25 = vpop.f32.mrf.mxu0  ;;  %v1302_v27 = vsel %vm1067_vm3, %v4263_v24, -inf }
 0x280   : > { %1303 = vmax.xlane.f32.xlu1 %v1302_v27 }
 0x281   : > { %v1280_v29 = vpop.f32.mrf.mxu0 }
 0x282   : > { %v1296_v30 = vsel %vm984_vm2, %v1280_v29, -1e+30 }
 0x283   : > { %v3439_v31 = vpop.f32.mrf.mxu0  ;;  %v1305_v34 = vsel %vm1067_vm3, %v1296_v30, -inf }
 0x284   : > { %1306 = vmax.xlane.f32.xlu0 %v1305_v34 }
 0x285   : > { %v1283_v37 = vpop.f32.mrf.mxu0 }
 0x286   : > { %v1297_v39 = vsel %vm984_vm2, %v1283_v37, -1e+30 }
 0x287   : > { %v3440_v42 = vpop.f32.mrf.mxu0  ;;  %v1308_v43 = vsel %vm1067_vm3, %v1297_v39, -inf }
 0x288   : > { %1309 = vmax.xlane.f32.xlu1 %v1308_v43 }
 0x289   : > { %v1288_v44 = vpop.f32.mrf.mxu0 }
 0x28a   : > { %v1298_v46 = vsel %vm984_vm2, %v1288_v44, -1e+30 }
 0x28b   : > { %v3443_v47 = vpop.f32.mrf.mxu0  ;;  %v1311_v48 = vsel %vm1067_vm3, %v1298_v46, -inf }
 0x28c   : > { %1312 = vmax.xlane.f32.xlu0 %v1311_v48 }
 0x28d   : > { %v1291_v51 = vpop.f32.mrf.mxu0 }
 0x28f   : > { %v3444_v52 = vpop.f32.mrf.mxu0 }
 0x292   : > { %v1070_v54 = vpop.xlane.xlu0 %1069 }
 0x293   : > { %v1083_v55 = vsub.f32 %v4212_v28, %v1070_v54 }
 0x295   : > { %v1088_v56 = vmul.f32 1.442695, %v1083_v55 }
 0x296   : > { %v1073_v57 = vpop.xlane.xlu1 %1072 }
 0x297   : > { %3728 = vpow2.f32 %v1088_v56  ;;  %v1084_v59 = vsub.f32 %v4218_v32, %v1073_v57 }
 0x299   : > { %v1090_v60 = vmul.f32 1.442695, %v1084_v59 }
 0x29a   : > { %v1076_v61 = vpop.xlane.xlu0 %1075 }
 0x29b   : > { %3730 = vpow2.f32 %v1090_v60  ;;  %v1085_v63 = vsub.f32 %v4224_v41, %v1076_v61 }
 0x29d   : > { %v1092_v0 = vmul.f32 1.442695, %v1085_v63 }
 0x29e   : > { %v1079_v1 = vpop.xlane.xlu0 %1078 }
 0x29f   : > { %3732 = vpow2.f32 %v1092_v0  ;;  %v1086_v2 = vsub.f32 %v4230_v45, %v1079_v1 }
 0x2a1   : > { %v1094_v4 = vmul.f32 1.442695, %v1086_v2 }
 0x2a2   : > { %v1082_v6 = vpop.xlane.xlu1 %1081 }
 0x2a3   : > { %3734 = vpow2.f32 %v1094_v4  ;;  %v1087_v28 = vsub.f32 %v4236_v50, %v1082_v6 }
 0x2a4   : > { %v4281_v7 = vpop.eup %3728 }
 0x2a5   : > { %v1096_v8 = vmul.f32 1.442695, %v1087_v28  ;;  %v1098_v32 = vsel %vm1067_vm3, %v4281_v7, 0.0 }
 0x2a6   : > { %1099 = vadd.xlane.f32.xlu1 %v1098_v32 }
 0x2a7   : > { %3736 = vpow2.f32 %v1096_v8 }
 0x2a8   : > { %v4285_v9 = vpop.eup %3730 }
 0x2a9   : > { %v1101_v41 = vsel %vm1067_vm3, %v4285_v9, 0.0 }
 0x2aa   : > { %1102 = vadd.xlane.f32.xlu0 %v1101_v41 }
 0x2ac   : > { %v4289_v45 = vpop.eup %3732 }
 0x2ad   : > { %v1104_v11 = vsel %vm1067_vm3, %v4289_v45, 0.0 }
 0x2ae   : > { %1105 = vadd.xlane.f32.xlu1 %v1104_v11 }
 0x2b0   : > { %v4293_v50 = vpop.eup %3734 }
 0x2b1   : > { %v1107_v13 = vsel %vm1067_vm3, %v4293_v50, 0.0 }
 0x2b2   : > { %1108 = vadd.xlane.f32.xlu0 %v1107_v13 }
 0x2b4   : > { %v4297_v14 = vpop.eup %3736 }
 0x2b5   : > { %v1110_v15 = vsel %vm1067_vm3, %v4297_v14, 0.0 }
 0x2b6   : > { %1111 = vadd.xlane.f32.xlu1 %v1110_v15  ;;  %v3682_v15 = vld [vmem:[%s4019_s27 + $0x18] sm:$0xff]  }
 0x2b7   : > { %3464 = vmatpush3.bf16.msra.mxu0 %v3682_v15 }
 0x2b8   : > { %3465 = vmatprep.subr.bf16.mxu0 %v3894_v33 }
 0x2c8   : > { %1364 = vrot.lane.b32.xlu0 %v4242_v12, %s3896_s1 }
 0x305   : > { %v1301_v16 = vpop.xlane.xlu0 %1300 }
 0x306   : > { %v1314_v18 = vsub.f32 %v4257_v20, %v1301_v16 }
 0x308   : > { %v1319_v19 = vmul.f32 1.442695, %v1314_v18 }
 0x309   : > { %v1304_v21 = vpop.xlane.xlu1 %1303 }
 0x30a   : > { %3738 = vpow2.f32 %v1319_v19  ;;  %v1315_v22 = vsub.f32 %v4263_v24, %v1304_v21 }
 0x30c   : > { %v1321_v23 = vmul.f32 1.442695, %v1315_v22 }
 0x30d   : > { %v1307_v25 = vpop.xlane.xlu0 %1306 }
 0x30e   : > { %3740 = vpow2.f32 %v1321_v23  ;;  %v1316_v27 = vsub.f32 %v1296_v30, %v1307_v25 }
 0x310   : > { %v1323_v29 = vmul.f32 1.442695, %v1316_v27 }
 0x311   : > { %v1310_v31 = vpop.xlane.xlu1 %1309 }
 0x312   : > { %3742 = vpow2.f32 %v1323_v29  ;;  %v1317_v34 = vsub.f32 %v1297_v39, %v1310_v31  ;;  %v3680_v29 = vld [vmem:[%s4019_s27 + $0x8] sm:$0xff]  }
 0x314   : > { %v1325_v37 = vmul.f32 1.442695, %v1317_v34 }
 0x315   : > { %v1313_v42 = vpop.xlane.xlu0 %1312 }
 0x316   : > { %3744 = vpow2.f32 %v1325_v37  ;;  %v1318_v43 = vsub.f32 %v1298_v46, %v1313_v42  ;;  %v3681_v42 = vld [vmem:[%s4019_s27] sm:$0xff]  }
 0x317   : > { %v4305_v44 = vpop.eup %3738 }
 0x318   : > { %v1327_v20 = vmul.f32 1.442695, %v1318_v43  ;;  %v1329_v47 = vsel %vm1067_vm3, %v4305_v44, 0.0 }
 0x319   : > { %1330 = vadd.xlane.f32.xlu0 %v1329_v47 }
 0x31a   : > { %3746 = vpow2.f32 %v1327_v20 }
 0x31b   : > { %v4309_v24 = vpop.eup %3740 }
 0x31c   : > { %v1332_v30 = vsel %vm1067_vm3, %v4309_v24, 0.0 }
 0x31d   : > { %1333 = vadd.xlane.f32.xlu1 %v1332_v30 }
 0x31f   : > { %v4313_v48 = vpop.eup %3742 }
 0x320   : > { %v1335_v39 = vsel %vm1067_vm3, %v4313_v48, 0.0 }
 0x321   : > { %1336 = vadd.xlane.f32.xlu0 %v1335_v39  ;;  %v3683_v39 = vld [vmem:[%s4019_s27 + $0x10] sm:$0xff]  }
 0x322   : > { %3466 = vmatpush3.bf16.msra.mxu0 %v3683_v39 }
 0x323   : > { %v4317_v46 = vpop.eup %3744  ;;  %3495 = vmatprep.subr.bf16.mxu0 %v3894_v33 }
 0x324   : > { %v1338_v51 = vsel %vm1067_vm3, %v4317_v46, 0.0 }
 0x325   : > { %1339 = vadd.xlane.f32.xlu1 %v1338_v51 }
 0x327   : > { %v4321_v52 = vpop.eup %3746 }
 0x328   : > { %v1341_v54 = vsel %vm1067_vm3, %v4321_v52, 0.0 }
 0x329   : > { %1342 = vadd.xlane.f32.xlu1 %v1341_v54 }
 0x32f   : > { %v1100_v55 = vpop.xlane.xlu1 %1099 }
 0x330   : > { %3748 = vrcp.f32 %v1100_v55 }
 0x333   : > { %v1103_v56 = vpop.xlane.xlu0 %1102 }
 0x334   : > { %3750 = vrcp.f32 %v1103_v56 }
 0x337   : > { %v1106_v57 = vpop.xlane.xlu1 %1105  ;;  %1360 = vrot.lane.b32.xlu0 %v4249_v38, %s3896_s1 }
 0x338   : > { %3752 = vrcp.f32 %v1106_v57 }
 0x33a   : > { %1362 = vrot.lane.b32.xlu1 %v4246_v17, %s3896_s1 }
 0x33b   : > { %1605 = vrot.lane.b32.xlu0 %v4139_v3, %s3897_s2  ;;  %v1109_v59 = vpop.xlane.xlu0 %1108 }
 0x33c   : > { %3754 = vrcp.f32 %v1109_v59 }
 0x33d   : > { %v3749_v60 = vpop.eup %3748 }
 0x33e   : > { %1607 = vrot.lane.b32.xlu1 %v4131_v62, %s3897_s2  ;;  %v1118_v1 = vmul.f32 %v3749_v60, %v4281_v7 }
 0x33f   : > { %v1112_v61 = vpop.xlane.xlu1 %1111  ;;  %1597 = vrot.lane.b32.xlu0 %v4125_v53, %s3897_s2  ;;  %v1365_v0 = vpop.permute.xlu0 %1364 }
 0x340   : > { %3756 = vrcp.f32 %v1112_v61  ;;  %v1378_v6 = vsel %vm1135_vm4, %v1365_v0, 0 }
 0x341   : > { %v3751_v63 = vpop.eup %3750 }
 0x342   : > { %v1119_v2 = vmul.f32 %v3751_v63, %v4285_v9  ;;  %1603 = vrot.lane.b32.xlu1 %v4121_v49, %s3897_s2 }
 0x343   : > { %1601 = vrot.lane.b32.xlu0 %v4129_v58, %s3897_s2 }
 0x344   : > { %v1123_v4 = vpack.c.bf16 %v1119_v2, %v1118_v1 }
 0x345   : > { %v3753_v28 = vpop.eup %3752 }
 0x346   : > { %1599 = vrot.lane.b32.xlu1 %v4144_v5, %s3897_s2  ;;  %3416 = vmatmul.mubr.msk.bf16.vlgmr.msra.gmra.mxu1 %vm1067_vm3, %v1123_v4  ;;  %v1120_v8 = vmul.f32 %v3753_v28, %v4289_v45 }
 0x347   : > { %3419 = vmatprep.mubr.msk.bf16.mxu1 %vm3895_vm0, %v3894_v33  ;;  %3446 = vmatpush3.bf16.msra.mxu1 %v1378_v6 }
 0x348   : > { %3447 = vmatprep.subr.bf16.mxu1 %v3894_v33 }
 0x349   : > { %v3755_v7 = vpop.eup %3754 }
 0x34a   : > { %v1121_v32 = vmul.f32 %v3755_v7, %v4293_v50 }
 0x34c   : > { %v1124_v9 = vpack.c.bf16 %v1121_v32, %v1120_v8 }
 0x34d   : > { %v3757_v41 = vpop.eup %3756 }
 0x34e   : > { %3420 = vmatmul.mubr.msk.bf16.gmra.mxu1 %vm1067_vm3, %v1124_v9  ;;  %v1122_v11 = vmul.f32 %v3757_v41, %v4297_v14 }
 0x34f   : > { %3423 = vmatprep.mubr.msk.bf16.mxu1 %vm3895_vm0, %v3894_v33 }
 0x350   : > { %v1125_v13 = vpack.c.bf16 %v1122_v11, %v1122_v11 }
 0x356   : > { %3424 = vmatmul.mubr.msk.bf16.gmra.mxu1 %vm1067_vm3, %v1125_v13 }
 0x357   : > { %3451 = vmatprep.mubr.msk.bf16.mxu1 %vm3895_vm0, %v3894_v33 }
 0x3a2   : > { %v1331_v50 = vpop.xlane.xlu0 %1330 }
 0x3a6   : > { %v1334_v45 = vpop.xlane.xlu1 %1333 }
 0x3a7   : > { %3758 = vrcp.f32 %v1334_v45 }
 0x3a8   : > { %3760 = vrcp.f32 %v1331_v50 }
 0x3aa   : > { %v1337_v18 = vpop.xlane.xlu0 %1336 }
 0x3ae   : > { %v1340_v16 = vpop.xlane.xlu1 %1339  ;;  %v1361_v27 = vpop.permute.xlu0 %1360 }
 0x3af   : > { %3762 = vrcp.f32 %v1340_v16 }
 0x3b0   : > { %3764 = vrcp.f32 %v1337_v18 }
 0x3b2   : > { %v1343_v14 = vpop.xlane.xlu1 %1342  ;;  %v1606_v13 = vpop.permute.xlu0 %1605 }
 0x3b3   : > { %3766 = vrcp.f32 %v1343_v14  ;;  %v1622_v16 = vsel %vm985_vm1, %v1606_v13, 0 }
 0x3b4   : > { %v3759_v19 = vpop.eup %3758 }
 0x3b5   : > { %v3761_v22 = vpop.eup %3760  ;;  %v1350_v23 = vmul.f32 %v3759_v19, %v4309_v24 }
 0x3b6   : > { %v1363_v21 = vpop.permute.xlu1 %1362  ;;  %v1349_v25 = vmul.f32 %v3761_v22, %v4305_v44 }
 0x3b7   : > { %3448 = vmatpush3.bf16.msra.mxu1 %v1363_v21 }
 0x3b8   : > { %3449 = vmatprep.subr.bf16.mxu1 %v3894_v33  ;;  %v1354_v31 = vpack.c.bf16 %v1350_v23, %v1349_v25 }
 0x3ba   : > { %v1608_v28 = vpop.permute.xlu1 %1607 }
 0x3bb   : > { %3450 = vmatpush3.bf16.msra.mxu1 %v1361_v27  ;;  %v1625_v9 = vsel %vm985_vm1, %v1608_v28, 0  ;;  %v1598_v27 = vpop.permute.xlu0 %1597 }
 0x3bc   : > { %3479 = vmatprep.subr.bf16.mxu1 %v3894_v33  ;;  %v3763_v34 = vpop.eup %3762 }
 0x3bd   : > { %v3765_v37 = vpop.eup %3764  ;;  %v1352_v43 = vmul.f32 %v3763_v34, %v4317_v46 }
 0x3be   : > { %3452 = vmatmul.mubr.msk.bf16.vlgmr.msra.gmra.mxu1 %vm1067_vm3, %v1354_v31  ;;  %v1351_v44 = vmul.f32 %v3765_v37, %v4313_v48  ;;  %v1604_v19 = vpop.permute.xlu1 %1603 }
 0x3bf   : > { %3455 = vmatprep.mubr.msk.bf16.mxu1 %vm3895_vm0, %v3894_v33  ;;  %3480 = vmatpush3.bf16.msra.mxu1 %v3680_v29  ;;  %v1619_v25 = vsel %vm985_vm1, %v1604_v19, 0  ;;  %v1602_v31 = vpop.permute.xlu0 %1601 }
 0x3c0   : > { %3481 = vmatprep.subr.bf16.mxu1 %v3894_v33  ;;  %v1355_v20 = vpack.c.bf16 %v1352_v43, %v1351_v44  ;;  %v3767_v47 = vpop.eup %3766 }
 0x3c1   : > { %v1353_v24 = vmul.f32 %v3767_v47, %v4321_v52 }
 0x3c2   : > { %v1600_v29 = vpop.permute.xlu1 %1599 }
 0x3c3   : > { %3482 = vmatpush3.bf16.msra.mxu1 %v3681_v42  ;;  %v1356_v30 = vpack.c.bf16 %v1353_v24, %v1353_v24 }
 0x3c4   : > { %3513 = vmatprep.subr.bf16.mxu1 %v3894_v33 }
 0x3c6   : > { %3456 = vmatmul.mubr.msk.bf16.gmra.mxu1 %vm1067_vm3, %v1355_v20 }
 0x3c7   : > { %3459 = vmatprep.mubr.msk.bf16.mxu1 %vm3895_vm0, %v3894_v33 }
 0x3ce   : > { %3460 = vmatmul.mubr.msk.bf16.gmra.mxu1 %vm1067_vm3, %v1356_v30 }
 0x3cf   : > { %3483 = vmatprep.mubr.msk.bf16.mxu1 %vm3895_vm0, %v3894_v33 }
 0x406   : > { %v1173_v48 = vpop.f32.mrf.mxu1 }
 0x408   : > { %v3417_v46 = vpop.f32.mrf.mxu1 }
 0x40a   : > { %v1176_v51 = vpop.f32.mrf.mxu1 }
 0x40b   : > { %v1195_v54 = vpack.c.bf16 %v1176_v51, %v1173_v48 }
 0x40c   : > { %v3418_v55 = vpop.f32.mrf.mxu1 }
 0x40d   : > { %3484 = vmatmul.mubr.msk.bf16.vlgmr.msra.gmra.mxu1 %vm985_vm1, %v1195_v54 }
 0x40e   : > { %v1181_v56 = vpop.f32.mrf.mxu1  ;;  %3487 = vmatprep.mubr.msk.bf16.mxu1 %vm3895_vm0, %v3894_v33 }
 0x410   : > { %v3421_v52 = vpop.f32.mrf.mxu1 }
 0x412   : > { %v1184_v57 = vpop.f32.mrf.mxu1 }
 0x413   : > { %v1196_v59 = vpack.c.bf16 %v1184_v57, %v1181_v56 }
 0x414   : > { %v3422_v60 = vpop.f32.mrf.mxu1 }
 0x415   : > { %3488 = vmatmul.mubr.msk.bf16.gmra.mxu1 %vm985_vm1, %v1196_v59 }
 0x416   : > { %v1189_v61 = vpop.f32.mrf.mxu1  ;;  %3491 = vmatprep.mubr.msk.bf16.mxu1 %vm3895_vm0, %v3894_v33 }
 0x417   : > { %v1197_v1 = vpack.c.bf16 %v1189_v61, %v1189_v61 }
 0x418   : > { %v3425_v63 = vpop.f32.mrf.mxu1 }
 0x41a   : > { %v1192_v0 = vpop.f32.mrf.mxu1 }
 0x41c   : > { %v3426_v2 = vpop.f32.mrf.mxu1 }
 0x41d   : > { %3492 = vmatmul.mubr.msk.bf16.gmra.mxu1 %vm985_vm1, %v1197_v1 }
 0x41e   : > { %3519 = vmatprep.mubr.msk.bf16.mxu1 %vm3895_vm0, %v3894_v33 }
 0x47e   : > { %v1414_v4 = vpop.f32.mrf.mxu1 }
 0x480   : > { %v3453_v6 = vpop.f32.mrf.mxu1 }
 0x482   : > { %v1417_v7 = vpop.f32.mrf.mxu1 }
 0x483   : > { %v1436_v8 = vpack.c.bf16 %v1417_v7, %v1414_v4 }
 0x484   : > { %v3454_v32 = vpop.f32.mrf.mxu1 }
 0x485   : > { %3468 = vmatmul.mubr.msk.bf16.vlgmr.msra.gmra.mxu0 %vm985_vm1, %v1436_v8 }
 0x486   : > { %3496 = vmatpush3.bf16.xpose.msra.mxu0 %v1625_v9  ;;  %v1422_v41 = vpop.f32.mrf.mxu1  ;;  %3471 = vmatprep.mubr.msk.bf16.mxu0 %vm3895_vm0, %v3894_v33 }
 0x487   : > { %3497 = vmatprep.subr.bf16.mxu0 %v3894_v33 }
 0x488   : > { %v3457_v11 = vpop.f32.mrf.mxu1 }
 0x48a   : > { %v1425_v15 = vpop.f32.mrf.mxu1 }
 0x48b   : > { %v1437_v45 = vpack.c.bf16 %v1425_v15, %v1422_v41 }
 0x48c   : > { %v3458_v50 = vpop.f32.mrf.mxu1 }
 0x48d   : > { %3472 = vmatmul.mubr.msk.bf16.gmra.mxu0 %vm985_vm1, %v1437_v45 }
 0x48e   : > { %3498 = vmatpush3.bf16.xpose.msra.mxu0 %v1622_v16  ;;  %v1430_v18 = vpop.f32.mrf.mxu1  ;;  %3475 = vmatprep.mubr.msk.bf16.mxu0 %vm3895_vm0, %v3894_v33 }
 0x48f   : > { %3499 = vmatprep.subr.bf16.mxu0 %v3894_v33  ;;  %v1438_v22 = vpack.c.bf16 %v1430_v18, %v1430_v18 }
 0x490   : > { %v3461_v14 = vpop.f32.mrf.mxu1 }
 0x492   : > { %v1433_v21 = vpop.f32.mrf.mxu1 }
 0x494   : > { %v3462_v23 = vpop.f32.mrf.mxu1 }
 0x495   : > { %3476 = vmatmul.mubr.msk.bf16.gmra.mxu0 %vm985_vm1, %v1438_v22 }
 0x496   : > { %3500 = vmatpush3.bf16.xpose.msra.mxu0 %v1619_v25  ;;  %3501 = vmatprep.mubr.msk.bf16.mxu0 %vm3895_vm0, %v3894_v33 }
 0x497   : > { %3531 = vmatprep.subr.bf16.mxu0 %v3894_v33 }
 0x49d   : > { %3502 = vmatmul.mubr.msk.bf16.vlgmr.msra.gmra.mxu0 %vm985_vm1, %v1598_v27 }
 0x49e   : > { %3505 = vmatprep.mubr.msk.bf16.mxu0 %vm3895_vm0, %v3894_v33 }
 0x4a5   : > { %3506 = vmatmul.mubr.msk.bf16.gmra.mxu0 %vm985_vm1, %v1600_v29 }
 0x4a6   : > { %3509 = vmatprep.mubr.msk.bf16.mxu0 %vm3895_vm0, %v3894_v33 }
 0x4ad   : > { %3510 = vmatmul.mubr.msk.bf16.gmra.mxu0 %vm985_vm1, %v1602_v31 }
 0x4ae   : > { %3535 = vmatprep.mubr.msk.bf16.mxu0 %vm3895_vm0, %v3894_v33 }
 0x4cd   : > { %v4414_v34 = vpop.f32.mrf.mxu1 }
 0x4cf   : > { %v3485_v37 = vpop.f32.mrf.mxu1 }
 0x4d1   : > { %v4416_v42 = vpop.f32.mrf.mxu1 }
 0x4d3   : > { %v3486_v43 = vpop.f32.mrf.mxu1 }
 0x4d5   : > { %v4418_v44 = vpop.f32.mrf.mxu1 }
 0x4d7   : > { %v3489_v20 = vpop.f32.mrf.mxu1 }
 0x4d9   : > { %v4420_v47 = vpop.f32.mrf.mxu1 }
 0x4db   : > { %v3490_v24 = vpop.f32.mrf.mxu1 }
 0x4dd   : > { %v4422_v30 = vpop.f32.mrf.mxu1 }
 0x4df   : > { %v3493_v39 = vpop.f32.mrf.mxu1 }
 0x4e1   : > { %v1594_v48 = vpop.f32.mrf.mxu1 }
 0x4e3   : > { %v3494_v46 = vpop.f32.mrf.mxu1 }
 0x545   : > { %v4424_v51 = vpop.f32.mrf.mxu0 }
 0x547   : > { %v3469_v54 = vpop.f32.mrf.mxu0 }
 0x549   : > { %v4426_v55 = vpop.f32.mrf.mxu0 }
 0x54b   : > { %v3470_v56 = vpop.f32.mrf.mxu0 }
 0x54d   : > { %v4428_v52 = vpop.f32.mrf.mxu0 }
 0x54f   : > { %v3473_v57 = vpop.f32.mrf.mxu0 }
 0x551   : > { %v4430_v59 = vpop.f32.mrf.mxu0 }
 0x553   : > { %v3474_v60 = vpop.f32.mrf.mxu0 }
 0x555   : > { %v4432_v61 = vpop.f32.mrf.mxu0 }
 0x557   : > { %v3477_v63 = vpop.f32.mrf.mxu0 }
 0x559   : > { %v1517_v0 = vpop.f32.mrf.mxu0 }
 0x55b   : > { %v3478_v1 = vpop.f32.mrf.mxu0 }
 0x55d   : > { %v1661_v2 = vpop.f32.mrf.mxu0 }
 0x55e   : > { %v1683_v4 = vsel %vm984_vm2, %v1661_v2, -1e+30 }
 0x55f   : > { %v3503_v6 = vpop.f32.mrf.mxu0  ;;  %v1688_v28 = vsel %vm1067_vm3, %v1683_v4, -inf }
 0x560   : > { %1689 = vmax.xlane.f32.xlu1 %v1688_v28 }
 0x561   : > { %v1664_v7 = vpop.f32.mrf.mxu0 }
 0x562   : > { %v1684_v8 = vsel %vm984_vm2, %v1664_v7, -1e+30 }
 0x563   : > { %v3504_v32 = vpop.f32.mrf.mxu0  ;;  %v1691_v9 = vsel %vm1067_vm3, %v1684_v8, -inf }
 0x564   : > { %1692 = vmax.xlane.f32.xlu0 %v1691_v9 }
 0x565   : > { %v1669_v41 = vpop.f32.mrf.mxu0 }
 0x566   : > { %v1685_v11 = vsel %vm984_vm2, %v1669_v41, -1e+30 }
 0x567   : > { %v3507_v13 = vpop.f32.mrf.mxu0  ;;  %v1694_v15 = vsel %vm1067_vm3, %v1685_v11, -inf }
 0x568   : > { %1695 = vmax.xlane.f32.xlu0 %v1694_v15 }
 0x569   : > { %v1672_v45 = vpop.f32.mrf.mxu0 }
 0x56a   : > { %v1686_v50 = vsel %vm984_vm2, %v1672_v45, -1e+30 }
 0x56b   : > { %v3508_v16 = vpop.f32.mrf.mxu0  ;;  %v1697_v18 = vsel %vm1067_vm3, %v1686_v50, -inf }
 0x56c   : > { %1698 = vmax.xlane.f32.xlu1 %v1697_v18 }
 0x56d   : > { %v1677_v14 = vpop.f32.mrf.mxu0 }
 0x56e   : > { %v1687_v19 = vsel %vm984_vm2, %v1677_v14, -1e+30 }
 0x56f   : > { %v3511_v21 = vpop.f32.mrf.mxu0  ;;  %v1700_v22 = vsel %vm1067_vm3, %v1687_v19, -inf }
 0x570   : > { %1701 = vmax.xlane.f32.xlu0 %v1700_v22 }
 0x571   : > { %v1680_v23 = vpop.f32.mrf.mxu0 }
 0x573   : > { %v3512_v25 = vpop.f32.mrf.mxu0 }
 0x57d   : > { %1748 = vrot.lane.b32.xlu1 %v4246_v17, %s3897_s2 }
 0x581   : > { %1746 = vrot.lane.b32.xlu1 %v4249_v38, %s3897_s2 }
 0x586   : > { %1750 = vrot.lane.b32.xlu0 %v4242_v12, %s3897_s2 }
 0x5e9   : > { %v1690_v27 = vpop.xlane.xlu1 %1689 }
 0x5ea   : > { %v1703_v29 = vsub.f32 %v1683_v4, %v1690_v27 }
 0x5ec   : > { %v1708_v31 = vmul.f32 1.442695, %v1703_v29 }
 0x5ed   : > { %v1693_v37 = vpop.xlane.xlu0 %1692 }
 0x5ee   : > { %3768 = vpow2.f32 %v1708_v31  ;;  %v1704_v43 = vsub.f32 %v1684_v8, %v1693_v37 }
 0x5f0   : > { %v1710_v20 = vmul.f32 1.442695, %v1704_v43 }
 0x5f1   : > { %v1696_v24 = vpop.xlane.xlu0 %1695 }
 0x5f2   : > { %3770 = vpow2.f32 %v1710_v20  ;;  %v1705_v39 = vsub.f32 %v1685_v11, %v1696_v24 }
 0x5f4   : > { %v1712_v48 = vmul.f32 1.442695, %v1705_v39 }
 0x5f5   : > { %v1699_v46 = vpop.xlane.xlu1 %1698 }
 0x5f6   : > { %3772 = vpow2.f32 %v1712_v48  ;;  %v1706_v54 = vsub.f32 %v1686_v50, %v1699_v46 }
 0x5f8   : > { %v1714_v56 = vmul.f32 1.442695, %v1706_v54 }
 0x5f9   : > { %v1702_v57 = vpop.xlane.xlu0 %1701  ;;  %v1749_v28 = vpop.permute.xlu1 %1748 }
 0x5fa   : > { %3774 = vpow2.f32 %v1714_v56  ;;  %v1707_v60 = vsub.f32 %v1687_v19, %v1702_v57  ;;  %v3684_v56 = vld [vmem:[%s4019_s27 + $0x28] sm:$0xff]   ;;  %v3685_v57 = vld [vmem:[%s4019_s27 + $0x20] sm:$0xff]  }
 0x5fb   : > { %v3769_v63 = vpop.eup %3768  ;;  %3532 = vmatpush3.bf16.msra.mxu0 %v3684_v56 }
 0x5fc   : > { %v1716_v0 = vmul.f32 1.442695, %v1707_v60  ;;  %v1718_v1 = vsel %vm1067_vm3, %v3769_v63, 0.0  ;;  %3533 = vmatprep.subr.bf16.mxu0 %v3894_v33 }
 0x5fd   : > { %1719 = vadd.xlane.f32.xlu1 %v1718_v1  ;;  %v1751_v2 = vpop.permute.xlu0 %1750  ;;  %v1747_v9 = vpop.permute.xlu1 %1746 }
 0x5fe   : > { %3776 = vpow2.f32 %v1716_v0  ;;  %v1764_v4 = vsel %vm1135_vm4, %v1751_v2, 0 }
 0x5ff   : > { %v3771_v6 = vpop.eup %3770  ;;  %3514 = vmatpush3.bf16.msra.mxu1 %v1764_v4  ;;  %3534 = vmatpush3.bf16.msra.mxu0 %v3685_v57 }
 0x600   : > { %v1721_v7 = vsel %vm1067_vm3, %v3771_v6, 0.0  ;;  %3515 = vmatprep.subr.bf16.mxu1 %v3894_v33  ;;  %3565 = vmatprep.subr.bf16.mxu0 %v3894_v33 }
 0x601   : > { %1722 = vadd.xlane.f32.xlu0 %v1721_v7 }
 0x603   : > { %v3773_v8 = vpop.eup %3772  ;;  %3516 = vmatpush3.bf16.msra.mxu1 %v1749_v28 }
 0x604   : > { %v1724_v32 = vsel %vm1067_vm3, %v3773_v8, 0.0  ;;  %3517 = vmatprep.subr.bf16.mxu1 %v3894_v33 }
 0x605   : > { %1725 = vadd.xlane.f32.xlu1 %v1724_v32 }
 0x607   : > { %v3775_v41 = vpop.eup %3774  ;;  %3518 = vmatpush3.bf16.msra.mxu1 %v1747_v9 }
 0x608   : > { %v1727_v11 = vsel %vm1067_vm3, %v3775_v41, 0.0  ;;  %3547 = vmatprep.subr.bf16.mxu1 %v3894_v33 }
 0x609   : > { %1728 = vadd.xlane.f32.xlu0 %v1727_v11 }
 0x60b   : > { %v3777_v13 = vpop.eup %3776 }
 0x60c   : > { %v1730_v15 = vsel %vm1067_vm3, %v3777_v13, 0.0 }
 0x60d   : > { %1731 = vadd.xlane.f32.xlu1 %v1730_v15 }
 0x61e   : > { %1919 = vrot.lane.b32.xlu1 %v4139_v3, %s3898_s7 }
 0x61f   : > { %1921 = vrot.lane.b32.xlu0 %v4131_v62, %s3898_s7 }
 0x622   : > { %1911 = vrot.lane.b32.xlu1 %v4125_v53, %s3898_s7 }
 0x623   : > { %1917 = vrot.lane.b32.xlu0 %v4121_v49, %s3898_s7 }
 0x626   : > { %1915 = vrot.lane.b32.xlu1 %v4129_v58, %s3898_s7 }
 0x627   : > { %1913 = vrot.lane.b32.xlu0 %v4144_v5, %s3898_s7 }
 0x686   : > { %v1720_v45 = vpop.xlane.xlu1 %1719 }
 0x687   : > { %3778 = vrcp.f32 %v1720_v45 }
 0x68a   : > { %v1723_v50 = vpop.xlane.xlu0 %1722 }
 0x68b   : > { %3780 = vrcp.f32 %v1723_v50 }
 0x68e   : > { %v1726_v3 = vpop.xlane.xlu1 %1725 }
 0x68f   : > { %3782 = vrcp.f32 %v1726_v3 }
 0x692   : > { %v1729_v16 = vpop.xlane.xlu0 %1728 }
 0x693   : > { %3784 = vrcp.f32 %v1729_v16 }
 0x694   : > { %v3779_v62 = vpop.eup %3778 }
 0x695   : > { %v1738_v14 = vmul.f32 %v3779_v62, %v3769_v63 }
 0x696   : > { %v1732_v18 = vpop.xlane.xlu1 %1731  ;;  %v1922_v19 = vpop.permute.xlu0 %1921 }
 0x697   : > { %3786 = vrcp.f32 %v1732_v18  ;;  %v1939_v58 = vsel %vm985_vm1, %v1922_v19, 0 }
 0x698   : > { %v3781_v53 = vpop.eup %3780 }
 0x699   : > { %v1739_v49 = vmul.f32 %v3781_v53, %v3771_v6 }
 0x69a   : > { %v1920_v27 = vpop.permute.xlu1 %1919  ;;  %v1918_v20 = vpop.permute.xlu0 %1917 }
 0x69b   : > { %v1743_v21 = vpack.c.bf16 %v1739_v49, %v1738_v14  ;;  %v1936_v37 = vsel %vm985_vm1, %v1920_v27, 0  ;;  %v1933_v39 = vsel %vm985_vm1, %v1918_v20, 0 }
 0x69c   : > { %v3783_v5 = vpop.eup %3782 }
 0x69d   : > { %3520 = vmatmul.mubr.msk.bf16.vlgmr.msra.gmra.mxu1 %vm1067_vm3, %v1743_v21  ;;  %v1740_v23 = vmul.f32 %v3783_v5, %v3773_v8 }
 0x69e   : > { %3548 = vmatpush3.bf16.xpose.msra.mxu1 %v1939_v58  ;;  %3523 = vmatprep.mubr.msk.bf16.mxu1 %vm3895_vm0, %v3894_v33  ;;  %v1912_v48 = vpop.permute.xlu1 %1911  ;;  %v1914_v46 = vpop.permute.xlu0 %1913 }
 0x69f   : > { %3549 = vmatprep.subr.bf16.mxu1 %v3894_v33 }
 0x6a0   : > { %v3785_v22 = vpop.eup %3784 }
 0x6a1   : > { %v1741_v25 = vmul.f32 %v3785_v22, %v3775_v41 }
 0x6a2   : > { %v1916_v54 = vpop.permute.xlu1 %1915 }
 0x6a3   : > { %v1744_v29 = vpack.c.bf16 %v1741_v25, %v1740_v23 }
 0x6a4   : > { %v3787_v31 = vpop.eup %3786 }
 0x6a5   : > { %3524 = vmatmul.mubr.msk.bf16.gmra.mxu1 %vm1067_vm3, %v1744_v29  ;;  %v1742_v43 = vmul.f32 %v3787_v31, %v3777_v13 }
 0x6a6   : > { %3550 = vmatpush3.bf16.xpose.msra.mxu1 %v1936_v37  ;;  %3527 = vmatprep.mubr.msk.bf16.mxu1 %vm3895_vm0, %v3894_v33 }
 0x6a7   : > { %3551 = vmatprep.subr.bf16.mxu1 %v3894_v33  ;;  %v1745_v24 = vpack.c.bf16 %v1742_v43, %v1742_v43 }
 0x6ad   : > { %3528 = vmatmul.mubr.msk.bf16.gmra.mxu1 %vm1067_vm3, %v1745_v24 }
 0x6ae   : > { %3552 = vmatpush3.bf16.xpose.msra.mxu1 %v1933_v39  ;;  %3553 = vmatprep.mubr.msk.bf16.mxu1 %vm3895_vm0, %v3894_v33 }
 0x6af   : > { %3583 = vmatprep.subr.bf16.mxu1 %v3894_v33 }
 0x6b5   : > { %3554 = vmatmul.mubr.msk.bf16.vlgmr.msra.gmra.mxu1 %vm985_vm1, %v1912_v48 }
 0x6b6   : > { %3557 = vmatprep.mubr.msk.bf16.mxu1 %vm3895_vm0, %v3894_v33 }
 0x6bd   : > { %3558 = vmatmul.mubr.msk.bf16.gmra.mxu1 %vm985_vm1, %v1914_v46 }
 0x6be   : > { %3561 = vmatprep.mubr.msk.bf16.mxu1 %vm3895_vm0, %v3894_v33 }
 0x6c5   : > { %3562 = vmatmul.mubr.msk.bf16.gmra.mxu1 %vm985_vm1, %v1916_v54 }
 0x6c6   : > { %3587 = vmatprep.mubr.msk.bf16.mxu1 %vm3895_vm0, %v3894_v33 }
 0x75d   : > { %v1800_v60 = vpop.f32.mrf.mxu1 }
 0x75f   : > { %v3521_v63 = vpop.f32.mrf.mxu1 }
 0x761   : > { %v1803_v0 = vpop.f32.mrf.mxu1 }
 0x762   : > { %v1822_v1 = vpack.c.bf16 %v1803_v0, %v1800_v60 }
 0x763   : > { %v3522_v2 = vpop.f32.mrf.mxu1 }
 0x764   : > { %3536 = vmatmul.mubr.msk.bf16.vlgmr.msra.gmra.mxu0 %vm985_vm1, %v1822_v1 }
 0x765   : > { %v1808_v4 = vpop.f32.mrf.mxu1  ;;  %3539 = vmatprep.mubr.msk.bf16.mxu0 %vm3895_vm0, %v3894_v33 }
 0x767   : > { %v3525_v6 = vpop.f32.mrf.mxu1 }
 0x768   : > { %v1576_v6 = vadd.f32 %v4414_v34, %v4424_v51  ;;  %v1587_v51 = vadd.f32 %v4420_v47, %v4430_v59 }
 0x769   : > { %v1811_v28 = vpop.f32.mrf.mxu1 }
 0x76a   : > { %v1823_v7 = vpack.c.bf16 %v1811_v28, %v1808_v4 }
 0x76b   : > { %v3526_v8 = vpop.f32.mrf.mxu1 }
 0x76c   : > { %3540 = vmatmul.mubr.msk.bf16.gmra.mxu0 %vm985_vm1, %v1823_v7 }
 0x76d   : > { %v1816_v32 = vpop.f32.mrf.mxu1  ;;  %3543 = vmatprep.mubr.msk.bf16.mxu0 %vm3895_vm0, %v3894_v33 }
 0x76e   : > { %v1824_v11 = vpack.c.bf16 %v1816_v32, %v1816_v32  ;;  %v1579_v32 = vadd.f32 %v4416_v42, %v4426_v55 }
 0x76f   : > { %v3529_v9 = vpop.f32.mrf.mxu1 }
 0x771   : > { %v1819_v41 = vpop.f32.mrf.mxu1 }
 0x773   : > { %v3530_v13 = vpop.f32.mrf.mxu1 }
 0x774   : > { %3544 = vmatmul.mubr.msk.bf16.gmra.mxu0 %vm985_vm1, %v1824_v11  ;;  %v1584_v13 = vadd.f32 %v4418_v44, %v4428_v52 }
 0x775   : > { %v1975_v15 = vpop.f32.mrf.mxu1  ;;  %3571 = vmatprep.mubr.msk.bf16.mxu0 %vm3895_vm0, %v3894_v33 }
 0x776   : > { %v1997_v45 = vsel %vm984_vm2, %v1975_v15, -1e+30 }
 0x777   : > { %v3555_v50 = vpop.f32.mrf.mxu1  ;;  %v2002_v3 = vsel %vm1067_vm3, %v1997_v45, -inf }
 0x778   : > { %2003 = vmax.xlane.f32.xlu0 %v2002_v3 }
 0x779   : > { %v1978_v16 = vpop.f32.mrf.mxu1 }
 0x77a   : > { %v1998_v62 = vsel %vm984_vm2, %v1978_v16, -1e+30  ;;  %v1592_v16 = vadd.f32 %v4422_v30, %v4432_v61 }
 0x77b   : > { %v3556_v18 = vpop.f32.mrf.mxu1  ;;  %v2005_v53 = vsel %vm1067_vm3, %v1998_v62, -inf }
 0x77c   : > { %2006 = vmax.xlane.f32.xlu1 %v2005_v53 }
 0x77d   : > { %v1983_v14 = vpop.f32.mrf.mxu1 }
 0x77e   : > { %v1999_v49 = vsel %vm984_vm2, %v1983_v14, -1e+30 }
 0x77f   : > { %v3559_v19 = vpop.f32.mrf.mxu1  ;;  %v2008_v21 = vsel %vm1067_vm3, %v1999_v49, -inf }
 0x780   : > { %2009 = vmax.xlane.f32.xlu0 %v2008_v21  ;;  %v3686_v21 = vld [vmem:[%s4019_s27 + $0x38] sm:$0xff]  }
 0x781   : > { %v1986_v58 = vpop.f32.mrf.mxu1  ;;  %3584 = vmatpush3.bf16.msra.mxu1 %v3686_v21 }
 0x782   : > { %v2000_v5 = vsel %vm984_vm2, %v1986_v58, -1e+30  ;;  %3585 = vmatprep.subr.bf16.mxu1 %v3894_v33 }
 0x783   : > { %v3560_v22 = vpop.f32.mrf.mxu1  ;;  %v2011_v23 = vsel %vm1067_vm3, %v2000_v5, -inf }
 0x784   : > { %2012 = vmax.xlane.f32.xlu0 %v2011_v23 }
 0x785   : > { %v1991_v25 = vpop.f32.mrf.mxu1 }
 0x786   : > { %v2001_v27 = vsel %vm984_vm2, %v1991_v25, -1e+30 }
 0x787   : > { %v3563_v29 = vpop.f32.mrf.mxu1  ;;  %v2014_v31 = vsel %vm1067_vm3, %v2001_v27, -inf }
 0x788   : > { %2015 = vmax.xlane.f32.xlu1 %v2014_v31 }
 0x789   : > { %v1994_v37 = vpop.f32.mrf.mxu1 }
 0x78b   : > { %v3564_v43 = vpop.f32.mrf.mxu1 }
 0x801   : > { %v2004_v20 = vpop.xlane.xlu0 %2003 }
 0x802   : > { %v2017_v24 = vsub.f32 %v1997_v45, %v2004_v20 }
 0x804   : > { %v2022_v39 = vmul.f32 1.442695, %v2017_v24 }
 0x805   : > { %v2007_v48 = vpop.xlane.xlu1 %2006 }
 0x806   : > { %3788 = vpow2.f32 %v2022_v39  ;;  %v2018_v46 = vsub.f32 %v1998_v62, %v2007_v48 }
 0x808   : > { %v2024_v54 = vmul.f32 1.442695, %v2018_v46 }
 0x809   : > { %v2010_v56 = vpop.xlane.xlu0 %2009 }
 0x80a   : > { %3790 = vpow2.f32 %v2024_v54  ;;  %v2019_v57 = vsub.f32 %v1999_v49, %v2010_v56 }
 0x80c   : > { %v2026_v60 = vmul.f32 1.442695, %v2019_v57 }
 0x80d   : > { %v2013_v42 = vpop.xlane.xlu0 %2012 }
 0x80e   : > { %3792 = vpow2.f32 %v2026_v60  ;;  %v2020_v44 = vsub.f32 %v2000_v5, %v2013_v42 }
 0x810   : > { %v2028_v47 = vmul.f32 1.442695, %v2020_v44 }
 0x811   : > { %v2016_v62 = vpop.xlane.xlu1 %2015 }
 0x812   : > { %v2021_v59 = vsub.f32 %v2001_v27, %v2016_v62  ;;  %3794 = vpow2.f32 %v2028_v47 }
 0x813   : > { %v4528_v26 = vpop.eup %3788 }
 0x814   : > { %v2032_v63 = vsel %vm1067_vm3, %v4528_v26, 0.0  ;;  %v2030_v49 = vmul.f32 1.442695, %v2021_v59 }
 0x815   : > { %2033 = vadd.xlane.f32.xlu0 %v2032_v63 }
 0x816   : > { %3796 = vpow2.f32 %v2030_v49  ;;  %v3849_v49 = vld [vmem:[#allocation2] sm:$0xff] }
 0x817   : > { %v4532_v0 = vpop.eup %3790 }
 0x818   : > { %v2035_v1 = vsel %vm1067_vm3, %v4532_v0, 0.0 }
 0x819   : > { %2036 = vadd.xlane.f32.xlu1 %v2035_v1 }
 0x81b   : > { %v4536_v2 = vpop.eup %3792 }
 0x81c   : > { %v2038_v4 = vsel %vm1067_vm3, %v4536_v2, 0.0 }
 0x81d   : > { %2039 = vadd.xlane.f32.xlu0 %v2038_v4 }
 0x81f   : > { %v3795_v19 = vpop.eup %3794 }
 0x820   : > { %v2041_v30 = vsel %vm1067_vm3, %v3795_v19, 0.0 }
 0x823   : > { %v3797_v61 = vpop.eup %3796 }
 0x824   : > { %v1884_v28 = vpop.f32.mrf.mxu0 }
 0x825   : > { %v4542_v7 = vadd.f32 %v1884_v28, %v1576_v6 }
 0x826   : > { %v3537_v8 = vpop.f32.mrf.mxu0 }
 0x828   : > { %v1887_v9 = vpop.f32.mrf.mxu0 }
 0x829   : > { %v4546_v41 = vadd.f32 %v1887_v9, %v1579_v32 }
 0x82a   : > { %2062 = vrot.lane.b32.xlu1 %v4246_v17, %s3898_s7  ;;  %v3538_v11 = vpop.f32.mrf.mxu0 }
 0x82c   : > { %v1892_v15 = vpop.f32.mrf.mxu0 }
 0x82d   : > { %v4552_v45 = vadd.f32 %v1892_v15, %v1584_v13 }
 0x82e   : > { %v3541_v34 = vpop.f32.mrf.mxu0 }
 0x830   : > { %v1895_v50 = vpop.f32.mrf.mxu0 }
 0x831   : > { %v4556_v3 = vadd.f32 %v1895_v50, %v1587_v51 }
 0x832   : > { %v3542_v55 = vpop.f32.mrf.mxu0 }
 0x833   : > { %2064 = vrot.lane.b32.xlu0 %v4242_v12, %s3898_s7  ;;  %v2044_v12 = vsel %vm1067_vm3, %v3797_v61, 0.0 }
 0x834   : > { %v1900_v17 = vpop.f32.mrf.mxu0 }
 0x835   : > { %v4562_v52 = vadd.f32 %v1900_v17, %v1592_v16  ;;  %v3176_v16 = vld [vmem:[%s4844_s14] ss:$0 sm:$0xff] }
 0x836   : > { %v3545_v18 = vpop.f32.mrf.mxu0 }
 0x838   : > { %v1903_v53 = vpop.f32.mrf.mxu0 }
 0x83a   : > { %v3546_v14 = vpop.f32.mrf.mxu0 }
 0x84e   : > { %2042 = vadd.xlane.f32.xlu1 %v2041_v30 }
 0x852   : > { %2045 = vadd.xlane.f32.xlu0 %v2044_v12 }
 0x85f   : > { %2060 = vrot.lane.b32.xlu1 %v4249_v38, %s3898_s7 }
 0x89e   : > { %v2034_v58 = vpop.xlane.xlu0 %2033 }
 0x8a2   : > { %v2037_v22 = vpop.xlane.xlu1 %2036 }
 0x8a3   : > { %3798 = vrcp.f32 %v2037_v22 }
 0x8a4   : > { %3800 = vrcp.f32 %v2034_v58 }
 0x8a6   : > { %v2040_v5 = vpop.xlane.xlu0 %2039  ;;  %v2063_v27 = vpop.permute.xlu1 %2062 }
 0x8a7   : > { %3802 = vrcp.f32 %v2040_v5  ;;  %v3850_v5 = vld [vmem:[#allocation2 + $0x20] sm:$0xff] }
 0x8aa   : > { %v2065_v23 = vpop.permute.xlu0 %2064 }
 0x8ab   : > { %v2078_v25 = vsel %vm1135_vm4, %v2065_v23, 0 }
 0x8ac   : > { %3566 = vmatpush3.bf16.msra.mxu0 %v2078_v25 }
 0x8ad   : > { %3567 = vmatprep.subr.bf16.mxu0 %v3894_v33 }
 0x8b0   : > { %3568 = vmatpush3.bf16.msra.mxu0 %v2063_v27  ;;  %v3799_v38 = vpop.eup %3798 }
 0x8b1   : > { %3569 = vmatprep.subr.bf16.mxu0 %v3894_v33  ;;  %v3801_v31 = vpop.eup %3800  ;;  %v2053_v37 = vmul.f32 %v3799_v38, %v4532_v0  ;;  %v3687_v0 = vld [vmem:[%s4019_s27 + $0x30] sm:$0xff]  }
 0x8b2   : > { %v2052_v43 = vmul.f32 %v3801_v31, %v4528_v26  ;;  %3586 = vmatpush3.bf16.msra.mxu1 %v3687_v0  ;;  %v3851_v38 = vld [vmem:[#allocation2 + $0x10] sm:$0xff] }
 0x8b4   : > { %v2057_v39 = vpack.c.bf16 %v2053_v37, %v2052_v43  ;;  %v3803_v48 = vpop.eup %3802  ;;  %v3852_v43 = vld [vmem:[#allocation2 + $0x18] sm:$0xff] }
 0x8b5   : > { %v2054_v54 = vmul.f32 %v3803_v48, %v4536_v2 }
 0x8d7   : > { %v2043_v29 = vpop.xlane.xlu1 %2042 }
 0x8d8   : > { %3804 = vrcp.f32 %v2043_v29 }
 0x8db   : > { %v2061_v20 = vpop.permute.xlu1 %2060  ;;  %v2046_v24 = vpop.xlane.xlu0 %2045 }
 0x8dc   : > { %3806 = vrcp.f32 %v2046_v24  ;;  %3570 = vmatpush3.bf16.msra.mxu0 %v2061_v20 }
 0x8df   : > { %3572 = vmatmul.mubr.msk.bf16.vlgmr.msra.gmra.mxu0 %vm1067_vm3, %v2057_v39  ;;  %v3690_v39 = vld [vmem:[%s4043_s29 + $0x74] ss:$8 sps:$4 sm:$0xff]  }
 0x8e0   : > { %3575 = vmatprep.mubr.msk.bf16.mxu0 %vm3895_vm0, %v3894_v33  ;;  %2433 = vmatprep.subr.bf16.mxu0 %v3690_v39 }
 0x8e5   : > { %v3805_v46 = vpop.eup %3804 }
 0x8e6   : > { %v2055_v56 = vmul.f32 %v3805_v46, %v3795_v19 }
 0x8e8   : > { %v2058_v57 = vpack.c.bf16 %v2055_v56, %v2054_v54 }
 0x8e9   : > { %v3807_v60 = vpop.eup %3806 }
 0x8ea   : > { %3576 = vmatmul.mubr.msk.bf16.gmra.mxu0 %vm1067_vm3, %v2058_v57  ;;  %v2056_v26 = vmul.f32 %v3807_v60, %v3797_v61 }
 0x8eb   : > { %3579 = vmatprep.mubr.msk.bf16.mxu0 %vm3895_vm0, %v3894_v33 }
 0x8ec   : > { %v2059_v63 = vpack.c.bf16 %v2056_v26, %v2056_v26 }
 0x8f2   : > { %3580 = vmatmul.mubr.msk.bf16.gmra.mxu0 %vm1067_vm3, %v2059_v63 }
 0x8f3   : > { %2465 = vmatprep.mubr.bf16.mxu0 %v3893_v10 }
 0x99f   : > { %v2114_v1 = vpop.f32.mrf.mxu0 }
 0x9a1   : > { %v3573_v4 = vpop.f32.mrf.mxu0 }
 0x9a3   : > { %v2117_v6 = vpop.f32.mrf.mxu0 }
 0x9a4   : > { %v2136_v2 = vpack.c.bf16 %v2117_v6, %v2114_v1 }
 0x9a5   : > { %v3574_v28 = vpop.f32.mrf.mxu0 }
 0x9a6   : > { %3588 = vmatmul.mubr.msk.bf16.vlgmr.msra.gmra.mxu1 %vm985_vm1, %v2136_v2 }
 0x9a7   : > { %3591 = vmatprep.mubr.msk.bf16.mxu1 %vm3895_vm0, %v3894_v33 }
 0x9aa   : > { %v2122_v8 = vpop.f32.mrf.mxu0 }
 0x9ac   : > { %v3577_v32 = vpop.f32.mrf.mxu0 }
 0x9ae   : > { %v2125_v9 = vpop.f32.mrf.mxu0 }
 0x9af   : > { %v2137_v11 = vpack.c.bf16 %v2125_v9, %v2122_v8  ;;  %v3693_v8 = vld [vmem:[%s4043_s29 + $0x64] ss:$8 sps:$4 sm:$0xff]   ;;  %v3691_v9 = vld [vmem:[%s4043_s29 + $0x60] ss:$8 sps:$4 sm:$0xff]  }
 0x9b0   : > { %v3578_v13 = vpop.f32.mrf.mxu0 }
 0x9b1   : > { %3592 = vmatmul.mubr.msk.bf16.gmra.mxu1 %vm985_vm1, %v2137_v11 }
 0x9b2   : > { %v2130_v15 = vpop.f32.mrf.mxu0  ;;  %3595 = vmatprep.mubr.msk.bf16.mxu1 %vm3895_vm0, %v3894_v33  ;;  %v3848_v33 = vld [vmem:[#allocation2 + $0x8] sm:$0xff] }
 0x9b3   : > { %v2138_v50 = vpack.c.bf16 %v2130_v15, %v2130_v15 }
 0x9b4   : > { %v3581_v34 = vpop.f32.mrf.mxu0 }
 0x9b5   : > { %v3696_v34 = vld [vmem:[%s4043_s29 + $0x54] ss:$8 sps:$4 sm:$0xff]  }
 0x9b6   : > { %v2133_v51 = vpop.f32.mrf.mxu0 }
 0x9b7   : > { %v3694_v51 = vld [vmem:[%s4043_s29 + $0x50] ss:$8 sps:$4 sm:$0xff]  }
 0x9b8   : > { %v3582_v42 = vpop.f32.mrf.mxu0 }
 0x9b9   : > { %3596 = vmatmul.mubr.msk.bf16.gmra.mxu1 %vm985_vm1, %v2138_v50  ;;  %v3699_v42 = vld [vmem:[%s4043_s29 + $0x44] ss:$8 sps:$4 sm:$0xff]  }
 0xa66   : > { %v2198_v55 = vpop.f32.mrf.mxu1 }
 0xa67   : > { %v2220_v17 = vadd.f32 %v2198_v55, %v4542_v7  ;;  %v3697_v55 = vld [vmem:[%s4043_s29 + $0x40] ss:$8 sps:$4 sm:$0xff]  }
 0xa68   : > { %v3589_v44 = vpop.f32.mrf.mxu1 }
 0xa69   : > { %v2232_v62 = vadd.f32 %v3176_v16, %v2220_v17  ;;  %v3700_v17 = vld [vmem:[%s4043_s29 + $0x30] ss:$8 sps:$4 sm:$0xff]   ;;  %v3705_v44 = vld [vmem:[%s4043_s29 + $0x24] ss:$8 sps:$4 sm:$0xff]  }
 0xa6a   : > { %v2201_v18 = vpop.f32.mrf.mxu1 }
 0xa6b   : > { %v2221_v53 = vadd.f32 %v2201_v18, %v4546_v41  ;;  %v2237_v47 = vadd.f32 %v3848_v33, %v2232_v62  ;;  %v3703_v62 = vld [vmem:[%s4043_s29 + $0x20] ss:$8 sps:$4 sm:$0xff]   ;;  %v3708_v18 = vld [vmem:[%s4043_s29 + $0x14] ss:$8 sps:$4 sm:$0xff]   ;;  %v3711_v33 = vld [vmem:[%s4043_s29 + $0x4] ss:$8 sps:$4 sm:$0xff]  }
 0xa6c   : > { %v3590_v59 = vpop.f32.mrf.mxu1 }
 0xa6d   : > { %v2233_v14 = vadd.f32 %v3176_v16, %v2221_v53  ;;  %2244 = vadd.xlane.f32.xlu1 %v2237_v47  ;;  %v3706_v53 = vld [vmem:[%s4043_s29 + $0x10] ss:$8 sps:$4 sm:$0xff]  }
 0xa6f   : > { %v2238_v19 = vadd.f32 %v3849_v49, %v2233_v14 }
 0xa71   : > { %2246 = vadd.xlane.f32.xlu0 %v2238_v19  ;;  %v2206_v30 = vpop.f32.mrf.mxu1 }
 0xa72   : > { %v2222_v61 = vadd.f32 %v2206_v30, %v4552_v45 }
 0xa73   : > { %v3593_v12 = vpop.f32.mrf.mxu1 }
 0xa74   : > { %v2234_v21 = vadd.f32 %v3176_v16, %v2222_v61 }
 0xa75   : > { %v2209_v58 = vpop.f32.mrf.mxu1 }
 0xa76   : > { %v2223_v7 = vadd.f32 %v2209_v58, %v4556_v3  ;;  %v2239_v22 = vadd.f32 %v3850_v5, %v2234_v21  ;;  %v3688_v3 = vld [vmem:[%s4043_s29 + $0x70] ss:$8 sps:$4 sm:$0xff]  }
 0xa77   : > { %v3594_v41 = vpop.f32.mrf.mxu1  ;;  %2434 = vmatpush1.bf16.msra.mxu0 %v3688_v3 }
 0xa78   : > { %v2235_v23 = vadd.f32 %v3176_v16, %v2223_v7  ;;  %2248 = vadd.xlane.f32.xlu0 %v2239_v22  ;;  %2435 = vmatprep.subr.bf16.mxu0 %v3693_v8  ;;  %v3713_v8 = vld [vmem:[%s4053_s0 + $0x38] sm:$0xff]  }
 0xa79   : > { %v2214_v25 = vpop.f32.mrf.mxu1 }
 0xa7a   : > { %v2224_v27 = vadd.f32 %v2214_v25, %v4562_v52  ;;  %v2240_v29 = vadd.f32 %v3851_v38, %v2235_v23  ;;  %v3177_v38 = vld [vmem:[%s4845_s23] ss:$0 sm:$0xff] }
 0xa7b   : > { %v3597_v31 = vpop.f32.mrf.mxu1  ;;  %2436 = vmatpush1.bf16.msra.mxu0 %v3691_v9  ;;  %v3715_v9 = vld [vmem:[%s4053_s0 + $0x30] sm:$0xff]  }
 0xa7c   : > { %v2236_v37 = vadd.f32 %v3176_v16, %v2224_v27  ;;  %2250 = vadd.xlane.f32.xlu1 %v2240_v29  ;;  %2437 = vmatprep.subr.bf16.mxu0 %v3696_v34  ;;  %v3702_v16 = vld [vmem:[%s4043_s29 + $0x34] ss:$8 sps:$4 sm:$0xff]  }
 0xa7d   : > { %v2217_v45 = vpop.f32.mrf.mxu1  ;;  %v3720_v34 = vld [vmem:[%s4053_s0 + $0x58] sm:$0xff]  }
 0xa7e   : > { %v2241_v20 = vadd.f32 %v3852_v43, %v2236_v37  ;;  %v3178_v43 = vld [vmem:[%s4847_s12] ss:$0 sm:$0xff] }
 0xa7f   : > { %v3598_v24 = vpop.f32.mrf.mxu1  ;;  %2438 = vmatpush1.bf16.msra.mxu0 %v3694_v51  ;;  %v3721_v51 = vld [vmem:[%s4053_s0 + $0x18] sm:$0xff]  }
 0xa80   : > { %2252 = vadd.xlane.f32.xlu0 %v2241_v20  ;;  %2439 = vmatprep.subr.bf16.mxu0 %v3699_v42  ;;  %v3723_v42 = vld [vmem:[%s4053_s0 + $0x10] sm:$0xff]  }
 0xa83   : > { %2440 = vmatpush1.bf16.msra.mxu0 %v3697_v55  ;;  %v3724_v55 = vld [vmem:[%s4053_s0 + $0x48] sm:$0xff]  }
 0xa84   : > { %2441 = vmatprep.subr.bf16.mxu0 %v3702_v16  ;;  %v3725_v16 = vld [vmem:[%s4053_s0 + $0x8] sm:$0xff]  }
 0xa87   : > { %2442 = vmatpush1.bf16.msra.mxu0 %v3700_v17  ;;  %v3726_v17 = vld [vmem:[%s4053_s0 + $0x40] sm:$0xff]  }
 0xa88   : > { %2443 = vmatprep.subr.bf16.mxu0 %v3705_v44  ;;  %v3727_v44 = vld [vmem:[%s4053_s0] sm:$0xff]  }
 0xa8b   : > { %2444 = vmatpush1.bf16.msra.mxu0 %v3703_v62  ;;  %v2341_v62 = vld [vmem:[%s4048_s13] sm:$0x3] }
 0xa8c   : > { %2445 = vmatprep.subr.bf16.mxu0 %v3708_v18  ;;  %v2346_v18 = vrot.slane %v2341_v62, %v715_v40 }
 0xa8f   : > { %2446 = vmatpush1.bf16.msra.mxu0 %v3706_v53  ;;  %v2350_v53 = vrot.slane %v2341_v62, %v719_v36 }
 0xa90   : > { %2447 = vmatprep.subr.bf16.mxu0 %v3711_v33 }
 0xaf6   : > { %v2245_v48 = vpop.xlane.xlu1 %2244 }
 0xaf7   : > { %v2255_v46 = vmul.f32 0.0078125, %v2245_v48 }
 0xaf9   : > { %v4604_v54 = vsub.f32 %v2237_v47, %v2255_v46  ;;  %v3709_v47 = vld [vmem:[%s4043_s29] ss:$8 sps:$4 sm:$0xff]  }
 0xafa   : > { %v2247_v52 = vpop.xlane.xlu0 %2246  ;;  %2448 = vmatpush1.bf16.msra.mxu0 %v3709_v47 }
 0xafb   : > { %v2256_v56 = vmul.f32 0.0078125, %v2247_v52  ;;  %v2265_v57 = vmul.f32 %v4604_v54, %v4604_v54 }
 0xafd   : > { %v4608_v60 = vsub.f32 %v2238_v19, %v2256_v56  ;;  %2270 = vadd.xlane.f32.xlu1 %v2265_v57 }
 0xaff   : > { %v2266_v26 = vmul.f32 %v4608_v60, %v4608_v60 }
 0xb01   : > { %v2249_v63 = vpop.xlane.xlu0 %2248  ;;  %2272 = vadd.xlane.f32.xlu0 %v2266_v26 }
 0xb02   : > { %v2257_v0 = vmul.f32 0.0078125, %v2249_v63 }
 0xb04   : > { %v4612_v1 = vsub.f32 %v2239_v22, %v2257_v0 }
 0xb05   : > { %v2251_v4 = vpop.xlane.xlu1 %2250 }
 0xb06   : > { %v2258_v6 = vmul.f32 0.0078125, %v2251_v4  ;;  %v2267_v2 = vmul.f32 %v4612_v1, %v4612_v1 }
 0xb08   : > { %v4616_v28 = vsub.f32 %v2240_v29, %v2258_v6  ;;  %2274 = vadd.xlane.f32.xlu1 %v2267_v2 }
 0xb09   : > { %v2253_v32 = vpop.xlane.xlu0 %2252 }
 0xb0a   : > { %v2259_v11 = vmul.f32 0.0078125, %v2253_v32  ;;  %v2268_v13 = vmul.f32 %v4616_v28, %v4616_v28  ;;  %v3714_v32 = vld [vmem:[%s4053_s0 + $0x70] sm:$0xff]  }
 0xb0c   : > { %v4622_v15 = vsub.f32 %v2241_v20, %v2259_v11  ;;  %2276 = vadd.xlane.f32.xlu0 %v2268_v13  ;;  %v3717_v11 = vld [vmem:[%s4053_s0 + $0x28] sm:$0xff]   ;;  %v3718_v13 = vld [vmem:[%s4053_s0 + $0x60] sm:$0xff]  }
 0xb0e   : > { %v2269_v50 = vmul.f32 %v4622_v15, %v4622_v15 }
 0xb10   : > { %2278 = vadd.xlane.f32.xlu1 %v2269_v50  ;;  %v3722_v50 = vld [vmem:[%s4053_s0 + $0x50] sm:$0xff]  }
 0xb86   : > { %v2271_v59 = vpop.xlane.xlu1 %2270 }
 0xb87   : > { %v2280_v14 = vmul.f32 0.0078125, %v2271_v59 }
 0xb89   : > { %v2285_v49 = vadd.f32 1e-05, %v2280_v14 }
 0xb8a   : > { %v2273_v19 = vpop.xlane.xlu0 %2272 }
 0xb8b   : > { %3808 = vrsqrt.f32 %v2285_v49  ;;  %v2281_v30 = vmul.f32 0.0078125, %v2273_v19 }
 0xb8d   : > { %v2286_v61 = vadd.f32 1e-05, %v2281_v30 }
 0xb8f   : > { %3810 = vrsqrt.f32 %v2286_v61 }
 0xb91   : > { %v2275_v12 = vpop.xlane.xlu1 %2274 }
 0xb92   : > { %v2282_v21 = vmul.f32 0.0078125, %v2275_v12 }
 0xb94   : > { %v2287_v58 = vadd.f32 1e-05, %v2282_v21 }
 0xb95   : > { %v2277_v7 = vpop.xlane.xlu0 %2276 }
 0xb96   : > { %3812 = vrsqrt.f32 %v2287_v58  ;;  %v2283_v5 = vmul.f32 0.0078125, %v2277_v7 }
 0xb98   : > { %v3809_v22 = vpop.eup %3808  ;;  %v2288_v41 = vadd.f32 1e-05, %v2283_v5 }
 0xb99   : > { %v2295_v23 = vmul.f32 %v3809_v22, %v4604_v54  ;;  %v2279_v25 = vpop.xlane.xlu1 %2278 }
 0xb9a   : > { %3814 = vrsqrt.f32 %v2288_v41  ;;  %v2284_v27 = vmul.f32 0.0078125, %v2279_v25 }
 0xb9b   : > { %v2306_v45 = vmul.f32 %v3177_v38, %v2295_v23 }
 0xb9c   : > { %v3811_v29 = vpop.eup %3810  ;;  %v2289_v31 = vadd.f32 1e-05, %v2284_v27 }
 0xb9d   : > { %v2296_v37 = vmul.f32 %v3811_v29, %v4608_v60  ;;  %v4650_v24 = vadd.f32 %v3178_v43, %v2306_v45 }
 0xb9e   : > { %3816 = vrsqrt.f32 %v2289_v31 }
 0xb9f   : > { %v2307_v20 = vmul.f32 %v3177_v38, %v2296_v37 }
 0xba1   : > { %v4652_v3 = vadd.f32 %v3178_v43, %v2307_v20 }
 0xba3   : > { %v3813_v39 = vpop.eup %3812  ;;  %v2322_v48 = vpack.c.bf16 %v4652_v3, %v4650_v24 }
 0xba4   : > { %v2297_v46 = vmul.f32 %v3813_v39, %v4612_v1 }
 0xba5   : > { %2466 = vmatmul.mubr.bf16.vlgmr.msra.gmra.mxu0 %v2322_v48 }
 0xba6   : > { %2475 = vmatprep.mubr.bf16.mxu0 %v3893_v10  ;;  %v2308_v56 = vmul.f32 %v3177_v38, %v2297_v46 }
 0xba7   : > { %v3815_v54 = vpop.eup %3814 }
 0xba8   : > { %v2298_v52 = vmul.f32 %v3815_v54, %v4616_v28  ;;  %v4659_v26 = vadd.f32 %v3178_v43, %v2308_v56  ;;  %v3712_v28 = vld [vmem:[%s4053_s0 + $0x78] sm:$0xff]  }
 0xba9   : > { %3329 = vmatprep.subr.bf16.mxu1 %v3712_v28 }
 0xbaa   : > { %v2309_v57 = vmul.f32 %v3177_v38, %v2298_v52  ;;  %3330 = vmatpush3.bf16.msra.mxu1 %v3713_v8 }
 0xbab   : > { %v3817_v60 = vpop.eup %3816  ;;  %3331 = vmatprep.subr.bf16.mxu1 %v3714_v32 }
 0xbac   : > { %v4661_v63 = vadd.f32 %v3178_v43, %v2309_v57  ;;  %v2299_v0 = vmul.f32 %v3817_v60, %v4622_v15  ;;  %v3719_v15 = vld [vmem:[%s4053_s0 + $0x20] sm:$0xff]  }
 0xbae   : > { %v2323_v1 = vpack.c.bf16 %v4661_v63, %v4659_v26  ;;  %v2310_v4 = vmul.f32 %v3177_v38, %v2299_v0  ;;  %3332 = vmatpush3.bf16.msra.mxu1 %v3715_v9 }
 0xbb0   : > { %2476 = vmatmul.mubr.bf16.gmra.mxu0 %v2323_v1  ;;  %v4667_v6 = vadd.f32 %v3178_v43, %v2310_v4 }
 0xbb1   : > { %2485 = vmatprep.mubr.bf16.mxu0 %v3893_v10  ;;  %v3716_v10 = vld [vmem:[%s4053_s0 + $0x68] sm:$0xff]  }
 0xbb2   : > { %v2324_v2 = vpack.c.bf16 %v4667_v6, %v4667_v6  ;;  %3333 = vmatprep.subr.bf16.mxu1 %v3716_v10 }
 0xbb3   : > { %3334 = vmatpush3.bf16.msra.mxu1 %v3717_v11 }
 0xbb4   : > { %3335 = vmatprep.subr.bf16.mxu1 %v3718_v13 }
 0xbb7   : > { %3336 = vmatpush3.bf16.msra.mxu1 %v3719_v15 }
 0xbb8   : > { %2486 = vmatmul.mubr.bf16.gmra.mxu0 %v2324_v2  ;;  %3337 = vmatprep.subr.bf16.mxu1 %v3720_v34 }
 0xbbb   : > { %3338 = vmatpush3.bf16.msra.mxu1 %v3721_v51 }
 0xbbc   : > { %3339 = vmatprep.subr.bf16.mxu1 %v3722_v50 }
 0xbbf   : > { %3340 = vmatpush3.bf16.msra.mxu1 %v3723_v42 }
 0xbc0   : > { %3341 = vmatprep.subr.bf16.mxu1 %v3724_v55 }
 0xbc3   : > { %3342 = vmatpush3.bf16.msra.mxu1 %v3725_v16 }
 0xbc4   : > { %3343 = vmatprep.subr.bf16.mxu1 %v3726_v17 }
 0xbc7   : > { %3344 = vmatpush3.bf16.msra.mxu1 %v3727_v44 }
 0xc65   : > { %v2467_v33 = vpop.f32.mrf.mxu0 }
 0xc66   : > { %v4692_v47 = vadd.f32 %v2467_v33, %v2346_v18 }
 0xc67   : > { %v2469_v59 = vpop.f32.mrf.mxu0 }
 0xc68   : > { %v2494_v14 = vmul.f32 %v4692_v47, %v4692_v47  ;;  %v4696_v49 = vadd.f32 %v2469_v59, %v2350_v53 }
 0xc69   : > { %v2471_v19 = vpop.f32.mrf.mxu0 }
 0xc6a   : > { %v2504_v30 = vmul.f32 %v2494_v14, %v4692_v47  ;;  %v2495_v61 = vmul.f32 %v4696_v49, %v4696_v49  ;;  %v4701_v12 = vadd.f32 %v2471_v19, %v2346_v18 }
 0xc6b   : > { %v2473_v40 = vpop.f32.mrf.mxu0 }
 0xc6c   : > { %v2514_v35 = vmul.f32 0.044715, %v2504_v30  ;;  %v2505_v36 = vmul.f32 %v2495_v61, %v4696_v49  ;;  %v2496_v21 = vmul.f32 %v4701_v12, %v4701_v12  ;;  %v4706_v58 = vadd.f32 %v2473_v40, %v2350_v53 }
 0xc6e   : > { %v2524_v7 = vadd.f32 %v2514_v35, %v4692_v47  ;;  %v2515_v5 = vmul.f32 0.044715, %v2505_v36  ;;  %v2506_v22 = vmul.f32 %v2496_v21, %v4701_v12  ;;  %v2497_v41 = vmul.f32 %v4706_v58, %v4706_v58 }
 0xc70   : > { %v2534_v23 = vmul.f32 0.7978846, %v2524_v7  ;;  %v2525_v25 = vadd.f32 %v2515_v5, %v4696_v49  ;;  %v2516_v27 = vmul.f32 0.044715, %v2506_v22  ;;  %v2507_v38 = vmul.f32 %v2497_v41, %v4706_v58  ;;  %v2477_v29 = vpop.f32.mrf.mxu0 }
 0xc71   : > { %v4714_v31 = vadd.f32 %v2477_v29, %v2346_v18 }
 0xc72   : > { %v2535_v37 = vmul.f32 0.7978846, %v2525_v25  ;;  %v2526_v45 = vadd.f32 %v2516_v27, %v4701_v12  ;;  %v2517_v43 = vmul.f32 0.044715, %v2507_v38  ;;  %v2479_v20 = vpop.f32.mrf.mxu0  ;;  %3818 = vtanh.f32 %v2534_v23 }
 0xc73   : > { %v2498_v39 = vmul.f32 %v4714_v31, %v4714_v31  ;;  %v4719_v48 = vadd.f32 %v2479_v20, %v2350_v53 }
 0xc74   : > { %3820 = vtanh.f32 %v2535_v37  ;;  %v2536_v46 = vmul.f32 0.7978846, %v2526_v45  ;;  %v2527_v54 = vadd.f32 %v2517_v43, %v4706_v58  ;;  %v2481_v52 = vpop.f32.mrf.mxu0 }
 0xc75   : > { %v2508_v56 = vmul.f32 %v2498_v39, %v4714_v31  ;;  %v2499_v57 = vmul.f32 %v4719_v48, %v4719_v48  ;;  %v4725_v60 = vadd.f32 %v2481_v52, %v2346_v18 }
 0xc76   : > { %3822 = vtanh.f32 %v2536_v46  ;;  %v2537_v0 = vmul.f32 0.7978846, %v2527_v54  ;;  %v2483_v1 = vpop.f32.mrf.mxu0 }
 0xc77   : > { %v2518_v4 = vmul.f32 0.044715, %v2508_v56  ;;  %v2509_v2 = vmul.f32 %v2499_v57, %v4719_v48  ;;  %v2500_v28 = vmul.f32 %v4725_v60, %v4725_v60  ;;  %v4730_v8 = vadd.f32 %v2483_v1, %v2350_v53 }
 0xc78   : > { %3824 = vtanh.f32 %v2537_v0  ;;  %v2487_v32 = vpop.f32.mrf.mxu0 }
 0xc79   : > { %v2528_v9 = vadd.f32 %v2518_v4, %v4714_v31  ;;  %v2519_v10 = vmul.f32 0.044715, %v2509_v2  ;;  %v2510_v11 = vmul.f32 %v2500_v28, %v4725_v60  ;;  %v2501_v13 = vmul.f32 %v4730_v8, %v4730_v8 }
 0xc7a   : > { %v4736_v15 = vadd.f32 %v2487_v32, %v2346_v18  ;;  %v2489_v34 = vpop.f32.mrf.mxu0 }
 0xc7b   : > { %v2538_v51 = vmul.f32 0.7978846, %v2528_v9  ;;  %v2529_v50 = vadd.f32 %v2519_v10, %v4719_v48  ;;  %v2520_v42 = vmul.f32 0.044715, %v2510_v11  ;;  %v2511_v55 = vmul.f32 %v2501_v13, %v4730_v8 }
 0xc7c   : > { %v2502_v16 = vmul.f32 %v4736_v15, %v4736_v15  ;;  %v4742_v17 = vadd.f32 %v2489_v34, %v2350_v53  ;;  %v2491_v44 = vpop.f32.mrf.mxu0 }
 0xc7d   : > { %v2539_v62 = vmul.f32 0.7978846, %v2529_v50  ;;  %v2530_v33 = vadd.f32 %v2520_v42, %v4725_v60  ;;  %v2521_v59 = vmul.f32 0.044715, %v2511_v55  ;;  %3826 = vtanh.f32 %v2538_v51 }
 0xc7e   : > { %v2512_v18 = vmul.f32 %v2502_v16, %v4736_v15  ;;  %v2503_v14 = vmul.f32 %v4742_v17, %v4742_v17  ;;  %v2492_v19 = vpop.f32.mrf.mxu0 }
 0xc7f   : > { %3828 = vtanh.f32 %v2539_v62  ;;  %v2540_v30 = vmul.f32 0.7978846, %v2530_v33  ;;  %v2531_v61 = vadd.f32 %v2521_v59, %v4730_v8  ;;  %v3819_v40 = vpop.eup %3818 }
 0xc80   : > { %v2522_v35 = vmul.f32 0.044715, %v2512_v18  ;;  %v2513_v53 = vmul.f32 %v2503_v14, %v4742_v17  ;;  %v2554_v23 = vadd.f32 1.0, %v3819_v40 }
 0xc81   : > { %v3821_v36 = vpop.eup %3820  ;;  %3830 = vtanh.f32 %v2540_v30  ;;  %v2541_v21 = vmul.f32 0.7978846, %v2531_v61 }
 0xc82   : > { %v2532_v7 = vadd.f32 %v2522_v35, %v4736_v15  ;;  %v2523_v5 = vmul.f32 0.044715, %v2513_v53  ;;  %v2555_v22 = vadd.f32 1.0, %v3821_v36  ;;  %v2564_v39 = vmul.f32 0.5, %v2554_v23 }
 0xc83   : > { %v3823_v41 = vpop.eup %3822  ;;  %3832 = vtanh.f32 %v2541_v21 }
 0xc84   : > { %v2556_v25 = vadd.f32 1.0, %v3823_v41  ;;  %v2542_v27 = vmul.f32 0.7978846, %v2532_v7  ;;  %v2533_v38 = vadd.f32 %v2523_v5, %v4742_v17  ;;  %v2565_v37 = vmul.f32 0.5, %v2555_v22 }
 0xc85   : > { %v3825_v29 = vpop.eup %3824  ;;  %v2574_v0 = vmul.f32 %v2564_v39, %v4692_v47 }
 0xc86   : > { %v2566_v45 = vmul.f32 0.5, %v2556_v25  ;;  %3834 = vtanh.f32 %v2542_v27  ;;  %v2543_v43 = vmul.f32 0.7978846, %v2533_v38  ;;  %v2557_v20 = vadd.f32 1.0, %v3825_v29 }
 0xc87   : > { %v2575_v52 = vmul.f32 %v2565_v37, %v4696_v49 }
 0xc88   : > { %3836 = vtanh.f32 %v2543_v43  ;;  %v2567_v46 = vmul.f32 0.5, %v2557_v20  ;;  %v2576_v54 = vmul.f32 %v2566_v45, %v4701_v12 }
 0xc8a   : > { %v2577_v56 = vmul.f32 %v2567_v46, %v4706_v58  ;;  %v3827_v57 = vpop.eup %3826  ;;  %v2584_v2 = vpack.c.bf16 %v2576_v54, %v2574_v0 }
 0xc8b   : > { %v2558_v9 = vadd.f32 1.0, %v3827_v57 }
 0xc8c   : > { %v3829_v1 = vpop.eup %3828  ;;  %v2585_v4 = vpack.c.bf16 %v2577_v56, %v2575_v52 }
 0xc8d   : > { %v2559_v28 = vadd.f32 1.0, %v3829_v1  ;;  %v2568_v51 = vmul.f32 0.5, %v2558_v9 }
 0xc8e   : > { %v3831_v32 = vpop.eup %3830  ;;  %2757 = vmatprep.mubr.bf16.mxu1 %v2585_v4 }
 0xc8f   : > { %2758 = vmatmul.mubr.bf16.vlgmr.msra.gmra.mxu1 %v2584_v2  ;;  %v2560_v10 = vadd.f32 1.0, %v3831_v32  ;;  %v2569_v34 = vmul.f32 0.5, %v2559_v28  ;;  %v2578_v44 = vmul.f32 %v2568_v51, %v4714_v31  ;;  %v3195_v31 = vld [vmem:[%s639_s24] ss:$0 sm:$0xff] }
 0xc90   : > { %v3833_v11 = vpop.eup %3832 }
 0xc91   : > { %v2561_v13 = vadd.f32 1.0, %v3833_v11  ;;  %v2570_v12 = vmul.f32 0.5, %v2560_v10  ;;  %v2579_v55 = vmul.f32 %v2569_v34, %v4719_v48 }
 0xc93   : > { %v3835_v49 = vpop.eup %3834  ;;  %v2571_v50 = vmul.f32 0.5, %v2561_v13  ;;  %v2580_v58 = vmul.f32 %v2570_v12, %v4725_v60 }
 0xc94   : > { %v2562_v42 = vadd.f32 1.0, %v3835_v49 }
 0xc95   : > { %v3837_v47 = vpop.eup %3836  ;;  %v2581_v16 = vmul.f32 %v2571_v50, %v4730_v8  ;;  %v2586_v59 = vpack.c.bf16 %v2580_v58, %v2578_v44 }
 0xc96   : > { %v2563_v62 = vadd.f32 1.0, %v3837_v47  ;;  %v2572_v14 = vmul.f32 0.5, %v2562_v42 }
 0xc97   : > { %v2587_v33 = vpack.c.bf16 %v2581_v16, %v2579_v55 }
 0xc98   : > { %v2573_v18 = vmul.f32 0.5, %v2563_v62  ;;  %v2582_v60 = vmul.f32 %v2572_v14, %v4736_v15 }
 0xc99   : > { %2765 = vmatprep.mubr.bf16.mxu1 %v2587_v33 }
 0xc9a   : > { %2766 = vmatmul.mubr.bf16.gmra.mxu1 %v2586_v59  ;;  %v2583_v19 = vmul.f32 %v2573_v18, %v4742_v17  ;;  %v2588_v61 = vpack.c.bf16 %v2582_v60, %v2582_v60 }
 0xc9c   : > { %v2589_v30 = vpack.c.bf16 %v2583_v19, %v2583_v19  ;;  %v3212_v19 = vld [vmem:[%s642_s3] ss:$0 sm:$0xff] }
 0xc9e   : > { %2773 = vmatprep.mubr.bf16.mxu1 %v2589_v30 }
 0xca2   : > { %2774 = vmatmul.mubr.bf16.gmra.mxu1 %v2588_v61 }
 0xd4f   : > { %v3345_v48 = vpop.f32.mrf.mxu1 }
 0xd51   : > { %v3346_v8 = vpop.f32.mrf.mxu1 }
 0xd52   : > { %v3347_v40 = vadd.f32 %v3346_v8, %v3345_v48  ;;  %v3213_v48 = vld [vmem:[%s645_s6] ss:$0 sm:$0xff]  ;;  %s4849_s6 = sld [smem:[#allocation3_spill]] }
 0xd53   : > { %v3348_v35 = vpop.f32.mrf.mxu1 }
 0xd54   : > { %v2760_v53 = vadd.f32 %v3347_v40, %v3195_v31 }
 0xd55   : > { %v3349_v36 = vpop.f32.mrf.mxu1 }
 0xd56   : > { %v3350_v21 = vadd.f32 %v3349_v36, %v3348_v35  ;;  %v2781_v17 = vadd.f32 %v2760_v53, %v4650_v24 }
 0xd58   : > { %v2763_v7 = vadd.f32 %v3350_v21, %v3195_v31  ;;  %2788 = vadd.xlane.f32.xlu0 %v2781_v17  ;;  %p3214_p8 = scmp.ne.s32.totalorder %s4849_s6, 1 }
 0xd5a   : > { %v3351_v15 = vpop.f32.mrf.mxu1  ;;  %v2782_v5 = vadd.f32 %v2763_v7, %v4652_v3 }
 0xd5c   : > { %v3352_v22 = vpop.f32.mrf.mxu1  ;;  %2790 = vadd.xlane.f32.xlu1 %v2782_v5 }
 0xd5d   : > { %v3353_v41 = vadd.f32 %v3352_v22, %v3351_v15 }
 0xd5e   : > { %v3354_v23 = vpop.f32.mrf.mxu1 }
 0xd5f   : > { %v2768_v25 = vadd.f32 %v3353_v41, %v3195_v31 }
 0xd60   : > { %v3355_v27 = vpop.f32.mrf.mxu1 }
 0xd61   : > { %v3356_v38 = vadd.f32 %v3355_v27, %v3354_v23  ;;  %v2783_v29 = vadd.f32 %v2768_v25, %v4659_v26 }
 0xd62   : > { %v3357_v37 = vpop.f32.mrf.mxu1 }
 0xd63   : > { %v2771_v45 = vadd.f32 %v3356_v38, %v3195_v31  ;;  %2792 = vadd.xlane.f32.xlu0 %v2783_v29 }
 0xd64   : > { %v3358_v43 = vpop.f32.mrf.mxu1 }
 0xd65   : > { %v3359_v20 = vadd.f32 %v3358_v43, %v3357_v37  ;;  %v2784_v24 = vadd.f32 %v2771_v45, %v4661_v63 }
 0xd66   : > { %v3360_v39 = vpop.f32.mrf.mxu1 }
 0xd67   : > { %v2776_v46 = vadd.f32 %v3359_v20, %v3195_v31  ;;  %2794 = vadd.xlane.f32.xlu1 %v2784_v24 }
 0xd68   : > { %v3361_v3 = vpop.f32.mrf.mxu1 }
 0xd69   : > { %v2785_v54 = vadd.f32 %v2776_v46, %v4667_v6 }
 0xd6b   : > { %2796 = vadd.xlane.f32.xlu0 %v2785_v54 }
 0xde1   : > { %v2789_v52 = vpop.xlane.xlu0 %2788 }
 0xde2   : > { %v2798_v56 = vmul.f32 0.0078125, %v2789_v52 }
 0xde4   : > { %v2803_v57 = vsub.f32 %v2781_v17, %v2798_v56 }
 0xde5   : > { %v2791_v0 = vpop.xlane.xlu1 %2790 }
 0xde6   : > { %v2799_v1 = vmul.f32 0.0078125, %v2791_v0  ;;  %v2808_v26 = vmul.f32 %v2803_v57, %v2803_v57 }
 0xde8   : > { %v2804_v4 = vsub.f32 %v2782_v5, %v2799_v1  ;;  %2813 = vadd.xlane.f32.xlu1 %v2808_v26 }
 0xdea   : > { %v2809_v2 = vmul.f32 %v2804_v4, %v2804_v4 }
 0xdec   : > { %2815 = vadd.xlane.f32.xlu0 %v2809_v2  ;;  %v2793_v28 = vpop.xlane.xlu0 %2792 }
 0xded   : > { %v2800_v32 = vmul.f32 0.0078125, %v2793_v28 }
 0xdef   : > { %v2805_v63 = vsub.f32 %v2783_v29, %v2800_v32 }
 0xdf0   : > { %v2795_v9 = vpop.xlane.xlu1 %2794 }
 0xdf1   : > { %v2801_v10 = vmul.f32 0.0078125, %v2795_v9  ;;  %v2810_v11 = vmul.f32 %v2805_v63, %v2805_v63 }
 0xdf3   : > { %v2806_v13 = vsub.f32 %v2784_v24, %v2801_v10  ;;  %2817 = vadd.xlane.f32.xlu1 %v2810_v11 }
 0xdf4   : > { %v2797_v6 = vpop.xlane.xlu0 %2796 }
 0xdf5   : > { %v2802_v34 = vmul.f32 0.0078125, %v2797_v6  ;;  %v2811_v12 = vmul.f32 %v2806_v13, %v2806_v13 }
 0xdf7   : > { %v2807_v51 = vsub.f32 %v2785_v54, %v2802_v34  ;;  %2819 = vadd.xlane.f32.xlu0 %v2811_v12 }
 0xdf9   : > { %v2812_v49 = vmul.f32 %v2807_v51, %v2807_v51 }
 0xdfb   : > { %2821 = vadd.xlane.f32.xlu1 %v2812_v49 }
 0xe71   : > { %v2814_v50 = vpop.xlane.xlu1 %2813 }
 0xe72   : > { %v2823_v58 = vmul.f32 0.0078125, %v2814_v50 }
 0xe74   : > { %v2828_v42 = vadd.f32 1e-05, %v2823_v58 }
 0xe75   : > { %v2816_v47 = vpop.xlane.xlu0 %2815 }
 0xe76   : > { %3838 = vrsqrt.f32 %v2828_v42  ;;  %v2824_v55 = vmul.f32 0.0078125, %v2816_v47 }
 0xe78   : > { %v2829_v16 = vadd.f32 1e-05, %v2824_v55 }
 0xe7a   : > { %3840 = vrsqrt.f32 %v2829_v16 }
 0xe7c   : > { %v2818_v44 = vpop.xlane.xlu1 %2817 }
 0xe7d   : > { %v2825_v62 = vmul.f32 0.0078125, %v2818_v44 }
 0xe7f   : > { %v2830_v33 = vadd.f32 1e-05, %v2825_v62 }
 0xe80   : > { %v2820_v59 = vpop.xlane.xlu0 %2819 }
 0xe81   : > { %3842 = vrsqrt.f32 %v2830_v33  ;;  %v2826_v18 = vmul.f32 0.0078125, %v2820_v59 }
 0xe83   : > { %v3839_v14 = vpop.eup %3838  ;;  %v2831_v30 = vadd.f32 1e-05, %v2826_v18 }
 0xe84   : > { %v2838_v60 = vmul.f32 %v3839_v14, %v2803_v57  ;;  %v2822_v61 = vpop.xlane.xlu1 %2821 }
 0xe85   : > { %3844 = vrsqrt.f32 %v2831_v30  ;;  %v2827_v31 = vmul.f32 0.0078125, %v2822_v61 }
 0xe86   : > { %v2849_v8 = vmul.f32 %v3212_v19, %v2838_v60 }
 0xe87   : > { %v3841_v40 = vpop.eup %3840  ;;  %v2832_v35 = vadd.f32 1e-05, %v2827_v31 }
 0xe88   : > { %v2860_v53 = vadd.f32 %v3213_v48, %v2849_v8  ;;  %v2839_v36 = vmul.f32 %v3841_v40, %v2804_v4 }
 0xe89   : > { %3846 = vrsqrt.f32 %v2832_v35 }
 0xe8a   : > { %2865 = vst [vmem:[#allocation2 + $0x8] sm:$0xff] %v2860_v53  ;;  %v2850_v21 = vmul.f32 %v3212_v19, %v2839_v36 }
 0xe8c   : > { %v2861_v17 = vadd.f32 %v3213_v48, %v2850_v21 }
 0xe8e   : > { %v3843_v7 = vpop.eup %3842  ;;  %2866 = vst [vmem:[#allocation2] sm:$0xff] %v2861_v17 }
 0xe8f   : > { %v2840_v15 = vmul.f32 %v3843_v7, %v2805_v63 }
 0xe91   : > { %v2851_v5 = vmul.f32 %v3212_v19, %v2840_v15 }
 0xe92   : > { %v3845_v22 = vpop.eup %3844 }
 0xe93   : > { %v2862_v41 = vadd.f32 %v3213_v48, %v2851_v5  ;;  %v2841_v23 = vmul.f32 %v3845_v22, %v2806_v13 }
 0xe95   : > { %2867 = vst [vmem:[#allocation2 + $0x20] sm:$0xff] %v2862_v41  ;;  %v2852_v25 = vmul.f32 %v3212_v19, %v2841_v23 }
 0xe96   : > { %v3847_v27 = vpop.eup %3846 }
 0xe97   : > { %v2863_v38 = vadd.f32 %v3213_v48, %v2852_v25  ;;  %v2842_v29 = vmul.f32 %v3847_v27, %v2807_v51 }
 0xe99   : > { %2868 = vst [vmem:[#allocation2 + $0x10] sm:$0xff] %v2863_v38  ;;  %v2853_v37 = vmul.f32 %v3212_v19, %v2842_v29  ;;  %2873 = sbr.rel (%p3214_p8) target bundleno = 3746 (0xea2), region = 80 }
 0xe9b   : > { %v2864_v45 = vadd.f32 %v3213_v48, %v2853_v37 }
 0xe9d   : > { %2869 = vst [vmem:[#allocation2 + $0x18] sm:$0xff] %v2864_v45 }
 0xe9e   : > { %v3241_v43 = vpack.c.bf16 %v2861_v17, %v2860_v53  ;;  %v3246_v20 = vpack.c.bf16 %v2863_v38, %v2862_v41  ;;  %v3229_v24 = vpack.c.bf16 %v2864_v45, %v2864_v45 }
 0xea0   : > { %3242 = vst [vmem:[%s4070_s8] sm:$0xff] %v3241_v43   ;;  %3249 = vst [vmem:[%s4070_s8 + $0x8] sm:$0xff] %v3246_v20  }
 0xea1   : > { %2899 = vst [vmem:[%s4070_s8 + $0x10] sm:$0xf] %v3229_v24 }
 0xea2 PF: > { %s4850_s15 = sld [smem:[#allocation6_spill]] }
 0xea3   : > { %s4851_s25 = sld [smem:[#allocation4_spill]] }
 0xea4   : > { %s4852_s26 = sld [smem:[#allocation5_spill]] }
 0xea5   : > { %s4853_s27 = sld [smem:[#allocation7_spill]] }
 0xea6   : > { %s4854_s28 = sld [smem:[#allocation8_spill]] }
 0xea8   : > { %s23_s29 = sadd.s32 1, %s4850_s15  }
 0xea9   : > { %p20_p9 = scmp.ge.s32.totalorder %s23_s29, 6  }
 0xeab   :  { %22 = sbr.rel (!%p20_p9) target bundleno = 10 (0xa), region = 146 }

</bundles_post_ra>
